<compile_context>
chip_gen: v6e
topology: v6e:2x2x1
jax: 0.10.0
libtpu: 0.0.40
codegen_flags: <defaults>
</compile_context>

<pallas_src>
import functools

import jax
import jax.numpy as jnp
from jax import lax
from jax.experimental import pallas as pl
from jax.experimental.pallas import tpu as pltpu

BN_EPS = 1e-5
LANE = 128                              # channel / lane padding quantum
TM_MAX = 512                            # max spatial rows per tile (multiple of 8)
VMEM_LIMIT_BYTES = 48 * 1024 * 1024     # below v7x's 64 MiB physical VMEM


# ---------------------------------------------------------------------------
# small helpers
# ---------------------------------------------------------------------------
def _round_up(x, m):
    return (x + m - 1) // m * m


def _choose_thw(hw):
    return min(TM_MAX, _round_up(hw, 8))


def _out_hw(size, k, stride, padding):
    return (size + 2 * padding - k) // stride + 1


def _pad_axis(x, size, axis):
    if x.shape[axis] == size:
        return x
    pads = [(0, 0)] * x.ndim
    pads[axis] = (0, size - x.shape[axis])
    return jnp.pad(x, pads)


def _pad_vec(v, c):
    return _pad_axis(v.reshape(1, -1).astype(jnp.float32), c, 1)


def _cparams(sem):
    return pltpu.CompilerParams(dimension_semantics=sem,
                                vmem_limit_bytes=VMEM_LIMIT_BYTES)


# BlockSpec helpers for the (image, spatial-tile) 2-D grid.
def _tile3(thw, c):                      # one (image, hw-tile) block
    return pl.BlockSpec((1, thw, c), lambda i, j: (i, j, 0))


def _img3(c):                            # per-image block, resident across j
    return pl.BlockSpec((1, 1, c), lambda i, j: (i, 0, 0))


def _res2(r, c):                         # fully resident 2-D block
    return pl.BlockSpec((r, c), lambda i, j: (0, 0))


def _bn_from_sums(s, ss, count, eps):
    inv = 1.0 / count
    mu = s * inv
    var = ss * inv - mu * mu
    return mu, lax.rsqrt(var + eps)


# ---------------------------------------------------------------------------
# Pass-1 kernels: im2col GEMM (bf16 x bf16 -> f32 MXU) + exact global BN
# sum / sum-of-squares + per-image row sums (SE squeeze), accumulated into
# grid-resident f32 outputs.
# ---------------------------------------------------------------------------
def _gemm_stats_kernel(p_ref, w_ref, acc_ref, sum_ref, ssq_ref, rsum_ref):
    acc = jnp.dot(p_ref[0], w_ref[...], preferred_element_type=jnp.float32)
    acc_ref[0] = acc

    @pl.when((pl.program_id(0) == 0) & (pl.program_id(1) == 0))
    def _():
        sum_ref[...] = jnp.zeros_like(sum_ref)
        ssq_ref[...] = jnp.zeros_like(ssq_ref)

    @pl.when(pl.program_id(1) == 0)
    def _():
        rsum_ref[...] = jnp.zeros_like(rsum_ref)

    csum = jnp.sum(acc, axis=0, keepdims=True)
    sum_ref[...] += csum
    ssq_ref[...] += jnp.sum(acc * acc, axis=0, keepdims=True)
    rsum_ref[0] += csum


def _gemm_stats_sc_kernel(p_ref, xc_ref, w_ref, wsc_ref,
                          acc_ref, sum_ref, ssq_ref,
                          sc_ref, sc_sum_ref, sc_ssq_ref):
    acc = jnp.dot(p_ref[0], w_ref[...], preferred_element_type=jnp.float32)
    # Fused 1x1 projection shortcut (its operand is the stride-sampled input).
    sc = jnp.dot(xc_ref[0], wsc_ref[...], preferred_element_type=jnp.float32)
    acc_ref[0] = acc
    sc_ref[0] = sc

    @pl.when((pl.program_id(0) == 0) & (pl.program_id(1) == 0))
    def _():
        sum_ref[...] = jnp.zeros_like(sum_ref)
        ssq_ref[...] = jnp.zeros_like(ssq_ref)
        sc_sum_ref[...] = jnp.zeros_like(sc_sum_ref)
        sc_ssq_ref[...] = jnp.zeros_like(sc_ssq_ref)

    sum_ref[...] += jnp.sum(acc, axis=0, keepdims=True)
    ssq_ref[...] += jnp.sum(acc * acc, axis=0, keepdims=True)
    sc_sum_ref[...] += jnp.sum(sc, axis=0, keepdims=True)
    sc_ssq_ref[...] += jnp.sum(sc * sc, axis=0, keepdims=True)


# ---------------------------------------------------------------------------
# Pass-2 / epilogue kernels (global batch stats, tiled over (image, hw-tile)).
# ---------------------------------------------------------------------------
def _bn_act_kernel(acc_ref, s_ref, ss_ref, g_ref, b_ref, o_ref,
                   *, count, eps, relu):
    mu, rstd = _bn_from_sums(s_ref[...], ss_ref[...], count, eps)
    y = (acc_ref[0] - mu) * rstd * g_ref[...] + b_ref[...]
    if relu:
        y = jnp.maximum(y, 0.0)
    o_ref[0] = y.astype(o_ref.dtype)


def _se_scale_kernel(rsum_ref, s_ref, ss_ref, g_ref, b_ref,
                     w1_ref, b1_ref, w2_ref, b2se_ref, scale_ref,
                     *, count, hw, eps):
    mu, rstd = _bn_from_sums(s_ref[...], ss_ref[...], count, eps)
    # BN is per-channel affine, so pooling commutes with it: the SE squeeze is
    # derived from the per-image row sums of the raw conv2 accumulator.
    pooled = (rsum_ref[0] * (1.0 / hw) - mu) * rstd * g_ref[...] + b_ref[...]
    z = jnp.maximum(
        jnp.dot(pooled, w1_ref[...], preferred_element_type=jnp.float32)
        + b1_ref[...], 0.0)
    s = jax.nn.sigmoid(
        jnp.dot(z, w2_ref[...], preferred_element_type=jnp.float32)
        + b2se_ref[...])
    scale_ref[0] = s


def _se_res_kernel(acc_ref, s_ref, ss_ref, g_ref, b_ref, scale_ref, res_ref,
                   o_ref, *, count, eps):
    mu, rstd = _bn_from_sums(s_ref[...], ss_ref[...], count, eps)
    y = (acc_ref[0] - mu) * rstd * g_ref[...] + b_ref[...]
    o_ref[0] = jnp.maximum(y * scale_ref[0] + res_ref[0], 0.0).astype(o_ref.dtype)


def _se_res_proj_kernel(acc_ref, s_ref, ss_ref, g_ref, b_ref, scale_ref,
                        sc_ref, scs_ref, scss_ref, gsc_ref, bsc_ref,
                        o_ref, *, count, eps):
    mu, rstd = _bn_from_sums(s_ref[...], ss_ref[...], count, eps)
    y = (acc_ref[0] - mu) * rstd * g_ref[...] + b_ref[...]
    smu, srstd = _bn_from_sums(scs_ref[...], scss_ref[...], count, eps)
    r = (sc_ref[0] - smu) * srstd * gsc_ref[...] + bsc_ref[...]
    o_ref[0] = jnp.maximum(y * scale_ref[0] + r, 0.0).astype(o_ref.dtype)


def _maxpool_kernel(p_ref, o_ref, *, taps, c):
    x = p_ref[0]
    out = x[:, 0:c]
    for t in range(1, taps):
        out = jnp.maximum(out, x[:, t * c:(t + 1) * c])
    o_ref[0] = out


def _avgpool_fc_kernel(y_ref, w_ref, b_ref, o_ref, *, hw):
    pooled = jnp.sum(y_ref[0], axis=0, keepdims=True) * (1.0 / hw)
    o_ref[0] = (jnp.dot(pooled, w_ref[...], preferred_element_type=jnp.float32)
                + b_ref[...])


# ---------------------------------------------------------------------------
# pallas_call wrappers
# ---------------------------------------------------------------------------
def _conv_gemm_stats(patches, w, *, thw):
    n, hwp, k = patches.shape
    c = w.shape[1]
    return pl.pallas_call(
        _gemm_stats_kernel,
        out_shape=(jax.ShapeDtypeStruct((n, hwp, c), jnp.float32),
                   jax.ShapeDtypeStruct((1, c), jnp.float32),
                   jax.ShapeDtypeStruct((1, c), jnp.float32),
                   jax.ShapeDtypeStruct((n, 1, c), jnp.float32)),
        grid=(n, hwp // thw),
        in_specs=[_tile3(thw, k), pl.BlockSpec((k, c), lambda i, j: (0, 0))],
        out_specs=(_tile3(thw, c), _res2(1, c), _res2(1, c), _img3(c)),
        compiler_params=_cparams(("arbitrary", "arbitrary")),
    )(patches, w)


def _conv_gemm_stats_sc(patches, xc, w, wsc, *, thw):
    n, hwp, k = patches.shape
    cin = xc.shape[2]
    c = w.shape[1]
    return pl.pallas_call(
        _gemm_stats_sc_kernel,
        out_shape=(jax.ShapeDtypeStruct((n, hwp, c), jnp.float32),
                   jax.ShapeDtypeStruct((1, c), jnp.float32),
                   jax.ShapeDtypeStruct((1, c), jnp.float32),
                   jax.ShapeDtypeStruct((n, hwp, c), jnp.float32),
                   jax.ShapeDtypeStruct((1, c), jnp.float32),
                   jax.ShapeDtypeStruct((1, c), jnp.float32)),
        grid=(n, hwp // thw),
        in_specs=[_tile3(thw, k), _tile3(thw, cin),
                  pl.BlockSpec((k, c), lambda i, j: (0, 0)),
                  pl.BlockSpec((cin, c), lambda i, j: (0, 0))],
        out_specs=(_tile3(thw, c), _res2(1, c), _res2(1, c),
                   _tile3(thw, c), _res2(1, c), _res2(1, c)),
        compiler_params=_cparams(("arbitrary", "arbitrary")),
    )(patches, xc, w, wsc)


def _bn_act(acc, s, ss, g, b, *, count, thw, relu, out_dtype):
    n, hwp, c = acc.shape
    kern = functools.partial(_bn_act_kernel, count=float(count), eps=BN_EPS,
                             relu=relu)
    return pl.pallas_call(
        kern,
        out_shape=jax.ShapeDtypeStruct((n, hwp, c), out_dtype),
        grid=(n, hwp // thw),
        in_specs=[_tile3(thw, c), _res2(1, c), _res2(1, c), _res2(1, c),
                  _res2(1, c)],
        out_specs=_tile3(thw, c),
        compiler_params=_cparams(("parallel", "parallel")),
    )(acc, s, ss, g, b)


def _se_scale(rsum, s, ss, g, b, w1, b1, w2, b2, *, count, hw):
    n, _, c = rsum.shape
    cm = w1.shape[1]
    kern = functools.partial(_se_scale_kernel, count=float(count),
                             hw=float(hw), eps=BN_EPS)
    return pl.pallas_call(
        kern,
        out_shape=jax.ShapeDtypeStruct((n, 1, c), jnp.float32),
        grid=(n,),
        in_specs=[pl.BlockSpec((1, 1, c), lambda i: (i, 0, 0)),
                  pl.BlockSpec((1, c), lambda i: (0, 0)),
                  pl.BlockSpec((1, c), lambda i: (0, 0)),
                  pl.BlockSpec((1, c), lambda i: (0, 0)),
                  pl.BlockSpec((1, c), lambda i: (0, 0)),
                  pl.BlockSpec((c, cm), lambda i: (0, 0)),
                  pl.BlockSpec((1, cm), lambda i: (0, 0)),
                  pl.BlockSpec((cm, c), lambda i: (0, 0)),
                  pl.BlockSpec((1, c), lambda i: (0, 0))],
        out_specs=pl.BlockSpec((1, 1, c), lambda i: (i, 0, 0)),
        compiler_params=_cparams(("parallel",)),
    )(rsum, s, ss, g, b, w1, b1, w2, b2)


def _se_residual(acc2, s2, ss2, g2, b2, scale, res, *, count, thw):
    n, hwp, c = acc2.shape
    kern = functools.partial(_se_res_kernel, count=float(count), eps=BN_EPS)
    return pl.pallas_call(
        kern,
        out_shape=jax.ShapeDtypeStruct((n, hwp, c), jnp.float32),
        grid=(n, hwp // thw),
        in_specs=[_tile3(thw, c), _res2(1, c), _res2(1, c), _res2(1, c),
                  _res2(1, c), _img3(c), _tile3(thw, c)],
        out_specs=_tile3(thw, c),
        compiler_params=_cparams(("parallel", "parallel")),
    )(acc2, s2, ss2, g2, b2, scale, res)


def _se_residual_proj(acc2, s2, ss2, g2, b2, scale, sc_acc, sc_s, sc_ss, gsc,
                      bsc, *, count, thw):
    n, hwp, c = acc2.shape
    kern = functools.partial(_se_res_proj_kernel, count=float(count), eps=BN_EPS)
    return pl.pallas_call(
        kern,
        out_shape=jax.ShapeDtypeStruct((n, hwp, c), jnp.float32),
        grid=(n, hwp // thw),
        in_specs=[_tile3(thw, c), _res2(1, c), _res2(1, c), _res2(1, c),
                  _res2(1, c), _img3(c), _tile3(thw, c), _res2(1, c),
                  _res2(1, c), _res2(1, c), _res2(1, c)],
        out_specs=_tile3(thw, c),
        compiler_params=_cparams(("parallel", "parallel")),
    )(acc2, s2, ss2, g2, b2, scale, sc_acc, sc_s, sc_ss, gsc, bsc)


def _maxpool(patches, *, thw, taps, c):
    n, hwp, k = patches.shape
    kern = functools.partial(_maxpool_kernel, taps=taps, c=c)
    return pl.pallas_call(
        kern,
        out_shape=jax.ShapeDtypeStruct((n, hwp, c), jnp.float32),
        grid=(n, hwp // thw),
        in_specs=[_tile3(thw, k)],
        out_specs=_tile3(thw, c),
        compiler_params=_cparams(("parallel", "parallel")),
    )(patches)


def _avgpool_fc(y, w, b, *, hw):
    n, hw_full, c = y.shape
    cls = w.shape[1]
    kern = functools.partial(_avgpool_fc_kernel, hw=float(hw))
    return pl.pallas_call(
        kern,
        out_shape=jax.ShapeDtypeStruct((n, 1, cls), jnp.float32),
        grid=(n,),
        in_specs=[pl.BlockSpec((1, hw_full, c), lambda i: (i, 0, 0)),
                  pl.BlockSpec((c, cls), lambda i: (0, 0)),
                  pl.BlockSpec((1, cls), lambda i: (0, 0))],
        out_specs=pl.BlockSpec((1, 1, cls), lambda i: (i, 0, 0)),
        compiler_params=_cparams(("parallel",)),
    )(y, w, b)


# ---------------------------------------------------------------------------
# Plain-JAX glue: im2col tap gather, weight / param reformatting.
# TODO(synk): patch formation is wrapper-side XLA; in-kernel haloed-tile
# shifted-slice accumulation would remove the ~9x patch HBM traffic.
# ---------------------------------------------------------------------------
def _im2col(x_nhwc, k, stride, padding):
    n, h, w, c = x_nhwc.shape
    ho = _out_hw(h, k, stride, padding)
    wo = _out_hw(w, k, stride, padding)
    xp = jnp.pad(x_nhwc, ((0, 0), (padding, padding), (padding, padding), (0, 0)))
    taps = [xp[:, kh:kh + stride * ho:stride, kw:kw + stride * wo:stride, :]
            for kh in range(k) for kw in range(k)]
    patches = jnp.concatenate(taps, axis=-1)          # (n, ho, wo, k*k*c)
    return patches.reshape(n, ho * wo, k * k * c)


def _prep_patches(x_nhwc, k, stride, padding, hwp):
    p = _im2col(x_nhwc, k, stride, padding)
    p = _pad_axis(p, _round_up(p.shape[-1], LANE), -1)   # lane-align K
    p = _pad_axis(p, hwp, 1)                             # tile-align rows
    return p.astype(jnp.bfloat16)


def _prep_weight(w_oihw, cin_used, cout_p):
    # (Cout, Cin, KH, KW) -> (KH*KW*cin_used (rounded to 128), Cout_p), bf16,
    # tap-major / channel-minor (matches patch column order).
    co, ci, kh, kw = w_oihw.shape
    w = jnp.transpose(w_oihw, (2, 3, 1, 0))              # (kh, kw, ci, co)
    w = jnp.pad(w, ((0, 0), (0, 0), (0, cin_used - ci), (0, cout_p - co)))
    w = w.reshape(kh * kw * cin_used, cout_p)
    w = _pad_axis(w, _round_up(w.shape[0], LANE), 0)
    return w.astype(jnp.bfloat16)


# ---------------------------------------------------------------------------
# Network pieces
# ---------------------------------------------------------------------------
def _stem_forward(x_nhwc, p, *, out_channels):
    n, h, w, cin = x_nhwc.shape
    coutp = _round_up(out_channels, LANE)
    ho = _out_hw(h, 7, 2, 3)
    wo = _out_hw(w, 7, 2, 3)
    hw = ho * wo
    thw = _choose_thw(hw)
    hwp = _round_up(hw, thw)

    patches = _prep_patches(x_nhwc, 7, 2, 3, hwp)
    wst = _prep_weight(p["w"], cin, coutp)
    g = _pad_vec(p["g"], coutp)
    b = _pad_vec(p["b"], coutp)

    acc, s, ss, _ = _conv_gemm_stats(patches, wst, thw=thw)
    y = _bn_act(acc, s, ss, g, b, count=n * hw, thw=thw, relu=True,
                out_dtype=jnp.float32)
    return y[:, :hw, :].reshape(n, ho, wo, coutp)


def _maxpool_forward(x_nhwc_p):
    # 3x3 / stride 2 / pad 1.  Input is post-ReLU (>= 0), so zero padding is
    # equivalent to -inf padding and keeps padded channel lanes exactly 0.
    n, h, w, cp = x_nhwc_p.shape
    ho = _out_hw(h, 3, 2, 1)
    wo = _out_hw(w, 3, 2, 1)
    hw = ho * wo
    thw = _choose_thw(hw)
    hwp = _round_up(hw, thw)
    patches = _pad_axis(_im2col(x_nhwc_p, 3, 2, 1), hwp, 1)   # f32, 9*cp lanes
    y = _maxpool(patches, thw=thw, taps=9, c=cp)
    return y[:, :hw, :].reshape(n, ho, wo, cp)


def _se_block_forward(x, p, *, stride, in_channels, out_channels,
                      reduction_ratio):
    """x: (n, h, w, cin_pad) f32, channels zero-padded to 128 lanes.
    Returns (n, ho, wo, cout_pad) f32."""
    n, h, w, cinp = x.shape
    coutp = _round_up(out_channels, LANE)
    projection = (stride != 1) or (in_channels != out_channels)

    ho = _out_hw(h, 3, stride, 1)
    wo = _out_hw(w, 3, stride, 1)
    hw = ho * wo
    thw = _choose_thw(hw)
    hwp = _round_up(hw, thw)
    count = n * hw

    # ---- conv1 (3x3 / stride / pad 1) [+ fused 1x1 projection shortcut] ----
    p1 = _prep_patches(x, 3, stride, 1, hwp)
    w1 = _prep_weight(p["w1"], cinp, coutp)
    g1 = _pad_vec(p["g1"], coutp)
    b1 = _pad_vec(p["b1"], coutp)

    if projection:
        xc = _pad_axis(x[:, ::stride, ::stride, :].reshape(n, hw, cinp),
                       hwp, 1).astype(jnp.bfloat16)
        wsc = _prep_weight(p["w_sc"], cinp, coutp)
        acc1, s1, ss1, sc_acc, sc_s, sc_ss = _conv_gemm_stats_sc(
            p1, xc, w1, wsc, thw=thw)
    else:
        acc1, s1, ss1, _ = _conv_gemm_stats(p1, w1, thw=thw)

    # bn1 + relu, stored bf16 (only ever consumed as an MXU operand).
    h1 = _bn_act(acc1, s1, ss1, g1, b1, count=count, thw=thw, relu=True,
                 out_dtype=jnp.bfloat16)

    # ---- conv2 (3x3 / 1 / pad 1) + stats + per-image SE squeeze sums --------
    h1_img = h1[:, :hw, :].reshape(n, ho, wo, coutp)
    p2 = _prep_patches(h1_img, 3, 1, 1, hwp)
    w2 = _prep_weight(p["w2"], coutp, coutp)
    g2 = _pad_vec(p["g2"], coutp)
    b2 = _pad_vec(p["b2"], coutp)
    acc2, s2, ss2, rsum2 = _conv_gemm_stats(p2, w2, thw=thw)

    # ---- SE excitation (per-image) ------------------------------------------
    cmid = max(1, out_channels // reduction_ratio)
    w_se1 = jnp.pad(p["se_w1"].T.astype(jnp.float32),
                    ((0, coutp - out_channels), (0, LANE - cmid)))
    b_se1 = _pad_vec(p["se_b1"], LANE)
    w_se2 = jnp.pad(p["se_w2"].T.astype(jnp.float32),
                    ((0, LANE - cmid), (0, coutp - out_channels)))
    b_se2 = _pad_vec(p["se_b2"], coutp)
    scale = _se_scale(rsum2, s2, ss2, g2, b2, w_se1, b_se1, w_se2, b_se2,
                      count=count, hw=hw)

    # ---- bn2 + SE scale + shortcut + relu (single epilogue pass) ------------
    if projection:
        gsc = _pad_vec(p["g_sc"], coutp)
        bsc = _pad_vec(p["b_sc"], coutp)
        out = _se_residual_proj(acc2, s2, ss2, g2, b2, scale,
                                sc_acc, sc_s, sc_ss, gsc, bsc,
                                count=count, thw=thw)
    else:
        res = _pad_axis(x.reshape(n, hw, cinp), hwp, 1)   # identity, f32
        out = _se_residual(acc2, s2, ss2, g2, b2, scale, res,
                           count=count, thw=thw)

    return out[:, :hw, :].reshape(n, ho, wo, coutp)


def _head_forward(x_nhwc_p, wfc, bfc, num_classes):
    n, h, w, cp = x_nhwc_p.shape
    hw = h * w
    clsp = _round_up(num_classes, LANE)
    wk = _pad_axis(_pad_axis(wfc.T.astype(jnp.float32), cp, 0), clsp, 1)
    bk = _pad_vec(bfc, clsp)
    logits = _avgpool_fc(x_nhwc_p.reshape(n, hw, cp), wk, bk, hw=hw)
    return logits[:, 0, :num_classes]


def custom_se_resnet_forward(x_nchw, params, cfg):
    """Full CustomSEResNet forward.  Input NCHW f32, output (N, num_classes)."""
    x = jnp.transpose(x_nchw, (0, 2, 3, 1)).astype(jnp.float32)   # NCHW -> NHWC
    h = _stem_forward(x, params["stem"], out_channels=cfg["stem_channels"])
    h = _maxpool_forward(h)
    for bp, (cin, cout, stride) in zip(params["blocks"], cfg["blocks"]):
        h = _se_block_forward(h, bp, stride=stride, in_channels=cin,
                              out_channels=cout,
                              reduction_ratio=cfg["reduction_ratio"])
    return _head_forward(h, params["fc_w"], params["fc_b"], cfg["num_classes"])


# ---------------------------------------------------------------------------
# Pure-JAX reference (lax.conv / reduce_window), precision-matched: bf16 conv
# operands with f32 accumulation, train-mode (biased) batch-norm statistics.
# ---------------------------------------------------------------------------
def reference_forward(x, params, cfg):
    def conv(v, w, s, p):
        return lax.conv_general_dilated(
            v.astype(jnp.bfloat16), w.astype(jnp.bfloat16), (s, s),
            [(p, p), (p, p)], dimension_numbers=("NCHW", "OIHW", "NCHW"),
            preferred_element_type=jnp.float32)

    def bn(v, g, b):
        mu = v.mean(axis=(0, 2, 3), keepdims=True)
        var = ((v - mu) ** 2).mean(axis=(0, 2, 3), keepdims=True)
        return (v - mu) * lax.rsqrt(var + BN_EPS) * g.reshape(1, -1, 1, 1) \
            + b.reshape(1, -1, 1, 1)

    st = params["stem"]
    h = jax.nn.relu(bn(conv(x, st["w"], 2, 3), st["g"], st["b"]))
    h = lax.reduce_window(h, -jnp.inf, lax.max, (1, 1, 3, 3), (1, 1, 2, 2),
                          ((0, 0), (0, 0), (1, 1), (1, 1)))
    for bp, (cin, cout, stride) in zip(params["blocks"], cfg["blocks"]):
        identity = h
        o = jax.nn.relu(bn(conv(h, bp["w1"], stride, 1), bp["g1"], bp["b1"]))
        o = bn(conv(o, bp["w2"], 1, 1), bp["g2"], bp["b2"])
        pooled = o.mean(axis=(2, 3))                       # (n, c)
        z = jax.nn.relu(pooled @ bp["se_w1"].T + bp["se_b1"])
        s = jax.nn.sigmoid(z @ bp["se_w2"].T + bp["se_b2"])
        o = o * s[:, :, None, None]
        if stride != 1 or cin != cout:
            identity = bn(conv(h, bp["w_sc"], stride, 0), bp["g_sc"], bp["b_sc"])
        h = jax.nn.relu(o + identity)
    pooled = h.mean(axis=(2, 3))
    return pooled @ params["fc_w"].T + params["fc_b"]


# ---------------------------------------------------------------------------
if __name__ == "__main__":
    root = jax.random.PRNGKey(0)
    k_x, k_p = jax.random.split(root)

    def conv_w(k, co, ci, kh, kw):
        return 0.05 * jax.random.normal(k, (co, ci, kh, kw), jnp.float32)

    def bn_gb(k, c):
        k1, k2 = jax.random.split(k)
        return (1.0 + 0.1 * jax.random.normal(k1, (c,), jnp.float32),
                0.1 * jax.random.normal(k2, (c,), jnp.float32))

    def make_block(k, cin, cout, stride, rr):
        cmid = max(1, cout // rr)
        ks = jax.random.split(k, 10)
        g1, b1 = bn_gb(ks[1], cout)
        g2, b2 = bn_gb(ks[3], cout)
        p = {"w1": conv_w(ks[0], cout, cin, 3, 3), "g1": g1, "b1": b1,
             "w2": conv_w(ks[2], cout, cout, 3, 3), "g2": g2, "b2": b2,
             "se_w1": 0.2 * jax.random.normal(ks[4], (cmid, cout), jnp.float32),
             "se_b1": 0.1 * jax.random.normal(ks[5], (cmid,), jnp.float32),
             "se_w2": 0.2 * jax.random.normal(ks[6], (cout, cmid), jnp.float32),
             "se_b2": 0.1 * jax.random.normal(ks[7], (cout,), jnp.float32)}
        if stride != 1 or cin != cout:
            gsc, bsc = bn_gb(ks[9], cout)
            p["w_sc"] = conv_w(ks[8], cout, cin, 1, 1)
            p["g_sc"] = gsc
            p["b_sc"] = bsc
        return p

    # CustomSEResNet(block=SEBasicBlock, layers=[1, 1], num_classes=10,
    #                reduction_ratio=16, input_channels=3)  -- small instance.
    layers = (1, 1)
    num_classes = 10
    reduction_ratio = 16
    input_channels = 3

    block_cfgs = []
    in_ch = 64
    for i, nblocks in enumerate(layers):
        out_ch = 64 * 2 ** i
        for bidx in range(nblocks):
            stride = (1 if i == 0 else 2) if bidx == 0 else 1
            block_cfgs.append((in_ch, out_ch, stride))
            in_ch = out_ch
    block_cfgs = tuple(block_cfgs)

    keys = jax.random.split(k_p, len(block_cfgs) + 4)
    g_st, b_st = bn_gb(keys[1], 64)
    params = {
        "stem": {"w": conv_w(keys[0], 64, input_channels, 7, 7),
                 "g": g_st, "b": b_st},
        "blocks": [make_block(keys[2 + i], ci, co, st, reduction_ratio)
                   for i, (ci, co, st) in enumerate(block_cfgs)],
        "fc_w": 0.1 * jax.random.normal(keys[-2], (num_classes, in_ch), jnp.float32),
        "fc_b": 0.1 * jax.random.normal(keys[-1], (num_classes,), jnp.float32),
    }

    cfg = {"blocks": block_cfgs, "reduction_ratio": reduction_ratio,
           "num_classes": num_classes, "stem_channels": 64}

    x = jax.random.normal(k_x, (2, input_channels, 32, 32), jnp.float32)

    fwd = jax.jit(lambda xx, pp: custom_se_resnet_forward(xx, pp, cfg))
    out = jax.block_until_ready(fwd(x, params))
    ref = reference_forward(x, params, cfg)

    assert out.shape == (2, num_classes), out.shape
    err = float(jnp.max(jnp.abs(out - ref)))
    assert err < 3e-2, f"max abs err vs reference: {err}"

    print("KERNEL_OK")
</pallas_src>

<mosaic_0001>
module attributes {stable_mosaic.version = 11 : i64} {
  func.func @_gemm_stats_kernel(%arg0: i32, %arg1: i32, %arg2: memref<1x256x256xbf16, #tpu.memory_space<vmem>>, %arg3: memref<256x128xbf16, #tpu.memory_space<vmem>>, %arg4: memref<1x256x128xf32, #tpu.memory_space<vmem>>, %arg5: memref<1x128xf32, #tpu.memory_space<vmem>>, %arg6: memref<1x128xf32, #tpu.memory_space<vmem>>, %arg7: memref<1x1x128xf32, #tpu.memory_space<vmem>>) attributes {dimension_semantics = [#tpu.dimension_semantics<arbitrary>, #tpu.dimension_semantics<arbitrary>], iteration_bounds = array<i64: 2, 1>, scalar_prefetch = 0 : i64, scratch_operands = 0 : i64, tpu.core_type = #tpu.core_type<tc>, window_params = [{transform_indices = @transform_0, window_bounds = array<i64: 1, 256, 256>}, {pipeline_mode = #tpu.pipeline_mode<synchronous>, transform_indices = @transform_1, window_bounds = array<i64: 256, 128>}, {transform_indices = @transform_2, window_bounds = array<i64: 1, 256, 128>}, {pipeline_mode = #tpu.pipeline_mode<synchronous>, transform_indices = @transform_3, window_bounds = array<i64: 1, 128>}, {pipeline_mode = #tpu.pipeline_mode<synchronous>, transform_indices = @transform_4, window_bounds = array<i64: 1, 128>}, {transform_indices = @transform_5, window_bounds = array<i64: 1, 1, 128>}]} {
    %c0 = arith.constant 0 : index
    %c0_0 = arith.constant 0 : index
    %c0_1 = arith.constant 0 : index
    %0 = vector.load %arg2[%c0, %c0_0, %c0_1] : memref<1x256x256xbf16, #tpu.memory_space<vmem>>, vector<1x256x256xbf16>
    %1 = vector.shape_cast %0 : vector<1x256x256xbf16> to vector<256x256xbf16>
    %c0_2 = arith.constant 0 : index
    %c0_3 = arith.constant 0 : index
    %2 = vector.load %arg3[%c0_2, %c0_3] : memref<256x128xbf16, #tpu.memory_space<vmem>>, vector<256x128xbf16>
    %cst = arith.constant dense<0.000000e+00> : vector<256x128xf32>
    %3 = tpu.matmul %1, %2, %cst {dimension_numbers = #tpu.dot_dimension_numbers<[1], [0], [0], [1], [0, 0, 1, 1], [], []>} : vector<256x256xbf16>, vector<256x128xbf16>, vector<256x128xf32> -> vector<256x128xf32>
    %c0_4 = arith.constant 0 : index
    %c0_5 = arith.constant 0 : index
    %c0_6 = arith.constant 0 : index
    %4 = vector.load %arg4[%c0_4, %c0_5, %c0_6] : memref<1x256x128xf32, #tpu.memory_space<vmem>>, vector<1x256x128xf32>
    %5 = vector.shape_cast %4 : vector<1x256x128xf32> to vector<256x128xf32>
    %6 = vector.shape_cast %3 : vector<256x128xf32> to vector<1x256x128xf32>
    tpu.vector_store %arg4[%c0_4, %c0_5, %c0_6], %6 {strides = array<i32>} : memref<1x256x128xf32, #tpu.memory_space<vmem>>, vector<1x256x128xf32>,
    %c0_i32 = arith.constant 0 : i32
    %7 = arith.cmpi eq, %arg0, %c0_i32 : i32
    %c0_i32_7 = arith.constant 0 : i32
    %8 = arith.cmpi eq, %arg1, %c0_i32_7 : i32
    %9 = arith.andi %7, %8 : i1
    %10 = arith.extui %9 : i1 to i32
    %c0_i32_8 = arith.constant 0 : i32
    %11 = arith.cmpi ne, %10, %c0_i32_8 : i32
    scf.if %11 {
      %cst_27 = arith.constant 0.000000e+00 : f32
      %32 = vector.broadcast %cst_27 : f32 to vector<1x128xf32>
      %c0_28 = arith.constant 0 : index
      %c0_29 = arith.constant 0 : index
      %33 = vector.load %arg5[%c0_28, %c0_29] : memref<1x128xf32, #tpu.memory_space<vmem>>, vector<1x128xf32>
      tpu.vector_store %arg5[%c0_28, %c0_29], %32 {strides = array<i32>} : memref<1x128xf32, #tpu.memory_space<vmem>>, vector<1x128xf32>,
      %cst_30 = arith.constant 0.000000e+00 : f32
      %34 = vector.broadcast %cst_30 : f32 to vector<1x128xf32>
      %c0_31 = arith.constant 0 : index
      %c0_32 = arith.constant 0 : index
      %35 = vector.load %arg6[%c0_31, %c0_32] : memref<1x128xf32, #tpu.memory_space<vmem>>, vector<1x128xf32>
      tpu.vector_store %arg6[%c0_31, %c0_32], %34 {strides = array<i32>} : memref<1x128xf32, #tpu.memory_space<vmem>>, vector<1x128xf32>,
    } else {
    }
    %c0_i32_9 = arith.constant 0 : i32
    %12 = arith.cmpi eq, %arg1, %c0_i32_9 : i32
    %13 = arith.extui %12 : i1 to i32
    %c0_i32_10 = arith.constant 0 : i32
    %14 = arith.cmpi ne, %13, %c0_i32_10 : i32
    scf.if %14 {
      %cst_27 = arith.constant 0.000000e+00 : f32
      %32 = vector.broadcast %cst_27 : f32 to vector<1x1x128xf32>
      %c0_28 = arith.constant 0 : index
      %c0_29 = arith.constant 0 : index
      %c0_30 = arith.constant 0 : index
      %33 = vector.load %arg7[%c0_28, %c0_29, %c0_30] : memref<1x1x128xf32, #tpu.memory_space<vmem>>, vector<1x1x128xf32>
      tpu.vector_store %arg7[%c0_28, %c0_29, %c0_30], %32 {strides = array<i32>} : memref<1x1x128xf32, #tpu.memory_space<vmem>>, vector<1x1x128xf32>,
    } else {
    }
    %cst_11 = arith.constant dense<0.000000e+00> : vector<128xf32>
    %15 = vector.multi_reduction <add>, %3, %cst_11 [0] : vector<256x128xf32> to vector<128xf32>
    %16 = vector.shape_cast %15 : vector<128xf32> to vector<1x128xf32>
    %c0_12 = arith.constant 0 : index
    %c0_13 = arith.constant 0 : index
    %17 = vector.load %arg5[%c0_12, %c0_13] : memref<1x128xf32, #tpu.memory_space<vmem>>, vector<1x128xf32>
    %18 = arith.addf %17, %16 : vector<1x128xf32>
    %c0_14 = arith.constant 0 : index
    %c0_15 = arith.constant 0 : index
    %19 = vector.load %arg5[%c0_14, %c0_15] : memref<1x128xf32, #tpu.memory_space<vmem>>, vector<1x128xf32>
    tpu.vector_store %arg5[%c0_14, %c0_15], %18 {strides = array<i32>} : memref<1x128xf32, #tpu.memory_space<vmem>>, vector<1x128xf32>,
    %c0_16 = arith.constant 0 : index
    %c0_17 = arith.constant 0 : index
    %20 = vector.load %arg6[%c0_16, %c0_17] : memref<1x128xf32, #tpu.memory_space<vmem>>, vector<1x128xf32>
    %21 = arith.mulf %3, %3 : vector<256x128xf32>
    %cst_18 = arith.constant dense<0.000000e+00> : vector<128xf32>
    %22 = vector.multi_reduction <add>, %21, %cst_18 [0] : vector<256x128xf32> to vector<128xf32>
    %23 = vector.shape_cast %22 : vector<128xf32> to vector<1x128xf32>
    %24 = arith.addf %20, %23 : vector<1x128xf32>
    %c0_19 = arith.constant 0 : index
    %c0_20 = arith.constant 0 : index
    %25 = vector.load %arg6[%c0_19, %c0_20] : memref<1x128xf32, #tpu.memory_space<vmem>>, vector<1x128xf32>
    tpu.vector_store %arg6[%c0_19, %c0_20], %24 {strides = array<i32>} : memref<1x128xf32, #tpu.memory_space<vmem>>, vector<1x128xf32>,
    %c0_21 = arith.constant 0 : index
    %c0_22 = arith.constant 0 : index
    %c0_23 = arith.constant 0 : index
    %26 = vector.load %arg7[%c0_21, %c0_22, %c0_23] : memref<1x1x128xf32, #tpu.memory_space<vmem>>, vector<1x1x128xf32>
    %27 = vector.shape_cast %26 : vector<1x1x128xf32> to vector<1x128xf32>
    %28 = arith.addf %27, %16 : vector<1x128xf32>
    %c0_24 = arith.constant 0 : index
    %c0_25 = arith.constant 0 : index
    %c0_26 = arith.constant 0 : index
    %29 = vector.load %arg7[%c0_24, %c0_25, %c0_26] : memref<1x1x128xf32, #tpu.memory_space<vmem>>, vector<1x1x128xf32>
    %30 = vector.shape_cast %29 : vector<1x1x128xf32> to vector<1x128xf32>
    %31 = vector.shape_cast %28 : vector<1x128xf32> to vector<1x1x128xf32>
    tpu.vector_store %arg7[%c0_24, %c0_25, %c0_26], %31 {strides = array<i32>} : memref<1x1x128xf32, #tpu.memory_space<vmem>>, vector<1x1x128xf32>,
    return
  }
  func.func @transform_0(%arg0: i32, %arg1: i32) -> (i32, i32, i32) {
    %c0_i32 = arith.constant 0 : i32
    %c0_i32_0 = arith.constant 0 : i32
    return %arg0, %arg1, %c0_i32 : i32, i32, i32
  }
  func.func @transform_1(%arg0: i32, %arg1: i32) -> (i32, i32) {
    %c0_i32 = arith.constant 0 : i32
    %c0_i32_0 = arith.constant 0 : i32
    %c0_i32_1 = arith.constant 0 : i32
    return %c0_i32, %c0_i32_0 : i32, i32
  }
  func.func @transform_2(%arg0: i32, %arg1: i32) -> (i32, i32, i32) {
    %c0_i32 = arith.constant 0 : i32
    %c0_i32_0 = arith.constant 0 : i32
    return %arg0, %arg1, %c0_i32 : i32, i32, i32
  }
  func.func @transform_3(%arg0: i32, %arg1: i32) -> (i32, i32) {
    %c0_i32 = arith.constant 0 : i32
    %c0_i32_0 = arith.constant 0 : i32
    %c0_i32_1 = arith.constant 0 : i32
    return %c0_i32, %c0_i32_0 : i32, i32
  }
  func.func @transform_4(%arg0: i32, %arg1: i32) -> (i32, i32) {
    %c0_i32 = arith.constant 0 : i32
    %c0_i32_0 = arith.constant 0 : i32
    %c0_i32_1 = arith.constant 0 : i32
    return %c0_i32, %c0_i32_0 : i32, i32
  }
  func.func @transform_5(%arg0: i32, %arg1: i32) -> (i32, i32, i32) {
    %c0_i32 = arith.constant 0 : i32
    %c0_i32_0 = arith.constant 0 : i32
    %c0_i32_1 = arith.constant 0 : i32
    return %arg0, %c0_i32, %c0_i32_0 : i32, i32, i32
  }
}

module attributes {stable_mosaic.version = 11 : i64} {
  func.func @_bn_act_kernel(%arg0: i32, %arg1: i32, %arg2: memref<1x256x128xf32, #tpu.memory_space<vmem>>, %arg3: memref<1x128xf32, #tpu.memory_space<vmem>>, %arg4: memref<1x128xf32, #tpu.memory_space<vmem>>, %arg5: memref<1x128xf32, #tpu.memory_space<vmem>>, %arg6: memref<1x128xf32, #tpu.memory_space<vmem>>, %arg7: memref<1x256x128xf32, #tpu.memory_space<vmem>>) attributes {dimension_semantics = [#tpu.dimension_semantics<parallel>, #tpu.dimension_semantics<parallel>], iteration_bounds = array<i64: 2, 1>, scalar_prefetch = 0 : i64, scratch_operands = 0 : i64, tpu.core_type = #tpu.core_type<tc>, window_params = [{transform_indices = @transform_0, window_bounds = array<i64: 1, 256, 128>}, {pipeline_mode = #tpu.pipeline_mode<synchronous>, transform_indices = @transform_1, window_bounds = array<i64: 1, 128>}, {pipeline_mode = #tpu.pipeline_mode<synchronous>, transform_indices = @transform_2, window_bounds = array<i64: 1, 128>}, {pipeline_mode = #tpu.pipeline_mode<synchronous>, transform_indices = @transform_3, window_bounds = array<i64: 1, 128>}, {pipeline_mode = #tpu.pipeline_mode<synchronous>, transform_indices = @transform_4, window_bounds = array<i64: 1, 128>}, {transform_indices = @transform_5, window_bounds = array<i64: 1, 256, 128>}]} {
    %c0 = arith.constant 0 : index
    %c0_0 = arith.constant 0 : index
    %0 = vector.load %arg3[%c0, %c0_0] : memref<1x128xf32, #tpu.memory_space<vmem>>, vector<1x128xf32>
    %c0_1 = arith.constant 0 : index
    %c0_2 = arith.constant 0 : index
    %1 = vector.load %arg4[%c0_1, %c0_2] : memref<1x128xf32, #tpu.memory_space<vmem>>, vector<1x128xf32>
    %cst = arith.constant 0.001953125 : f32
    %2 = vector.broadcast %cst : f32 to vector<1x128xf32>
    %3 = arith.mulf %0, %2 : vector<1x128xf32>
    %cst_3 = arith.constant 0.001953125 : f32
    %4 = vector.broadcast %cst_3 : f32 to vector<1x128xf32>
    %5 = arith.mulf %1, %4 : vector<1x128xf32>
    %6 = arith.mulf %3, %3 : vector<1x128xf32>
    %7 = arith.subf %5, %6 : vector<1x128xf32>
    %cst_4 = arith.constant 9.99999974E-6 : f32
    %8 = vector.broadcast %cst_4 : f32 to vector<1x128xf32>
    %9 = arith.addf %7, %8 : vector<1x128xf32>
    %10 = math.rsqrt %9 : vector<1x128xf32>
    %c0_5 = arith.constant 0 : index
    %c0_6 = arith.constant 0 : index
    %c0_7 = arith.constant 0 : index
    %11 = vector.load %arg2[%c0_5, %c0_6, %c0_7] : memref<1x256x128xf32, #tpu.memory_space<vmem>>, vector<1x256x128xf32>
    %12 = vector.shape_cast %11 : vector<1x256x128xf32> to vector<256x128xf32>
    %13 = vector.broadcast %3 : vector<1x128xf32> to vector<256x128xf32>
    %14 = arith.subf %12, %13 : vector<256x128xf32>
    %15 = vector.broadcast %10 : vector<1x128xf32> to vector<256x128xf32>
    %16 = arith.mulf %14, %15 : vector<256x128xf32>
    %c0_8 = arith.constant 0 : index
    %c0_9 = arith.constant 0 : index
    %17 = vector.load %arg5[%c0_8, %c0_9] : memref<1x128xf32, #tpu.memory_space<vmem>>, vector<1x128xf32>
    %18 = vector.broadcast %17 : vector<1x128xf32> to vector<256x128xf32>
    %19 = arith.mulf %16, %18 : vector<256x128xf32>
    %c0_10 = arith.constant 0 : index
    %c0_11 = arith.constant 0 : index
    %20 = vector.load %arg6[%c0_10, %c0_11] : memref<1x128xf32, #tpu.memory_space<vmem>>, vector<1x128xf32>
    %21 = vector.broadcast %20 : vector<1x128xf32> to vector<256x128xf32>
    %22 = arith.addf %19, %21 : vector<256x128xf32>
    %cst_12 = arith.constant 0.000000e+00 : f32
    %23 = vector.broadcast %cst_12 : f32 to vector<256x128xf32>
    %24 = arith.maximumf %22, %23 : vector<256x128xf32>
    %c0_13 = arith.constant 0 : index
    %c0_14 = arith.constant 0 : index
    %c0_15 = arith.constant 0 : index
    %25 = vector.load %arg7[%c0_13, %c0_14, %c0_15] : memref<1x256x128xf32, #tpu.memory_space<vmem>>, vector<1x256x128xf32>
    %26 = vector.shape_cast %25 : vector<1x256x128xf32> to vector<256x128xf32>
    %27 = vector.shape_cast %24 : vector<256x128xf32> to vector<1x256x128xf32>
    tpu.vector_store %arg7[%c0_13, %c0_14, %c0_15], %27 {strides = array<i32>} : memref<1x256x128xf32, #tpu.memory_space<vmem>>, vector<1x256x128xf32>,
    return
  }
  func.func @transform_0(%arg0: i32, %arg1: i32) -> (i32, i32, i32) {
    %c0_i32 = arith.constant 0 : i32
    %c0_i32_0 = arith.constant 0 : i32
    return %arg0, %arg1, %c0_i32 : i32, i32, i32
  }
  func.func @transform_1(%arg0: i32, %arg1: i32) -> (i32, i32) {
    %c0_i32 = arith.constant 0 : i32
    %c0_i32_0 = arith.constant 0 : i32
    %c0_i32_1 = arith.constant 0 : i32
    return %c0_i32, %c0_i32_0 : i32, i32
  }
  func.func @transform_2(%arg0: i32, %arg1: i32) -> (i32, i32) {
    %c0_i32 = arith.constant 0 : i32
    %c0_i32_0 = arith.constant 0 : i32
    %c0_i32_1 = arith.constant 0 : i32
    return %c0_i32, %c0_i32_0 : i32, i32
  }
  func.func @transform_3(%arg0: i32, %arg1: i32) -> (i32, i32) {
    %c0_i32 = arith.constant 0 : i32
    %c0_i32_0 = arith.constant 0 : i32
    %c0_i32_1 = arith.constant 0 : i32
    return %c0_i32, %c0_i32_0 : i32, i32
  }
  func.func @transform_4(%arg0: i32, %arg1: i32) -> (i32, i32) {
    %c0_i32 = arith.constant 0 : i32
    %c0_i32_0 = arith.constant 0 : i32
    %c0_i32_1 = arith.constant 0 : i32
    return %c0_i32, %c0_i32_0 : i32, i32
  }
  func.func @transform_5(%arg0: i32, %arg1: i32) -> (i32, i32, i32) {
    %c0_i32 = arith.constant 0 : i32
    %c0_i32_0 = arith.constant 0 : i32
    return %arg0, %arg1, %c0_i32 : i32, i32, i32
  }
}

module attributes {stable_mosaic.version = 11 : i64} {
  func.func @_maxpool_kernel(%arg0: i32, %arg1: i32, %arg2: memref<1x64x1152xf32, #tpu.memory_space<vmem>>, %arg3: memref<1x64x128xf32, #tpu.memory_space<vmem>>) attributes {dimension_semantics = [#tpu.dimension_semantics<parallel>, #tpu.dimension_semantics<parallel>], iteration_bounds = array<i64: 2, 1>, scalar_prefetch = 0 : i64, scratch_operands = 0 : i64, tpu.core_type = #tpu.core_type<tc>, window_params = [{transform_indices = @transform_0, window_bounds = array<i64: 1, 64, 1152>}, {transform_indices = @transform_1, window_bounds = array<i64: 1, 64, 128>}]} {
    %c0 = arith.constant 0 : index
    %c0_0 = arith.constant 0 : index
    %c0_1 = arith.constant 0 : index
    %0 = vector.load %arg2[%c0, %c0_0, %c0_1] : memref<1x64x1152xf32, #tpu.memory_space<vmem>>, vector<1x64x1152xf32>
    %1 = vector.shape_cast %0 : vector<1x64x1152xf32> to vector<64x1152xf32>
    %2 = vector.extract_strided_slice %1 {offsets = [0, 0], sizes = [64, 128], strides = [1, 1]} : vector<64x1152xf32> to vector<64x128xf32>
    %3 = vector.extract_strided_slice %1 {offsets = [0, 128], sizes = [64, 128], strides = [1, 1]} : vector<64x1152xf32> to vector<64x128xf32>
    %4 = arith.maximumf %2, %3 : vector<64x128xf32>
    %5 = vector.extract_strided_slice %1 {offsets = [0, 256], sizes = [64, 128], strides = [1, 1]} : vector<64x1152xf32> to vector<64x128xf32>
    %6 = arith.maximumf %4, %5 : vector<64x128xf32>
    %7 = vector.extract_strided_slice %1 {offsets = [0, 384], sizes = [64, 128], strides = [1, 1]} : vector<64x1152xf32> to vector<64x128xf32>
    %8 = arith.maximumf %6, %7 : vector<64x128xf32>
    %9 = vector.extract_strided_slice %1 {offsets = [0, 512], sizes = [64, 128], strides = [1, 1]} : vector<64x1152xf32> to vector<64x128xf32>
    %10 = arith.maximumf %8, %9 : vector<64x128xf32>
    %11 = vector.extract_strided_slice %1 {offsets = [0, 640], sizes = [64, 128], strides = [1, 1]} : vector<64x1152xf32> to vector<64x128xf32>
    %12 = arith.maximumf %10, %11 : vector<64x128xf32>
    %13 = vector.extract_strided_slice %1 {offsets = [0, 768], sizes = [64, 128], strides = [1, 1]} : vector<64x1152xf32> to vector<64x128xf32>
    %14 = arith.maximumf %12, %13 : vector<64x128xf32>
    %15 = vector.extract_strided_slice %1 {offsets = [0, 896], sizes = [64, 128], strides = [1, 1]} : vector<64x1152xf32> to vector<64x128xf32>
    %16 = arith.maximumf %14, %15 : vector<64x128xf32>
    %17 = vector.extract_strided_slice %1 {offsets = [0, 1024], sizes = [64, 128], strides = [1, 1]} : vector<64x1152xf32> to vector<64x128xf32>
    %18 = arith.maximumf %16, %17 : vector<64x128xf32>
    %c0_2 = arith.constant 0 : index
    %c0_3 = arith.constant 0 : index
    %c0_4 = arith.constant 0 : index
    %19 = vector.load %arg3[%c0_2, %c0_3, %c0_4] : memref<1x64x128xf32, #tpu.memory_space<vmem>>, vector<1x64x128xf32>
    %20 = vector.shape_cast %19 : vector<1x64x128xf32> to vector<64x128xf32>
    %21 = vector.shape_cast %18 : vector<64x128xf32> to vector<1x64x128xf32>
    tpu.vector_store %arg3[%c0_2, %c0_3, %c0_4], %21 {strides = array<i32>} : memref<1x64x128xf32, #tpu.memory_space<vmem>>, vector<1x64x128xf32>,
    return
  }
  func.func @transform_0(%arg0: i32, %arg1: i32) -> (i32, i32, i32) {
    %c0_i32 = arith.constant 0 : i32
    %c0_i32_0 = arith.constant 0 : i32
    return %arg0, %arg1, %c0_i32 : i32, i32, i32
  }
  func.func @transform_1(%arg0: i32, %arg1: i32) -> (i32, i32, i32) {
    %c0_i32 = arith.constant 0 : i32
    %c0_i32_0 = arith.constant 0 : i32
    return %arg0, %arg1, %c0_i32 : i32, i32, i32
  }
}

module attributes {stable_mosaic.version = 11 : i64} {
  func.func @_gemm_stats_kernel(%arg0: i32, %arg1: i32, %arg2: memref<1x64x1152xbf16, #tpu.memory_space<vmem>>, %arg3: memref<1152x128xbf16, #tpu.memory_space<vmem>>, %arg4: memref<1x64x128xf32, #tpu.memory_space<vmem>>, %arg5: memref<1x128xf32, #tpu.memory_space<vmem>>, %arg6: memref<1x128xf32, #tpu.memory_space<vmem>>, %arg7: memref<1x1x128xf32, #tpu.memory_space<vmem>>) attributes {dimension_semantics = [#tpu.dimension_semantics<arbitrary>, #tpu.dimension_semantics<arbitrary>], iteration_bounds = array<i64: 2, 1>, scalar_prefetch = 0 : i64, scratch_operands = 0 : i64, tpu.core_type = #tpu.core_type<tc>, window_params = [{transform_indices = @transform_0, window_bounds = array<i64: 1, 64, 1152>}, {pipeline_mode = #tpu.pipeline_mode<synchronous>, transform_indices = @transform_1, window_bounds = array<i64: 1152, 128>}, {transform_indices = @transform_2, window_bounds = array<i64: 1, 64, 128>}, {pipeline_mode = #tpu.pipeline_mode<synchronous>, transform_indices = @transform_3, window_bounds = array<i64: 1, 128>}, {pipeline_mode = #tpu.pipeline_mode<synchronous>, transform_indices = @transform_4, window_bounds = array<i64: 1, 128>}, {transform_indices = @transform_5, window_bounds = array<i64: 1, 1, 128>}]} {
    %c0 = arith.constant 0 : index
    %c0_0 = arith.constant 0 : index
    %c0_1 = arith.constant 0 : index
    %0 = vector.load %arg2[%c0, %c0_0, %c0_1] : memref<1x64x1152xbf16, #tpu.memory_space<vmem>>, vector<1x64x1152xbf16>
    %1 = vector.shape_cast %0 : vector<1x64x1152xbf16> to vector<64x1152xbf16>
    %c0_2 = arith.constant 0 : index
    %c0_3 = arith.constant 0 : index
    %2 = vector.load %arg3[%c0_2, %c0_3] : memref<1152x128xbf16, #tpu.memory_space<vmem>>, vector<1152x128xbf16>
    %cst = arith.constant dense<0.000000e+00> : vector<64x128xf32>
    %3 = tpu.matmul %1, %2, %cst {dimension_numbers = #tpu.dot_dimension_numbers<[1], [0], [0], [1], [0, 0, 1, 1], [], []>} : vector<64x1152xbf16>, vector<1152x128xbf16>, vector<64x128xf32> -> vector<64x128xf32>
    %c0_4 = arith.constant 0 : index
    %c0_5 = arith.constant 0 : index
    %c0_6 = arith.constant 0 : index
    %4 = vector.load %arg4[%c0_4, %c0_5, %c0_6] : memref<1x64x128xf32, #tpu.memory_space<vmem>>, vector<1x64x128xf32>
    %5 = vector.shape_cast %4 : vector<1x64x128xf32> to vector<64x128xf32>
    %6 = vector.shape_cast %3 : vector<64x128xf32> to vector<1x64x128xf32>
    tpu.vector_store %arg4[%c0_4, %c0_5, %c0_6], %6 {strides = array<i32>} : memref<1x64x128xf32, #tpu.memory_space<vmem>>, vector<1x64x128xf32>,
    %c0_i32 = arith.constant 0 : i32
    %7 = arith.cmpi eq, %arg0, %c0_i32 : i32
    %c0_i32_7 = arith.constant 0 : i32
    %8 = arith.cmpi eq, %arg1, %c0_i32_7 : i32
    %9 = arith.andi %7, %8 : i1
    %10 = arith.extui %9 : i1 to i32
    %c0_i32_8 = arith.constant 0 : i32
    %11 = arith.cmpi ne, %10, %c0_i32_8 : i32
    scf.if %11 {
      %cst_27 = arith.constant 0.000000e+00 : f32
      %32 = vector.broadcast %cst_27 : f32 to vector<1x128xf32>
      %c0_28 = arith.constant 0 : index
      %c0_29 = arith.constant 0 : index
      %33 = vector.load %arg5[%c0_28, %c0_29] : memref<1x128xf32, #tpu.memory_space<vmem>>, vector<1x128xf32>
      tpu.vector_store %arg5[%c0_28, %c0_29], %32 {strides = array<i32>} : memref<1x128xf32, #tpu.memory_space<vmem>>, vector<1x128xf32>,
      %cst_30 = arith.constant 0.000000e+00 : f32
      %34 = vector.broadcast %cst_30 : f32 to vector<1x128xf32>
      %c0_31 = arith.constant 0 : index
      %c0_32 = arith.constant 0 : index
      %35 = vector.load %arg6[%c0_31, %c0_32] : memref<1x128xf32, #tpu.memory_space<vmem>>, vector<1x128xf32>
      tpu.vector_store %arg6[%c0_31, %c0_32], %34 {strides = array<i32>} : memref<1x128xf32, #tpu.memory_space<vmem>>, vector<1x128xf32>,
    } else {
    }
    %c0_i32_9 = arith.constant 0 : i32
    %12 = arith.cmpi eq, %arg1, %c0_i32_9 : i32
    %13 = arith.extui %12 : i1 to i32
    %c0_i32_10 = arith.constant 0 : i32
    %14 = arith.cmpi ne, %13, %c0_i32_10 : i32
    scf.if %14 {
      %cst_27 = arith.constant 0.000000e+00 : f32
      %32 = vector.broadcast %cst_27 : f32 to vector<1x1x128xf32>
      %c0_28 = arith.constant 0 : index
      %c0_29 = arith.constant 0 : index
      %c0_30 = arith.constant 0 : index
      %33 = vector.load %arg7[%c0_28, %c0_29, %c0_30] : memref<1x1x128xf32, #tpu.memory_space<vmem>>, vector<1x1x128xf32>
      tpu.vector_store %arg7[%c0_28, %c0_29, %c0_30], %32 {strides = array<i32>} : memref<1x1x128xf32, #tpu.memory_space<vmem>>, vector<1x1x128xf32>,
    } else {
    }
    %cst_11 = arith.constant dense<0.000000e+00> : vector<128xf32>
    %15 = vector.multi_reduction <add>, %3, %cst_11 [0] : vector<64x128xf32> to vector<128xf32>
    %16 = vector.shape_cast %15 : vector<128xf32> to vector<1x128xf32>
    %c0_12 = arith.constant 0 : index
    %c0_13 = arith.constant 0 : index
    %17 = vector.load %arg5[%c0_12, %c0_13] : memref<1x128xf32, #tpu.memory_space<vmem>>, vector<1x128xf32>
    %18 = arith.addf %17, %16 : vector<1x128xf32>
    %c0_14 = arith.constant 0 : index
    %c0_15 = arith.constant 0 : index
    %19 = vector.load %arg5[%c0_14, %c0_15] : memref<1x128xf32, #tpu.memory_space<vmem>>, vector<1x128xf32>
    tpu.vector_store %arg5[%c0_14, %c0_15], %18 {strides = array<i32>} : memref<1x128xf32, #tpu.memory_space<vmem>>, vector<1x128xf32>,
    %c0_16 = arith.constant 0 : index
    %c0_17 = arith.constant 0 : index
    %20 = vector.load %arg6[%c0_16, %c0_17] : memref<1x128xf32, #tpu.memory_space<vmem>>, vector<1x128xf32>
    %21 = arith.mulf %3, %3 : vector<64x128xf32>
    %cst_18 = arith.constant dense<0.000000e+00> : vector<128xf32>
    %22 = vector.multi_reduction <add>, %21, %cst_18 [0] : vector<64x128xf32> to vector<128xf32>
    %23 = vector.shape_cast %22 : vector<128xf32> to vector<1x128xf32>
    %24 = arith.addf %20, %23 : vector<1x128xf32>
    %c0_19 = arith.constant 0 : index
    %c0_20 = arith.constant 0 : index
    %25 = vector.load %arg6[%c0_19, %c0_20] : memref<1x128xf32, #tpu.memory_space<vmem>>, vector<1x128xf32>
    tpu.vector_store %arg6[%c0_19, %c0_20], %24 {strides = array<i32>} : memref<1x128xf32, #tpu.memory_space<vmem>>, vector<1x128xf32>,
    %c0_21 = arith.constant 0 : index
    %c0_22 = arith.constant 0 : index
    %c0_23 = arith.constant 0 : index
    %26 = vector.load %arg7[%c0_21, %c0_22, %c0_23] : memref<1x1x128xf32, #tpu.memory_space<vmem>>, vector<1x1x128xf32>
    %27 = vector.shape_cast %26 : vector<1x1x128xf32> to vector<1x128xf32>
    %28 = arith.addf %27, %16 : vector<1x128xf32>
    %c0_24 = arith.constant 0 : index
    %c0_25 = arith.constant 0 : index
    %c0_26 = arith.constant 0 : index
    %29 = vector.load %arg7[%c0_24, %c0_25, %c0_26] : memref<1x1x128xf32, #tpu.memory_space<vmem>>, vector<1x1x128xf32>
    %30 = vector.shape_cast %29 : vector<1x1x128xf32> to vector<1x128xf32>
    %31 = vector.shape_cast %28 : vector<1x128xf32> to vector<1x1x128xf32>
    tpu.vector_store %arg7[%c0_24, %c0_25, %c0_26], %31 {strides = array<i32>} : memref<1x1x128xf32, #tpu.memory_space<vmem>>, vector<1x1x128xf32>,
    return
  }
  func.func @transform_0(%arg0: i32, %arg1: i32) -> (i32, i32, i32) {
    %c0_i32 = arith.constant 0 : i32
    %c0_i32_0 = arith.constant 0 : i32
    return %arg0, %arg1, %c0_i32 : i32, i32, i32
  }
  func.func @transform_1(%arg0: i32, %arg1: i32) -> (i32, i32) {
    %c0_i32 = arith.constant 0 : i32
    %c0_i32_0 = arith.constant 0 : i32
    %c0_i32_1 = arith.constant 0 : i32
    return %c0_i32, %c0_i32_0 : i32, i32
  }
  func.func @transform_2(%arg0: i32, %arg1: i32) -> (i32, i32, i32) {
    %c0_i32 = arith.constant 0 : i32
    %c0_i32_0 = arith.constant 0 : i32
    return %arg0, %arg1, %c0_i32 : i32, i32, i32
  }
  func.func @transform_3(%arg0: i32, %arg1: i32) -> (i32, i32) {
    %c0_i32 = arith.constant 0 : i32
    %c0_i32_0 = arith.constant 0 : i32
    %c0_i32_1 = arith.constant 0 : i32
    return %c0_i32, %c0_i32_0 : i32, i32
  }
  func.func @transform_4(%arg0: i32, %arg1: i32) -> (i32, i32) {
    %c0_i32 = arith.constant 0 : i32
    %c0_i32_0 = arith.constant 0 : i32
    %c0_i32_1 = arith.constant 0 : i32
    return %c0_i32, %c0_i32_0 : i32, i32
  }
  func.func @transform_5(%arg0: i32, %arg1: i32) -> (i32, i32, i32) {
    %c0_i32 = arith.constant 0 : i32
    %c0_i32_0 = arith.constant 0 : i32
    %c0_i32_1 = arith.constant 0 : i32
    return %arg0, %c0_i32, %c0_i32_0 : i32, i32, i32
  }
}

module attributes {stable_mosaic.version = 11 : i64} {
  func.func @_bn_act_kernel(%arg0: i32, %arg1: i32, %arg2: memref<1x64x128xf32, #tpu.memory_space<vmem>>, %arg3: memref<1x128xf32, #tpu.memory_space<vmem>>, %arg4: memref<1x128xf32, #tpu.memory_space<vmem>>, %arg5: memref<1x128xf32, #tpu.memory_space<vmem>>, %arg6: memref<1x128xf32, #tpu.memory_space<vmem>>, %arg7: memref<1x64x128xbf16, #tpu.memory_space<vmem>>) attributes {dimension_semantics = [#tpu.dimension_semantics<parallel>, #tpu.dimension_semantics<parallel>], iteration_bounds = array<i64: 2, 1>, scalar_prefetch = 0 : i64, scratch_operands = 0 : i64, tpu.core_type = #tpu.core_type<tc>, window_params = [{transform_indices = @transform_0, window_bounds = array<i64: 1, 64, 128>}, {pipeline_mode = #tpu.pipeline_mode<synchronous>, transform_indices = @transform_1, window_bounds = array<i64: 1, 128>}, {pipeline_mode = #tpu.pipeline_mode<synchronous>, transform_indices = @transform_2, window_bounds = array<i64: 1, 128>}, {pipeline_mode = #tpu.pipeline_mode<synchronous>, transform_indices = @transform_3, window_bounds = array<i64: 1, 128>}, {pipeline_mode = #tpu.pipeline_mode<synchronous>, transform_indices = @transform_4, window_bounds = array<i64: 1, 128>}, {transform_indices = @transform_5, window_bounds = array<i64: 1, 64, 128>}]} {
    %c0 = arith.constant 0 : index
    %c0_0 = arith.constant 0 : index
    %0 = vector.load %arg3[%c0, %c0_0] : memref<1x128xf32, #tpu.memory_space<vmem>>, vector<1x128xf32>
    %c0_1 = arith.constant 0 : index
    %c0_2 = arith.constant 0 : index
    %1 = vector.load %arg4[%c0_1, %c0_2] : memref<1x128xf32, #tpu.memory_space<vmem>>, vector<1x128xf32>
    %cst = arith.constant 7.812500e-03 : f32
    %2 = vector.broadcast %cst : f32 to vector<1x128xf32>
    %3 = arith.mulf %0, %2 : vector<1x128xf32>
    %cst_3 = arith.constant 7.812500e-03 : f32
    %4 = vector.broadcast %cst_3 : f32 to vector<1x128xf32>
    %5 = arith.mulf %1, %4 : vector<1x128xf32>
    %6 = arith.mulf %3, %3 : vector<1x128xf32>
    %7 = arith.subf %5, %6 : vector<1x128xf32>
    %cst_4 = arith.constant 9.99999974E-6 : f32
    %8 = vector.broadcast %cst_4 : f32 to vector<1x128xf32>
    %9 = arith.addf %7, %8 : vector<1x128xf32>
    %10 = math.rsqrt %9 : vector<1x128xf32>
    %c0_5 = arith.constant 0 : index
    %c0_6 = arith.constant 0 : index
    %c0_7 = arith.constant 0 : index
    %11 = vector.load %arg2[%c0_5, %c0_6, %c0_7] : memref<1x64x128xf32, #tpu.memory_space<vmem>>, vector<1x64x128xf32>
    %12 = vector.shape_cast %11 : vector<1x64x128xf32> to vector<64x128xf32>
    %13 = vector.broadcast %3 : vector<1x128xf32> to vector<64x128xf32>
    %14 = arith.subf %12, %13 : vector<64x128xf32>
    %15 = vector.broadcast %10 : vector<1x128xf32> to vector<64x128xf32>
    %16 = arith.mulf %14, %15 : vector<64x128xf32>
    %c0_8 = arith.constant 0 : index
    %c0_9 = arith.constant 0 : index
    %17 = vector.load %arg5[%c0_8, %c0_9] : memref<1x128xf32, #tpu.memory_space<vmem>>, vector<1x128xf32>
    %18 = vector.broadcast %17 : vector<1x128xf32> to vector<64x128xf32>
    %19 = arith.mulf %16, %18 : vector<64x128xf32>
    %c0_10 = arith.constant 0 : index
    %c0_11 = arith.constant 0 : index
    %20 = vector.load %arg6[%c0_10, %c0_11] : memref<1x128xf32, #tpu.memory_space<vmem>>, vector<1x128xf32>
    %21 = vector.broadcast %20 : vector<1x128xf32> to vector<64x128xf32>
    %22 = arith.addf %19, %21 : vector<64x128xf32>
    %cst_12 = arith.constant 0.000000e+00 : f32
    %23 = vector.broadcast %cst_12 : f32 to vector<64x128xf32>
    %24 = arith.maximumf %22, %23 : vector<64x128xf32>
    %25 = arith.truncf %24 : vector<64x128xf32> to vector<64x128xbf16>
    %c0_13 = arith.constant 0 : index
    %c0_14 = arith.constant 0 : index
    %c0_15 = arith.constant 0 : index
    %26 = vector.load %arg7[%c0_13, %c0_14, %c0_15] : memref<1x64x128xbf16, #tpu.memory_space<vmem>>, vector<1x64x128xbf16>
    %27 = vector.shape_cast %26 : vector<1x64x128xbf16> to vector<64x128xbf16>
    %28 = vector.shape_cast %25 : vector<64x128xbf16> to vector<1x64x128xbf16>
    tpu.vector_store %arg7[%c0_13, %c0_14, %c0_15], %28 {strides = array<i32>} : memref<1x64x128xbf16, #tpu.memory_space<vmem>>, vector<1x64x128xbf16>,
    return
  }
  func.func @transform_0(%arg0: i32, %arg1: i32) -> (i32, i32, i32) {
    %c0_i32 = arith.constant 0 : i32
    %c0_i32_0 = arith.constant 0 : i32
    return %arg0, %arg1, %c0_i32 : i32, i32, i32
  }
  func.func @transform_1(%arg0: i32, %arg1: i32) -> (i32, i32) {
    %c0_i32 = arith.constant 0 : i32
    %c0_i32_0 = arith.constant 0 : i32
    %c0_i32_1 = arith.constant 0 : i32
    return %c0_i32, %c0_i32_0 : i32, i32
  }
  func.func @transform_2(%arg0: i32, %arg1: i32) -> (i32, i32) {
    %c0_i32 = arith.constant 0 : i32
    %c0_i32_0 = arith.constant 0 : i32
    %c0_i32_1 = arith.constant 0 : i32
    return %c0_i32, %c0_i32_0 : i32, i32
  }
  func.func @transform_3(%arg0: i32, %arg1: i32) -> (i32, i32) {
    %c0_i32 = arith.constant 0 : i32
    %c0_i32_0 = arith.constant 0 : i32
    %c0_i32_1 = arith.constant 0 : i32
    return %c0_i32, %c0_i32_0 : i32, i32
  }
  func.func @transform_4(%arg0: i32, %arg1: i32) -> (i32, i32) {
    %c0_i32 = arith.constant 0 : i32
    %c0_i32_0 = arith.constant 0 : i32
    %c0_i32_1 = arith.constant 0 : i32
    return %c0_i32, %c0_i32_0 : i32, i32
  }
  func.func @transform_5(%arg0: i32, %arg1: i32) -> (i32, i32, i32) {
    %c0_i32 = arith.constant 0 : i32
    %c0_i32_0 = arith.constant 0 : i32
    return %arg0, %arg1, %c0_i32 : i32, i32, i32
  }
}

module attributes {stable_mosaic.version = 11 : i64} {
  func.func @_se_res_kernel(%arg0: i32, %arg1: i32, %arg2: memref<1x64x128xf32, #tpu.memory_space<vmem>>, %arg3: memref<1x128xf32, #tpu.memory_space<vmem>>, %arg4: memref<1x128xf32, #tpu.memory_space<vmem>>, %arg5: memref<1x128xf32, #tpu.memory_space<vmem>>, %arg6: memref<1x128xf32, #tpu.memory_space<vmem>>, %arg7: memref<1x1x128xf32, #tpu.memory_space<vmem>>, %arg8: memref<1x64x128xf32, #tpu.memory_space<vmem>>, %arg9: memref<1x64x128xf32, #tpu.memory_space<vmem>>) attributes {dimension_semantics = [#tpu.dimension_semantics<parallel>, #tpu.dimension_semantics<parallel>], iteration_bounds = array<i64: 2, 1>, scalar_prefetch = 0 : i64, scratch_operands = 0 : i64, tpu.core_type = #tpu.core_type<tc>, window_params = [{transform_indices = @transform_0, window_bounds = array<i64: 1, 64, 128>}, {pipeline_mode = #tpu.pipeline_mode<synchronous>, transform_indices = @transform_1, window_bounds = array<i64: 1, 128>}, {pipeline_mode = #tpu.pipeline_mode<synchronous>, transform_indices = @transform_2, window_bounds = array<i64: 1, 128>}, {pipeline_mode = #tpu.pipeline_mode<synchronous>, transform_indices = @transform_3, window_bounds = array<i64: 1, 128>}, {pipeline_mode = #tpu.pipeline_mode<synchronous>, transform_indices = @transform_4, window_bounds = array<i64: 1, 128>}, {transform_indices = @transform_5, window_bounds = array<i64: 1, 1, 128>}, {transform_indices = @transform_6, window_bounds = array<i64: 1, 64, 128>}, {transform_indices = @transform_7, window_bounds = array<i64: 1, 64, 128>}]} {
    %c0 = arith.constant 0 : index
    %c0_0 = arith.constant 0 : index
    %0 = vector.load %arg3[%c0, %c0_0] : memref<1x128xf32, #tpu.memory_space<vmem>>, vector<1x128xf32>
    %c0_1 = arith.constant 0 : index
    %c0_2 = arith.constant 0 : index
    %1 = vector.load %arg4[%c0_1, %c0_2] : memref<1x128xf32, #tpu.memory_space<vmem>>, vector<1x128xf32>
    %cst = arith.constant 7.812500e-03 : f32
    %2 = vector.broadcast %cst : f32 to vector<1x128xf32>
    %3 = arith.mulf %0, %2 : vector<1x128xf32>
    %cst_3 = arith.constant 7.812500e-03 : f32
    %4 = vector.broadcast %cst_3 : f32 to vector<1x128xf32>
    %5 = arith.mulf %1, %4 : vector<1x128xf32>
    %6 = arith.mulf %3, %3 : vector<1x128xf32>
    %7 = arith.subf %5, %6 : vector<1x128xf32>
    %cst_4 = arith.constant 9.99999974E-6 : f32
    %8 = vector.broadcast %cst_4 : f32 to vector<1x128xf32>
    %9 = arith.addf %7, %8 : vector<1x128xf32>
    %10 = math.rsqrt %9 : vector<1x128xf32>
    %c0_5 = arith.constant 0 : index
    %c0_6 = arith.constant 0 : index
    %c0_7 = arith.constant 0 : index
    %11 = vector.load %arg2[%c0_5, %c0_6, %c0_7] : memref<1x64x128xf32, #tpu.memory_space<vmem>>, vector<1x64x128xf32>
    %12 = vector.shape_cast %11 : vector<1x64x128xf32> to vector<64x128xf32>
    %13 = vector.broadcast %3 : vector<1x128xf32> to vector<64x128xf32>
    %14 = arith.subf %12, %13 : vector<64x128xf32>
    %15 = vector.broadcast %10 : vector<1x128xf32> to vector<64x128xf32>
    %16 = arith.mulf %14, %15 : vector<64x128xf32>
    %c0_8 = arith.constant 0 : index
    %c0_9 = arith.constant 0 : index
    %17 = vector.load %arg5[%c0_8, %c0_9] : memref<1x128xf32, #tpu.memory_space<vmem>>, vector<1x128xf32>
    %18 = vector.broadcast %17 : vector<1x128xf32> to vector<64x128xf32>
    %19 = arith.mulf %16, %18 : vector<64x128xf32>
    %c0_10 = arith.constant 0 : index
    %c0_11 = arith.constant 0 : index
    %20 = vector.load %arg6[%c0_10, %c0_11] : memref<1x128xf32, #tpu.memory_space<vmem>>, vector<1x128xf32>
    %21 = vector.broadcast %20 : vector<1x128xf32> to vector<64x128xf32>
    %22 = arith.addf %19, %21 : vector<64x128xf32>
    %c0_12 = arith.constant 0 : index
    %c0_13 = arith.constant 0 : index
    %c0_14 = arith.constant 0 : index
    %23 = vector.load %arg7[%c0_12, %c0_13, %c0_14] : memref<1x1x128xf32, #tpu.memory_space<vmem>>, vector<1x1x128xf32>
    %24 = vector.shape_cast %23 : vector<1x1x128xf32> to vector<1x128xf32>
    %25 = vector.broadcast %24 : vector<1x128xf32> to vector<64x128xf32>
    %26 = arith.mulf %22, %25 : vector<64x128xf32>
    %c0_15 = arith.constant 0 : index
    %c0_16 = arith.constant 0 : index
    %c0_17 = arith.constant 0 : index
    %27 = vector.load %arg8[%c0_15, %c0_16, %c0_17] : memref<1x64x128xf32, #tpu.memory_space<vmem>>, vector<1x64x128xf32>
    %28 = vector.shape_cast %27 : vector<1x64x128xf32> to vector<64x128xf32>
    %29 = arith.addf %26, %28 : vector<64x128xf32>
    %cst_18 = arith.constant 0.000000e+00 : f32
    %30 = vector.broadcast %cst_18 : f32 to vector<64x128xf32>
    %31 = arith.maximumf %29, %30 : vector<64x128xf32>
    %c0_19 = arith.constant 0 : index
    %c0_20 = arith.constant 0 : index
    %c0_21 = arith.constant 0 : index
    %32 = vector.load %arg9[%c0_19, %c0_20, %c0_21] : memref<1x64x128xf32, #tpu.memory_space<vmem>>, vector<1x64x128xf32>
    %33 = vector.shape_cast %32 : vector<1x64x128xf32> to vector<64x128xf32>
    %34 = vector.shape_cast %31 : vector<64x128xf32> to vector<1x64x128xf32>
    tpu.vector_store %arg9[%c0_19, %c0_20, %c0_21], %34 {strides = array<i32>} : memref<1x64x128xf32, #tpu.memory_space<vmem>>, vector<1x64x128xf32>,
    return
  }
  func.func @transform_0(%arg0: i32, %arg1: i32) -> (i32, i32, i32) {
    %c0_i32 = arith.constant 0 : i32
    %c0_i32_0 = arith.constant 0 : i32
    return %arg0, %arg1, %c0_i32 : i32, i32, i32
  }
  func.func @transform_1(%arg0: i32, %arg1: i32) -> (i32, i32) {
    %c0_i32 = arith.constant 0 : i32
    %c0_i32_0 = arith.constant 0 : i32
    %c0_i32_1 = arith.constant 0 : i32
    return %c0_i32, %c0_i32_0 : i32, i32
  }
  func.func @transform_2(%arg0: i32, %arg1: i32) -> (i32, i32) {
    %c0_i32 = arith.constant 0 : i32
    %c0_i32_0 = arith.constant 0 : i32
    %c0_i32_1 = arith.constant 0 : i32
    return %c0_i32, %c0_i32_0 : i32, i32
  }
  func.func @transform_3(%arg0: i32, %arg1: i32) -> (i32, i32) {
    %c0_i32 = arith.constant 0 : i32
    %c0_i32_0 = arith.constant 0 : i32
    %c0_i32_1 = arith.constant 0 : i32
    return %c0_i32, %c0_i32_0 : i32, i32
  }
  func.func @transform_4(%arg0: i32, %arg1: i32) -> (i32, i32) {
    %c0_i32 = arith.constant 0 : i32
    %c0_i32_0 = arith.constant 0 : i32
    %c0_i32_1 = arith.constant 0 : i32
    return %c0_i32, %c0_i32_0 : i32, i32
  }
  func.func @transform_5(%arg0: i32, %arg1: i32) -> (i32, i32, i32) {
    %c0_i32 = arith.constant 0 : i32
    %c0_i32_0 = arith.constant 0 : i32
    %c0_i32_1 = arith.constant 0 : i32
    return %arg0, %c0_i32, %c0_i32_0 : i32, i32, i32
  }
  func.func @transform_6(%arg0: i32, %arg1: i32) -> (i32, i32, i32) {
    %c0_i32 = arith.constant 0 : i32
    %c0_i32_0 = arith.constant 0 : i32
    return %arg0, %arg1, %c0_i32 : i32, i32, i32
  }
  func.func @transform_7(%arg0: i32, %arg1: i32) -> (i32, i32, i32) {
    %c0_i32 = arith.constant 0 : i32
    %c0_i32_0 = arith.constant 0 : i32
    return %arg0, %arg1, %c0_i32 : i32, i32, i32
  }
}

module attributes {stable_mosaic.version = 11 : i64} {
  func.func @_gemm_stats_kernel(%arg0: i32, %arg1: i32, %arg2: memref<1x64x1152xbf16, #tpu.memory_space<vmem>>, %arg3: memref<1152x128xbf16, #tpu.memory_space<vmem>>, %arg4: memref<1x64x128xf32, #tpu.memory_space<vmem>>, %arg5: memref<1x128xf32, #tpu.memory_space<vmem>>, %arg6: memref<1x128xf32, #tpu.memory_space<vmem>>, %arg7: memref<1x1x128xf32, #tpu.memory_space<vmem>>) attributes {dimension_semantics = [#tpu.dimension_semantics<arbitrary>, #tpu.dimension_semantics<arbitrary>], iteration_bounds = array<i64: 2, 1>, scalar_prefetch = 0 : i64, scratch_operands = 0 : i64, tpu.core_type = #tpu.core_type<tc>, window_params = [{transform_indices = @transform_0, window_bounds = array<i64: 1, 64, 1152>}, {pipeline_mode = #tpu.pipeline_mode<synchronous>, transform_indices = @transform_1, window_bounds = array<i64: 1152, 128>}, {transform_indices = @transform_2, window_bounds = array<i64: 1, 64, 128>}, {pipeline_mode = #tpu.pipeline_mode<synchronous>, transform_indices = @transform_3, window_bounds = array<i64: 1, 128>}, {pipeline_mode = #tpu.pipeline_mode<synchronous>, transform_indices = @transform_4, window_bounds = array<i64: 1, 128>}, {transform_indices = @transform_5, window_bounds = array<i64: 1, 1, 128>}]} {
    %c0 = arith.constant 0 : index
    %c0_0 = arith.constant 0 : index
    %c0_1 = arith.constant 0 : index
    %0 = vector.load %arg2[%c0, %c0_0, %c0_1] : memref<1x64x1152xbf16, #tpu.memory_space<vmem>>, vector<1x64x1152xbf16>
    %1 = vector.shape_cast %0 : vector<1x64x1152xbf16> to vector<64x1152xbf16>
    %c0_2 = arith.constant 0 : index
    %c0_3 = arith.constant 0 : index
    %2 = vector.load %arg3[%c0_2, %c0_3] : memref<1152x128xbf16, #tpu.memory_space<vmem>>, vector<1152x128xbf16>
    %cst = arith.constant dense<0.000000e+00> : vector<64x128xf32>
    %3 = tpu.matmul %1, %2, %cst {dimension_numbers = #tpu.dot_dimension_numbers<[1], [0], [0], [1], [0, 0, 1, 1], [], []>} : vector<64x1152xbf16>, vector<1152x128xbf16>, vector<64x128xf32> -> vector<64x128xf32>
    %c0_4 = arith.constant 0 : index
    %c0_5 = arith.constant 0 : index
    %c0_6 = arith.constant 0 : index
    %4 = vector.load %arg4[%c0_4, %c0_5, %c0_6] : memref<1x64x128xf32, #tpu.memory_space<vmem>>, vector<1x64x128xf32>
    %5 = vector.shape_cast %4 : vector<1x64x128xf32> to vector<64x128xf32>
    %6 = vector.shape_cast %3 : vector<64x128xf32> to vector<1x64x128xf32>
    tpu.vector_store %arg4[%c0_4, %c0_5, %c0_6], %6 {strides = array<i32>} : memref<1x64x128xf32, #tpu.memory_space<vmem>>, vector<1x64x128xf32>,
    %c0_i32 = arith.constant 0 : i32
    %7 = arith.cmpi eq, %arg0, %c0_i32 : i32
    %c0_i32_7 = arith.constant 0 : i32
    %8 = arith.cmpi eq, %arg1, %c0_i32_7 : i32
    %9 = arith.andi %7, %8 : i1
    %10 = arith.extui %9 : i1 to i32
    %c0_i32_8 = arith.constant 0 : i32
    %11 = arith.cmpi ne, %10, %c0_i32_8 : i32
    scf.if %11 {
      %cst_27 = arith.constant 0.000000e+00 : f32
      %32 = vector.broadcast %cst_27 : f32 to vector<1x128xf32>
      %c0_28 = arith.constant 0 : index
      %c0_29 = arith.constant 0 : index
      %33 = vector.load %arg5[%c0_28, %c0_29] : memref<1x128xf32, #tpu.memory_space<vmem>>, vector<1x128xf32>
      tpu.vector_store %arg5[%c0_28, %c0_29], %32 {strides = array<i32>} : memref<1x128xf32, #tpu.memory_space<vmem>>, vector<1x128xf32>,
      %cst_30 = arith.constant 0.000000e+00 : f32
      %34 = vector.broadcast %cst_30 : f32 to vector<1x128xf32>
      %c0_31 = arith.constant 0 : index
      %c0_32 = arith.constant 0 : index
      %35 = vector.load %arg6[%c0_31, %c0_32] : memref<1x128xf32, #tpu.memory_space<vmem>>, vector<1x128xf32>
      tpu.vector_store %arg6[%c0_31, %c0_32], %34 {strides = array<i32>} : memref<1x128xf32, #tpu.memory_space<vmem>>, vector<1x128xf32>,
    } else {
    }
    %c0_i32_9 = arith.constant 0 : i32
    %12 = arith.cmpi eq, %arg1, %c0_i32_9 : i32
    %13 = arith.extui %12 : i1 to i32
    %c0_i32_10 = arith.constant 0 : i32
    %14 = arith.cmpi ne, %13, %c0_i32_10 : i32
    scf.if %14 {
      %cst_27 = arith.constant 0.000000e+00 : f32
      %32 = vector.broadcast %cst_27 : f32 to vector<1x1x128xf32>
      %c0_28 = arith.constant 0 : index
      %c0_29 = arith.constant 0 : index
      %c0_30 = arith.constant 0 : index
      %33 = vector.load %arg7[%c0_28, %c0_29, %c0_30] : memref<1x1x128xf32, #tpu.memory_space<vmem>>, vector<1x1x128xf32>
      tpu.vector_store %arg7[%c0_28, %c0_29, %c0_30], %32 {strides = array<i32>} : memref<1x1x128xf32, #tpu.memory_space<vmem>>, vector<1x1x128xf32>,
    } else {
    }
    %cst_11 = arith.constant dense<0.000000e+00> : vector<128xf32>
    %15 = vector.multi_reduction <add>, %3, %cst_11 [0] : vector<64x128xf32> to vector<128xf32>
    %16 = vector.shape_cast %15 : vector<128xf32> to vector<1x128xf32>
    %c0_12 = arith.constant 0 : index
    %c0_13 = arith.constant 0 : index
    %17 = vector.load %arg5[%c0_12, %c0_13] : memref<1x128xf32, #tpu.memory_space<vmem>>, vector<1x128xf32>
    %18 = arith.addf %17, %16 : vector<1x128xf32>
    %c0_14 = arith.constant 0 : index
    %c0_15 = arith.constant 0 : index
    %19 = vector.load %arg5[%c0_14, %c0_15] : memref<1x128xf32, #tpu.memory_space<vmem>>, vector<1x128xf32>
    tpu.vector_store %arg5[%c0_14, %c0_15], %18 {strides = array<i32>} : memref<1x128xf32, #tpu.memory_space<vmem>>, vector<1x128xf32>,
    %c0_16 = arith.constant 0 : index
    %c0_17 = arith.constant 0 : index
    %20 = vector.load %arg6[%c0_16, %c0_17] : memref<1x128xf32, #tpu.memory_space<vmem>>, vector<1x128xf32>
    %21 = arith.mulf %3, %3 : vector<64x128xf32>
    %cst_18 = arith.constant dense<0.000000e+00> : vector<128xf32>
    %22 = vector.multi_reduction <add>, %21, %cst_18 [0] : vector<64x128xf32> to vector<128xf32>
    %23 = vector.shape_cast %22 : vector<128xf32> to vector<1x128xf32>
    %24 = arith.addf %20, %23 : vector<1x128xf32>
    %c0_19 = arith.constant 0 : index
    %c0_20 = arith.constant 0 : index
    %25 = vector.load %arg6[%c0_19, %c0_20] : memref<1x128xf32, #tpu.memory_space<vmem>>, vector<1x128xf32>
    tpu.vector_store %arg6[%c0_19, %c0_20], %24 {strides = array<i32>} : memref<1x128xf32, #tpu.memory_space<vmem>>, vector<1x128xf32>,
    %c0_21 = arith.constant 0 : index
    %c0_22 = arith.constant 0 : index
    %c0_23 = arith.constant 0 : index
    %26 = vector.load %arg7[%c0_21, %c0_22, %c0_23] : memref<1x1x128xf32, #tpu.memory_space<vmem>>, vector<1x1x128xf32>
    %27 = vector.shape_cast %26 : vector<1x1x128xf32> to vector<1x128xf32>
    %28 = arith.addf %27, %16 : vector<1x128xf32>
    %c0_24 = arith.constant 0 : index
    %c0_25 = arith.constant 0 : index
    %c0_26 = arith.constant 0 : index
    %29 = vector.load %arg7[%c0_24, %c0_25, %c0_26] : memref<1x1x128xf32, #tpu.memory_space<vmem>>, vector<1x1x128xf32>
    %30 = vector.shape_cast %29 : vector<1x1x128xf32> to vector<1x128xf32>
    %31 = vector.shape_cast %28 : vector<1x128xf32> to vector<1x1x128xf32>
    tpu.vector_store %arg7[%c0_24, %c0_25, %c0_26], %31 {strides = array<i32>} : memref<1x1x128xf32, #tpu.memory_space<vmem>>, vector<1x1x128xf32>,
    return
  }
  func.func @transform_0(%arg0: i32, %arg1: i32) -> (i32, i32, i32) {
    %c0_i32 = arith.constant 0 : i32
    %c0_i32_0 = arith.constant 0 : i32
    return %arg0, %arg1, %c0_i32 : i32, i32, i32
  }
  func.func @transform_1(%arg0: i32, %arg1: i32) -> (i32, i32) {
    %c0_i32 = arith.constant 0 : i32
    %c0_i32_0 = arith.constant 0 : i32
    %c0_i32_1 = arith.constant 0 : i32
    return %c0_i32, %c0_i32_0 : i32, i32
  }
  func.func @transform_2(%arg0: i32, %arg1: i32) -> (i32, i32, i32) {
    %c0_i32 = arith.constant 0 : i32
    %c0_i32_0 = arith.constant 0 : i32
    return %arg0, %arg1, %c0_i32 : i32, i32, i32
  }
  func.func @transform_3(%arg0: i32, %arg1: i32) -> (i32, i32) {
    %c0_i32 = arith.constant 0 : i32
    %c0_i32_0 = arith.constant 0 : i32
    %c0_i32_1 = arith.constant 0 : i32
    return %c0_i32, %c0_i32_0 : i32, i32
  }
  func.func @transform_4(%arg0: i32, %arg1: i32) -> (i32, i32) {
    %c0_i32 = arith.constant 0 : i32
    %c0_i32_0 = arith.constant 0 : i32
    %c0_i32_1 = arith.constant 0 : i32
    return %c0_i32, %c0_i32_0 : i32, i32
  }
  func.func @transform_5(%arg0: i32, %arg1: i32) -> (i32, i32, i32) {
    %c0_i32 = arith.constant 0 : i32
    %c0_i32_0 = arith.constant 0 : i32
    %c0_i32_1 = arith.constant 0 : i32
    return %arg0, %c0_i32, %c0_i32_0 : i32, i32, i32
  }
}

module attributes {stable_mosaic.version = 11 : i64} {
  func.func @_se_scale_kernel(%arg0: i32, %arg1: memref<1x1x128xf32, #tpu.memory_space<vmem>>, %arg2: memref<1x128xf32, #tpu.memory_space<vmem>>, %arg3: memref<1x128xf32, #tpu.memory_space<vmem>>, %arg4: memref<1x128xf32, #tpu.memory_space<vmem>>, %arg5: memref<1x128xf32, #tpu.memory_space<vmem>>, %arg6: memref<128x128xf32, #tpu.memory_space<vmem>>, %arg7: memref<1x128xf32, #tpu.memory_space<vmem>>, %arg8: memref<128x128xf32, #tpu.memory_space<vmem>>, %arg9: memref<1x128xf32, #tpu.memory_space<vmem>>, %arg10: memref<1x1x128xf32, #tpu.memory_space<vmem>>) attributes {dimension_semantics = [#tpu.dimension_semantics<parallel>], iteration_bounds = array<i64: 2>, scalar_prefetch = 0 : i64, scratch_operands = 0 : i64, tpu.core_type = #tpu.core_type<tc>, window_params = [{transform_indices = @transform_0, window_bounds = array<i64: 1, 1, 128>}, {pipeline_mode = #tpu.pipeline_mode<synchronous>, transform_indices = @transform_1, window_bounds = array<i64: 1, 128>}, {pipeline_mode = #tpu.pipeline_mode<synchronous>, transform_indices = @transform_2, window_bounds = array<i64: 1, 128>}, {pipeline_mode = #tpu.pipeline_mode<synchronous>, transform_indices = @transform_3, window_bounds = array<i64: 1, 128>}, {pipeline_mode = #tpu.pipeline_mode<synchronous>, transform_indices = @transform_4, window_bounds = array<i64: 1, 128>}, {pipeline_mode = #tpu.pipeline_mode<synchronous>, transform_indices = @transform_5, window_bounds = array<i64: 128, 128>}, {pipeline_mode = #tpu.pipeline_mode<synchronous>, transform_indices = @transform_6, window_bounds = array<i64: 1, 128>}, {pipeline_mode = #tpu.pipeline_mode<synchronous>, transform_indices = @transform_7, window_bounds = array<i64: 128, 128>}, {pipeline_mode = #tpu.pipeline_mode<synchronous>, transform_indices = @transform_8, window_bounds = array<i64: 1, 128>}, {transform_indices = @transform_9, window_bounds = array<i64: 1, 1, 128>}]} {
    %c0 = arith.constant 0 : index
    %c0_0 = arith.constant 0 : index
    %0 = vector.load %arg2[%c0, %c0_0] : memref<1x128xf32, #tpu.memory_space<vmem>>, vector<1x128xf32>
    %c0_1 = arith.constant 0 : index
    %c0_2 = arith.constant 0 : index
    %1 = vector.load %arg3[%c0_1, %c0_2] : memref<1x128xf32, #tpu.memory_space<vmem>>, vector<1x128xf32>
    %cst = arith.constant 7.812500e-03 : f32
    %2 = vector.broadcast %cst : f32 to vector<1x128xf32>
    %3 = arith.mulf %0, %2 : vector<1x128xf32>
    %cst_3 = arith.constant 7.812500e-03 : f32
    %4 = vector.broadcast %cst_3 : f32 to vector<1x128xf32>
    %5 = arith.mulf %1, %4 : vector<1x128xf32>
    %6 = arith.mulf %3, %3 : vector<1x128xf32>
    %7 = arith.subf %5, %6 : vector<1x128xf32>
    %cst_4 = arith.constant 9.99999974E-6 : f32
    %8 = vector.broadcast %cst_4 : f32 to vector<1x128xf32>
    %9 = arith.addf %7, %8 : vector<1x128xf32>
    %10 = math.rsqrt %9 : vector<1x128xf32>
    %c0_5 = arith.constant 0 : index
    %c0_6 = arith.constant 0 : index
    %c0_7 = arith.constant 0 : index
    %11 = vector.load %arg1[%c0_5, %c0_6, %c0_7] : memref<1x1x128xf32, #tpu.memory_space<vmem>>, vector<1x1x128xf32>
    %12 = vector.shape_cast %11 : vector<1x1x128xf32> to vector<1x128xf32>
    %cst_8 = arith.constant 1.562500e-02 : f32
    %13 = vector.broadcast %cst_8 : f32 to vector<1x128xf32>
    %14 = arith.mulf %12, %13 : vector<1x128xf32>
    %15 = arith.subf %14, %3 : vector<1x128xf32>
    %16 = arith.mulf %15, %10 : vector<1x128xf32>
    %c0_9 = arith.constant 0 : index
    %c0_10 = arith.constant 0 : index
    %17 = vector.load %arg4[%c0_9, %c0_10] : memref<1x128xf32, #tpu.memory_space<vmem>>, vector<1x128xf32>
    %18 = arith.mulf %16, %17 : vector<1x128xf32>
    %c0_11 = arith.constant 0 : index
    %c0_12 = arith.constant 0 : index
    %19 = vector.load %arg5[%c0_11, %c0_12] : memref<1x128xf32, #tpu.memory_space<vmem>>, vector<1x128xf32>
    %20 = arith.addf %18, %19 : vector<1x128xf32>
    %c0_13 = arith.constant 0 : index
    %c0_14 = arith.constant 0 : index
    %21 = vector.load %arg6[%c0_13, %c0_14] : memref<128x128xf32, #tpu.memory_space<vmem>>, vector<128x128xf32>
    %cst_15 = arith.constant dense<0.000000e+00> : vector<1x128xf32>
    %22 = tpu.matmul %20, %21, %cst_15 {dimension_numbers = #tpu.dot_dimension_numbers<[1], [0], [0], [1], [0, 0, 1, 1], [], []>} : vector<1x128xf32>, vector<128x128xf32>, vector<1x128xf32> -> vector<1x128xf32>
    %c0_16 = arith.constant 0 : index
    %c0_17 = arith.constant 0 : index
    %23 = vector.load %arg7[%c0_16, %c0_17] : memref<1x128xf32, #tpu.memory_space<vmem>>, vector<1x128xf32>
    %24 = arith.addf %22, %23 : vector<1x128xf32>
    %cst_18 = arith.constant 0.000000e+00 : f32
    %25 = vector.broadcast %cst_18 : f32 to vector<1x128xf32>
    %26 = arith.maximumf %24, %25 : vector<1x128xf32>
    %c0_19 = arith.constant 0 : index
    %c0_20 = arith.constant 0 : index
    %27 = vector.load %arg8[%c0_19, %c0_20] : memref<128x128xf32, #tpu.memory_space<vmem>>, vector<128x128xf32>
    %cst_21 = arith.constant dense<0.000000e+00> : vector<1x128xf32>
    %28 = tpu.matmul %26, %27, %cst_21 {dimension_numbers = #tpu.dot_dimension_numbers<[1], [0], [0], [1], [0, 0, 1, 1], [], []>} : vector<1x128xf32>, vector<128x128xf32>, vector<1x128xf32> -> vector<1x128xf32>
    %c0_22 = arith.constant 0 : index
    %c0_23 = arith.constant 0 : index
    %29 = vector.load %arg9[%c0_22, %c0_23] : memref<1x128xf32, #tpu.memory_space<vmem>>, vector<1x128xf32>
    %30 = arith.addf %28, %29 : vector<1x128xf32>
    %31 = arith.negf %30 : vector<1x128xf32>
    %32 = math.exp %31 : vector<1x128xf32>
    %cst_24 = arith.constant 1.000000e+00 : f32
    %33 = vector.broadcast %cst_24 : f32 to vector<1x128xf32>
    %34 = arith.addf %33, %32 : vector<1x128xf32>
    %35 = arith.divf %33, %34 : vector<1x128xf32>
    %c0_25 = arith.constant 0 : index
    %c0_26 = arith.constant 0 : index
    %c0_27 = arith.constant 0 : index
    %36 = vector.load %arg10[%c0_25, %c0_26, %c0_27] : memref<1x1x128xf32, #tpu.memory_space<vmem>>, vector<1x1x128xf32>
    %37 = vector.shape_cast %36 : vector<1x1x128xf32> to vector<1x128xf32>
    %38 = vector.shape_cast %35 : vector<1x128xf32> to vector<1x1x128xf32>
    tpu.vector_store %arg10[%c0_25, %c0_26, %c0_27], %38 {strides = array<i32>} : memref<1x1x128xf32, #tpu.memory_space<vmem>>, vector<1x1x128xf32>,
    return
  }
  func.func @transform_0(%arg0: i32) -> (i32, i32, i32) {
    %c0_i32 = arith.constant 0 : i32
    %c0_i32_0 = arith.constant 0 : i32
    %c0_i32_1 = arith.constant 0 : i32
    return %arg0, %c0_i32, %c0_i32_0 : i32, i32, i32
  }
  func.func @transform_1(%arg0: i32) -> (i32, i32) {
    %c0_i32 = arith.constant 0 : i32
    %c0_i32_0 = arith.constant 0 : i32
    %c0_i32_1 = arith.constant 0 : i32
    return %c0_i32, %c0_i32_0 : i32, i32
  }
  func.func @transform_2(%arg0: i32) -> (i32, i32) {
    %c0_i32 = arith.constant 0 : i32
    %c0_i32_0 = arith.constant 0 : i32
    %c0_i32_1 = arith.constant 0 : i32
    return %c0_i32, %c0_i32_0 : i32, i32
  }
  func.func @transform_3(%arg0: i32) -> (i32, i32) {
    %c0_i32 = arith.constant 0 : i32
    %c0_i32_0 = arith.constant 0 : i32
    %c0_i32_1 = arith.constant 0 : i32
    return %c0_i32, %c0_i32_0 : i32, i32
  }
  func.func @transform_4(%arg0: i32) -> (i32, i32) {
    %c0_i32 = arith.constant 0 : i32
    %c0_i32_0 = arith.constant 0 : i32
    %c0_i32_1 = arith.constant 0 : i32
    return %c0_i32, %c0_i32_0 : i32, i32
  }
  func.func @transform_5(%arg0: i32) -> (i32, i32) {
    %c0_i32 = arith.constant 0 : i32
    %c0_i32_0 = arith.constant 0 : i32
    %c0_i32_1 = arith.constant 0 : i32
    return %c0_i32, %c0_i32_0 : i32, i32
  }
  func.func @transform_6(%arg0: i32) -> (i32, i32) {
    %c0_i32 = arith.constant 0 : i32
    %c0_i32_0 = arith.constant 0 : i32
    %c0_i32_1 = arith.constant 0 : i32
    return %c0_i32, %c0_i32_0 : i32, i32
  }
  func.func @transform_7(%arg0: i32) -> (i32, i32) {
    %c0_i32 = arith.constant 0 : i32
    %c0_i32_0 = arith.constant 0 : i32
    %c0_i32_1 = arith.constant 0 : i32
    return %c0_i32, %c0_i32_0 : i32, i32
  }
  func.func @transform_8(%arg0: i32) -> (i32, i32) {
    %c0_i32 = arith.constant 0 : i32
    %c0_i32_0 = arith.constant 0 : i32
    %c0_i32_1 = arith.constant 0 : i32
    return %c0_i32, %c0_i32_0 : i32, i32
  }
  func.func @transform_9(%arg0: i32) -> (i32, i32, i32) {
    %c0_i32 = arith.constant 0 : i32
    %c0_i32_0 = arith.constant 0 : i32
    %c0_i32_1 = arith.constant 0 : i32
    return %arg0, %c0_i32, %c0_i32_0 : i32, i32, i32
  }
}

module attributes {stable_mosaic.version = 11 : i64} {
  func.func @_gemm_stats_sc_kernel(%arg0: i32, %arg1: i32, %arg2: memref<1x16x1152xbf16, #tpu.memory_space<vmem>>, %arg3: memref<1x16x128xbf16, #tpu.memory_space<vmem>>, %arg4: memref<1152x128xbf16, #tpu.memory_space<vmem>>, %arg5: memref<128x128xbf16, #tpu.memory_space<vmem>>, %arg6: memref<1x16x128xf32, #tpu.memory_space<vmem>>, %arg7: memref<1x128xf32, #tpu.memory_space<vmem>>, %arg8: memref<1x128xf32, #tpu.memory_space<vmem>>, %arg9: memref<1x16x128xf32, #tpu.memory_space<vmem>>, %arg10: memref<1x128xf32, #tpu.memory_space<vmem>>, %arg11: memref<1x128xf32, #tpu.memory_space<vmem>>) attributes {dimension_semantics = [#tpu.dimension_semantics<arbitrary>, #tpu.dimension_semantics<arbitrary>], iteration_bounds = array<i64: 2, 1>, scalar_prefetch = 0 : i64, scratch_operands = 0 : i64, tpu.core_type = #tpu.core_type<tc>, window_params = [{transform_indices = @transform_0, window_bounds = array<i64: 1, 16, 1152>}, {transform_indices = @transform_1, window_bounds = array<i64: 1, 16, 128>}, {pipeline_mode = #tpu.pipeline_mode<synchronous>, transform_indices = @transform_2, window_bounds = array<i64: 1152, 128>}, {pipeline_mode = #tpu.pipeline_mode<synchronous>, transform_indices = @transform_3, window_bounds = array<i64: 128, 128>}, {transform_indices = @transform_4, window_bounds = array<i64: 1, 16, 128>}, {pipeline_mode = #tpu.pipeline_mode<synchronous>, transform_indices = @transform_5, window_bounds = array<i64: 1, 128>}, {pipeline_mode = #tpu.pipeline_mode<synchronous>, transform_indices = @transform_6, window_bounds = array<i64: 1, 128>}, {transform_indices = @transform_7, window_bounds = array<i64: 1, 16, 128>}, {pipeline_mode = #tpu.pipeline_mode<synchronous>, transform_indices = @transform_8, window_bounds = array<i64: 1, 128>}, {pipeline_mode = #tpu.pipeline_mode<synchronous>, transform_indices = @transform_9, window_bounds = array<i64: 1, 128>}]} {
    %c0 = arith.constant 0 : index
    %c0_0 = arith.constant 0 : index
    %c0_1 = arith.constant 0 : index
    %0 = vector.load %arg2[%c0, %c0_0, %c0_1] : memref<1x16x1152xbf16, #tpu.memory_space<vmem>>, vector<1x16x1152xbf16>
    %1 = vector.shape_cast %0 : vector<1x16x1152xbf16> to vector<16x1152xbf16>
    %c0_2 = arith.constant 0 : index
    %c0_3 = arith.constant 0 : index
    %2 = vector.load %arg4[%c0_2, %c0_3] : memref<1152x128xbf16, #tpu.memory_space<vmem>>, vector<1152x128xbf16>
    %cst = arith.constant dense<0.000000e+00> : vector<16x128xf32>
    %3 = tpu.matmul %1, %2, %cst {dimension_numbers = #tpu.dot_dimension_numbers<[1], [0], [0], [1], [0, 0, 1, 1], [], []>} : vector<16x1152xbf16>, vector<1152x128xbf16>, vector<16x128xf32> -> vector<16x128xf32>
    %c0_4 = arith.constant 0 : index
    %c0_5 = arith.constant 0 : index
    %c0_6 = arith.constant 0 : index
    %4 = vector.load %arg3[%c0_4, %c0_5, %c0_6] : memref<1x16x128xbf16, #tpu.memory_space<vmem>>, vector<1x16x128xbf16>
    %5 = vector.shape_cast %4 : vector<1x16x128xbf16> to vector<16x128xbf16>
    %c0_7 = arith.constant 0 : index
    %c0_8 = arith.constant 0 : index
    %6 = vector.load %arg5[%c0_7, %c0_8] : memref<128x128xbf16, #tpu.memory_space<vmem>>, vector<128x128xbf16>
    %cst_9 = arith.constant dense<0.000000e+00> : vector<16x128xf32>
    %7 = tpu.matmul %5, %6, %cst_9 {dimension_numbers = #tpu.dot_dimension_numbers<[1], [0], [0], [1], [0, 0, 1, 1], [], []>} : vector<16x128xbf16>, vector<128x128xbf16>, vector<16x128xf32> -> vector<16x128xf32>
    %c0_10 = arith.constant 0 : index
    %c0_11 = arith.constant 0 : index
    %c0_12 = arith.constant 0 : index
    %8 = vector.load %arg6[%c0_10, %c0_11, %c0_12] : memref<1x16x128xf32, #tpu.memory_space<vmem>>, vector<1x16x128xf32>
    %9 = vector.shape_cast %8 : vector<1x16x128xf32> to vector<16x128xf32>
    %10 = vector.shape_cast %3 : vector<16x128xf32> to vector<1x16x128xf32>
    tpu.vector_store %arg6[%c0_10, %c0_11, %c0_12], %10 {strides = array<i32>} : memref<1x16x128xf32, #tpu.memory_space<vmem>>, vector<1x16x128xf32>,
    %c0_13 = arith.constant 0 : index
    %c0_14 = arith.constant 0 : index
    %c0_15 = arith.constant 0 : index
    %11 = vector.load %arg9[%c0_13, %c0_14, %c0_15] : memref<1x16x128xf32, #tpu.memory_space<vmem>>, vector<1x16x128xf32>
    %12 = vector.shape_cast %11 : vector<1x16x128xf32> to vector<16x128xf32>
    %13 = vector.shape_cast %7 : vector<16x128xf32> to vector<1x16x128xf32>
    tpu.vector_store %arg9[%c0_13, %c0_14, %c0_15], %13 {strides = array<i32>} : memref<1x16x128xf32, #tpu.memory_space<vmem>>, vector<1x16x128xf32>,
    %c0_i32 = arith.constant 0 : i32
    %14 = arith.cmpi eq, %arg0, %c0_i32 : i32
    %c0_i32_16 = arith.constant 0 : i32
    %15 = arith.cmpi eq, %arg1, %c0_i32_16 : i32
    %16 = arith.andi %14, %15 : i1
    %17 = arith.extui %16 : i1 to i32
    %c0_i32_17 = arith.constant 0 : i32
    %18 = arith.cmpi ne, %17, %c0_i32_17 : i32
    scf.if %18 {
      %cst_38 = arith.constant 0.000000e+00 : f32
      %41 = vector.broadcast %cst_38 : f32 to vector<1x128xf32>
      %c0_39 = arith.constant 0 : index
      %c0_40 = arith.constant 0 : index
      %42 = vector.load %arg7[%c0_39, %c0_40] : memref<1x128xf32, #tpu.memory_space<vmem>>, vector<1x128xf32>
      tpu.vector_store %arg7[%c0_39, %c0_40], %41 {strides = array<i32>} : memref<1x128xf32, #tpu.memory_space<vmem>>, vector<1x128xf32>,
      %cst_41 = arith.constant 0.000000e+00 : f32
      %43 = vector.broadcast %cst_41 : f32 to vector<1x128xf32>
      %c0_42 = arith.constant 0 : index
      %c0_43 = arith.constant 0 : index
      %44 = vector.load %arg8[%c0_42, %c0_43] : memref<1x128xf32, #tpu.memory_space<vmem>>, vector<1x128xf32>
      tpu.vector_store %arg8[%c0_42, %c0_43], %43 {strides = array<i32>} : memref<1x128xf32, #tpu.memory_space<vmem>>, vector<1x128xf32>,
      %cst_44 = arith.constant 0.000000e+00 : f32
      %45 = vector.broadcast %cst_44 : f32 to vector<1x128xf32>
      %c0_45 = arith.constant 0 : index
      %c0_46 = arith.constant 0 : index
      %46 = vector.load %arg10[%c0_45, %c0_46] : memref<1x128xf32, #tpu.memory_space<vmem>>, vector<1x128xf32>
      tpu.vector_store %arg10[%c0_45, %c0_46], %45 {strides = array<i32>} : memref<1x128xf32, #tpu.memory_space<vmem>>, vector<1x128xf32>,
      %cst_47 = arith.constant 0.000000e+00 : f32
      %47 = vector.broadcast %cst_47 : f32 to vector<1x128xf32>
      %c0_48 = arith.constant 0 : index
      %c0_49 = arith.constant 0 : index
      %48 = vector.load %arg11[%c0_48, %c0_49] : memref<1x128xf32, #tpu.memory_space<vmem>>, vector<1x128xf32>
      tpu.vector_store %arg11[%c0_48, %c0_49], %47 {strides = array<i32>} : memref<1x128xf32, #tpu.memory_space<vmem>>, vector<1x128xf32>,
    } else {
    }
    %c0_18 = arith.constant 0 : index
    %c0_19 = arith.constant 0 : index
    %19 = vector.load %arg7[%c0_18, %c0_19] : memref<1x128xf32, #tpu.memory_space<vmem>>, vector<1x128xf32>
    %cst_20 = arith.constant dense<0.000000e+00> : vector<128xf32>
    %20 = vector.multi_reduction <add>, %3, %cst_20 [0] : vector<16x128xf32> to vector<128xf32>
    %21 = vector.shape_cast %20 : vector<128xf32> to vector<1x128xf32>
    %22 = arith.addf %19, %21 : vector<1x128xf32>
    %c0_21 = arith.constant 0 : index
    %c0_22 = arith.constant 0 : index
    %23 = vector.load %arg7[%c0_21, %c0_22] : memref<1x128xf32, #tpu.memory_space<vmem>>, vector<1x128xf32>
    tpu.vector_store %arg7[%c0_21, %c0_22], %22 {strides = array<i32>} : memref<1x128xf32, #tpu.memory_space<vmem>>, vector<1x128xf32>,
    %c0_23 = arith.constant 0 : index
    %c0_24 = arith.constant 0 : index
    %24 = vector.load %arg8[%c0_23, %c0_24] : memref<1x128xf32, #tpu.memory_space<vmem>>, vector<1x128xf32>
    %25 = arith.mulf %3, %3 : vector<16x128xf32>
    %cst_25 = arith.constant dense<0.000000e+00> : vector<128xf32>
    %26 = vector.multi_reduction <add>, %25, %cst_25 [0] : vector<16x128xf32> to vector<128xf32>
    %27 = vector.shape_cast %26 : vector<128xf32> to vector<1x128xf32>
    %28 = arith.addf %24, %27 : vector<1x128xf32>
    %c0_26 = arith.constant 0 : index
    %c0_27 = arith.constant 0 : index
    %29 = vector.load %arg8[%c0_26, %c0_27] : memref<1x128xf32, #tpu.memory_space<vmem>>, vector<1x128xf32>
    tpu.vector_store %arg8[%c0_26, %c0_27], %28 {strides = array<i32>} : memref<1x128xf32, #tpu.memory_space<vmem>>, vector<1x128xf32>,
    %c0_28 = arith.constant 0 : index
    %c0_29 = arith.constant 0 : index
    %30 = vector.load %arg10[%c0_28, %c0_29] : memref<1x128xf32, #tpu.memory_space<vmem>>, vector<1x128xf32>
    %cst_30 = arith.constant dense<0.000000e+00> : vector<128xf32>
    %31 = vector.multi_reduction <add>, %7, %cst_30 [0] : vector<16x128xf32> to vector<128xf32>
    %32 = vector.shape_cast %31 : vector<128xf32> to vector<1x128xf32>
    %33 = arith.addf %30, %32 : vector<1x128xf32>
    %c0_31 = arith.constant 0 : index
    %c0_32 = arith.constant 0 : index
    %34 = vector.load %arg10[%c0_31, %c0_32] : memref<1x128xf32, #tpu.memory_space<vmem>>, vector<1x128xf32>
    tpu.vector_store %arg10[%c0_31, %c0_32], %33 {strides = array<i32>} : memref<1x128xf32, #tpu.memory_space<vmem>>, vector<1x128xf32>,
    %c0_33 = arith.constant 0 : index
    %c0_34 = arith.constant 0 : index
    %35 = vector.load %arg11[%c0_33, %c0_34] : memref<1x128xf32, #tpu.memory_space<vmem>>, vector<1x128xf32>
    %36 = arith.mulf %7, %7 : vector<16x128xf32>
    %cst_35 = arith.constant dense<0.000000e+00> : vector<128xf32>
    %37 = vector.multi_reduction <add>, %36, %cst_35 [0] : vector<16x128xf32> to vector<128xf32>
    %38 = vector.shape_cast %37 : vector<128xf32> to vector<1x128xf32>
    %39 = arith.addf %35, %38 : vector<1x128xf32>
    %c0_36 = arith.constant 0 : index
    %c0_37 = arith.constant 0 : index
    %40 = vector.load %arg11[%c0_36, %c0_37] : memref<1x128xf32, #tpu.memory_space<vmem>>, vector<1x128xf32>
    tpu.vector_store %arg11[%c0_36, %c0_37], %39 {strides = array<i32>} : memref<1x128xf32, #tpu.memory_space<vmem>>, vector<1x128xf32>,
    return
  }
  func.func @transform_0(%arg0: i32, %arg1: i32) -> (i32, i32, i32) {
    %c0_i32 = arith.constant 0 : i32
    %c0_i32_0 = arith.constant 0 : i32
    return %arg0, %arg1, %c0_i32 : i32, i32, i32
  }
  func.func @transform_1(%arg0: i32, %arg1: i32) -> (i32, i32, i32) {
    %c0_i32 = arith.constant 0 : i32
    %c0_i32_0 = arith.constant 0 : i32
    return %arg0, %arg1, %c0_i32 : i32, i32, i32
  }
  func.func @transform_2(%arg0: i32, %arg1: i32) -> (i32, i32) {
    %c0_i32 = arith.constant 0 : i32
    %c0_i32_0 = arith.constant 0 : i32
    %c0_i32_1 = arith.constant 0 : i32
    return %c0_i32, %c0_i32_0 : i32, i32
  }
  func.func @transform_3(%arg0: i32, %arg1: i32) -> (i32, i32) {
    %c0_i32 = arith.constant 0 : i32
    %c0_i32_0 = arith.constant 0 : i32
    %c0_i32_1 = arith.constant 0 : i32
    return %c0_i32, %c0_i32_0 : i32, i32
  }
  func.func @transform_4(%arg0: i32, %arg1: i32) -> (i32, i32, i32) {
    %c0_i32 = arith.constant 0 : i32
    %c0_i32_0 = arith.constant 0 : i32
    return %arg0, %arg1, %c0_i32 : i32, i32, i32
  }
  func.func @transform_5(%arg0: i32, %arg1: i32) -> (i32, i32) {
    %c0_i32 = arith.constant 0 : i32
    %c0_i32_0 = arith.constant 0 : i32
    %c0_i32_1 = arith.constant 0 : i32
    return %c0_i32, %c0_i32_0 : i32, i32
  }
  func.func @transform_6(%arg0: i32, %arg1: i32) -> (i32, i32) {
    %c0_i32 = arith.constant 0 : i32
    %c0_i32_0 = arith.constant 0 : i32
    %c0_i32_1 = arith.constant 0 : i32
    return %c0_i32, %c0_i32_0 : i32, i32
  }
  func.func @transform_7(%arg0: i32, %arg1: i32) -> (i32, i32, i32) {
    %c0_i32 = arith.constant 0 : i32
    %c0_i32_0 = arith.constant 0 : i32
    return %arg0, %arg1, %c0_i32 : i32, i32, i32
  }
  func.func @transform_8(%arg0: i32, %arg1: i32) -> (i32, i32) {
    %c0_i32 = arith.constant 0 : i32
    %c0_i32_0 = arith.constant 0 : i32
    %c0_i32_1 = arith.constant 0 : i32
    return %c0_i32, %c0_i32_0 : i32, i32
  }
  func.func @transform_9(%arg0: i32, %arg1: i32) -> (i32, i32) {
    %c0_i32 = arith.constant 0 : i32
    %c0_i32_0 = arith.constant 0 : i32
    %c0_i32_1 = arith.constant 0 : i32
    return %c0_i32, %c0_i32_0 : i32, i32
  }
}

module attributes {stable_mosaic.version = 11 : i64} {
  func.func @_bn_act_kernel(%arg0: i32, %arg1: i32, %arg2: memref<1x16x128xf32, #tpu.memory_space<vmem>>, %arg3: memref<1x128xf32, #tpu.memory_space<vmem>>, %arg4: memref<1x128xf32, #tpu.memory_space<vmem>>, %arg5: memref<1x128xf32, #tpu.memory_space<vmem>>, %arg6: memref<1x128xf32, #tpu.memory_space<vmem>>, %arg7: memref<1x16x128xbf16, #tpu.memory_space<vmem>>) attributes {dimension_semantics = [#tpu.dimension_semantics<parallel>, #tpu.dimension_semantics<parallel>], iteration_bounds = array<i64: 2, 1>, scalar_prefetch = 0 : i64, scratch_operands = 0 : i64, tpu.core_type = #tpu.core_type<tc>, window_params = [{transform_indices = @transform_0, window_bounds = array<i64: 1, 16, 128>}, {pipeline_mode = #tpu.pipeline_mode<synchronous>, transform_indices = @transform_1, window_bounds = array<i64: 1, 128>}, {pipeline_mode = #tpu.pipeline_mode<synchronous>, transform_indices = @transform_2, window_bounds = array<i64: 1, 128>}, {pipeline_mode = #tpu.pipeline_mode<synchronous>, transform_indices = @transform_3, window_bounds = array<i64: 1, 128>}, {pipeline_mode = #tpu.pipeline_mode<synchronous>, transform_indices = @transform_4, window_bounds = array<i64: 1, 128>}, {transform_indices = @transform_5, window_bounds = array<i64: 1, 16, 128>}]} {
    %c0 = arith.constant 0 : index
    %c0_0 = arith.constant 0 : index
    %0 = vector.load %arg3[%c0, %c0_0] : memref<1x128xf32, #tpu.memory_space<vmem>>, vector<1x128xf32>
    %c0_1 = arith.constant 0 : index
    %c0_2 = arith.constant 0 : index
    %1 = vector.load %arg4[%c0_1, %c0_2] : memref<1x128xf32, #tpu.memory_space<vmem>>, vector<1x128xf32>
    %cst = arith.constant 3.125000e-02 : f32
    %2 = vector.broadcast %cst : f32 to vector<1x128xf32>
    %3 = arith.mulf %0, %2 : vector<1x128xf32>
    %cst_3 = arith.constant 3.125000e-02 : f32
    %4 = vector.broadcast %cst_3 : f32 to vector<1x128xf32>
    %5 = arith.mulf %1, %4 : vector<1x128xf32>
    %6 = arith.mulf %3, %3 : vector<1x128xf32>
    %7 = arith.subf %5, %6 : vector<1x128xf32>
    %cst_4 = arith.constant 9.99999974E-6 : f32
    %8 = vector.broadcast %cst_4 : f32 to vector<1x128xf32>
    %9 = arith.addf %7, %8 : vector<1x128xf32>
    %10 = math.rsqrt %9 : vector<1x128xf32>
    %c0_5 = arith.constant 0 : index
    %c0_6 = arith.constant 0 : index
    %c0_7 = arith.constant 0 : index
    %11 = vector.load %arg2[%c0_5, %c0_6, %c0_7] : memref<1x16x128xf32, #tpu.memory_space<vmem>>, vector<1x16x128xf32>
    %12 = vector.shape_cast %11 : vector<1x16x128xf32> to vector<16x128xf32>
    %13 = vector.broadcast %3 : vector<1x128xf32> to vector<16x128xf32>
    %14 = arith.subf %12, %13 : vector<16x128xf32>
    %15 = vector.broadcast %10 : vector<1x128xf32> to vector<16x128xf32>
    %16 = arith.mulf %14, %15 : vector<16x128xf32>
    %c0_8 = arith.constant 0 : index
    %c0_9 = arith.constant 0 : index
    %17 = vector.load %arg5[%c0_8, %c0_9] : memref<1x128xf32, #tpu.memory_space<vmem>>, vector<1x128xf32>
    %18 = vector.broadcast %17 : vector<1x128xf32> to vector<16x128xf32>
    %19 = arith.mulf %16, %18 : vector<16x128xf32>
    %c0_10 = arith.constant 0 : index
    %c0_11 = arith.constant 0 : index
    %20 = vector.load %arg6[%c0_10, %c0_11] : memref<1x128xf32, #tpu.memory_space<vmem>>, vector<1x128xf32>
    %21 = vector.broadcast %20 : vector<1x128xf32> to vector<16x128xf32>
    %22 = arith.addf %19, %21 : vector<16x128xf32>
    %cst_12 = arith.constant 0.000000e+00 : f32
    %23 = vector.broadcast %cst_12 : f32 to vector<16x128xf32>
    %24 = arith.maximumf %22, %23 : vector<16x128xf32>
    %25 = arith.truncf %24 : vector<16x128xf32> to vector<16x128xbf16>
    %c0_13 = arith.constant 0 : index
    %c0_14 = arith.constant 0 : index
    %c0_15 = arith.constant 0 : index
    %26 = vector.load %arg7[%c0_13, %c0_14, %c0_15] : memref<1x16x128xbf16, #tpu.memory_space<vmem>>, vector<1x16x128xbf16>
    %27 = vector.shape_cast %26 : vector<1x16x128xbf16> to vector<16x128xbf16>
    %28 = vector.shape_cast %25 : vector<16x128xbf16> to vector<1x16x128xbf16>
    tpu.vector_store %arg7[%c0_13, %c0_14, %c0_15], %28 {strides = array<i32>} : memref<1x16x128xbf16, #tpu.memory_space<vmem>>, vector<1x16x128xbf16>,
    return
  }
  func.func @transform_0(%arg0: i32, %arg1: i32) -> (i32, i32, i32) {
    %c0_i32 = arith.constant 0 : i32
    %c0_i32_0 = arith.constant 0 : i32
    return %arg0, %arg1, %c0_i32 : i32, i32, i32
  }
  func.func @transform_1(%arg0: i32, %arg1: i32) -> (i32, i32) {
    %c0_i32 = arith.constant 0 : i32
    %c0_i32_0 = arith.constant 0 : i32
    %c0_i32_1 = arith.constant 0 : i32
    return %c0_i32, %c0_i32_0 : i32, i32
  }
  func.func @transform_2(%arg0: i32, %arg1: i32) -> (i32, i32) {
    %c0_i32 = arith.constant 0 : i32
    %c0_i32_0 = arith.constant 0 : i32
    %c0_i32_1 = arith.constant 0 : i32
    return %c0_i32, %c0_i32_0 : i32, i32
  }
  func.func @transform_3(%arg0: i32, %arg1: i32) -> (i32, i32) {
    %c0_i32 = arith.constant 0 : i32
    %c0_i32_0 = arith.constant 0 : i32
    %c0_i32_1 = arith.constant 0 : i32
    return %c0_i32, %c0_i32_0 : i32, i32
  }
  func.func @transform_4(%arg0: i32, %arg1: i32) -> (i32, i32) {
    %c0_i32 = arith.constant 0 : i32
    %c0_i32_0 = arith.constant 0 : i32
    %c0_i32_1 = arith.constant 0 : i32
    return %c0_i32, %c0_i32_0 : i32, i32
  }
  func.func @transform_5(%arg0: i32, %arg1: i32) -> (i32, i32, i32) {
    %c0_i32 = arith.constant 0 : i32
    %c0_i32_0 = arith.constant 0 : i32
    return %arg0, %arg1, %c0_i32 : i32, i32, i32
  }
}

module attributes {stable_mosaic.version = 11 : i64} {
  func.func @_se_scale_kernel(%arg0: i32, %arg1: memref<1x1x128xf32, #tpu.memory_space<vmem>>, %arg2: memref<1x128xf32, #tpu.memory_space<vmem>>, %arg3: memref<1x128xf32, #tpu.memory_space<vmem>>, %arg4: memref<1x128xf32, #tpu.memory_space<vmem>>, %arg5: memref<1x128xf32, #tpu.memory_space<vmem>>, %arg6: memref<128x128xf32, #tpu.memory_space<vmem>>, %arg7: memref<1x128xf32, #tpu.memory_space<vmem>>, %arg8: memref<128x128xf32, #tpu.memory_space<vmem>>, %arg9: memref<1x128xf32, #tpu.memory_space<vmem>>, %arg10: memref<1x1x128xf32, #tpu.memory_space<vmem>>) attributes {dimension_semantics = [#tpu.dimension_semantics<parallel>], iteration_bounds = array<i64: 2>, scalar_prefetch = 0 : i64, scratch_operands = 0 : i64, tpu.core_type = #tpu.core_type<tc>, window_params = [{transform_indices = @transform_0, window_bounds = array<i64: 1, 1, 128>}, {pipeline_mode = #tpu.pipeline_mode<synchronous>, transform_indices = @transform_1, window_bounds = array<i64: 1, 128>}, {pipeline_mode = #tpu.pipeline_mode<synchronous>, transform_indices = @transform_2, window_bounds = array<i64: 1, 128>}, {pipeline_mode = #tpu.pipeline_mode<synchronous>, transform_indices = @transform_3, window_bounds = array<i64: 1, 128>}, {pipeline_mode = #tpu.pipeline_mode<synchronous>, transform_indices = @transform_4, window_bounds = array<i64: 1, 128>}, {pipeline_mode = #tpu.pipeline_mode<synchronous>, transform_indices = @transform_5, window_bounds = array<i64: 128, 128>}, {pipeline_mode = #tpu.pipeline_mode<synchronous>, transform_indices = @transform_6, window_bounds = array<i64: 1, 128>}, {pipeline_mode = #tpu.pipeline_mode<synchronous>, transform_indices = @transform_7, window_bounds = array<i64: 128, 128>}, {pipeline_mode = #tpu.pipeline_mode<synchronous>, transform_indices = @transform_8, window_bounds = array<i64: 1, 128>}, {transform_indices = @transform_9, window_bounds = array<i64: 1, 1, 128>}]} {
    %c0 = arith.constant 0 : index
    %c0_0 = arith.constant 0 : index
    %0 = vector.load %arg2[%c0, %c0_0] : memref<1x128xf32, #tpu.memory_space<vmem>>, vector<1x128xf32>
    %c0_1 = arith.constant 0 : index
    %c0_2 = arith.constant 0 : index
    %1 = vector.load %arg3[%c0_1, %c0_2] : memref<1x128xf32, #tpu.memory_space<vmem>>, vector<1x128xf32>
    %cst = arith.constant 3.125000e-02 : f32
    %2 = vector.broadcast %cst : f32 to vector<1x128xf32>
    %3 = arith.mulf %0, %2 : vector<1x128xf32>
    %cst_3 = arith.constant 3.125000e-02 : f32
    %4 = vector.broadcast %cst_3 : f32 to vector<1x128xf32>
    %5 = arith.mulf %1, %4 : vector<1x128xf32>
    %6 = arith.mulf %3, %3 : vector<1x128xf32>
    %7 = arith.subf %5, %6 : vector<1x128xf32>
    %cst_4 = arith.constant 9.99999974E-6 : f32
    %8 = vector.broadcast %cst_4 : f32 to vector<1x128xf32>
    %9 = arith.addf %7, %8 : vector<1x128xf32>
    %10 = math.rsqrt %9 : vector<1x128xf32>
    %c0_5 = arith.constant 0 : index
    %c0_6 = arith.constant 0 : index
    %c0_7 = arith.constant 0 : index
    %11 = vector.load %arg1[%c0_5, %c0_6, %c0_7] : memref<1x1x128xf32, #tpu.memory_space<vmem>>, vector<1x1x128xf32>
    %12 = vector.shape_cast %11 : vector<1x1x128xf32> to vector<1x128xf32>
    %cst_8 = arith.constant 6.250000e-02 : f32
    %13 = vector.broadcast %cst_8 : f32 to vector<1x128xf32>
    %14 = arith.mulf %12, %13 : vector<1x128xf32>
    %15 = arith.subf %14, %3 : vector<1x128xf32>
    %16 = arith.mulf %15, %10 : vector<1x128xf32>
    %c0_9 = arith.constant 0 : index
    %c0_10 = arith.constant 0 : index
    %17 = vector.load %arg4[%c0_9, %c0_10] : memref<1x128xf32, #tpu.memory_space<vmem>>, vector<1x128xf32>
    %18 = arith.mulf %16, %17 : vector<1x128xf32>
    %c0_11 = arith.constant 0 : index
    %c0_12 = arith.constant 0 : index
    %19 = vector.load %arg5[%c0_11, %c0_12] : memref<1x128xf32, #tpu.memory_space<vmem>>, vector<1x128xf32>
    %20 = arith.addf %18, %19 : vector<1x128xf32>
    %c0_13 = arith.constant 0 : index
    %c0_14 = arith.constant 0 : index
    %21 = vector.load %arg6[%c0_13, %c0_14] : memref<128x128xf32, #tpu.memory_space<vmem>>, vector<128x128xf32>
    %cst_15 = arith.constant dense<0.000000e+00> : vector<1x128xf32>
    %22 = tpu.matmul %20, %21, %cst_15 {dimension_numbers = #tpu.dot_dimension_numbers<[1], [0], [0], [1], [0, 0, 1, 1], [], []>} : vector<1x128xf32>, vector<128x128xf32>, vector<1x128xf32> -> vector<1x128xf32>
    %c0_16 = arith.constant 0 : index
    %c0_17 = arith.constant 0 : index
    %23 = vector.load %arg7[%c0_16, %c0_17] : memref<1x128xf32, #tpu.memory_space<vmem>>, vector<1x128xf32>
    %24 = arith.addf %22, %23 : vector<1x128xf32>
    %cst_18 = arith.constant 0.000000e+00 : f32
    %25 = vector.broadcast %cst_18 : f32 to vector<1x128xf32>
    %26 = arith.maximumf %24, %25 : vector<1x128xf32>
    %c0_19 = arith.constant 0 : index
    %c0_20 = arith.constant 0 : index
    %27 = vector.load %arg8[%c0_19, %c0_20] : memref<128x128xf32, #tpu.memory_space<vmem>>, vector<128x128xf32>
    %cst_21 = arith.constant dense<0.000000e+00> : vector<1x128xf32>
    %28 = tpu.matmul %26, %27, %cst_21 {dimension_numbers = #tpu.dot_dimension_numbers<[1], [0], [0], [1], [0, 0, 1, 1], [], []>} : vector<1x128xf32>, vector<128x128xf32>, vector<1x128xf32> -> vector<1x128xf32>
    %c0_22 = arith.constant 0 : index
    %c0_23 = arith.constant 0 : index
    %29 = vector.load %arg9[%c0_22, %c0_23] : memref<1x128xf32, #tpu.memory_space<vmem>>, vector<1x128xf32>
    %30 = arith.addf %28, %29 : vector<1x128xf32>
    %31 = arith.negf %30 : vector<1x128xf32>
    %32 = math.exp %31 : vector<1x128xf32>
    %cst_24 = arith.constant 1.000000e+00 : f32
    %33 = vector.broadcast %cst_24 : f32 to vector<1x128xf32>
    %34 = arith.addf %33, %32 : vector<1x128xf32>
    %35 = arith.divf %33, %34 : vector<1x128xf32>
    %c0_25 = arith.constant 0 : index
    %c0_26 = arith.constant 0 : index
    %c0_27 = arith.constant 0 : index
    %36 = vector.load %arg10[%c0_25, %c0_26, %c0_27] : memref<1x1x128xf32, #tpu.memory_space<vmem>>, vector<1x1x128xf32>
    %37 = vector.shape_cast %36 : vector<1x1x128xf32> to vector<1x128xf32>
    %38 = vector.shape_cast %35 : vector<1x128xf32> to vector<1x1x128xf32>
    tpu.vector_store %arg10[%c0_25, %c0_26, %c0_27], %38 {strides = array<i32>} : memref<1x1x128xf32, #tpu.memory_space<vmem>>, vector<1x1x128xf32>,
    return
  }
  func.func @transform_0(%arg0: i32) -> (i32, i32, i32) {
    %c0_i32 = arith.constant 0 : i32
    %c0_i32_0 = arith.constant 0 : i32
    %c0_i32_1 = arith.constant 0 : i32
    return %arg0, %c0_i32, %c0_i32_0 : i32, i32, i32
  }
  func.func @transform_1(%arg0: i32) -> (i32, i32) {
    %c0_i32 = arith.constant 0 : i32
    %c0_i32_0 = arith.constant 0 : i32
    %c0_i32_1 = arith.constant 0 : i32
    return %c0_i32, %c0_i32_0 : i32, i32
  }
  func.func @transform_2(%arg0: i32) -> (i32, i32) {
    %c0_i32 = arith.constant 0 : i32
    %c0_i32_0 = arith.constant 0 : i32
    %c0_i32_1 = arith.constant 0 : i32
    return %c0_i32, %c0_i32_0 : i32, i32
  }
  func.func @transform_3(%arg0: i32) -> (i32, i32) {
    %c0_i32 = arith.constant 0 : i32
    %c0_i32_0 = arith.constant 0 : i32
    %c0_i32_1 = arith.constant 0 : i32
    return %c0_i32, %c0_i32_0 : i32, i32
  }
  func.func @transform_4(%arg0: i32) -> (i32, i32) {
    %c0_i32 = arith.constant 0 : i32
    %c0_i32_0 = arith.constant 0 : i32
    %c0_i32_1 = arith.constant 0 : i32
    return %c0_i32, %c0_i32_0 : i32, i32
  }
  func.func @transform_5(%arg0: i32) -> (i32, i32) {
    %c0_i32 = arith.constant 0 : i32
    %c0_i32_0 = arith.constant 0 : i32
    %c0_i32_1 = arith.constant 0 : i32
    return %c0_i32, %c0_i32_0 : i32, i32
  }
  func.func @transform_6(%arg0: i32) -> (i32, i32) {
    %c0_i32 = arith.constant 0 : i32
    %c0_i32_0 = arith.constant 0 : i32
    %c0_i32_1 = arith.constant 0 : i32
    return %c0_i32, %c0_i32_0 : i32, i32
  }
  func.func @transform_7(%arg0: i32) -> (i32, i32) {
    %c0_i32 = arith.constant 0 : i32
    %c0_i32_0 = arith.constant 0 : i32
    %c0_i32_1 = arith.constant 0 : i32
    return %c0_i32, %c0_i32_0 : i32, i32
  }
  func.func @transform_8(%arg0: i32) -> (i32, i32) {
    %c0_i32 = arith.constant 0 : i32
    %c0_i32_0 = arith.constant 0 : i32
    %c0_i32_1 = arith.constant 0 : i32
    return %c0_i32, %c0_i32_0 : i32, i32
  }
  func.func @transform_9(%arg0: i32) -> (i32, i32, i32) {
    %c0_i32 = arith.constant 0 : i32
    %c0_i32_0 = arith.constant 0 : i32
    %c0_i32_1 = arith.constant 0 : i32
    return %arg0, %c0_i32, %c0_i32_0 : i32, i32, i32
  }
}

module attributes {stable_mosaic.version = 11 : i64} {
  func.func @_gemm_stats_kernel(%arg0: i32, %arg1: i32, %arg2: memref<1x16x1152xbf16, #tpu.memory_space<vmem>>, %arg3: memref<1152x128xbf16, #tpu.memory_space<vmem>>, %arg4: memref<1x16x128xf32, #tpu.memory_space<vmem>>, %arg5: memref<1x128xf32, #tpu.memory_space<vmem>>, %arg6: memref<1x128xf32, #tpu.memory_space<vmem>>, %arg7: memref<1x1x128xf32, #tpu.memory_space<vmem>>) attributes {dimension_semantics = [#tpu.dimension_semantics<arbitrary>, #tpu.dimension_semantics<arbitrary>], iteration_bounds = array<i64: 2, 1>, scalar_prefetch = 0 : i64, scratch_operands = 0 : i64, tpu.core_type = #tpu.core_type<tc>, window_params = [{transform_indices = @transform_0, window_bounds = array<i64: 1, 16, 1152>}, {pipeline_mode = #tpu.pipeline_mode<synchronous>, transform_indices = @transform_1, window_bounds = array<i64: 1152, 128>}, {transform_indices = @transform_2, window_bounds = array<i64: 1, 16, 128>}, {pipeline_mode = #tpu.pipeline_mode<synchronous>, transform_indices = @transform_3, window_bounds = array<i64: 1, 128>}, {pipeline_mode = #tpu.pipeline_mode<synchronous>, transform_indices = @transform_4, window_bounds = array<i64: 1, 128>}, {transform_indices = @transform_5, window_bounds = array<i64: 1, 1, 128>}]} {
    %c0 = arith.constant 0 : index
    %c0_0 = arith.constant 0 : index
    %c0_1 = arith.constant 0 : index
    %0 = vector.load %arg2[%c0, %c0_0, %c0_1] : memref<1x16x1152xbf16, #tpu.memory_space<vmem>>, vector<1x16x1152xbf16>
    %1 = vector.shape_cast %0 : vector<1x16x1152xbf16> to vector<16x1152xbf16>
    %c0_2 = arith.constant 0 : index
    %c0_3 = arith.constant 0 : index
    %2 = vector.load %arg3[%c0_2, %c0_3] : memref<1152x128xbf16, #tpu.memory_space<vmem>>, vector<1152x128xbf16>
    %cst = arith.constant dense<0.000000e+00> : vector<16x128xf32>
    %3 = tpu.matmul %1, %2, %cst {dimension_numbers = #tpu.dot_dimension_numbers<[1], [0], [0], [1], [0, 0, 1, 1], [], []>} : vector<16x1152xbf16>, vector<1152x128xbf16>, vector<16x128xf32> -> vector<16x128xf32>
    %c0_4 = arith.constant 0 : index
    %c0_5 = arith.constant 0 : index
    %c0_6 = arith.constant 0 : index
    %4 = vector.load %arg4[%c0_4, %c0_5, %c0_6] : memref<1x16x128xf32, #tpu.memory_space<vmem>>, vector<1x16x128xf32>
    %5 = vector.shape_cast %4 : vector<1x16x128xf32> to vector<16x128xf32>
    %6 = vector.shape_cast %3 : vector<16x128xf32> to vector<1x16x128xf32>
    tpu.vector_store %arg4[%c0_4, %c0_5, %c0_6], %6 {strides = array<i32>} : memref<1x16x128xf32, #tpu.memory_space<vmem>>, vector<1x16x128xf32>,
    %c0_i32 = arith.constant 0 : i32
    %7 = arith.cmpi eq, %arg0, %c0_i32 : i32
    %c0_i32_7 = arith.constant 0 : i32
    %8 = arith.cmpi eq, %arg1, %c0_i32_7 : i32
    %9 = arith.andi %7, %8 : i1
    %10 = arith.extui %9 : i1 to i32
    %c0_i32_8 = arith.constant 0 : i32
    %11 = arith.cmpi ne, %10, %c0_i32_8 : i32
    scf.if %11 {
      %cst_27 = arith.constant 0.000000e+00 : f32
      %32 = vector.broadcast %cst_27 : f32 to vector<1x128xf32>
      %c0_28 = arith.constant 0 : index
      %c0_29 = arith.constant 0 : index
      %33 = vector.load %arg5[%c0_28, %c0_29] : memref<1x128xf32, #tpu.memory_space<vmem>>, vector<1x128xf32>
      tpu.vector_store %arg5[%c0_28, %c0_29], %32 {strides = array<i32>} : memref<1x128xf32, #tpu.memory_space<vmem>>, vector<1x128xf32>,
      %cst_30 = arith.constant 0.000000e+00 : f32
      %34 = vector.broadcast %cst_30 : f32 to vector<1x128xf32>
      %c0_31 = arith.constant 0 : index
      %c0_32 = arith.constant 0 : index
      %35 = vector.load %arg6[%c0_31, %c0_32] : memref<1x128xf32, #tpu.memory_space<vmem>>, vector<1x128xf32>
      tpu.vector_store %arg6[%c0_31, %c0_32], %34 {strides = array<i32>} : memref<1x128xf32, #tpu.memory_space<vmem>>, vector<1x128xf32>,
    } else {
    }
    %c0_i32_9 = arith.constant 0 : i32
    %12 = arith.cmpi eq, %arg1, %c0_i32_9 : i32
    %13 = arith.extui %12 : i1 to i32
    %c0_i32_10 = arith.constant 0 : i32
    %14 = arith.cmpi ne, %13, %c0_i32_10 : i32
    scf.if %14 {
      %cst_27 = arith.constant 0.000000e+00 : f32
      %32 = vector.broadcast %cst_27 : f32 to vector<1x1x128xf32>
      %c0_28 = arith.constant 0 : index
      %c0_29 = arith.constant 0 : index
      %c0_30 = arith.constant 0 : index
      %33 = vector.load %arg7[%c0_28, %c0_29, %c0_30] : memref<1x1x128xf32, #tpu.memory_space<vmem>>, vector<1x1x128xf32>
      tpu.vector_store %arg7[%c0_28, %c0_29, %c0_30], %32 {strides = array<i32>} : memref<1x1x128xf32, #tpu.memory_space<vmem>>, vector<1x1x128xf32>,
    } else {
    }
    %cst_11 = arith.constant dense<0.000000e+00> : vector<128xf32>
    %15 = vector.multi_reduction <add>, %3, %cst_11 [0] : vector<16x128xf32> to vector<128xf32>
    %16 = vector.shape_cast %15 : vector<128xf32> to vector<1x128xf32>
    %c0_12 = arith.constant 0 : index
    %c0_13 = arith.constant 0 : index
    %17 = vector.load %arg5[%c0_12, %c0_13] : memref<1x128xf32, #tpu.memory_space<vmem>>, vector<1x128xf32>
    %18 = arith.addf %17, %16 : vector<1x128xf32>
    %c0_14 = arith.constant 0 : index
    %c0_15 = arith.constant 0 : index
    %19 = vector.load %arg5[%c0_14, %c0_15] : memref<1x128xf32, #tpu.memory_space<vmem>>, vector<1x128xf32>
    tpu.vector_store %arg5[%c0_14, %c0_15], %18 {strides = array<i32>} : memref<1x128xf32, #tpu.memory_space<vmem>>, vector<1x128xf32>,
    %c0_16 = arith.constant 0 : index
    %c0_17 = arith.constant 0 : index
    %20 = vector.load %arg6[%c0_16, %c0_17] : memref<1x128xf32, #tpu.memory_space<vmem>>, vector<1x128xf32>
    %21 = arith.mulf %3, %3 : vector<16x128xf32>
    %cst_18 = arith.constant dense<0.000000e+00> : vector<128xf32>
    %22 = vector.multi_reduction <add>, %21, %cst_18 [0] : vector<16x128xf32> to vector<128xf32>
    %23 = vector.shape_cast %22 : vector<128xf32> to vector<1x128xf32>
    %24 = arith.addf %20, %23 : vector<1x128xf32>
    %c0_19 = arith.constant 0 : index
    %c0_20 = arith.constant 0 : index
    %25 = vector.load %arg6[%c0_19, %c0_20] : memref<1x128xf32, #tpu.memory_space<vmem>>, vector<1x128xf32>
    tpu.vector_store %arg6[%c0_19, %c0_20], %24 {strides = array<i32>} : memref<1x128xf32, #tpu.memory_space<vmem>>, vector<1x128xf32>,
    %c0_21 = arith.constant 0 : index
    %c0_22 = arith.constant 0 : index
    %c0_23 = arith.constant 0 : index
    %26 = vector.load %arg7[%c0_21, %c0_22, %c0_23] : memref<1x1x128xf32, #tpu.memory_space<vmem>>, vector<1x1x128xf32>
    %27 = vector.shape_cast %26 : vector<1x1x128xf32> to vector<1x128xf32>
    %28 = arith.addf %27, %16 : vector<1x128xf32>
    %c0_24 = arith.constant 0 : index
    %c0_25 = arith.constant 0 : index
    %c0_26 = arith.constant 0 : index
    %29 = vector.load %arg7[%c0_24, %c0_25, %c0_26] : memref<1x1x128xf32, #tpu.memory_space<vmem>>, vector<1x1x128xf32>
    %30 = vector.shape_cast %29 : vector<1x1x128xf32> to vector<1x128xf32>
    %31 = vector.shape_cast %28 : vector<1x128xf32> to vector<1x1x128xf32>
    tpu.vector_store %arg7[%c0_24, %c0_25, %c0_26], %31 {strides = array<i32>} : memref<1x1x128xf32, #tpu.memory_space<vmem>>, vector<1x1x128xf32>,
    return
  }
  func.func @transform_0(%arg0: i32, %arg1: i32) -> (i32, i32, i32) {
    %c0_i32 = arith.constant 0 : i32
    %c0_i32_0 = arith.constant 0 : i32
    return %arg0, %arg1, %c0_i32 : i32, i32, i32
  }
  func.func @transform_1(%arg0: i32, %arg1: i32) -> (i32, i32) {
    %c0_i32 = arith.constant 0 : i32
    %c0_i32_0 = arith.constant 0 : i32
    %c0_i32_1 = arith.constant 0 : i32
    return %c0_i32, %c0_i32_0 : i32, i32
  }
  func.func @transform_2(%arg0: i32, %arg1: i32) -> (i32, i32, i32) {
    %c0_i32 = arith.constant 0 : i32
    %c0_i32_0 = arith.constant 0 : i32
    return %arg0, %arg1, %c0_i32 : i32, i32, i32
  }
  func.func @transform_3(%arg0: i32, %arg1: i32) -> (i32, i32) {
    %c0_i32 = arith.constant 0 : i32
    %c0_i32_0 = arith.constant 0 : i32
    %c0_i32_1 = arith.constant 0 : i32
    return %c0_i32, %c0_i32_0 : i32, i32
  }
  func.func @transform_4(%arg0: i32, %arg1: i32) -> (i32, i32) {
    %c0_i32 = arith.constant 0 : i32
    %c0_i32_0 = arith.constant 0 : i32
    %c0_i32_1 = arith.constant 0 : i32
    return %c0_i32, %c0_i32_0 : i32, i32
  }
  func.func @transform_5(%arg0: i32, %arg1: i32) -> (i32, i32, i32) {
    %c0_i32 = arith.constant 0 : i32
    %c0_i32_0 = arith.constant 0 : i32
    %c0_i32_1 = arith.constant 0 : i32
    return %arg0, %c0_i32, %c0_i32_0 : i32, i32, i32
  }
}

module attributes {stable_mosaic.version = 11 : i64} {
  func.func @_se_res_proj_kernel(%arg0: i32, %arg1: i32, %arg2: memref<1x16x128xf32, #tpu.memory_space<vmem>>, %arg3: memref<1x128xf32, #tpu.memory_space<vmem>>, %arg4: memref<1x128xf32, #tpu.memory_space<vmem>>, %arg5: memref<1x128xf32, #tpu.memory_space<vmem>>, %arg6: memref<1x128xf32, #tpu.memory_space<vmem>>, %arg7: memref<1x1x128xf32, #tpu.memory_space<vmem>>, %arg8: memref<1x16x128xf32, #tpu.memory_space<vmem>>, %arg9: memref<1x128xf32, #tpu.memory_space<vmem>>, %arg10: memref<1x128xf32, #tpu.memory_space<vmem>>, %arg11: memref<1x128xf32, #tpu.memory_space<vmem>>, %arg12: memref<1x128xf32, #tpu.memory_space<vmem>>, %arg13: memref<1x16x128xf32, #tpu.memory_space<vmem>>) attributes {dimension_semantics = [#tpu.dimension_semantics<parallel>, #tpu.dimension_semantics<parallel>], iteration_bounds = array<i64: 2, 1>, scalar_prefetch = 0 : i64, scratch_operands = 0 : i64, tpu.core_type = #tpu.core_type<tc>, window_params = [{transform_indices = @transform_0, window_bounds = array<i64: 1, 16, 128>}, {pipeline_mode = #tpu.pipeline_mode<synchronous>, transform_indices = @transform_1, window_bounds = array<i64: 1, 128>}, {pipeline_mode = #tpu.pipeline_mode<synchronous>, transform_indices = @transform_2, window_bounds = array<i64: 1, 128>}, {pipeline_mode = #tpu.pipeline_mode<synchronous>, transform_indices = @transform_3, window_bounds = array<i64: 1, 128>}, {pipeline_mode = #tpu.pipeline_mode<synchronous>, transform_indices = @transform_4, window_bounds = array<i64: 1, 128>}, {transform_indices = @transform_5, window_bounds = array<i64: 1, 1, 128>}, {transform_indices = @transform_6, window_bounds = array<i64: 1, 16, 128>}, {pipeline_mode = #tpu.pipeline_mode<synchronous>, transform_indices = @transform_7, window_bounds = array<i64: 1, 128>}, {pipeline_mode = #tpu.pipeline_mode<synchronous>, transform_indices = @transform_8, window_bounds = array<i64: 1, 128>}, {pipeline_mode = #tpu.pipeline_mode<synchronous>, transform_indices = @transform_9, window_bounds = array<i64: 1, 128>}, {pipeline_mode = #tpu.pipeline_mode<synchronous>, transform_indices = @transform_10, window_bounds = array<i64: 1, 128>}, {transform_indices = @transform_11, window_bounds = array<i64: 1, 16, 128>}]} {
    %c0 = arith.constant 0 : index
    %c0_0 = arith.constant 0 : index
    %0 = vector.load %arg3[%c0, %c0_0] : memref<1x128xf32, #tpu.memory_space<vmem>>, vector<1x128xf32>
    %c0_1 = arith.constant 0 : index
    %c0_2 = arith.constant 0 : index
    %1 = vector.load %arg4[%c0_1, %c0_2] : memref<1x128xf32, #tpu.memory_space<vmem>>, vector<1x128xf32>
    %cst = arith.constant 3.125000e-02 : f32
    %2 = vector.broadcast %cst : f32 to vector<1x128xf32>
    %3 = arith.mulf %0, %2 : vector<1x128xf32>
    %cst_3 = arith.constant 3.125000e-02 : f32
    %4 = vector.broadcast %cst_3 : f32 to vector<1x128xf32>
    %5 = arith.mulf %1, %4 : vector<1x128xf32>
    %6 = arith.mulf %3, %3 : vector<1x128xf32>
    %7 = arith.subf %5, %6 : vector<1x128xf32>
    %cst_4 = arith.constant 9.99999974E-6 : f32
    %8 = vector.broadcast %cst_4 : f32 to vector<1x128xf32>
    %9 = arith.addf %7, %8 : vector<1x128xf32>
    %10 = math.rsqrt %9 : vector<1x128xf32>
    %c0_5 = arith.constant 0 : index
    %c0_6 = arith.constant 0 : index
    %c0_7 = arith.constant 0 : index
    %11 = vector.load %arg2[%c0_5, %c0_6, %c0_7] : memref<1x16x128xf32, #tpu.memory_space<vmem>>, vector<1x16x128xf32>
    %12 = vector.shape_cast %11 : vector<1x16x128xf32> to vector<16x128xf32>
    %13 = vector.broadcast %3 : vector<1x128xf32> to vector<16x128xf32>
    %14 = arith.subf %12, %13 : vector<16x128xf32>
    %15 = vector.broadcast %10 : vector<1x128xf32> to vector<16x128xf32>
    %16 = arith.mulf %14, %15 : vector<16x128xf32>
    %c0_8 = arith.constant 0 : index
    %c0_9 = arith.constant 0 : index
    %17 = vector.load %arg5[%c0_8, %c0_9] : memref<1x128xf32, #tpu.memory_space<vmem>>, vector<1x128xf32>
    %18 = vector.broadcast %17 : vector<1x128xf32> to vector<16x128xf32>
    %19 = arith.mulf %16, %18 : vector<16x128xf32>
    %c0_10 = arith.constant 0 : index
    %c0_11 = arith.constant 0 : index
    %20 = vector.load %arg6[%c0_10, %c0_11] : memref<1x128xf32, #tpu.memory_space<vmem>>, vector<1x128xf32>
    %21 = vector.broadcast %20 : vector<1x128xf32> to vector<16x128xf32>
    %22 = arith.addf %19, %21 : vector<16x128xf32>
    %c0_12 = arith.constant 0 : index
    %c0_13 = arith.constant 0 : index
    %23 = vector.load %arg9[%c0_12, %c0_13] : memref<1x128xf32, #tpu.memory_space<vmem>>, vector<1x128xf32>
    %c0_14 = arith.constant 0 : index
    %c0_15 = arith.constant 0 : index
    %24 = vector.load %arg10[%c0_14, %c0_15] : memref<1x128xf32, #tpu.memory_space<vmem>>, vector<1x128xf32>
    %cst_16 = arith.constant 3.125000e-02 : f32
    %25 = vector.broadcast %cst_16 : f32 to vector<1x128xf32>
    %26 = arith.mulf %23, %25 : vector<1x128xf32>
    %cst_17 = arith.constant 3.125000e-02 : f32
    %27 = vector.broadcast %cst_17 : f32 to vector<1x128xf32>
    %28 = arith.mulf %24, %27 : vector<1x128xf32>
    %29 = arith.mulf %26, %26 : vector<1x128xf32>
    %30 = arith.subf %28, %29 : vector<1x128xf32>
    %cst_18 = arith.constant 9.99999974E-6 : f32
    %31 = vector.broadcast %cst_18 : f32 to vector<1x128xf32>
    %32 = arith.addf %30, %31 : vector<1x128xf32>
    %33 = math.rsqrt %32 : vector<1x128xf32>
    %c0_19 = arith.constant 0 : index
    %c0_20 = arith.constant 0 : index
    %c0_21 = arith.constant 0 : index
    %34 = vector.load %arg8[%c0_19, %c0_20, %c0_21] : memref<1x16x128xf32, #tpu.memory_space<vmem>>, vector<1x16x128xf32>
    %35 = vector.shape_cast %34 : vector<1x16x128xf32> to vector<16x128xf32>
    %36 = vector.broadcast %26 : vector<1x128xf32> to vector<16x128xf32>
    %37 = arith.subf %35, %36 : vector<16x128xf32>
    %38 = vector.broadcast %33 : vector<1x128xf32> to vector<16x128xf32>
    %39 = arith.mulf %37, %38 : vector<16x128xf32>
    %c0_22 = arith.constant 0 : index
    %c0_23 = arith.constant 0 : index
    %40 = vector.load %arg11[%c0_22, %c0_23] : memref<1x128xf32, #tpu.memory_space<vmem>>, vector<1x128xf32>
    %41 = vector.broadcast %40 : vector<1x128xf32> to vector<16x128xf32>
    %42 = arith.mulf %39, %41 : vector<16x128xf32>
    %c0_24 = arith.constant 0 : index
    %c0_25 = arith.constant 0 : index
    %43 = vector.load %arg12[%c0_24, %c0_25] : memref<1x128xf32, #tpu.memory_space<vmem>>, vector<1x128xf32>
    %44 = vector.broadcast %43 : vector<1x128xf32> to vector<16x128xf32>
    %45 = arith.addf %42, %44 : vector<16x128xf32>
    %c0_26 = arith.constant 0 : index
    %c0_27 = arith.constant 0 : index
    %c0_28 = arith.constant 0 : index
    %46 = vector.load %arg7[%c0_26, %c0_27, %c0_28] : memref<1x1x128xf32, #tpu.memory_space<vmem>>, vector<1x1x128xf32>
    %47 = vector.shape_cast %46 : vector<1x1x128xf32> to vector<1x128xf32>
    %48 = vector.broadcast %47 : vector<1x128xf32> to vector<16x128xf32>
    %49 = arith.mulf %22, %48 : vector<16x128xf32>
    %50 = arith.addf %49, %45 : vector<16x128xf32>
    %cst_29 = arith.constant 0.000000e+00 : f32
    %51 = vector.broadcast %cst_29 : f32 to vector<16x128xf32>
    %52 = arith.maximumf %50, %51 : vector<16x128xf32>
    %c0_30 = arith.constant 0 : index
    %c0_31 = arith.constant 0 : index
    %c0_32 = arith.constant 0 : index
    %53 = vector.load %arg13[%c0_30, %c0_31, %c0_32] : memref<1x16x128xf32, #tpu.memory_space<vmem>>, vector<1x16x128xf32>
    %54 = vector.shape_cast %53 : vector<1x16x128xf32> to vector<16x128xf32>
    %55 = vector.shape_cast %52 : vector<16x128xf32> to vector<1x16x128xf32>
    tpu.vector_store %arg13[%c0_30, %c0_31, %c0_32], %55 {strides = array<i32>} : memref<1x16x128xf32, #tpu.memory_space<vmem>>, vector<1x16x128xf32>,
    return
  }
  func.func @transform_0(%arg0: i32, %arg1: i32) -> (i32, i32, i32) {
    %c0_i32 = arith.constant 0 : i32
    %c0_i32_0 = arith.constant 0 : i32
    return %arg0, %arg1, %c0_i32 : i32, i32, i32
  }
  func.func @transform_1(%arg0: i32, %arg1: i32) -> (i32, i32) {
    %c0_i32 = arith.constant 0 : i32
    %c0_i32_0 = arith.constant 0 : i32
    %c0_i32_1 = arith.constant 0 : i32
    return %c0_i32, %c0_i32_0 : i32, i32
  }
  func.func @transform_2(%arg0: i32, %arg1: i32) -> (i32, i32) {
    %c0_i32 = arith.constant 0 : i32
    %c0_i32_0 = arith.constant 0 : i32
    %c0_i32_1 = arith.constant 0 : i32
    return %c0_i32, %c0_i32_0 : i32, i32
  }
  func.func @transform_3(%arg0: i32, %arg1: i32) -> (i32, i32) {
    %c0_i32 = arith.constant 0 : i32
    %c0_i32_0 = arith.constant 0 : i32
    %c0_i32_1 = arith.constant 0 : i32
    return %c0_i32, %c0_i32_0 : i32, i32
  }
  func.func @transform_4(%arg0: i32, %arg1: i32) -> (i32, i32) {
    %c0_i32 = arith.constant 0 : i32
    %c0_i32_0 = arith.constant 0 : i32
    %c0_i32_1 = arith.constant 0 : i32
    return %c0_i32, %c0_i32_0 : i32, i32
  }
  func.func @transform_5(%arg0: i32, %arg1: i32) -> (i32, i32, i32) {
    %c0_i32 = arith.constant 0 : i32
    %c0_i32_0 = arith.constant 0 : i32
    %c0_i32_1 = arith.constant 0 : i32
    return %arg0, %c0_i32, %c0_i32_0 : i32, i32, i32
  }
  func.func @transform_6(%arg0: i32, %arg1: i32) -> (i32, i32, i32) {
    %c0_i32 = arith.constant 0 : i32
    %c0_i32_0 = arith.constant 0 : i32
    return %arg0, %arg1, %c0_i32 : i32, i32, i32
  }
  func.func @transform_7(%arg0: i32, %arg1: i32) -> (i32, i32) {
    %c0_i32 = arith.constant 0 : i32
    %c0_i32_0 = arith.constant 0 : i32
    %c0_i32_1 = arith.constant 0 : i32
    return %c0_i32, %c0_i32_0 : i32, i32
  }
  func.func @transform_8(%arg0: i32, %arg1: i32) -> (i32, i32) {
    %c0_i32 = arith.constant 0 : i32
    %c0_i32_0 = arith.constant 0 : i32
    %c0_i32_1 = arith.constant 0 : i32
    return %c0_i32, %c0_i32_0 : i32, i32
  }
  func.func @transform_9(%arg0: i32, %arg1: i32) -> (i32, i32) {
    %c0_i32 = arith.constant 0 : i32
    %c0_i32_0 = arith.constant 0 : i32
    %c0_i32_1 = arith.constant 0 : i32
    return %c0_i32, %c0_i32_0 : i32, i32
  }
  func.func @transform_10(%arg0: i32, %arg1: i32) -> (i32, i32) {
    %c0_i32 = arith.constant 0 : i32
    %c0_i32_0 = arith.constant 0 : i32
    %c0_i32_1 = arith.constant 0 : i32
    return %c0_i32, %c0_i32_0 : i32, i32
  }
  func.func @transform_11(%arg0: i32, %arg1: i32) -> (i32, i32, i32) {
    %c0_i32 = arith.constant 0 : i32
    %c0_i32_0 = arith.constant 0 : i32
    return %arg0, %arg1, %c0_i32 : i32, i32, i32
  }
}

module attributes {stable_mosaic.version = 11 : i64} {
  func.func @_avgpool_fc_kernel(%arg0: i32, %arg1: memref<1x16x128xf32, #tpu.memory_space<vmem>>, %arg2: memref<128x128xf32, #tpu.memory_space<vmem>>, %arg3: memref<1x128xf32, #tpu.memory_space<vmem>>, %arg4: memref<1x1x128xf32, #tpu.memory_space<vmem>>) attributes {dimension_semantics = [#tpu.dimension_semantics<parallel>], iteration_bounds = array<i64: 2>, scalar_prefetch = 0 : i64, scratch_operands = 0 : i64, tpu.core_type = #tpu.core_type<tc>, window_params = [{transform_indices = @transform_0, window_bounds = array<i64: 1, 16, 128>}, {pipeline_mode = #tpu.pipeline_mode<synchronous>, transform_indices = @transform_1, window_bounds = array<i64: 128, 128>}, {pipeline_mode = #tpu.pipeline_mode<synchronous>, transform_indices = @transform_2, window_bounds = array<i64: 1, 128>}, {transform_indices = @transform_3, window_bounds = array<i64: 1, 1, 128>}]} {
    %c0 = arith.constant 0 : index
    %c0_0 = arith.constant 0 : index
    %c0_1 = arith.constant 0 : index
    %0 = vector.load %arg1[%c0, %c0_0, %c0_1] : memref<1x16x128xf32, #tpu.memory_space<vmem>>, vector<1x16x128xf32>
    %1 = vector.shape_cast %0 : vector<1x16x128xf32> to vector<16x128xf32>
    %cst = arith.constant dense<0.000000e+00> : vector<128xf32>
    %2 = vector.multi_reduction <add>, %1, %cst [0] : vector<16x128xf32> to vector<128xf32>
    %3 = vector.shape_cast %2 : vector<128xf32> to vector<1x128xf32>
    %cst_2 = arith.constant 6.250000e-02 : f32
    %4 = vector.broadcast %cst_2 : f32 to vector<1x128xf32>
    %5 = arith.mulf %3, %4 : vector<1x128xf32>
    %c0_3 = arith.constant 0 : index
    %c0_4 = arith.constant 0 : index
    %6 = vector.load %arg2[%c0_3, %c0_4] : memref<128x128xf32, #tpu.memory_space<vmem>>, vector<128x128xf32>
    %cst_5 = arith.constant dense<0.000000e+00> : vector<1x128xf32>
    %7 = tpu.matmul %5, %6, %cst_5 {dimension_numbers = #tpu.dot_dimension_numbers<[1], [0], [0], [1], [0, 0, 1, 1], [], []>} : vector<1x128xf32>, vector<128x128xf32>, vector<1x128xf32> -> vector<1x128xf32>
    %c0_6 = arith.constant 0 : index
    %c0_7 = arith.constant 0 : index
    %8 = vector.load %arg3[%c0_6, %c0_7] : memref<1x128xf32, #tpu.memory_space<vmem>>, vector<1x128xf32>
    %9 = arith.addf %7, %8 : vector<1x128xf32>
    %c0_8 = arith.constant 0 : index
    %c0_9 = arith.constant 0 : index
    %c0_10 = arith.constant 0 : index
    %10 = vector.load %arg4[%c0_8, %c0_9, %c0_10] : memref<1x1x128xf32, #tpu.memory_space<vmem>>, vector<1x1x128xf32>
    %11 = vector.shape_cast %10 : vector<1x1x128xf32> to vector<1x128xf32>
    %12 = vector.shape_cast %9 : vector<1x128xf32> to vector<1x1x128xf32>
    tpu.vector_store %arg4[%c0_8, %c0_9, %c0_10], %12 {strides = array<i32>} : memref<1x1x128xf32, #tpu.memory_space<vmem>>, vector<1x1x128xf32>,
    return
  }
  func.func @transform_0(%arg0: i32) -> (i32, i32, i32) {
    %c0_i32 = arith.constant 0 : i32
    %c0_i32_0 = arith.constant 0 : i32
    %c0_i32_1 = arith.constant 0 : i32
    return %arg0, %c0_i32, %c0_i32_0 : i32, i32, i32
  }
  func.func @transform_1(%arg0: i32) -> (i32, i32) {
    %c0_i32 = arith.constant 0 : i32
    %c0_i32_0 = arith.constant 0 : i32
    %c0_i32_1 = arith.constant 0 : i32
    return %c0_i32, %c0_i32_0 : i32, i32
  }
  func.func @transform_2(%arg0: i32) -> (i32, i32) {
    %c0_i32 = arith.constant 0 : i32
    %c0_i32_0 = arith.constant 0 : i32
    %c0_i32_1 = arith.constant 0 : i32
    return %c0_i32, %c0_i32_0 : i32, i32
  }
  func.func @transform_3(%arg0: i32) -> (i32, i32, i32) {
    %c0_i32 = arith.constant 0 : i32
    %c0_i32_0 = arith.constant 0 : i32
    %c0_i32_1 = arith.constant 0 : i32
    return %arg0, %c0_i32, %c0_i32_0 : i32, i32, i32
  }
}

</mosaic_0001>

<bundles_post_ra>
// kernel: _lambda_.14
= control target key start
LH: loop header
LB: loop body
LE: loop exit
PB: predicated region body
PF: predicated region fallthrough
CT: control target
= control target key end

     0   :  { %11 = vsyncpa [#allocation3], 0  ;;  %s1931_s0 = inlined_call_operand.vmem [shape: bf16[2,256,256], index: 0, kind: input, shape index: {}]   ;;  %s1932_s1 = inlined_call_operand.vmem [shape: bf16[256,128], index: 1, kind: input, shape index: {}]   ;;  %s1933_s2 = inlined_call_operand.vmem [shape: f32[2,256,128], index: 2, kind: output, shape index: {0}]   ;;  %s1934_s3 = inlined_call_operand.vmem [shape: f32[1,128], index: 3, kind: output, shape index: {1}]   ;;  %s1935_s4 = inlined_call_operand.vmem [shape: f32[1,128], index: 4, kind: output, shape index: {2}]   ;;  %s1936_s5 = inlined_call_operand.hbm [shape: f32[2,1,128], index: 5, kind: output, shape index: {3}]  }
   0x1   :  { %13 = vsyncpa [#allocation3 + $0x1], 0  ;;  %s1483_s18 = smov 0   ;;  %s1485_s19 = smov 0  }
   0x2   :  { %s1487_s20 = smov 0   ;;  %s1489_s21 = smov 0  }
   0x3   :  { %s1491_s22 = smov 0   ;;  %s1493_s23 = smov 0  }
   0x4 LB: > { %s1059_s24 = sadd.s32 4294967295, %s1448_s23   ;;  %s1060_s25 = sadd.s32 4294967294, %s1448_s23   ;;  %s1448_s23 = sphi %s1493_s23, %s19_s23   ;;  %s1444_s22 = sphi %s1491_s22, %s1943_s22   ;;  %s1440_s21 = sphi %s1489_s21, %s1942_s21   ;;  %s1436_s20 = sphi %s1487_s20, %s1941_s20   ;;  %s1432_s19 = sphi %s1485_s19, %s1940_s19   ;;  %s1428_s18 = sphi %s1483_s18, %s1939_s18  }
   0x5   : > { %s31_s26 = sadd.s32 1, %s1444_s22  ;;  %s157_s27 = sadd.s32 1, %s1436_s20 }
   0x6   : > { %p33_p0 = scmp.ge.s32.totalorder %s31_s26, 2  ;;  %p167_p1 = scmp.ne.s32.totalorder %s1436_s20, %s1432_s19 }
   0x7   : > { %p168_p2 = scmp.eq.s32.totalorder %s1059_s24, 1  ;;  %p173_p3 = scmp.ne.s32.totalorder %s1432_s19, %s1428_s18 }
   0x8   : > { %s1945_s26 = smov (%p33_p0, %s31_s26), 0  ;;  %p174_p5 = scmp.eq.s32.totalorder %s1060_s25, 1 }
   0x9   : > { %p1523_p4 = por %p168_p2, %p167_p1  ;;  %s154_s29 = ssub.s32 %s1444_s22, %s1945_s26 }
   0xa   : > { %p1063_p6 = scmp.ge.s32.totalorder %s1448_s23, 1  ;;  %p155_p7 = scmp.eq.s32.totalorder %s154_s29, 0 }
   0xb   : > { %p1530_p8 = por %p174_p5, %p173_p3  ;;  %p209_p9 = scmp.lt.s32.totalorder %s1448_s23, 3 }
   0xc   : > { %s1536_s6 = scalar_select %p155_p7, %s1436_s20, %s157_s27  }
   0xd   : > { %p210_p10 = pnand %p1063_p6, %p209_p9 }
   0xe   : > { %s248_s7 = sand.u32 (!%p210_p10), 1, %s1432_s19   ;;  %p251_p11 = scmp.lt.s32.totalorder (!%p210_p10), %s1440_s21, 1 }
   0xf   : > { %213 = sbr.rel (%p210_p10) target bundleno = 406 (0x196), region = 28  ;;  %p785_p12 = scmp.eq.s32.totalorder (!%p210_p10), %s1440_s21, 0 }
  0x14   : > { %v1308_v0 = vld [vmem:[%s1932_s1 + $0x78] sm:$0xff]   ;;  %v1310_v2 = vld [vmem:[%s1932_s1 + $0x70] sm:$0xff]   ;;  %v1312_v4 = vld [vmem:[%s1932_s1 + $0x68] sm:$0xff]   ;;  %s1559_s27 = scalar_select %p251_p11, %s1440_s21, 1 }
  0x15   : > { %v1309_v1 = vld [vmem:[%s1932_s1 + $0x38] sm:$0xff]   ;;  %1123 = vmatprep.subr.bf16.mxu0 %v1308_v0  ;;  %1235 = vmatprep.subr.bf16.mxu1 %v1308_v0  ;;  %v1311_v3 = vld [vmem:[%s1932_s1 + $0x30] sm:$0xff]   ;;  %v1313_v5 = vld [vmem:[%s1932_s1 + $0x28] sm:$0xff]  }
  0x16   : > { %1124 = vmatpush3.bf16.msra.mxu0 %v1309_v1  ;;  %1243 = vmatpush3.bf16.msra.mxu1 %v1309_v1  ;;  %v1314_v6 = vld [vmem:[%s1932_s1 + $0x60] sm:$0xff]   ;;  %s1120_s11 = sshll.u32 %s1559_s27, 8  ;;  %v1316_v8 = vld [vmem:[%s1932_s1 + $0x58] sm:$0xff]   ;;  %v1318_v10 = vld [vmem:[%s1932_s1 + $0x50] sm:$0xff]   ;;  %s1763_s27 = scalar_lea.vmem [#allocation2], %s248_s7 }
  0x17   : > { %1125 = vmatprep.subr.bf16.mxu0 %v1310_v2  ;;  %1236 = vmatprep.subr.bf16.mxu1 %v1310_v2  ;;  %v1315_v7 = vld [vmem:[%s1932_s1 + $0x20] sm:$0xff]   ;;  %s1576_s16 = scalar_lea.vmem %s1931_s0, %s1120_s11  ;;  %v1317_v9 = vld [vmem:[%s1932_s1 + $0x18] sm:$0xff]   ;;  %v1319_v13 = vld [vmem:[%s1932_s1 + $0x10] sm:$0xff]   ;;  %s1637_s9 = scalar_lea.vmem %s1933_s2, %s1120_s11 }
  0x18   : > { %v1326_v11 = vld [vmem:[%s1576_s16 + $0x4] ss:$8 sps:$4 sm:$0xff]   ;;  %v1324_v18 = vld [vmem:[%s1576_s16] ss:$8 sps:$4 sm:$0xff]   ;;  %v1330_v20 = vld [vmem:[%s1576_s16 + $0x14] ss:$8 sps:$4 sm:$0xff]  }
  0x19   : > { %v1329_v12 = vld [vmem:[%s1576_s16 + $0x84] ss:$8 sps:$4 sm:$0xff]   ;;  %624 = vmatprep.mubr.bf16.mxu0 %v1326_v11  ;;  %v1327_v19 = vld [vmem:[%s1576_s16 + $0x80] ss:$8 sps:$4 sm:$0xff]   ;;  %v1332_v21 = vld [vmem:[%s1576_s16 + $0x94] ss:$8 sps:$4 sm:$0xff]  }
  0x1a   : > { %1126 = vmatpush3.bf16.msra.mxu0 %v1311_v3  ;;  %1244 = vmatpush3.bf16.msra.mxu1 %v1311_v3  ;;  %v1320_v14 = vld [vmem:[%s1932_s1 + $0x48] sm:$0xff]   ;;  %v1322_v16 = vld [vmem:[%s1932_s1 + $0x40] sm:$0xff]   ;;  %v1334_v22 = vld [vmem:[%s1576_s16 + $0x10] ss:$8 sps:$4 sm:$0xff]  }
  0x1b   : > { %1127 = vmatprep.subr.bf16.mxu0 %v1312_v4  ;;  %1237 = vmatprep.subr.bf16.mxu1 %v1312_v4  ;;  %v1321_v15 = vld [vmem:[%s1932_s1 + $0x8] sm:$0xff]   ;;  %v1323_v17 = vld [vmem:[%s1932_s1] sm:$0xff]   ;;  %v1335_v23 = vld [vmem:[%s1576_s16 + $0x90] ss:$8 sps:$4 sm:$0xff]  }
  0x1c   : > { %688 = vmatprep.mubr.bf16.mxu1 %v1329_v12  ;;  %v1336_v24 = vld [vmem:[%s1576_s16 + $0x24] ss:$8 sps:$4 sm:$0xff]   ;;  %v1340_v26 = vld [vmem:[%s1576_s16 + $0x20] ss:$8 sps:$4 sm:$0xff]   ;;  %v1342_v28 = vld [vmem:[%s1576_s16 + $0x34] ss:$8 sps:$4 sm:$0xff]  }
  0x1d   : > { %v1338_v25 = vld [vmem:[%s1576_s16 + $0xa4] ss:$8 sps:$4 sm:$0xff]   ;;  %v1341_v27 = vld [vmem:[%s1576_s16 + $0xa0] ss:$8 sps:$4 sm:$0xff]   ;;  %v1344_v29 = vld [vmem:[%s1576_s16 + $0xb4] ss:$8 sps:$4 sm:$0xff]  }
  0x1e   : > { %1128 = vmatpush3.bf16.msra.mxu0 %v1313_v5  ;;  %1245 = vmatpush3.bf16.msra.mxu1 %v1313_v5  ;;  %v1346_v30 = vld [vmem:[%s1576_s16 + $0x30] ss:$8 sps:$4 sm:$0xff]   ;;  %v1348_v32 = vld [vmem:[%s1576_s16 + $0x44] ss:$8 sps:$4 sm:$0xff]   ;;  %v1352_v34 = vld [vmem:[%s1576_s16 + $0x40] ss:$8 sps:$4 sm:$0xff]  }
  0x1f   : > { %1129 = vmatprep.subr.bf16.mxu0 %v1314_v6  ;;  %1238 = vmatprep.subr.bf16.mxu1 %v1314_v6  ;;  %v1347_v31 = vld [vmem:[%s1576_s16 + $0xb0] ss:$8 sps:$4 sm:$0xff]   ;;  %v1350_v33 = vld [vmem:[%s1576_s16 + $0xc4] ss:$8 sps:$4 sm:$0xff]   ;;  %v1353_v35 = vld [vmem:[%s1576_s16 + $0xc0] ss:$8 sps:$4 sm:$0xff]  }
  0x20   : > { %v1354_v36 = vld [vmem:[%s1576_s16 + $0x54] ss:$8 sps:$4 sm:$0xff]   ;;  %v1358_v38 = vld [vmem:[%s1576_s16 + $0x50] ss:$8 sps:$4 sm:$0xff]   ;;  %v1360_v40 = vld [vmem:[%s1576_s16 + $0x64] ss:$8 sps:$4 sm:$0xff]  }
  0x21   : > { %v1356_v37 = vld [vmem:[%s1576_s16 + $0xd4] ss:$8 sps:$4 sm:$0xff]   ;;  %v1359_v39 = vld [vmem:[%s1576_s16 + $0xd0] ss:$8 sps:$4 sm:$0xff]   ;;  %v1362_v41 = vld [vmem:[%s1576_s16 + $0xe4] ss:$8 sps:$4 sm:$0xff]  }
  0x22   : > { %1130 = vmatpush3.bf16.msra.mxu0 %v1315_v7  ;;  %1246 = vmatpush3.bf16.msra.mxu1 %v1315_v7  ;;  %v1364_v42 = vld [vmem:[%s1576_s16 + $0x60] ss:$8 sps:$4 sm:$0xff]   ;;  %v1366_v44 = vld [vmem:[%s1576_s16 + $0x74] ss:$8 sps:$4 sm:$0xff]   ;;  %v1370_v46 = vld [vmem:[%s1576_s16 + $0x70] ss:$8 sps:$4 sm:$0xff]  }
  0x23   : > { %1131 = vmatprep.subr.bf16.mxu0 %v1316_v8  ;;  %1239 = vmatprep.subr.bf16.mxu1 %v1316_v8  ;;  %v1365_v43 = vld [vmem:[%s1576_s16 + $0xe0] ss:$8 sps:$4 sm:$0xff]   ;;  %v1368_v45 = vld [vmem:[%s1576_s16 + $0xf4] ss:$8 sps:$4 sm:$0xff]   ;;  %v1371_v47 = vld [vmem:[%s1576_s16 + $0xf0] ss:$8 sps:$4 sm:$0xff]  }
  0x26   : > { %1132 = vmatpush3.bf16.msra.mxu0 %v1317_v9  ;;  %1247 = vmatpush3.bf16.msra.mxu1 %v1317_v9 }
  0x27   : > { %1133 = vmatprep.subr.bf16.mxu0 %v1318_v10  ;;  %1240 = vmatprep.subr.bf16.mxu1 %v1318_v10 }
  0x2a   : > { %1134 = vmatpush3.bf16.msra.mxu0 %v1319_v13  ;;  %1248 = vmatpush3.bf16.msra.mxu1 %v1319_v13 }
  0x2b   : > { %1135 = vmatprep.subr.bf16.mxu0 %v1320_v14  ;;  %1241 = vmatprep.subr.bf16.mxu1 %v1320_v14 }
  0x2e   : > { %1136 = vmatpush3.bf16.msra.mxu0 %v1321_v15  ;;  %1249 = vmatpush3.bf16.msra.mxu1 %v1321_v15 }
  0x2f   : > { %1137 = vmatprep.subr.bf16.mxu0 %v1322_v16  ;;  %1242 = vmatprep.subr.bf16.mxu1 %v1322_v16 }
  0x32   : > { %1138 = vmatpush3.bf16.msra.mxu0 %v1323_v17  ;;  %1250 = vmatpush3.bf16.msra.mxu1 %v1323_v17 }
  0x35   : > { %625 = vmatmul.mubr.bf16.vlgmr.msra.gmra.mxu0 %v1324_v18  ;;  %689 = vmatmul.mubr.bf16.vlgmr.msra.gmra.mxu1 %v1327_v19 }
  0x36   : > { %632 = vmatprep.mubr.bf16.mxu0 %v1330_v20  ;;  %696 = vmatprep.mubr.bf16.mxu1 %v1332_v21 }
  0x3d   : > { %633 = vmatmul.mubr.bf16.gmra.mxu0 %v1334_v22  ;;  %697 = vmatmul.mubr.bf16.gmra.mxu1 %v1335_v23 }
  0x3e   : > { %640 = vmatprep.mubr.bf16.mxu0 %v1336_v24  ;;  %704 = vmatprep.mubr.bf16.mxu1 %v1338_v25 }
  0x45   : > { %641 = vmatmul.mubr.bf16.gmra.mxu0 %v1340_v26  ;;  %705 = vmatmul.mubr.bf16.gmra.mxu1 %v1341_v27 }
  0x46   : > { %648 = vmatprep.mubr.bf16.mxu0 %v1342_v28  ;;  %712 = vmatprep.mubr.bf16.mxu1 %v1344_v29 }
  0x4d   : > { %649 = vmatmul.mubr.bf16.gmra.mxu0 %v1346_v30  ;;  %713 = vmatmul.mubr.bf16.gmra.mxu1 %v1347_v31 }
  0x4e   : > { %656 = vmatprep.mubr.bf16.mxu0 %v1348_v32  ;;  %720 = vmatprep.mubr.bf16.mxu1 %v1350_v33 }
  0x55   : > { %657 = vmatmul.mubr.bf16.gmra.mxu0 %v1352_v34  ;;  %721 = vmatmul.mubr.bf16.gmra.mxu1 %v1353_v35 }
  0x56   : > { %664 = vmatprep.mubr.bf16.mxu0 %v1354_v36  ;;  %728 = vmatprep.mubr.bf16.mxu1 %v1356_v37 }
  0x5d   : > { %665 = vmatmul.mubr.bf16.gmra.mxu0 %v1358_v38  ;;  %729 = vmatmul.mubr.bf16.gmra.mxu1 %v1359_v39 }
  0x5e   : > { %672 = vmatprep.mubr.bf16.mxu0 %v1360_v40  ;;  %736 = vmatprep.mubr.bf16.mxu1 %v1362_v41 }
  0x65   : > { %673 = vmatmul.mubr.bf16.gmra.mxu0 %v1364_v42  ;;  %737 = vmatmul.mubr.bf16.gmra.mxu1 %v1365_v43 }
  0x66   : > { %680 = vmatprep.mubr.bf16.mxu0 %v1366_v44  ;;  %744 = vmatprep.mubr.bf16.mxu1 %v1368_v45 }
  0x6d   : > { %681 = vmatmul.mubr.bf16.gmra.mxu0 %v1370_v46  ;;  %745 = vmatmul.mubr.bf16.gmra.mxu1 %v1371_v47 }
  0xf5   : > { %v1139_v48 = vpop.f32.mrf.mxu0  ;;  %v1187_v49 = vpop.f32.mrf.mxu1 }
  0xf7   : > { %v1140_v50 = vpop.f32.mrf.mxu0  ;;  %v1188_v51 = vpop.f32.mrf.mxu1 }
  0xf8   : > { %v1639_v52 = vadd.f32 %v1140_v50, %v1139_v48  ;;  %v1641_v53 = vadd.f32 %v1188_v51, %v1187_v49 }
  0xf9   : > { %v1142_v54 = vpop.f32.mrf.mxu0  ;;  %v1190_v55 = vpop.f32.mrf.mxu1 }
  0xfa   : > { %753 = vst [vmem:[%s1637_s9] sm:$0xff] %v1639_v52  ;;  %769 = vst [vmem:[%s1637_s9 + $0x80] sm:$0xff] %v1641_v53 }
  0xfb   : > { %v1143_v56 = vpop.f32.mrf.mxu0  ;;  %v1191_v57 = vpop.f32.mrf.mxu1 }
  0xfc   : > { %v1647_v58 = vadd.f32 %v1143_v56, %v1142_v54  ;;  %v1649_v59 = vadd.f32 %v1191_v57, %v1190_v55 }
  0xfd   : > { %v1145_v60 = vpop.f32.mrf.mxu0  ;;  %v1193_v61 = vpop.f32.mrf.mxu1 }
  0xfe   : > { %754 = vst [vmem:[%s1637_s9 + $0x8] sm:$0xff] %v1647_v58  ;;  %770 = vst [vmem:[%s1637_s9 + $0x88] sm:$0xff] %v1649_v59 }
  0xff   : > { %v1146_v62 = vpop.f32.mrf.mxu0  ;;  %v1194_v63 = vpop.f32.mrf.mxu1 }
 0x100   : > { %v1655_v0 = vadd.f32 %v1146_v62, %v1145_v60  ;;  %v1657_v1 = vadd.f32 %v1194_v63, %v1193_v61 }
 0x101   : > { %v1148_v2 = vpop.f32.mrf.mxu0  ;;  %v1196_v3 = vpop.f32.mrf.mxu1 }
 0x102   : > { %755 = vst [vmem:[%s1637_s9 + $0x10] sm:$0xff] %v1655_v0  ;;  %771 = vst [vmem:[%s1637_s9 + $0x90] sm:$0xff] %v1657_v1 }
 0x103   : > { %v1149_v4 = vpop.f32.mrf.mxu0  ;;  %v1197_v5 = vpop.f32.mrf.mxu1 }
 0x104   : > { %v1663_v6 = vadd.f32 %v1149_v4, %v1148_v2  ;;  %v1665_v7 = vadd.f32 %v1197_v5, %v1196_v3 }
 0x105   : > { %v1151_v8 = vpop.f32.mrf.mxu0  ;;  %v1199_v9 = vpop.f32.mrf.mxu1 }
 0x106   : > { %756 = vst [vmem:[%s1637_s9 + $0x18] sm:$0xff] %v1663_v6  ;;  %772 = vst [vmem:[%s1637_s9 + $0x98] sm:$0xff] %v1665_v7 }
 0x107   : > { %v1152_v10 = vpop.f32.mrf.mxu0  ;;  %v1200_v11 = vpop.f32.mrf.mxu1 }
 0x108   : > { %v1671_v12 = vadd.f32 %v1152_v10, %v1151_v8  ;;  %v1673_v13 = vadd.f32 %v1200_v11, %v1199_v9 }
 0x109   : > { %v1154_v14 = vpop.f32.mrf.mxu0  ;;  %v1202_v15 = vpop.f32.mrf.mxu1 }
 0x10a   : > { %757 = vst [vmem:[%s1637_s9 + $0x20] sm:$0xff] %v1671_v12  ;;  %773 = vst [vmem:[%s1637_s9 + $0xa0] sm:$0xff] %v1673_v13 }
 0x10b   : > { %v1155_v16 = vpop.f32.mrf.mxu0  ;;  %v1203_v17 = vpop.f32.mrf.mxu1 }
 0x10c   : > { %v1679_v18 = vadd.f32 %v1155_v16, %v1154_v14  ;;  %v1681_v19 = vadd.f32 %v1203_v17, %v1202_v15 }
 0x10d   : > { %v1157_v20 = vpop.f32.mrf.mxu0  ;;  %v1205_v21 = vpop.f32.mrf.mxu1 }
 0x10e   : > { %758 = vst [vmem:[%s1637_s9 + $0x28] sm:$0xff] %v1679_v18  ;;  %774 = vst [vmem:[%s1637_s9 + $0xa8] sm:$0xff] %v1681_v19 }
 0x10f   : > { %v1158_v22 = vpop.f32.mrf.mxu0  ;;  %v1206_v23 = vpop.f32.mrf.mxu1 }
 0x110   : > { %v1687_v24 = vadd.f32 %v1158_v22, %v1157_v20  ;;  %v1689_v25 = vadd.f32 %v1206_v23, %v1205_v21 }
 0x111   : > { %v1160_v26 = vpop.f32.mrf.mxu0  ;;  %v1208_v27 = vpop.f32.mrf.mxu1 }
 0x112   : > { %759 = vst [vmem:[%s1637_s9 + $0x30] sm:$0xff] %v1687_v24  ;;  %775 = vst [vmem:[%s1637_s9 + $0xb0] sm:$0xff] %v1689_v25 }
 0x113   : > { %v1161_v28 = vpop.f32.mrf.mxu0  ;;  %v1209_v29 = vpop.f32.mrf.mxu1 }
 0x114   : > { %v1695_v30 = vadd.f32 %v1161_v28, %v1160_v26  ;;  %v1697_v31 = vadd.f32 %v1209_v29, %v1208_v27 }
 0x115   : > { %v1163_v32 = vpop.f32.mrf.mxu0  ;;  %v1211_v33 = vpop.f32.mrf.mxu1 }
 0x116   : > { %760 = vst [vmem:[%s1637_s9 + $0x38] sm:$0xff] %v1695_v30  ;;  %776 = vst [vmem:[%s1637_s9 + $0xb8] sm:$0xff] %v1697_v31 }
 0x117   : > { %v1164_v34 = vpop.f32.mrf.mxu0  ;;  %v1212_v35 = vpop.f32.mrf.mxu1 }
 0x118   : > { %v1703_v36 = vadd.f32 %v1164_v34, %v1163_v32  ;;  %v1705_v37 = vadd.f32 %v1212_v35, %v1211_v33  ;;  %v1450_v32 = vmov (%p785_p12), 0.0  }
 0x119   : > { %v1166_v38 = vpop.f32.mrf.mxu0  ;;  %v1214_v39 = vpop.f32.mrf.mxu1  ;;  %791 = vst [vmem:[%s1934_s3] sm:$0x1] (%p785_p12), %v1450_v32  ;;  %792 = vst [vmem:[%s1935_s4] sm:$0x1] (%p785_p12), %v1450_v32 }
 0x11a   : > { %761 = vst [vmem:[%s1637_s9 + $0x40] sm:$0xff] %v1703_v36  ;;  %777 = vst [vmem:[%s1637_s9 + $0xc0] sm:$0xff] %v1705_v37 }
 0x11b   : > { %v1167_v40 = vpop.f32.mrf.mxu0  ;;  %v1215_v41 = vpop.f32.mrf.mxu1 }
 0x11c   : > { %v1711_v42 = vadd.f32 %v1167_v40, %v1166_v38  ;;  %v1713_v43 = vadd.f32 %v1215_v41, %v1214_v39 }
 0x11d   : > { %v1169_v44 = vpop.f32.mrf.mxu0  ;;  %v1217_v45 = vpop.f32.mrf.mxu1 }
 0x11e   : > { %762 = vst [vmem:[%s1637_s9 + $0x48] sm:$0xff] %v1711_v42  ;;  %778 = vst [vmem:[%s1637_s9 + $0xc8] sm:$0xff] %v1713_v43 }
 0x11f   : > { %v1170_v46 = vpop.f32.mrf.mxu0  ;;  %v1218_v47 = vpop.f32.mrf.mxu1 }
 0x120   : > { %v1719_v48 = vadd.f32 %v1170_v46, %v1169_v44  ;;  %v1721_v49 = vadd.f32 %v1218_v47, %v1217_v45 }
 0x121   : > { %v1172_v50 = vpop.f32.mrf.mxu0  ;;  %v1220_v51 = vpop.f32.mrf.mxu1 }
 0x122   : > { %763 = vst [vmem:[%s1637_s9 + $0x50] sm:$0xff] %v1719_v48  ;;  %779 = vst [vmem:[%s1637_s9 + $0xd0] sm:$0xff] %v1721_v49 }
 0x123   : > { %v1173_v54 = vpop.f32.mrf.mxu0  ;;  %v1221_v55 = vpop.f32.mrf.mxu1 }
 0x124   : > { %v1727_v56 = vadd.f32 %v1173_v54, %v1172_v50  ;;  %v1729_v57 = vadd.f32 %v1221_v55, %v1220_v51 }
 0x125   : > { %v1175_v60 = vpop.f32.mrf.mxu0  ;;  %v1223_v61 = vpop.f32.mrf.mxu1 }
 0x126   : > { %764 = vst [vmem:[%s1637_s9 + $0x58] sm:$0xff] %v1727_v56  ;;  %780 = vst [vmem:[%s1637_s9 + $0xd8] sm:$0xff] %v1729_v57 }
 0x127   : > { %v1176_v62 = vpop.f32.mrf.mxu0  ;;  %v1224_v63 = vpop.f32.mrf.mxu1 }
 0x128   : > { %v1735_v2 = vadd.f32 %v1176_v62, %v1175_v60  ;;  %v1737_v3 = vadd.f32 %v1224_v63, %v1223_v61 }
 0x129   : > { %v1178_v4 = vpop.f32.mrf.mxu0  ;;  %v1226_v5 = vpop.f32.mrf.mxu1 }
 0x12a   : > { %765 = vst [vmem:[%s1637_s9 + $0x60] sm:$0xff] %v1735_v2  ;;  %781 = vst [vmem:[%s1637_s9 + $0xe0] sm:$0xff] %v1737_v3 }
 0x12b   : > { %v1179_v8 = vpop.f32.mrf.mxu0  ;;  %v1227_v9 = vpop.f32.mrf.mxu1 }
 0x12c   : > { %v1743_v10 = vadd.f32 %v1179_v8, %v1178_v4  ;;  %v1745_v11 = vadd.f32 %v1227_v9, %v1226_v5 }
 0x12d   : > { %v1181_v14 = vpop.f32.mrf.mxu0  ;;  %v1229_v15 = vpop.f32.mrf.mxu1 }
 0x12e   : > { %766 = vst [vmem:[%s1637_s9 + $0x68] sm:$0xff] %v1743_v10  ;;  %782 = vst [vmem:[%s1637_s9 + $0xe8] sm:$0xff] %v1745_v11 }
 0x12f   : > { %v1182_v16 = vpop.f32.mrf.mxu0  ;;  %v1230_v17 = vpop.f32.mrf.mxu1 }
 0x130   : > { %v1183_v20 = vadd.f32 %v1182_v16, %v1181_v14  ;;  %v1751_v21 = vadd.f32 %v1230_v17, %v1229_v15 }
 0x131   : > { %v1184_v22 = vpop.f32.mrf.mxu0  ;;  %v1232_v23 = vpop.f32.mrf.mxu1 }
 0x132   : > { %767 = vst [vmem:[%s1637_s9 + $0x70] sm:$0xff] %v1183_v20  ;;  %783 = vst [vmem:[%s1637_s9 + $0xf0] sm:$0xff] %v1751_v21  ;;  %790 = sbr.rel (!%p785_p12) target bundleno = 311 (0x137), region = 32 }
 0x133   : > { %v1185_v26 = vpop.f32.mrf.mxu0  ;;  %v1233_v27 = vpop.f32.mrf.mxu1 }
 0x134   : > { %v1186_v28 = vadd.f32 %v1185_v26, %v1184_v22  ;;  %v1756_v29 = vadd.f32 %v1233_v27, %v1232_v23 }
 0x136   : > { %768 = vst [vmem:[%s1637_s9 + $0x78] sm:$0xff] %v1186_v28  ;;  %784 = vst [vmem:[%s1637_s9 + $0xf8] sm:$0xff] %v1756_v29 }
 0x137 PF: > { %v797_v33 = vadd.f32 %v1647_v58, %v1639_v52  ;;  %v1451_v34 = vmov 0.0   ;;  %v838_v39 = vmul.f32 %v1639_v52, %v1639_v52  ;;  %v839_v40 = vmul.f32 %v1647_v58, %v1647_v58  ;;  %s1117_s15 = sshll.u32 %s1440_s21, 4  ;;  %s944_s17 = sshll.u32 %s1763_s27, 4  ;;  %s1875_s17 = int_to_ptr.vmem [resolvable:$true] %s944_s17 }
 0x138   : > { %796 = vst [vmem:[%s1763_s27] sm:$0x1] %v1451_v34  ;;  %v840_v44 = vmul.f32 %v1655_v0, %v1655_v0  ;;  %v841_v46 = vmul.f32 %v1663_v6, %v1663_v6  ;;  %v842_v51 = vmul.f32 %v1671_v12, %v1671_v12  ;;  %v843_v58 = vmul.f32 %v1679_v18, %v1679_v18  ;;  %s1873_s29 = scalar_lea.hbm %s1936_s5, %s1117_s15  ;;  %s922_s21 = scalar_lea.sflag [#allocation3], %s248_s7 }
 0x139   : > { %v798_v35 = vadd.f32 %v1655_v0, %v797_v33  ;;  %v870_v47 = vadd.f32 %v839_v40, %v838_v39  ;;  %v844_v60 = vmul.f32 %v1687_v24, %v1687_v24  ;;  %v845_v62 = vmul.f32 %v1695_v30, %v1695_v30  ;;  %s1372_s11 = scalar_lea.vmem %s1875_s17, 16  ;;  %s1452_s16 = smov [#allocation2]  }
 0x13a   : > { %v846_v4 = vmul.f32 %v1703_v36, %v1703_v36  ;;  %v847_v8 = vmul.f32 %v1711_v42, %v1711_v42  ;;  %v848_v14 = vmul.f32 %v1719_v48, %v1719_v48  ;;  %v849_v16 = vmul.f32 %v1727_v56, %v1727_v56  ;;  %p1373_p13 = scmp.ne.s32.totalorder %s1875_s17, %s1372_s11  ;;  %s1376_s10 = sshll.u32 %s1452_s16, 4  ;;  %s1377_s10 = int_to_ptr.vmem [resolvable:$false] %s1376_s10 }
 0x13b   : > { %v799_v38 = vadd.f32 %v1663_v6, %v798_v35  ;;  %v871_v52 = vadd.f32 %v870_v47, %v840_v44  ;;  %v850_v22 = vmul.f32 %v1735_v2, %v1735_v2  ;;  %v853_v35 = vmul.f32 %v1186_v28, %v1186_v28  ;;  %s1378_s12 = scalar_lea.vmem %s1377_s10, 32  ;;  %p1379_p2 = scmp.lt.s32.totalorder %s1875_s17, %s1377_s10 }
 0x13c   : > { %v854_v39 = vmul.f32 %v1641_v53, %v1641_v53  ;;  %p1374_p0 = pnand %p1373_p13, %p1523_p4  ;;  %p1380_p3 = scmp.lt.s32.totalorder %s1378_s12, %s1372_s11 }
 0x13d   : > { %v800_v41 = vadd.f32 %v1671_v12, %v799_v38  ;;  %v872_v55 = vadd.f32 %v871_v52, %v841_v46  ;;  %v857_v46 = vmul.f32 %v1665_v7, %v1665_v7  ;;  %v859_v52 = vmul.f32 %v1681_v19, %v1681_v19 }
 0x13e   : > { %p1375_p1 = pneg %p1374_p0  ;;  %p1381_p5 = por %p1380_p3, %p1379_p2 }
 0x13f   : > { %v801_v45 = vadd.f32 %v1679_v18, %v800_v41  ;;  %v873_v61 = vadd.f32 %v872_v55, %v842_v51 }
 0x140   : > { %p1382_p6 = pnand %p1381_p5, %p1375_p1 }
 0x141   : > { %v802_v50 = vadd.f32 %v1687_v24, %v801_v45  ;;  %v874_v63 = vadd.f32 %v873_v61, %v843_v58  ;;  %v860_v58 = vmul.f32 %v1689_v25, %v1689_v25  ;;  %v862_v61 = vmul.f32 %v1705_v37, %v1705_v37 }
 0x143   : > { %v803_v54 = vadd.f32 %v1695_v30, %v802_v50  ;;  %v875_v5 = vadd.f32 %v874_v63, %v844_v60  ;;  %v858_v50 = vmul.f32 %v1673_v13, %v1673_v13 }
 0x145   : > { %v804_v0 = vadd.f32 %v1703_v36, %v803_v54  ;;  %v876_v9 = vadd.f32 %v875_v5, %v845_v62  ;;  %v863_v62 = vmul.f32 %v1713_v43, %v1713_v43  ;;  %v865_v5 = vmul.f32 %v1729_v57, %v1729_v57 }
 0x147   : > { %v805_v6 = vadd.f32 %v1711_v42, %v804_v0  ;;  %v877_v15 = vadd.f32 %v876_v9, %v846_v4  ;;  %v851_v42 = vmul.f32 %v1743_v10, %v1743_v10  ;;  %v861_v0 = vmul.f32 %v1697_v31, %v1697_v31 }
 0x149   : > { %v806_v12 = vadd.f32 %v1719_v48, %v805_v6  ;;  %v878_v17 = vadd.f32 %v877_v15, %v847_v8  ;;  %v852_v48 = vmul.f32 %v1183_v20, %v1183_v20  ;;  %v866_v8 = vmul.f32 %v1737_v3, %v1737_v3 }
 0x14b   : > { %v807_v18 = vadd.f32 %v1727_v56, %v806_v12  ;;  %v879_v23 = vadd.f32 %v878_v17, %v848_v14  ;;  %v864_v12 = vmul.f32 %v1721_v49, %v1721_v49 }
 0x14d   : > { %v808_v24 = vadd.f32 %v1735_v2, %v807_v18  ;;  %v880_v27 = vadd.f32 %v879_v23, %v849_v16  ;;  %v869_v16 = vmul.f32 %v1756_v29, %v1756_v29 }
 0x14f   : > { %v809_v30 = vadd.f32 %v1743_v10, %v808_v24  ;;  %v881_v33 = vadd.f32 %v880_v27, %v850_v22  ;;  %v855_v10 = vmul.f32 %v1649_v59, %v1649_v59  ;;  %v867_v24 = vmul.f32 %v1745_v11, %v1745_v11 }
 0x151   : > { %v810_v36 = vadd.f32 %v1183_v20, %v809_v30  ;;  %v882_v38 = vadd.f32 %v881_v33, %v851_v42  ;;  %v856_v20 = vmul.f32 %v1657_v1, %v1657_v1  ;;  %v909_v42 = vld [vmem:[%s1763_s27] sm:$0x1] }
 0x153   : > { %v811_v26 = vadd.f32 %v1186_v28, %v810_v36  ;;  %v883_v2 = vadd.f32 %v882_v38, %v852_v48 }
 0x155   : > { %v812_v32 = vadd.f32 %v1641_v53, %v811_v26  ;;  %v884_v41 = vadd.f32 %v883_v2, %v853_v35 }
 0x157   : > { %v813_v34 = vadd.f32 %v1649_v59, %v812_v32  ;;  %v885_v45 = vadd.f32 %v884_v41, %v854_v39 }
 0x159   : > { %v814_v56 = vadd.f32 %v1657_v1, %v813_v34  ;;  %v886_v47 = vadd.f32 %v885_v45, %v855_v10 }
 0x15b   : > { %v815_v40 = vadd.f32 %v1665_v7, %v814_v56  ;;  %v887_v51 = vadd.f32 %v886_v47, %v856_v20 }
 0x15d   : > { %v816_v44 = vadd.f32 %v1673_v13, %v815_v40  ;;  %v888_v54 = vadd.f32 %v887_v51, %v857_v46 }
 0x15f   : > { %v817_v28 = vadd.f32 %v1681_v19, %v816_v44  ;;  %v889_v55 = vadd.f32 %v888_v54, %v858_v50 }
 0x161   : > { %v818_v53 = vadd.f32 %v1689_v25, %v817_v28  ;;  %v890_v60 = vadd.f32 %v889_v55, %v859_v52 }
 0x163   : > { %v819_v59 = vadd.f32 %v1697_v31, %v818_v53  ;;  %v891_v6 = vadd.f32 %v890_v60, %v860_v58 }
 0x165   : > { %v820_v1 = vadd.f32 %v1705_v37, %v819_v59  ;;  %v892_v63 = vadd.f32 %v891_v6, %v861_v0 }
 0x167   : > { %v821_v7 = vadd.f32 %v1713_v43, %v820_v1  ;;  %v893_v4 = vadd.f32 %v892_v63, %v862_v61 }
 0x169   : > { %v822_v13 = vadd.f32 %v1721_v49, %v821_v7  ;;  %v894_v18 = vadd.f32 %v893_v4, %v863_v62 }
 0x16b   : > { %v823_v19 = vadd.f32 %v1729_v57, %v822_v13  ;;  %v895_v9 = vadd.f32 %v894_v18, %v864_v12  ;;  %v868_v57 = vmul.f32 %v1751_v21, %v1751_v21 }
 0x16d   : > { %v824_v25 = vadd.f32 %v1737_v3, %v823_v19  ;;  %v896_v49 = vadd.f32 %v895_v9, %v865_v5 }
 0x16f   : > { %v825_v31 = vadd.f32 %v1745_v11, %v824_v25  ;;  %v897_v15 = vadd.f32 %v896_v49, %v866_v8  ;;  %v834_v11 = vld [vmem:[%s1934_s3] sm:$0x1] }
 0x171   : > { %v826_v37 = vadd.f32 %v1751_v21, %v825_v31  ;;  %v898_v3 = vadd.f32 %v897_v15, %v867_v24 }
 0x173   : > { %v827_v43 = vadd.f32 %v1756_v29, %v826_v37  ;;  %v899_v36 = vadd.f32 %v898_v3, %v868_v57 }
 0x175   : > { %v828_v14 = vrot.slane %v827_v43, 4  ;;  %v900_v23 = vadd.f32 %v899_v36, %v869_v16 }
 0x177   : > { %v829_v30 = vadd.f32 %v828_v14, %v827_v43  ;;  %v901_v27 = vrot.slane %v900_v23, 4 }
 0x179   : > { %v830_v17 = vrot.slane %v829_v30, 2  ;;  %v902_v32 = vadd.f32 %v901_v27, %v900_v23 }
 0x17b   : > { %v831_v22 = vadd.f32 %v830_v17, %v829_v30  ;;  %v903_v33 = vrot.slane %v902_v32, 2 }
 0x17d   : > { %v832_v26 = vrot.slane %v831_v22, 1  ;;  %v904_v34 = vadd.f32 %v903_v33, %v902_v32 }
 0x17f   : > { %v833_v21 = vadd.f32 %v832_v26, %v831_v22 }
 0x181   : > { %v910_v29 = vadd.f32 %v909_v42, %v833_v21  ;;  %v835_v48 = vadd.f32 %v834_v11, %v833_v21 }
 0x183   : > { %911 = vst [vmem:[%s1763_s27] sm:$0x1] %v910_v29  ;;  %836 = vst [vmem:[%s1934_s3] sm:$0x1] %v835_v48 }
 0x184   : > { %1385 = shalt.err (!%p1382_p6)
}
 0x185   : > { %s1386_s27 = scalar_lea.hbm %s1873_s29, 16  ;;  %s1390_s14 = scalar_lea.hbm %s1936_s5, 32 }
 0x186   : > { %p1387_p7 = scmp.ne.s32.totalorder %s1873_s29, %s1386_s27  ;;  %p1391_p11 = scmp.lt.s32.totalorder %s1873_s29, %s1936_s5 }
 0x187   : > { %p1392_p12 = scmp.lt.s32.totalorder %s1390_s14, %s1386_s27 }
 0x188   : > { %p1388_p9 = pnand %p1387_p7, %p1523_p4 }
 0x189   : > { %p1393_p13 = por %p1392_p12, %p1391_p11 }
 0x18a   : > { %p1389_p10 = pneg %p1388_p9 }
 0x18c   : > { %p1394_p0 = pnand %p1393_p13, %p1389_p10 }
 0x18e   : > { %1397 = shalt.err (!%p1394_p0)
}
 0x18f   : > { %1251 = dma.vmem_to_hbm [thread:$0]  (%p1523_p4), %s1875_s17, 16, %s1873_s29, %s922_s21   ;;  %v905_v35 = vrot.slane %v904_v34, 1  ;;  %v837_v38 = vld [vmem:[%s1935_s4] sm:$0x1] }
 0x191   : > { %v906_v56 = vadd.f32 %v905_v35, %v904_v34 }
 0x193   : > { %v907_v39 = vadd.f32 %v906_v56, %v837_v38 }
 0x195   : > { %908 = vst [vmem:[%s1935_s4] sm:$0x1] %v907_v39 }
 0x196 PF: > { %p1257_p1 = scmp.ge.s32.totalorder %s1448_s23, 2  ;;  %s974_s28 = sand.u32 1, %s1428_s18  }
 0x197   : > { %s975_s17 = scalar_lea.sflag [#allocation3], %s974_s28 }
 0x198   : > { %p1254_p2 = pnand %p1257_p1, %p1530_p8 }
 0x19a   : > { %p1255_p4 = pneg %p1254_p2 }
 0x19c   : > { %1423 = dma.done.wait (%p1255_p4), %s975_s17, 16  }
 0x19d   : > { %1425 = vsyncadd (%p1255_p4), %s975_s17, 4294967280  ;;  %s19_s23 = sadd.s32 1, %s1448_s23   ;;  %s1939_s18 = smov %s1432_s19 }
 0x19e   : > { %p16_p3 = scmp.ge.s32.totalorder %s19_s23, 4   ;;  %s1940_s19 = smov %s1436_s20 }
 0x19f   : > { %s1941_s20 = smov %s1536_s6  ;;  %s1942_s21 = smov %s1444_s22 }
 0x1a0   : > { %s1943_s22 = smov %s1945_s26  ;;  %18 = sbr.rel (!%p16_p3) target bundleno = 4 (0x4), region = 99 }
 0x1a5   :  { %979 = vsyncpa [#allocation3], 1 }
 0x1a6   :  { %981 = vsyncpa [#allocation3 + $0x1], 1 }

// kernel: _lambda_.15
= control target key start
LH: loop header
LB: loop body
LE: loop exit
PB: predicated region body
PF: predicated region fallthrough
CT: control target
= control target key end

     0   :  { %s704_s18 = smov 0   ;;  %s706_s19 = smov 0   ;;  %s1131_s0 = inlined_call_operand.vmem [shape: f32[2,256,128], index: 0, kind: input, shape index: {}]   ;;  %s1132_s1 = inlined_call_operand.vmem [shape: f32[1,128], index: 1, kind: input, shape index: {}]   ;;  %s1133_s2 = inlined_call_operand.vmem [shape: f32[1,128], index: 2, kind: input, shape index: {}]   ;;  %s1134_s3 = inlined_call_operand.vmem [shape: f32[1,128], index: 3, kind: input, shape index: {}]   ;;  %s1135_s4 = inlined_call_operand.vmem [shape: f32[1,128], index: 4, kind: input, shape index: {}]   ;;  %s1136_s5 = inlined_call_operand.vmem [shape: f32[2,256,128], index: 5, kind: output, shape index: {}]  }
   0x1   :  { %s708_s20 = smov 0  }
   0x2 LB: > { %s27_s21 = sadd.s32 1, %s668_s19  ;;  %p613_p0 = scmp.ge.s32.totalorder %s672_s20, 1  ;;  %s672_s20 = sphi %s708_s20, %s15_s20   ;;  %s668_s19 = sphi %s706_s19, %s1146_s19   ;;  %s664_s18 = sphi %s704_s18, %s1145_s18  }
   0x3   : > { %p29_p1 = scmp.ge.s32.totalorder %s27_s21, 2  ;;  %p208_p2 = scmp.lt.s32.totalorder %s672_s20, 3 }
   0x5   : > { %s1148_s21 = smov (%p29_p1, %s27_s21), 0  ;;  %p209_p3 = pnand %p613_p0, %p208_p2 }
   0x6   : > { %p245_p4 = scmp.lt.s32.totalorder (!%p209_p3), %s664_s18, 1 }
   0x7   : > { %212 = sbr.rel (%p209_p3) target bundleno = 78 (0x4e), region = 40 }
   0xc   : > { %v264_v0 = vld [vmem:[%s1132_s1] sm:$0x1]  ;;  %v305_v2 = vlaneseq  ;;  %s1150_s18 = smov (!%p245_p4, %s664_s18), 1 }
   0xd   : > { %v265_v1 = vld [vmem:[%s1133_s2] sm:$0x1]  ;;  %v266_v3 = vmul.f32 0.001953125, %v264_v0  ;;  %s622_s26 = sshll.u32 %s1150_s18, 8 }
   0xe   : > { %v267_v4 = vmul.f32 0.001953125, %v265_v1  ;;  %v730_v6 = vshrl.u32 %v305_v2, 7  ;;  %s738_s29 = scalar_lea.vmem %s1131_s0, %s622_s26  ;;  %s940_s11 = scalar_lea.vmem %s1136_s5, %s622_s26 }
   0xf   : > { %v268_v5 = vmul.f32 %v266_v3, %v266_v3  ;;  %v742_v10 = vld [vmem:[%s738_s29] sm:$0xff]  ;;  %v747_v12 = vld [vmem:[%s738_s29 + $0x8] sm:$0xff]  ;;  %v750_v13 = vld [vmem:[%s738_s29 + $0x10] sm:$0xff] }
  0x10   : > { %v307_v9 = vsub.s32 0, %v730_v6  ;;  %v753_v14 = vld [vmem:[%s738_s29 + $0x18] sm:$0xff]  ;;  %v756_v15 = vld [vmem:[%s738_s29 + $0x20] sm:$0xff]  ;;  %v759_v16 = vld [vmem:[%s738_s29 + $0x28] sm:$0xff] }
  0x11   : > { %v269_v7 = vsub.f32 %v267_v4, %v268_v5  ;;  %v762_v17 = vld [vmem:[%s738_s29 + $0x30] sm:$0xff]  ;;  %v765_v18 = vld [vmem:[%s738_s29 + $0x38] sm:$0xff]  ;;  %v768_v19 = vld [vmem:[%s738_s29 + $0x40] sm:$0xff] }
  0x12   : > { %v744_v11 = vrot.slane %v266_v3, %v307_v9  ;;  %v771_v20 = vld [vmem:[%s738_s29 + $0x48] sm:$0xff]  ;;  %v774_v21 = vld [vmem:[%s738_s29 + $0x50] sm:$0xff]  ;;  %v777_v22 = vld [vmem:[%s738_s29 + $0x58] sm:$0xff] }
  0x13   : > { %v270_v8 = vadd.f32 1e-05, %v269_v7  ;;  %v780_v23 = vld [vmem:[%s738_s29 + $0x60] sm:$0xff]  ;;  %v783_v24 = vld [vmem:[%s738_s29 + $0x68] sm:$0xff]  ;;  %v788_v26 = vld [vmem:[%s738_s29 + $0x70] sm:$0xff] }
  0x14   : > { %v310_v25 = vsub.f32 %v742_v10, %v744_v11  ;;  %v791_v27 = vld [vmem:[%s738_s29 + $0x78] sm:$0xff]  ;;  %v794_v28 = vld [vmem:[%s738_s29 + $0x80] sm:$0xff]  ;;  %v311_v29 = vsub.f32 %v747_v12, %v744_v11  ;;  %v312_v30 = vsub.f32 %v750_v13, %v744_v11  ;;  %v313_v31 = vsub.f32 %v753_v14, %v744_v11  ;;  %v805_v33 = vld [vmem:[%s738_s29 + $0x88] sm:$0xff] }
  0x15   : > { %648 = vrsqrt.f32 %v270_v8  ;;  %v314_v32 = vsub.f32 %v756_v15, %v744_v11  ;;  %v808_v34 = vld [vmem:[%s738_s29 + $0x90] sm:$0xff]  ;;  %v811_v35 = vld [vmem:[%s738_s29 + $0x98] sm:$0xff]  ;;  %v315_v36 = vsub.f32 %v759_v16, %v744_v11  ;;  %v316_v37 = vsub.f32 %v762_v17, %v744_v11  ;;  %v822_v40 = vld [vmem:[%s738_s29 + $0xa0] sm:$0xff] }
  0x16   : > { %v317_v38 = vsub.f32 %v765_v18, %v744_v11  ;;  %v318_v39 = vsub.f32 %v768_v19, %v744_v11  ;;  %v825_v41 = vld [vmem:[%s738_s29 + $0xa8] sm:$0xff]  ;;  %v828_v42 = vld [vmem:[%s738_s29 + $0xb0] sm:$0xff]  ;;  %v319_v43 = vsub.f32 %v771_v20, %v744_v11  ;;  %v320_v44 = vsub.f32 %v774_v21, %v744_v11  ;;  %v839_v47 = vld [vmem:[%s738_s29 + $0xb8] sm:$0xff] }
  0x17   : > { %v321_v45 = vsub.f32 %v777_v22, %v744_v11  ;;  %v322_v46 = vsub.f32 %v780_v23, %v744_v11  ;;  %v842_v48 = vld [vmem:[%s738_s29 + $0xc0] sm:$0xff]  ;;  %v845_v49 = vld [vmem:[%s738_s29 + $0xc8] sm:$0xff]  ;;  %v323_v50 = vsub.f32 %v783_v24, %v744_v11  ;;  %v324_v51 = vsub.f32 %v788_v26, %v744_v11  ;;  %v856_v54 = vld [vmem:[%s738_s29 + $0xd0] sm:$0xff] }
  0x18   : > { %v325_v52 = vsub.f32 %v791_v27, %v744_v11  ;;  %v326_v53 = vsub.f32 %v794_v28, %v744_v11  ;;  %v859_v55 = vld [vmem:[%s738_s29 + $0xd8] sm:$0xff]  ;;  %v862_v56 = vld [vmem:[%s738_s29 + $0xe0] sm:$0xff]  ;;  %v327_v57 = vsub.f32 %v805_v33, %v744_v11  ;;  %v328_v58 = vsub.f32 %v808_v34, %v744_v11  ;;  %v873_v61 = vld [vmem:[%s738_s29 + $0xe8] sm:$0xff] }
  0x19   : > { %v329_v59 = vsub.f32 %v811_v35, %v744_v11  ;;  %v330_v60 = vsub.f32 %v822_v40, %v744_v11  ;;  %v876_v62 = vld [vmem:[%s738_s29 + $0xf0] sm:$0xff]  ;;  %v879_v63 = vld [vmem:[%s738_s29 + $0xf8] sm:$0xff]  ;;  %v331_v1 = vsub.f32 %v825_v41, %v744_v11  ;;  %v332_v2 = vsub.f32 %v828_v42, %v744_v11  ;;  %v900_v10 = vld [vmem:[%s1134_s3] ss:$0 sm:$0xff] }
  0x1a   : > { %v333_v3 = vsub.f32 %v839_v47, %v744_v11 }
  0x22   : > { %v649_v0 = vpop.eup %648 }
  0x23   : > { %v889_v5 = vrot.slane %v649_v0, %v307_v9  ;;  %v917_v0 = vld [vmem:[%s1135_s4] ss:$0 sm:$0xff] }
  0x25   : > { %v348_v15 = vmul.f32 %v889_v5, %v310_v25  ;;  %v349_v16 = vmul.f32 %v889_v5, %v311_v29  ;;  %v350_v17 = vmul.f32 %v889_v5, %v312_v30  ;;  %v351_v18 = vmul.f32 %v889_v5, %v313_v31 }
  0x26   : > { %v352_v9 = vmul.f32 %v889_v5, %v314_v32  ;;  %v353_v13 = vmul.f32 %v889_v5, %v315_v36  ;;  %v354_v14 = vmul.f32 %v889_v5, %v316_v37  ;;  %v355_v25 = vmul.f32 %v889_v5, %v317_v38 }
  0x27   : > { %v387_v29 = vmul.f32 %v900_v10, %v348_v15  ;;  %v388_v30 = vmul.f32 %v900_v10, %v349_v16  ;;  %v389_v31 = vmul.f32 %v900_v10, %v350_v17  ;;  %v390_v12 = vmul.f32 %v900_v10, %v351_v18 }
  0x28   : > { %v391_v8 = vmul.f32 %v900_v10, %v352_v9  ;;  %v392_v7 = vmul.f32 %v900_v10, %v353_v13  ;;  %v393_v32 = vmul.f32 %v900_v10, %v354_v14  ;;  %v394_v36 = vmul.f32 %v900_v10, %v355_v25 }
  0x29   : > { %v426_v37 = vadd.f32 %v917_v0, %v387_v29  ;;  %v427_v38 = vadd.f32 %v917_v0, %v388_v30  ;;  %v428_v15 = vadd.f32 %v917_v0, %v389_v31  ;;  %v429_v16 = vadd.f32 %v917_v0, %v390_v12 }
  0x2a   : > { %v430_v9 = vadd.f32 %v917_v0, %v391_v8  ;;  %v431_v13 = vadd.f32 %v917_v0, %v392_v7  ;;  %v432_v14 = vadd.f32 %v917_v0, %v393_v32  ;;  %v433_v17 = vadd.f32 %v917_v0, %v394_v36 }
  0x2b   : > { %v458_v18 = vmax.f32 %v426_v37, 0.0  ;;  %v459_v12 = vmax.f32 %v427_v38, 0.0  ;;  %v460_v25 = vmax.f32 %v428_v15, 0.0  ;;  %v461_v29 = vmax.f32 %v429_v16, 0.0 }
  0x2c   : > { %v462_v30 = vmax.f32 %v430_v9, 0.0  ;;  %v463_v31 = vmax.f32 %v431_v13, 0.0  ;;  %v464_v6 = vmax.f32 %v432_v14, 0.0  ;;  %v465_v4 = vmax.f32 %v433_v17, 0.0 }
  0x2d   : > { %490 = vst [vmem:[%s940_s11] sm:$0xff] %v458_v18  ;;  %491 = vst [vmem:[%s940_s11 + $0x8] sm:$0xff] %v459_v12  ;;  %v356_v7 = vmul.f32 %v889_v5, %v318_v39  ;;  %v357_v8 = vmul.f32 %v889_v5, %v319_v43  ;;  %v358_v32 = vmul.f32 %v889_v5, %v320_v44 }
  0x2e   : > { %492 = vst [vmem:[%s940_s11 + $0x10] sm:$0xff] %v460_v25  ;;  %493 = vst [vmem:[%s940_s11 + $0x18] sm:$0xff] %v461_v29  ;;  %v359_v36 = vmul.f32 %v889_v5, %v321_v45  ;;  %v360_v19 = vmul.f32 %v889_v5, %v322_v46  ;;  %v361_v20 = vmul.f32 %v889_v5, %v323_v50 }
  0x2f   : > { %494 = vst [vmem:[%s940_s11 + $0x20] sm:$0xff] %v462_v30  ;;  %495 = vst [vmem:[%s940_s11 + $0x28] sm:$0xff] %v463_v31  ;;  %v362_v21 = vmul.f32 %v889_v5, %v324_v51  ;;  %v363_v22 = vmul.f32 %v889_v5, %v325_v52  ;;  %v395_v39 = vmul.f32 %v900_v10, %v356_v7 }
  0x30   : > { %496 = vst [vmem:[%s940_s11 + $0x30] sm:$0xff] %v464_v6  ;;  %497 = vst [vmem:[%s940_s11 + $0x38] sm:$0xff] %v465_v4  ;;  %v396_v23 = vmul.f32 %v900_v10, %v357_v8  ;;  %v397_v43 = vmul.f32 %v900_v10, %v358_v32  ;;  %v398_v24 = vmul.f32 %v900_v10, %v359_v36 }
  0x31   : > { %v399_v44 = vmul.f32 %v900_v10, %v360_v19  ;;  %v400_v45 = vmul.f32 %v900_v10, %v361_v20  ;;  %v401_v26 = vmul.f32 %v900_v10, %v362_v21  ;;  %v402_v46 = vmul.f32 %v900_v10, %v363_v22 }
  0x32   : > { %v434_v27 = vadd.f32 %v917_v0, %v395_v39  ;;  %v435_v50 = vadd.f32 %v917_v0, %v396_v23  ;;  %v436_v51 = vadd.f32 %v917_v0, %v397_v43  ;;  %v437_v52 = vadd.f32 %v917_v0, %v398_v24 }
  0x33   : > { %v438_v4 = vadd.f32 %v917_v0, %v399_v44  ;;  %v439_v6 = vadd.f32 %v917_v0, %v400_v45  ;;  %v440_v37 = vadd.f32 %v917_v0, %v401_v26  ;;  %v441_v38 = vadd.f32 %v917_v0, %v402_v46 }
  0x34   : > { %v466_v15 = vmax.f32 %v434_v27, 0.0  ;;  %v467_v16 = vmax.f32 %v435_v50, 0.0  ;;  %v468_v9 = vmax.f32 %v436_v51, 0.0  ;;  %v469_v13 = vmax.f32 %v437_v52, 0.0 }
  0x35   : > { %v470_v14 = vmax.f32 %v438_v4, 0.0  ;;  %v471_v17 = vmax.f32 %v439_v6, 0.0  ;;  %v472_v18 = vmax.f32 %v440_v37, 0.0  ;;  %v473_v12 = vmax.f32 %v441_v38, 0.0 }
  0x36   : > { %498 = vst [vmem:[%s940_s11 + $0x40] sm:$0xff] %v466_v15  ;;  %499 = vst [vmem:[%s940_s11 + $0x48] sm:$0xff] %v467_v16  ;;  %v364_v25 = vmul.f32 %v889_v5, %v326_v53  ;;  %v365_v29 = vmul.f32 %v889_v5, %v327_v57  ;;  %v366_v30 = vmul.f32 %v889_v5, %v328_v58 }
  0x37   : > { %500 = vst [vmem:[%s940_s11 + $0x50] sm:$0xff] %v468_v9  ;;  %501 = vst [vmem:[%s940_s11 + $0x58] sm:$0xff] %v469_v13  ;;  %v367_v31 = vmul.f32 %v889_v5, %v329_v59  ;;  %v368_v28 = vmul.f32 %v889_v5, %v330_v60  ;;  %v369_v33 = vmul.f32 %v889_v5, %v331_v1 }
  0x38   : > { %502 = vst [vmem:[%s940_s11 + $0x60] sm:$0xff] %v470_v14  ;;  %503 = vst [vmem:[%s940_s11 + $0x68] sm:$0xff] %v471_v17  ;;  %v370_v34 = vmul.f32 %v889_v5, %v332_v2  ;;  %v371_v35 = vmul.f32 %v889_v5, %v333_v3  ;;  %v403_v53 = vmul.f32 %v900_v10, %v364_v25 }
  0x39   : > { %504 = vst [vmem:[%s940_s11 + $0x70] sm:$0xff] %v472_v18  ;;  %505 = vst [vmem:[%s940_s11 + $0x78] sm:$0xff] %v473_v12  ;;  %v404_v40 = vmul.f32 %v900_v10, %v365_v29  ;;  %v405_v57 = vmul.f32 %v900_v10, %v366_v30  ;;  %v406_v41 = vmul.f32 %v900_v10, %v367_v31 }
  0x3a   : > { %v407_v58 = vmul.f32 %v900_v10, %v368_v28  ;;  %v408_v59 = vmul.f32 %v900_v10, %v369_v33  ;;  %v409_v42 = vmul.f32 %v900_v10, %v370_v34  ;;  %v410_v60 = vmul.f32 %v900_v10, %v371_v35 }
  0x3b   : > { %v442_v47 = vadd.f32 %v917_v0, %v403_v53  ;;  %v443_v1 = vadd.f32 %v917_v0, %v404_v40  ;;  %v444_v2 = vadd.f32 %v917_v0, %v405_v57  ;;  %v445_v3 = vadd.f32 %v917_v0, %v406_v41 }
  0x3c   : > { %v446_v7 = vadd.f32 %v917_v0, %v407_v58  ;;  %v447_v8 = vadd.f32 %v917_v0, %v408_v59  ;;  %v448_v32 = vadd.f32 %v917_v0, %v409_v42  ;;  %v449_v36 = vadd.f32 %v917_v0, %v410_v60 }
  0x3d   : > { %v474_v19 = vmax.f32 %v442_v47, 0.0  ;;  %v475_v20 = vmax.f32 %v443_v1, 0.0  ;;  %v476_v21 = vmax.f32 %v444_v2, 0.0  ;;  %v477_v22 = vmax.f32 %v445_v3, 0.0 }
  0x3e   : > { %v478_v39 = vmax.f32 %v446_v7, 0.0  ;;  %v479_v23 = vmax.f32 %v447_v8, 0.0  ;;  %v480_v43 = vmax.f32 %v448_v32, 0.0  ;;  %v481_v24 = vmax.f32 %v449_v36, 0.0 }
  0x3f   : > { %506 = vst [vmem:[%s940_s11 + $0x80] sm:$0xff] %v474_v19  ;;  %507 = vst [vmem:[%s940_s11 + $0x88] sm:$0xff] %v475_v20  ;;  %v1137_v44 = vsub.f32 %v842_v48, %v744_v11  ;;  %v1138_v26 = vsub.f32 %v845_v49, %v744_v11  ;;  %v1139_v27 = vsub.f32 %v856_v54, %v744_v11 }
  0x40   : > { %508 = vst [vmem:[%s940_s11 + $0x90] sm:$0xff] %v476_v21  ;;  %509 = vst [vmem:[%s940_s11 + $0x98] sm:$0xff] %v477_v22  ;;  %v1140_v51 = vsub.f32 %v859_v55, %v744_v11  ;;  %v1141_v48 = vsub.f32 %v862_v56, %v744_v11  ;;  %v1142_v4 = vsub.f32 %v873_v61, %v744_v11 }
  0x41   : > { %v372_v45 = vmul.f32 %v889_v5, %v1137_v44  ;;  %v373_v46 = vmul.f32 %v889_v5, %v1138_v26  ;;  %v374_v50 = vmul.f32 %v889_v5, %v1139_v27  ;;  %510 = vst [vmem:[%s940_s11 + $0xa0] sm:$0xff] %v478_v39  ;;  %511 = vst [vmem:[%s940_s11 + $0xa8] sm:$0xff] %v479_v23 }
  0x42   : > { %v375_v52 = vmul.f32 %v889_v5, %v1140_v51  ;;  %512 = vst [vmem:[%s940_s11 + $0xb0] sm:$0xff] %v480_v43  ;;  %513 = vst [vmem:[%s940_s11 + $0xb8] sm:$0xff] %v481_v24  ;;  %v376_v49 = vmul.f32 %v889_v5, %v1141_v48  ;;  %v377_v54 = vmul.f32 %v889_v5, %v1142_v4 }
  0x43   : > { %v1143_v6 = vsub.f32 %v876_v62, %v744_v11  ;;  %v1144_v37 = vsub.f32 %v879_v63, %v744_v11  ;;  %v411_v15 = vmul.f32 %v900_v10, %v372_v45  ;;  %v412_v56 = vmul.f32 %v900_v10, %v373_v46 }
  0x44   : > { %v413_v16 = vmul.f32 %v900_v10, %v374_v50  ;;  %v414_v61 = vmul.f32 %v900_v10, %v375_v52  ;;  %v415_v9 = vmul.f32 %v900_v10, %v376_v49  ;;  %v416_v13 = vmul.f32 %v900_v10, %v377_v54 }
  0x45   : > { %v378_v55 = vmul.f32 %v889_v5, %v1143_v6  ;;  %v379_v38 = vmul.f32 %v889_v5, %v1144_v37  ;;  %v450_v11 = vadd.f32 %v917_v0, %v411_v15  ;;  %v451_v63 = vadd.f32 %v917_v0, %v412_v56 }
  0x46   : > { %v452_v5 = vadd.f32 %v917_v0, %v413_v16  ;;  %v453_v17 = vadd.f32 %v917_v0, %v414_v61  ;;  %v454_v18 = vadd.f32 %v917_v0, %v415_v9  ;;  %v455_v12 = vadd.f32 %v917_v0, %v416_v13 }
  0x47   : > { %v417_v62 = vmul.f32 %v900_v10, %v378_v55  ;;  %v418_v14 = vmul.f32 %v900_v10, %v379_v38  ;;  %v482_v29 = vmax.f32 %v450_v11, 0.0  ;;  %v483_v30 = vmax.f32 %v451_v63, 0.0 }
  0x48   : > { %v484_v31 = vmax.f32 %v452_v5, 0.0  ;;  %v485_v28 = vmax.f32 %v453_v17, 0.0  ;;  %v486_v33 = vmax.f32 %v454_v18, 0.0  ;;  %v487_v34 = vmax.f32 %v455_v12, 0.0 }
  0x49   : > { %v456_v10 = vadd.f32 %v917_v0, %v417_v62  ;;  %v457_v25 = vadd.f32 %v917_v0, %v418_v14  ;;  %514 = vst [vmem:[%s940_s11 + $0xc0] sm:$0xff] %v482_v29  ;;  %515 = vst [vmem:[%s940_s11 + $0xc8] sm:$0xff] %v483_v30 }
  0x4a   : > { %516 = vst [vmem:[%s940_s11 + $0xd0] sm:$0xff] %v484_v31  ;;  %517 = vst [vmem:[%s940_s11 + $0xd8] sm:$0xff] %v485_v28 }
  0x4b   : > { %v488_v35 = vmax.f32 %v456_v10, 0.0  ;;  %v489_v53 = vmax.f32 %v457_v25, 0.0  ;;  %518 = vst [vmem:[%s940_s11 + $0xe0] sm:$0xff] %v486_v33  ;;  %519 = vst [vmem:[%s940_s11 + $0xe8] sm:$0xff] %v487_v34 }
  0x4d   : > { %520 = vst [vmem:[%s940_s11 + $0xf0] sm:$0xff] %v488_v35  ;;  %521 = vst [vmem:[%s940_s11 + $0xf8] sm:$0xff] %v489_v53 }
  0x4e PF: > { %s15_s20 = sadd.s32 1, %s672_s20   ;;  %s1145_s18 = smov %s668_s19 }
  0x4f   : > { %p12_p5 = scmp.ge.s32.totalorder %s15_s20, 4   ;;  %s1146_s19 = smov %s1148_s21 }
  0x51   :  { %14 = sbr.rel (!%p12_p5) target bundleno = 2 (0x2), region = 70 }

// kernel: _lambda_.16
= control target key start
LH: loop header
LB: loop body
LE: loop exit
PB: predicated region body
PF: predicated region fallthrough
CT: control target
= control target key end

     0   :  { %s463_s6 = smov 0   ;;  %s465_s7 = smov 0   ;;  %s584_s0 = inlined_call_operand.vmem [shape: f32[2,64,1152], index: 0, kind: input, shape index: {}]   ;;  %s585_s1 = inlined_call_operand.vmem [shape: f32[2,64,128], index: 1, kind: output, shape index: {}]  }
   0x1   :  { %s467_s8 = smov 0  }
   0x2 LB: > { %s23_s9 = sadd.s32 1, %s447_s7  ;;  %p397_p0 = scmp.ge.s32.totalorder %s451_s8, 1  ;;  %s451_s8 = sphi %s467_s8, %s11_s8   ;;  %s447_s7 = sphi %s465_s7, %s587_s7   ;;  %s443_s6 = sphi %s463_s6, %s586_s6  }
   0x3   : > { %p25_p1 = scmp.ge.s32.totalorder %s23_s9, 2  ;;  %p109_p2 = scmp.lt.s32.totalorder %s451_s8, 3 }
   0x5   : > { %s589_s9 = smov (%p25_p1, %s23_s9), 0  ;;  %p110_p3 = pnand %p397_p0, %p109_p2 }
   0x6   : > { %p139_p4 = scmp.lt.s32.totalorder (!%p110_p3), %s443_s6, 1 }
   0x7   : > { %113 = sbr.rel (%p110_p3) target bundleno = 52 (0x34), region = 24 }
   0xc   : > { %s591_s6 = smov (!%p139_p4, %s443_s6), 1 }
   0xd   : > { %s404_s10 = smul.u32 576, %s591_s6  ;;  %s403_s14 = sshll.u32 %s591_s6, 6 }
   0xe   : > { %s525_s17 = scalar_lea.vmem %s585_s1, %s403_s14 }
   0xf   : > { %s487_s13 = scalar_lea.vmem %s584_s0, %s404_s10 }
  0x10   : > { %v159_v0 = vld [vmem:[%s487_s13] sm:$0xff]  ;;  %v160_v1 = vld [vmem:[%s487_s13 + $0x8] sm:$0xff]  ;;  %v161_v2 = vld [vmem:[%s487_s13 + $0x10] sm:$0xff] }
  0x11   : > { %v231_v3 = vmax.f32 %v159_v0, %v160_v1  ;;  %v162_v4 = vld [vmem:[%s487_s13 + $0x18] sm:$0xff]  ;;  %v168_v6 = vld [vmem:[%s487_s13 + $0x48] sm:$0xff]  ;;  %v169_v7 = vld [vmem:[%s487_s13 + $0x50] sm:$0xff] }
  0x12   : > { %v170_v8 = vld [vmem:[%s487_s13 + $0x58] sm:$0xff]  ;;  %v163_v9 = vld [vmem:[%s487_s13 + $0x20] sm:$0xff]  ;;  %v232_v10 = vmax.f32 %v168_v6, %v169_v7  ;;  %v164_v11 = vld [vmem:[%s487_s13 + $0x28] sm:$0xff] }
  0x13   : > { %v239_v5 = vmax.f32 %v231_v3, %v161_v2  ;;  %v171_v13 = vld [vmem:[%s487_s13 + $0x60] sm:$0xff]  ;;  %v177_v15 = vld [vmem:[%s487_s13 + $0x90] sm:$0xff]  ;;  %v178_v16 = vld [vmem:[%s487_s13 + $0x98] sm:$0xff] }
  0x14   : > { %v240_v14 = vmax.f32 %v232_v10, %v170_v8  ;;  %v179_v17 = vld [vmem:[%s487_s13 + $0xa0] sm:$0xff]  ;;  %v172_v19 = vld [vmem:[%s487_s13 + $0x68] sm:$0xff]  ;;  %v233_v20 = vmax.f32 %v177_v15, %v178_v16  ;;  %v165_v21 = vld [vmem:[%s487_s13 + $0x30] sm:$0xff] }
  0x15   : > { %v247_v12 = vmax.f32 %v239_v5, %v162_v4  ;;  %v173_v22 = vld [vmem:[%s487_s13 + $0x70] sm:$0xff]  ;;  %v180_v24 = vld [vmem:[%s487_s13 + $0xa8] sm:$0xff]  ;;  %v186_v27 = vld [vmem:[%s487_s13 + $0xd8] sm:$0xff] }
  0x16   : > { %v248_v23 = vmax.f32 %v240_v14, %v171_v13  ;;  %v241_v26 = vmax.f32 %v233_v20, %v179_v17  ;;  %v187_v28 = vld [vmem:[%s487_s13 + $0xe0] sm:$0xff]  ;;  %v188_v29 = vld [vmem:[%s487_s13 + $0xe8] sm:$0xff]  ;;  %v166_v30 = vld [vmem:[%s487_s13 + $0x38] sm:$0xff] }
  0x17   : > { %v255_v18 = vmax.f32 %v247_v12, %v163_v9  ;;  %v167_v31 = vld [vmem:[%s487_s13 + $0x40] sm:$0xff]  ;;  %v181_v33 = vld [vmem:[%s487_s13 + $0xb0] sm:$0xff]  ;;  %v234_v34 = vmax.f32 %v186_v27, %v187_v28  ;;  %v174_v36 = vld [vmem:[%s487_s13 + $0x78] sm:$0xff] }
  0x18   : > { %v256_v32 = vmax.f32 %v248_v23, %v172_v19  ;;  %v182_v37 = vld [vmem:[%s487_s13 + $0xb8] sm:$0xff]  ;;  %v249_v38 = vmax.f32 %v241_v26, %v180_v24  ;;  %v189_v39 = vld [vmem:[%s487_s13 + $0xf0] sm:$0xff]  ;;  %v195_v42 = vld [vmem:[%s487_s13 + $0x120] sm:$0xff] }
  0x19   : > { %v263_v25 = vmax.f32 %v255_v18, %v164_v11  ;;  %v242_v41 = vmax.f32 %v234_v34, %v188_v29  ;;  %v196_v43 = vld [vmem:[%s487_s13 + $0x128] sm:$0xff]  ;;  %v197_v44 = vld [vmem:[%s487_s13 + $0x130] sm:$0xff]  ;;  %v175_v46 = vld [vmem:[%s487_s13 + $0x80] sm:$0xff] }
  0x1a   : > { %v264_v40 = vmax.f32 %v256_v32, %v173_v22  ;;  %v176_v47 = vld [vmem:[%s487_s13 + $0x88] sm:$0xff]  ;;  %v257_v48 = vmax.f32 %v249_v38, %v181_v33  ;;  %v190_v49 = vld [vmem:[%s487_s13 + $0xf8] sm:$0xff]  ;;  %v235_v50 = vmax.f32 %v195_v42, %v196_v43  ;;  %v183_v52 = vld [vmem:[%s487_s13 + $0xc0] sm:$0xff] }
  0x1b   : > { %v271_v35 = vmax.f32 %v263_v25, %v165_v21  ;;  %v191_v53 = vld [vmem:[%s487_s13 + $0x100] sm:$0xff]  ;;  %v250_v54 = vmax.f32 %v242_v41, %v189_v39  ;;  %v198_v55 = vld [vmem:[%s487_s13 + $0x138] sm:$0xff]  ;;  %v204_v59 = vld [vmem:[%s487_s13 + $0x168] sm:$0xff] }
  0x1c   : > { %v272_v51 = vmax.f32 %v264_v40, %v174_v36  ;;  %v265_v57 = vmax.f32 %v257_v48, %v182_v37  ;;  %v243_v58 = vmax.f32 %v235_v50, %v197_v44  ;;  %v205_v60 = vld [vmem:[%s487_s13 + $0x170] sm:$0xff]  ;;  %v206_v61 = vld [vmem:[%s487_s13 + $0x178] sm:$0xff]  ;;  %v184_v63 = vld [vmem:[%s487_s13 + $0xc8] sm:$0xff] }
  0x1d   : > { %v279_v45 = vmax.f32 %v271_v35, %v166_v30  ;;  %v185_v0 = vld [vmem:[%s487_s13 + $0xd0] sm:$0xff]  ;;  %v258_v1 = vmax.f32 %v250_v54, %v190_v49  ;;  %v199_v2 = vld [vmem:[%s487_s13 + $0x140] sm:$0xff]  ;;  %v236_v3 = vmax.f32 %v204_v59, %v205_v60  ;;  %v192_v5 = vld [vmem:[%s487_s13 + $0x108] sm:$0xff] }
  0x1e   : > { %v280_v62 = vmax.f32 %v272_v51, %v175_v46  ;;  %v273_v4 = vmax.f32 %v265_v57, %v183_v52  ;;  %v200_v6 = vld [vmem:[%s487_s13 + $0x148] sm:$0xff]  ;;  %v251_v7 = vmax.f32 %v243_v58, %v198_v55  ;;  %v207_v8 = vld [vmem:[%s487_s13 + $0x180] sm:$0xff]  ;;  %v213_v12 = vld [vmem:[%s487_s13 + $0x1b0] sm:$0xff] }
  0x1f   : > { %v287_v56 = vmax.f32 %v279_v45, %v167_v31  ;;  %v266_v10 = vmax.f32 %v258_v1, %v191_v53  ;;  %v244_v11 = vmax.f32 %v236_v3, %v206_v61  ;;  %v214_v13 = vld [vmem:[%s487_s13 + $0x1b8] sm:$0xff]  ;;  %v215_v14 = vld [vmem:[%s487_s13 + $0x1c0] sm:$0xff]  ;;  %v193_v16 = vld [vmem:[%s487_s13 + $0x110] sm:$0xff] }
  0x20   : > { %v288_v9 = vmax.f32 %v280_v62, %v176_v47  ;;  %v281_v15 = vmax.f32 %v273_v4, %v184_v63  ;;  %v194_v17 = vld [vmem:[%s487_s13 + $0x118] sm:$0xff]  ;;  %v259_v18 = vmax.f32 %v251_v7, %v199_v2  ;;  %v208_v19 = vld [vmem:[%s487_s13 + $0x188] sm:$0xff]  ;;  %v237_v20 = vmax.f32 %v213_v12, %v214_v13  ;;  %v201_v22 = vld [vmem:[%s487_s13 + $0x150] sm:$0xff] }
  0x21   : > { %295 = vst [vmem:[%s525_s17] sm:$0xff] %v287_v56  ;;  %v274_v21 = vmax.f32 %v266_v10, %v192_v5  ;;  %v209_v23 = vld [vmem:[%s487_s13 + $0x190] sm:$0xff]  ;;  %v252_v24 = vmax.f32 %v244_v11, %v207_v8  ;;  %v216_v25 = vld [vmem:[%s487_s13 + $0x1c8] sm:$0xff]  ;;  %v222_v29 = vld [vmem:[%s487_s13 + $0x1f8] sm:$0xff] }
  0x22   : > { %296 = vst [vmem:[%s525_s17 + $0x8] sm:$0xff] %v288_v9  ;;  %v289_v26 = vmax.f32 %v281_v15, %v185_v0  ;;  %v267_v27 = vmax.f32 %v259_v18, %v200_v6  ;;  %v245_v28 = vmax.f32 %v237_v20, %v215_v14  ;;  %v223_v30 = vld [vmem:[%s487_s13 + $0x200] sm:$0xff]  ;;  %v224_v31 = vld [vmem:[%s487_s13 + $0x208] sm:$0xff]  ;;  %v202_v33 = vld [vmem:[%s487_s13 + $0x158] sm:$0xff] }
  0x23   : > { %v282_v32 = vmax.f32 %v274_v21, %v193_v16  ;;  %v260_v34 = vmax.f32 %v252_v24, %v208_v19  ;;  %v217_v35 = vld [vmem:[%s487_s13 + $0x1d0] sm:$0xff]  ;;  %v238_v36 = vmax.f32 %v222_v29, %v223_v30  ;;  %v210_v38 = vld [vmem:[%s487_s13 + $0x198] sm:$0xff]  ;;  %v203_v42 = vld [vmem:[%s487_s13 + $0x160] sm:$0xff] }
  0x24   : > { %297 = vst [vmem:[%s525_s17 + $0x10] sm:$0xff] %v289_v26  ;;  %v275_v37 = vmax.f32 %v267_v27, %v201_v22  ;;  %v253_v39 = vmax.f32 %v245_v28, %v216_v25  ;;  %v225_v40 = vld [vmem:[%s487_s13 + $0x210] sm:$0xff]  ;;  %v218_v44 = vld [vmem:[%s487_s13 + $0x1d8] sm:$0xff]  ;;  %v211_v47 = vld [vmem:[%s487_s13 + $0x1a0] sm:$0xff] }
  0x25   : > { %v290_v41 = vmax.f32 %v282_v32, %v194_v17  ;;  %v268_v43 = vmax.f32 %v260_v34, %v209_v23  ;;  %v246_v45 = vmax.f32 %v238_v36, %v224_v31  ;;  %v226_v49 = vld [vmem:[%s487_s13 + $0x218] sm:$0xff]  ;;  %v219_v51 = vld [vmem:[%s487_s13 + $0x1e0] sm:$0xff]  ;;  %v212_v54 = vld [vmem:[%s487_s13 + $0x1a8] sm:$0xff] }
  0x26   : > { %v283_v46 = vmax.f32 %v275_v37, %v202_v33  ;;  %v261_v48 = vmax.f32 %v253_v39, %v217_v35  ;;  %v227_v56 = vld [vmem:[%s487_s13 + $0x220] sm:$0xff]  ;;  %v220_v58 = vld [vmem:[%s487_s13 + $0x1e8] sm:$0xff]  ;;  %v221_v63 = vld [vmem:[%s487_s13 + $0x1f0] sm:$0xff] }
  0x27   : > { %298 = vst [vmem:[%s525_s17 + $0x18] sm:$0xff] %v290_v41  ;;  %v276_v50 = vmax.f32 %v268_v43, %v210_v38  ;;  %v254_v52 = vmax.f32 %v246_v45, %v225_v40  ;;  %v228_v61 = vld [vmem:[%s487_s13 + $0x228] sm:$0xff]  ;;  %v229_v2 = vld [vmem:[%s487_s13 + $0x230] sm:$0xff]  ;;  %v230_v5 = vld [vmem:[%s487_s13 + $0x238] sm:$0xff] }
  0x28   : > { %v291_v53 = vmax.f32 %v283_v46, %v203_v42  ;;  %v269_v55 = vmax.f32 %v261_v48, %v218_v44 }
  0x29   : > { %v284_v57 = vmax.f32 %v276_v50, %v211_v47  ;;  %v262_v59 = vmax.f32 %v254_v52, %v226_v49 }
  0x2a   : > { %299 = vst [vmem:[%s525_s17 + $0x20] sm:$0xff] %v291_v53  ;;  %v277_v60 = vmax.f32 %v269_v55, %v219_v51 }
  0x2b   : > { %v292_v62 = vmax.f32 %v284_v57, %v212_v54  ;;  %v270_v0 = vmax.f32 %v262_v59, %v227_v56 }
  0x2c   : > { %v285_v1 = vmax.f32 %v277_v60, %v220_v58 }
  0x2d   : > { %300 = vst [vmem:[%s525_s17 + $0x28] sm:$0xff] %v292_v62  ;;  %v278_v3 = vmax.f32 %v270_v0, %v228_v61 }
  0x2e   : > { %v293_v4 = vmax.f32 %v285_v1, %v221_v63 }
  0x2f   : > { %v286_v6 = vmax.f32 %v278_v3, %v229_v2 }
  0x30   : > { %301 = vst [vmem:[%s525_s17 + $0x30] sm:$0xff] %v293_v4 }
  0x31   : > { %v294_v7 = vmax.f32 %v286_v6, %v230_v5 }
  0x33   : > { %302 = vst [vmem:[%s525_s17 + $0x38] sm:$0xff] %v294_v7 }
  0x34 PF: > { %s11_s8 = sadd.s32 1, %s451_s8   ;;  %s586_s6 = smov %s447_s7 }
  0x35   : > { %p8_p5 = scmp.ge.s32.totalorder %s11_s8, 4   ;;  %s587_s7 = smov %s589_s9 }
  0x37   :  { %10 = sbr.rel (!%p8_p5) target bundleno = 2 (0x2), region = 54 }

// kernel: _lambda_.18
= control target key start
LH: loop header
LB: loop body
LE: loop exit
PB: predicated region body
PF: predicated region fallthrough
CT: control target
= control target key end

     0   :  { %s607_s18 = smov 0   ;;  %s609_s19 = smov 0   ;;  %s656_s0 = inlined_call_operand.vmem [shape: f32[2,64,128], index: 0, kind: input, shape index: {}]   ;;  %s657_s1 = inlined_call_operand.vmem [shape: f32[1,128], index: 1, kind: input, shape index: {}]   ;;  %s658_s2 = inlined_call_operand.vmem [shape: f32[1,128], index: 2, kind: input, shape index: {}]   ;;  %s659_s3 = inlined_call_operand.vmem [shape: f32[1,128], index: 3, kind: input, shape index: {}]   ;;  %s660_s4 = inlined_call_operand.vmem [shape: f32[1,128], index: 4, kind: input, shape index: {}]   ;;  %s661_s5 = inlined_call_operand.vmem [shape: bf16[2,64,128], index: 5, kind: output, shape index: {}]  }
   0x1   :  { %s611_s20 = smov 0  }
   0x2 LB: > { %s27_s21 = sadd.s32 1, %s571_s19  ;;  %p477_p0 = scmp.ge.s32.totalorder %s575_s20, 1  ;;  %s575_s20 = sphi %s611_s20, %s15_s20   ;;  %s571_s19 = sphi %s609_s19, %s663_s19   ;;  %s567_s18 = sphi %s607_s18, %s662_s18  }
   0x3   : > { %p29_p1 = scmp.ge.s32.totalorder %s27_s21, 2  ;;  %p208_p2 = scmp.lt.s32.totalorder %s575_s20, 3 }
   0x5   : > { %s665_s21 = smov (%p29_p1, %s27_s21), 0  ;;  %p209_p3 = pnand %p477_p0, %p208_p2 }
   0x6   : > { %p245_p4 = scmp.lt.s32.totalorder (!%p209_p3), %s567_s18, 1 }
   0x7   : > { %212 = sbr.rel (%p209_p3) target bundleno = 49 (0x31), region = 40 }
   0xc   : > { %v264_v0 = vld [vmem:[%s657_s1] sm:$0x1]  ;;  %v281_v6 = vlaneseq  ;;  %s667_s18 = smov (!%p245_p4, %s567_s18), 1 }
   0xd   : > { %v265_v1 = vld [vmem:[%s658_s2] sm:$0x1]  ;;  %v266_v2 = vmul.f32 0.0078125, %v264_v0  ;;  %s494_s26 = sshll.u32 %s667_s18, 6  ;;  %s495_s9 = sshll.u32 %s667_s18, 5 }
   0xe   : > { %v267_v3 = vmul.f32 0.0078125, %v265_v1  ;;  %v282_v8 = vshrl.u32 %v281_v6, 7  ;;  %s252_s29 = scalar_lea.vmem %s656_s0, %s494_s26  ;;  %v482_v29 = vld [vmem:[%s659_s3] ss:$0 sm:$0xff]  ;;  %s262_s12 = scalar_lea.vmem %s661_s5, %s495_s9 }
   0xf   : > { %v268_v4 = vmul.f32 %v266_v2, %v266_v2  ;;  %v272_v10 = vld [vmem:[%s252_s29] sm:$0xff]  ;;  %v273_v11 = vld [vmem:[%s252_s29 + $0x8] sm:$0xff]  ;;  %v274_v13 = vld [vmem:[%s252_s29 + $0x10] sm:$0xff] }
  0x10   : > { %v283_v9 = vsub.s32 0, %v282_v8  ;;  %v275_v14 = vld [vmem:[%s252_s29 + $0x18] sm:$0xff]  ;;  %v276_v15 = vld [vmem:[%s252_s29 + $0x20] sm:$0xff]  ;;  %v277_v16 = vld [vmem:[%s252_s29 + $0x28] sm:$0xff] }
  0x11   : > { %v269_v5 = vsub.f32 %v267_v3, %v268_v4  ;;  %v278_v17 = vld [vmem:[%s252_s29 + $0x30] sm:$0xff]  ;;  %v279_v18 = vld [vmem:[%s252_s29 + $0x38] sm:$0xff]  ;;  %v483_v34 = vld [vmem:[%s660_s4] ss:$0 sm:$0xff] }
  0x12   : > { %v284_v12 = vrot.slane %v266_v2, %v283_v9 }
  0x13   : > { %v270_v7 = vadd.f32 1e-05, %v269_v5 }
  0x14   : > { %v286_v19 = vsub.f32 %v272_v10, %v284_v12  ;;  %v287_v20 = vsub.f32 %v273_v11, %v284_v12  ;;  %v288_v21 = vsub.f32 %v274_v13, %v284_v12  ;;  %v289_v22 = vsub.f32 %v275_v14, %v284_v12 }
  0x15   : > { %551 = vrsqrt.f32 %v270_v7  ;;  %v290_v24 = vsub.f32 %v276_v15, %v284_v12  ;;  %v291_v25 = vsub.f32 %v277_v16, %v284_v12  ;;  %v292_v26 = vsub.f32 %v278_v17, %v284_v12 }
  0x16   : > { %v293_v27 = vsub.f32 %v279_v18, %v284_v12 }
  0x22   : > { %v552_v23 = vpop.eup %551 }
  0x23   : > { %v298_v28 = vrot.slane %v552_v23, %v283_v9 }
  0x25   : > { %v300_v30 = vmul.f32 %v298_v28, %v286_v19  ;;  %v301_v31 = vmul.f32 %v298_v28, %v287_v20  ;;  %v302_v32 = vmul.f32 %v298_v28, %v288_v21  ;;  %v303_v33 = vmul.f32 %v298_v28, %v289_v22 }
  0x26   : > { %v304_v35 = vmul.f32 %v298_v28, %v290_v24  ;;  %v305_v36 = vmul.f32 %v298_v28, %v291_v25  ;;  %v306_v37 = vmul.f32 %v298_v28, %v292_v26  ;;  %v307_v38 = vmul.f32 %v298_v28, %v293_v27 }
  0x27   : > { %v315_v39 = vmul.f32 %v482_v29, %v300_v30  ;;  %v316_v40 = vmul.f32 %v482_v29, %v301_v31  ;;  %v317_v41 = vmul.f32 %v482_v29, %v302_v32  ;;  %v318_v42 = vmul.f32 %v482_v29, %v303_v33 }
  0x28   : > { %v319_v43 = vmul.f32 %v482_v29, %v304_v35  ;;  %v320_v44 = vmul.f32 %v482_v29, %v305_v36  ;;  %v321_v45 = vmul.f32 %v482_v29, %v306_v37  ;;  %v322_v46 = vmul.f32 %v482_v29, %v307_v38 }
  0x29   : > { %v330_v47 = vadd.f32 %v483_v34, %v315_v39  ;;  %v331_v48 = vadd.f32 %v483_v34, %v316_v40  ;;  %v332_v49 = vadd.f32 %v483_v34, %v317_v41  ;;  %v333_v50 = vadd.f32 %v483_v34, %v318_v42 }
  0x2a   : > { %v334_v51 = vadd.f32 %v483_v34, %v319_v43  ;;  %v335_v52 = vadd.f32 %v483_v34, %v320_v44  ;;  %v336_v53 = vadd.f32 %v483_v34, %v321_v45  ;;  %v337_v54 = vadd.f32 %v483_v34, %v322_v46 }
  0x2b   : > { %v338_v55 = vmax.f32 %v330_v47, 0.0  ;;  %v339_v56 = vmax.f32 %v331_v48, 0.0  ;;  %v340_v57 = vmax.f32 %v332_v49, 0.0  ;;  %v341_v58 = vmax.f32 %v333_v50, 0.0 }
  0x2c   : > { %v342_v59 = vmax.f32 %v334_v51, 0.0  ;;  %v343_v60 = vmax.f32 %v335_v52, 0.0  ;;  %v344_v61 = vmax.f32 %v336_v53, 0.0  ;;  %v345_v62 = vmax.f32 %v337_v54, 0.0 }
  0x2d   : > { %v507_v63 = vpack.c.bf16 %v339_v56, %v338_v55  ;;  %v512_v0 = vpack.c.bf16 %v341_v58, %v340_v57 }
  0x2e   : > { %v517_v1 = vpack.c.bf16 %v343_v60, %v342_v59  ;;  %v522_v2 = vpack.c.bf16 %v345_v62, %v344_v61 }
  0x2f   : > { %508 = vst [vmem:[%s262_s12] sm:$0xff] %v507_v63   ;;  %524 = vst [vmem:[%s262_s12 + $0x8] sm:$0xff] %v512_v0  }
  0x30   : > { %525 = vst [vmem:[%s262_s12 + $0x10] sm:$0xff] %v517_v1   ;;  %526 = vst [vmem:[%s262_s12 + $0x18] sm:$0xff] %v522_v2  }
  0x31 PF: > { %s15_s20 = sadd.s32 1, %s575_s20   ;;  %s662_s18 = smov %s571_s19 }
  0x32   : > { %p12_p5 = scmp.ge.s32.totalorder %s15_s20, 4   ;;  %s663_s19 = smov %s665_s21 }
  0x34   :  { %14 = sbr.rel (!%p12_p5) target bundleno = 2 (0x2), region = 70 }

// kernel: _lambda_.17
= control target key start
LH: loop header
LB: loop body
LE: loop exit
PB: predicated region body
PF: predicated region fallthrough
CT: control target
= control target key end

     0   :  { %11 = vsyncpa [#allocation3], 0  ;;  %s2695_s0 = inlined_call_operand.vmem [shape: bf16[2,64,1152], index: 0, kind: input, shape index: {}]   ;;  %s2696_s1 = inlined_call_operand.vmem [shape: bf16[1152,128], index: 1, kind: input, shape index: {}]   ;;  %s2697_s2 = inlined_call_operand.vmem [shape: f32[2,64,128], index: 2, kind: output, shape index: {0}]   ;;  %s2698_s3 = inlined_call_operand.vmem [shape: f32[1,128], index: 3, kind: output, shape index: {1}]   ;;  %s2699_s4 = inlined_call_operand.vmem [shape: f32[1,128], index: 4, kind: output, shape index: {2}]   ;;  %s2700_s5 = inlined_call_operand.hbm [shape: f32[2,1,128], index: 5, kind: output, shape index: {3}]  }
   0x1   :  { %13 = vsyncpa [#allocation3 + $0x1], 0  ;;  %s2234_s18 = smov 0   ;;  %s2236_s19 = smov 0  }
   0x2   :  { %s2238_s20 = smov 0   ;;  %s2240_s21 = smov 0  }
   0x3   :  { %s2242_s22 = smov 0   ;;  %s2244_s23 = smov 0  }
   0x4 LB: > { %s1607_s24 = sadd.s32 4294967295, %s2199_s23   ;;  %s1608_s25 = sadd.s32 4294967294, %s2199_s23   ;;  %s2199_s23 = sphi %s2244_s23, %s19_s23   ;;  %s2195_s22 = sphi %s2242_s22, %s2723_s22   ;;  %s2191_s21 = sphi %s2240_s21, %s2722_s21   ;;  %s2187_s20 = sphi %s2238_s20, %s2721_s20   ;;  %s2183_s19 = sphi %s2236_s19, %s2720_s19   ;;  %s2179_s18 = sphi %s2234_s18, %s2719_s18  }
   0x5   : > { %s31_s26 = sadd.s32 1, %s2195_s22  ;;  %s157_s27 = sadd.s32 1, %s2187_s20 }
   0x6   : > { %p33_p0 = scmp.ge.s32.totalorder %s31_s26, 2  ;;  %p167_p1 = scmp.ne.s32.totalorder %s2187_s20, %s2183_s19 }
   0x7   : > { %p168_p2 = scmp.eq.s32.totalorder %s1607_s24, 1  ;;  %p173_p3 = scmp.ne.s32.totalorder %s2183_s19, %s2179_s18 }
   0x8   : > { %s2725_s26 = smov (%p33_p0, %s31_s26), 0  ;;  %p174_p5 = scmp.eq.s32.totalorder %s1608_s25, 1 }
   0x9   : > { %p2274_p4 = por %p168_p2, %p167_p1  ;;  %s154_s29 = ssub.s32 %s2195_s22, %s2725_s26 }
   0xa   : > { %p1611_p6 = scmp.ge.s32.totalorder %s2199_s23, 1  ;;  %p155_p7 = scmp.eq.s32.totalorder %s154_s29, 0 }
   0xb   : > { %p2281_p8 = por %p174_p5, %p173_p3  ;;  %p209_p9 = scmp.lt.s32.totalorder %s2199_s23, 3 }
   0xc   : > { %s2287_s6 = scalar_select %p155_p7, %s2187_s20, %s157_s27  }
   0xd   : > { %p210_p10 = pnand %p1611_p6, %p209_p9 }
   0xf   : > { %213 = sbr.rel (%p210_p10) target bundleno = 363 (0x16b), region = 28 }
  0x14   : > { %s248_s7 = sand.u32 1, %s2183_s19   ;;  %v1999_v0 = vld [vmem:[%s2696_s1 + $0x78] sm:$0xff]   ;;  %v2003_v4 = vld [vmem:[%s2696_s1 + $0x70] sm:$0xff]   ;;  %v2007_v8 = vld [vmem:[%s2696_s1 + $0x68] sm:$0xff]   ;;  %p251_p11 = scmp.lt.s32.totalorder %s2191_s21, 1 }
  0x15   : > { %v2000_v1 = vld [vmem:[%s2696_s1 + $0xf8] sm:$0xff]   ;;  %1729 = vmatprep.subr.bf16.mxu0 %v1999_v0  ;;  %v2004_v5 = vld [vmem:[%s2696_s1 + $0xf0] sm:$0xff]   ;;  %v2008_v9 = vld [vmem:[%s2696_s1 + $0xe8] sm:$0xff]   ;;  %p1405_p12 = scmp.eq.s32.totalorder %s2191_s21, 0 }
  0x16   : > { %v2001_v2 = vld [vmem:[%s2696_s1 + $0x38] sm:$0xff]   ;;  %1769 = vmatprep.subr.bf16.mxu1 %v2000_v1  ;;  %v2005_v6 = vld [vmem:[%s2696_s1 + $0x30] sm:$0xff]   ;;  %v2009_v10 = vld [vmem:[%s2696_s1 + $0x28] sm:$0xff]   ;;  %s2358_s10 = scalar_select %p251_p11, %s2191_s21, 1 }
  0x17   : > { %v2002_v3 = vld [vmem:[%s2696_s1 + $0xb8] sm:$0xff]   ;;  %1730 = vmatpush3.bf16.msra.mxu0 %v2001_v2  ;;  %v2006_v7 = vld [vmem:[%s2696_s1 + $0xb0] sm:$0xff]   ;;  %v2010_v11 = vld [vmem:[%s2696_s1 + $0xa8] sm:$0xff]  }
  0x18   : > { %1770 = vmatpush3.bf16.msra.mxu1 %v2002_v3  ;;  %1731 = vmatprep.subr.bf16.mxu0 %v2003_v4  ;;  %v2011_v12 = vld [vmem:[%s2696_s1 + $0x60] sm:$0xff]   ;;  %v2015_v16 = vld [vmem:[%s2696_s1 + $0x58] sm:$0xff]   ;;  %v2019_v20 = vld [vmem:[%s2696_s1 + $0x50] sm:$0xff]   ;;  %s1941_s25 = smul.u32 288, %s2358_s10 }
  0x19   : > { %1771 = vmatprep.subr.bf16.mxu1 %v2004_v5  ;;  %v2012_v13 = vld [vmem:[%s2696_s1 + $0xe0] sm:$0xff]   ;;  %v2016_v17 = vld [vmem:[%s2696_s1 + $0xd8] sm:$0xff]   ;;  %v2020_v21 = vld [vmem:[%s2696_s1 + $0xd0] sm:$0xff]  }
  0x1a   : > { %v2013_v14 = vld [vmem:[%s2696_s1 + $0x20] sm:$0xff]   ;;  %v2017_v18 = vld [vmem:[%s2696_s1 + $0x18] sm:$0xff]   ;;  %v2021_v22 = vld [vmem:[%s2696_s1 + $0x10] sm:$0xff]   ;;  %s2388_s17 = scalar_lea.vmem %s2695_s0, %s1941_s25 }
  0x1b   : > { %1732 = vmatpush3.bf16.msra.mxu0 %v2005_v6  ;;  %v2014_v15 = vld [vmem:[%s2696_s1 + $0xa0] sm:$0xff]   ;;  %v2018_v19 = vld [vmem:[%s2696_s1 + $0x98] sm:$0xff]   ;;  %v2022_v23 = vld [vmem:[%s2696_s1 + $0x90] sm:$0xff]  }
  0x1c   : > { %1772 = vmatpush3.bf16.msra.mxu1 %v2006_v7  ;;  %1733 = vmatprep.subr.bf16.mxu0 %v2007_v8  ;;  %v2023_v24 = vld [vmem:[%s2696_s1 + $0x48] sm:$0xff]   ;;  %v2027_v28 = vld [vmem:[%s2696_s1 + $0x40] sm:$0xff]   ;;  %v2037_v36 = vld [vmem:[%s2696_s1 + $0x178] sm:$0xff]  }
  0x1d   : > { %1773 = vmatprep.subr.bf16.mxu1 %v2008_v9  ;;  %v2024_v25 = vld [vmem:[%s2696_s1 + $0xc8] sm:$0xff]   ;;  %v2028_v29 = vld [vmem:[%s2696_s1 + $0xc0] sm:$0xff]   ;;  %v2038_v37 = vld [vmem:[%s2696_s1 + $0x1f8] sm:$0xff]  }
  0x1e   : > { %v2025_v26 = vld [vmem:[%s2696_s1 + $0x8] sm:$0xff]   ;;  %v2029_v30 = vld [vmem:[%s2696_s1] sm:$0xff]   ;;  %v2039_v38 = vld [vmem:[%s2696_s1 + $0x138] sm:$0xff]  }
  0x1f   : > { %1734 = vmatpush3.bf16.msra.mxu0 %v2009_v10  ;;  %v2026_v27 = vld [vmem:[%s2696_s1 + $0x88] sm:$0xff]   ;;  %v2030_v31 = vld [vmem:[%s2696_s1 + $0x80] sm:$0xff]   ;;  %v2040_v39 = vld [vmem:[%s2696_s1 + $0x1b8] sm:$0xff]  }
  0x20   : > { %1774 = vmatpush3.bf16.msra.mxu1 %v2010_v11  ;;  %1735 = vmatprep.subr.bf16.mxu0 %v2011_v12  ;;  %v2031_v32 = vld [vmem:[%s2388_s17] ss:$36 sps:$4 sm:$0xff]   ;;  %v2034_v34 = vld [vmem:[%s2388_s17 + $0x8] ss:$36 sps:$4 sm:$0xff]   ;;  %v2041_v40 = vld [vmem:[%s2696_s1 + $0x170] sm:$0xff]  }
  0x21   : > { %1775 = vmatprep.subr.bf16.mxu1 %v2012_v13  ;;  %v2033_v33 = vld [vmem:[%s2388_s17 + $0x4] ss:$36 sps:$4 sm:$0xff]   ;;  %v2036_v35 = vld [vmem:[%s2388_s17 + $0xc] ss:$36 sps:$4 sm:$0xff]   ;;  %v2047_v45 = vld [vmem:[%s2388_s17 + $0x54] ss:$36 sps:$4 sm:$0xff]  }
  0x22   : > { %1104 = vmatprep.mubr.bf16.mxu0 %v2033_v33  ;;  %1169 = vmatprep.mubr.bf16.mxu1 %v2036_v35  ;;  %v2042_v41 = vld [vmem:[%s2696_s1 + $0x1f0] sm:$0xff]   ;;  %v2049_v46 = vld [vmem:[%s2388_s17 + $0x48] ss:$36 sps:$4 sm:$0xff]   ;;  %v2055_v52 = vld [vmem:[%s2696_s1 + $0x160] sm:$0xff]  }
  0x23   : > { %1736 = vmatpush3.bf16.msra.mxu0 %v2013_v14  ;;  %v2043_v42 = vld [vmem:[%s2696_s1 + $0x130] sm:$0xff]   ;;  %v2051_v48 = vld [vmem:[%s2696_s1 + $0x168] sm:$0xff]   ;;  %v2056_v53 = vld [vmem:[%s2696_s1 + $0x1e0] sm:$0xff]  }
  0x24   : > { %1776 = vmatpush3.bf16.msra.mxu1 %v2014_v15  ;;  %1737 = vmatprep.subr.bf16.mxu0 %v2015_v16  ;;  %v2044_v43 = vld [vmem:[%s2696_s1 + $0x1b0] sm:$0xff]   ;;  %v2052_v49 = vld [vmem:[%s2696_s1 + $0x1e8] sm:$0xff]   ;;  %v2057_v54 = vld [vmem:[%s2696_s1 + $0x120] sm:$0xff]  }
  0x25   : > { %1777 = vmatprep.subr.bf16.mxu1 %v2016_v17  ;;  %v2045_v44 = vld [vmem:[%s2388_s17 + $0x4c] ss:$36 sps:$4 sm:$0xff]   ;;  %v2058_v55 = vld [vmem:[%s2696_s1 + $0x1a0] sm:$0xff]   ;;  %v2059_v56 = vld [vmem:[%s2388_s17 + $0x94] ss:$36 sps:$4 sm:$0xff]  }
  0x26   : > { %v2050_v47 = vld [vmem:[%s2388_s17 + $0x50] ss:$36 sps:$4 sm:$0xff]   ;;  %v2053_v50 = vld [vmem:[%s2696_s1 + $0x128] sm:$0xff]   ;;  %v2061_v57 = vld [vmem:[%s2388_s17 + $0x9c] ss:$36 sps:$4 sm:$0xff]  }
  0x27   : > { %1738 = vmatpush3.bf16.msra.mxu0 %v2017_v18  ;;  %v2054_v51 = vld [vmem:[%s2696_s1 + $0x1a8] sm:$0xff]   ;;  %v2063_v58 = vld [vmem:[%s2388_s17 + $0x90] ss:$36 sps:$4 sm:$0xff]   ;;  %v2064_v59 = vld [vmem:[%s2388_s17 + $0x98] ss:$36 sps:$4 sm:$0xff]  }
  0x28   : > { %1778 = vmatpush3.bf16.msra.mxu1 %v2018_v19  ;;  %1739 = vmatprep.subr.bf16.mxu0 %v2019_v20  ;;  %v2065_v60 = vld [vmem:[%s2696_s1 + $0x158] sm:$0xff]   ;;  %v2069_v0 = vld [vmem:[%s2696_s1 + $0x150] sm:$0xff]   ;;  %v2075_v5 = vld [vmem:[%s2388_s17 + $0xe4] ss:$36 sps:$4 sm:$0xff]  }
  0x29   : > { %1779 = vmatprep.subr.bf16.mxu1 %v2020_v21  ;;  %v2066_v61 = vld [vmem:[%s2696_s1 + $0x1d8] sm:$0xff]   ;;  %v2070_v1 = vld [vmem:[%s2696_s1 + $0x1d0] sm:$0xff]   ;;  %v2078_v7 = vld [vmem:[%s2388_s17 + $0xe0] ss:$36 sps:$4 sm:$0xff]  }
  0x2a   : > { %v2067_v62 = vld [vmem:[%s2696_s1 + $0x118] sm:$0xff]   ;;  %v2071_v2 = vld [vmem:[%s2696_s1 + $0x110] sm:$0xff]   ;;  %v2079_v8 = vld [vmem:[%s2696_s1 + $0x148] sm:$0xff]  }
  0x2b   : > { %1740 = vmatpush3.bf16.msra.mxu0 %v2021_v22  ;;  %v2068_v63 = vld [vmem:[%s2696_s1 + $0x198] sm:$0xff]   ;;  %v2072_v3 = vld [vmem:[%s2696_s1 + $0x190] sm:$0xff]   ;;  %v2080_v9 = vld [vmem:[%s2696_s1 + $0x1c8] sm:$0xff]  }
  0x2c   : > { %1780 = vmatpush3.bf16.msra.mxu1 %v2022_v23  ;;  %1741 = vmatprep.subr.bf16.mxu0 %v2023_v24  ;;  %v2073_v4 = vld [vmem:[%s2388_s17 + $0xdc] ss:$36 sps:$4 sm:$0xff]   ;;  %v2081_v10 = vld [vmem:[%s2696_s1 + $0x108] sm:$0xff]   ;;  %v2087_v16 = vld [vmem:[%s2388_s17 + $0x10] ss:$36 sps:$4 sm:$0xff]  }
  0x2d   : > { %1781 = vmatprep.subr.bf16.mxu1 %v2024_v25  ;;  %v2077_v6 = vld [vmem:[%s2388_s17 + $0xd8] ss:$36 sps:$4 sm:$0xff]   ;;  %v2082_v11 = vld [vmem:[%s2696_s1 + $0x188] sm:$0xff]   ;;  %v2083_v12 = vld [vmem:[%s2696_s1 + $0x140] sm:$0xff]  }
  0x2e   : > { %v2084_v13 = vld [vmem:[%s2696_s1 + $0x1c0] sm:$0xff]   ;;  %v2089_v17 = vld [vmem:[%s2388_s17 + $0x14] ss:$36 sps:$4 sm:$0xff]   ;;  %v2111_v33 = vld [vmem:[%s2388_s17 + $0xec] ss:$36 sps:$4 sm:$0xff]  }
  0x2f   : > { %1742 = vmatpush3.bf16.msra.mxu0 %v2025_v26  ;;  %v2085_v14 = vld [vmem:[%s2696_s1 + $0x100] sm:$0xff]   ;;  %v2090_v18 = vld [vmem:[%s2388_s17 + $0x18] ss:$36 sps:$4 sm:$0xff]   ;;  %v2094_v21 = vld [vmem:[%s2696_s1 + $0x230] sm:$0xff]  }
  0x30   : > { %1782 = vmatpush3.bf16.msra.mxu1 %v2026_v27  ;;  %1743 = vmatprep.subr.bf16.mxu0 %v2027_v28  ;;  %v2086_v15 = vld [vmem:[%s2696_s1 + $0x180] sm:$0xff]   ;;  %v2093_v20 = vld [vmem:[%s2696_s1 + $0x238] sm:$0xff]   ;;  %v2101_v26 = vld [vmem:[%s2696_s1 + $0x228] sm:$0xff]  }
  0x31   : > { %1783 = vmatprep.subr.bf16.mxu1 %v2028_v29  ;;  %v2092_v19 = vld [vmem:[%s2388_s17 + $0x1c] ss:$36 sps:$4 sm:$0xff]   ;;  %v2097_v23 = vld [vmem:[%s2388_s17 + $0x64] ss:$36 sps:$4 sm:$0xff]   ;;  %v2105_v28 = vld [vmem:[%s2388_s17 + $0xac] ss:$36 sps:$4 sm:$0xff]  }
  0x32   : > { %v2095_v22 = vld [vmem:[%s2388_s17 + $0x5c] ss:$36 sps:$4 sm:$0xff]   ;;  %v2103_v27 = vld [vmem:[%s2388_s17 + $0xa4] ss:$36 sps:$4 sm:$0xff]   ;;  %v2110_v35 = vld [vmem:[%s2696_s1 + $0x210] sm:$0xff]  }
  0x33   : > { %1744 = vmatpush3.bf16.msra.mxu0 %v2029_v30  ;;  %v2099_v24 = vld [vmem:[%s2388_s17 + $0x58] ss:$36 sps:$4 sm:$0xff]   ;;  %v2100_v25 = vld [vmem:[%s2388_s17 + $0x60] ss:$36 sps:$4 sm:$0xff]  }
  0x34   : > { %1784 = vmatpush3.bf16.msra.mxu1 %v2030_v31  ;;  %1809 = vmatprep.subr.bf16.mxu0 %v2037_v36  ;;  %v2102_v29 = vld [vmem:[%s2696_s1 + $0x220] sm:$0xff]   ;;  %v2108_v31 = vld [vmem:[%s2388_s17 + $0xa8] ss:$36 sps:$4 sm:$0xff]  }
  0x35   : > { %1849 = vmatprep.subr.bf16.mxu1 %v2038_v37  ;;  %v2107_v30 = vld [vmem:[%s2388_s17 + $0xa0] ss:$36 sps:$4 sm:$0xff]   ;;  %v2115_v36 = vld [vmem:[%s2388_s17 + $0xe8] ss:$36 sps:$4 sm:$0xff]  }
  0x36   : > { %1105 = vmatmul.mubr.bf16.vlgmr.msra.gmra.mxu0 %v2031_v32  ;;  %v2109_v32 = vld [vmem:[%s2696_s1 + $0x218] sm:$0xff]   ;;  %v2117_v37 = vld [vmem:[%s2696_s1 + $0x208] sm:$0xff]  }
  0x37   : > { %1170 = vmatmul.mubr.bf16.vlgmr.msra.gmra.mxu1 %v2034_v34  ;;  %1810 = vmatpush3.bf16.msra.mxu0 %v2039_v38  ;;  %v2113_v34 = vld [vmem:[%s2388_s17 + $0xf4] ss:$36 sps:$4 sm:$0xff]  }
  0x38   : > { %1850 = vmatpush3.bf16.msra.mxu1 %v2040_v39  ;;  %1811 = vmatprep.subr.bf16.mxu0 %v2041_v40  ;;  %v2116_v38 = vld [vmem:[%s2388_s17 + $0xf0] ss:$36 sps:$4 sm:$0xff]   ;;  %v2119_v39 = vld [vmem:[%s2388_s17 + $0x20] ss:$36 sps:$4 sm:$0xff]  }
  0x39   : > { %1851 = vmatprep.subr.bf16.mxu1 %v2042_v41  ;;  %1112 = vmatprep.mubr.bf16.mxu0 %v2045_v44  ;;  %v2120_v40 = vld [vmem:[%s2388_s17 + $0xb0] ss:$36 sps:$4 sm:$0xff]   ;;  %v2118_v41 = vld [vmem:[%s2696_s1 + $0x200] sm:$0xff]  }
  0x3a   : > { %1177 = vmatprep.mubr.bf16.mxu1 %v2047_v45 }
  0x3b   : > { %1812 = vmatpush3.bf16.msra.mxu0 %v2043_v42  ;;  %v2121_v42 = vld [vmem:[%s2388_s17 + $0x68] ss:$36 sps:$4 sm:$0xff]  }
  0x3c   : > { %1852 = vmatpush3.bf16.msra.mxu1 %v2044_v43  ;;  %1813 = vmatprep.subr.bf16.mxu0 %v2051_v48  ;;  %v2122_v43 = vld [vmem:[%s2388_s17 + $0xf8] ss:$36 sps:$4 sm:$0xff]   ;;  %s1727_s17 = sshll.u32 %s2358_s10, 6  ;;  %s2617_s10 = scalar_lea.vmem [#allocation2], %s248_s7 }
  0x3d   : > { %1853 = vmatprep.subr.bf16.mxu1 %v2052_v49  ;;  %s2599_s29 = scalar_lea.vmem %s2697_s2, %s1727_s17 }
  0x3e   : > { %1113 = vmatmul.mubr.bf16.gmra.mxu0 %v2049_v46 }
  0x3f   : > { %1178 = vmatmul.mubr.bf16.gmra.mxu1 %v2050_v47  ;;  %1814 = vmatpush3.bf16.msra.mxu0 %v2053_v50 }
  0x40   : > { %1854 = vmatpush3.bf16.msra.mxu1 %v2054_v51  ;;  %1815 = vmatprep.subr.bf16.mxu0 %v2055_v52 }
  0x41   : > { %1855 = vmatprep.subr.bf16.mxu1 %v2056_v53  ;;  %1120 = vmatprep.mubr.bf16.mxu0 %v2059_v56 }
  0x42   : > { %1185 = vmatprep.mubr.bf16.mxu1 %v2061_v57 }
  0x43   : > { %1816 = vmatpush3.bf16.msra.mxu0 %v2057_v54 }
  0x44   : > { %1856 = vmatpush3.bf16.msra.mxu1 %v2058_v55  ;;  %1817 = vmatprep.subr.bf16.mxu0 %v2065_v60 }
  0x45   : > { %1857 = vmatprep.subr.bf16.mxu1 %v2066_v61 }
  0x46   : > { %1121 = vmatmul.mubr.bf16.gmra.mxu0 %v2063_v58 }
  0x47   : > { %1186 = vmatmul.mubr.bf16.gmra.mxu1 %v2064_v59  ;;  %1818 = vmatpush3.bf16.msra.mxu0 %v2067_v62 }
  0x48   : > { %1858 = vmatpush3.bf16.msra.mxu1 %v2068_v63  ;;  %1819 = vmatprep.subr.bf16.mxu0 %v2069_v0 }
  0x49   : > { %1859 = vmatprep.subr.bf16.mxu1 %v2070_v1  ;;  %1128 = vmatprep.mubr.bf16.mxu0 %v2073_v4 }
  0x4a   : > { %1193 = vmatprep.mubr.bf16.mxu1 %v2075_v5 }
  0x4b   : > { %1820 = vmatpush3.bf16.msra.mxu0 %v2071_v2 }
  0x4c   : > { %1860 = vmatpush3.bf16.msra.mxu1 %v2072_v3  ;;  %1821 = vmatprep.subr.bf16.mxu0 %v2079_v8 }
  0x4d   : > { %1861 = vmatprep.subr.bf16.mxu1 %v2080_v9 }
  0x4e   : > { %1129 = vmatmul.mubr.bf16.gmra.mxu0 %v2077_v6 }
  0x4f   : > { %1194 = vmatmul.mubr.bf16.gmra.mxu1 %v2078_v7  ;;  %1822 = vmatpush3.bf16.msra.mxu0 %v2081_v10 }
  0x50   : > { %1862 = vmatpush3.bf16.msra.mxu1 %v2082_v11  ;;  %1823 = vmatprep.subr.bf16.mxu0 %v2083_v12 }
  0x51   : > { %1863 = vmatprep.subr.bf16.mxu1 %v2084_v13  ;;  %1234 = vmatprep.mubr.bf16.mxu0 %v2089_v17 }
  0x52   : > { %1299 = vmatprep.mubr.bf16.mxu1 %v2092_v19 }
  0x53   : > { %1824 = vmatpush3.bf16.msra.mxu0 %v2085_v14 }
  0x54   : > { %1864 = vmatpush3.bf16.msra.mxu1 %v2086_v15  ;;  %1901 = vmatprep.subr.bf16.mxu0 %v2093_v20 }
  0x55   : > { %1925 = vmatprep.subr.bf16.mxu1 %v2093_v20 }
  0x56   : > { %1235 = vmatmul.mubr.bf16.vlgmr.msra.gmra.mxu0 %v2087_v16 }
  0x57   : > { %1300 = vmatmul.mubr.bf16.vlgmr.msra.gmra.mxu1 %v2090_v18  ;;  %1902 = vmatpush3.bf16.msra.mxu0 %v2093_v20 }
  0x58   : > { %1933 = vmatpush3.bf16.msra.mxu1 %v2093_v20  ;;  %1903 = vmatprep.subr.bf16.mxu0 %v2094_v21 }
  0x59   : > { %1926 = vmatprep.subr.bf16.mxu1 %v2094_v21  ;;  %1242 = vmatprep.mubr.bf16.mxu0 %v2095_v22 }
  0x5a   : > { %1307 = vmatprep.mubr.bf16.mxu1 %v2097_v23 }
  0x5b   : > { %1904 = vmatpush3.bf16.msra.mxu0 %v2094_v21 }
  0x5c   : > { %1934 = vmatpush3.bf16.msra.mxu1 %v2094_v21  ;;  %1905 = vmatprep.subr.bf16.mxu0 %v2101_v26 }
  0x5d   : > { %1927 = vmatprep.subr.bf16.mxu1 %v2101_v26 }
  0x5e   : > { %1243 = vmatmul.mubr.bf16.gmra.mxu0 %v2099_v24 }
  0x5f   : > { %1308 = vmatmul.mubr.bf16.gmra.mxu1 %v2100_v25  ;;  %1250 = vmatprep.mubr.bf16.mxu0 %v2103_v27 }
  0x60   : > { %1906 = vmatpush3.bf16.msra.mxu0 %v2101_v26  ;;  %1315 = vmatprep.mubr.bf16.mxu1 %v2105_v28 }
  0x61   : > { %1935 = vmatpush3.bf16.msra.mxu1 %v2101_v26  ;;  %1907 = vmatprep.subr.bf16.mxu0 %v2102_v29 }
  0x62   : > { %1928 = vmatprep.subr.bf16.mxu1 %v2102_v29 }
  0x64   : > { %1908 = vmatpush3.bf16.msra.mxu0 %v2102_v29 }
  0x65   : > { %1936 = vmatpush3.bf16.msra.mxu1 %v2102_v29  ;;  %1909 = vmatprep.subr.bf16.mxu0 %v2109_v32 }
  0x66   : > { %1251 = vmatmul.mubr.bf16.gmra.mxu0 %v2107_v30  ;;  %1929 = vmatprep.subr.bf16.mxu1 %v2109_v32 }
  0x67   : > { %1316 = vmatmul.mubr.bf16.gmra.mxu1 %v2108_v31  ;;  %1258 = vmatprep.mubr.bf16.mxu0 %v2111_v33 }
  0x68   : > { %1910 = vmatpush3.bf16.msra.mxu0 %v2109_v32  ;;  %1323 = vmatprep.mubr.bf16.mxu1 %v2113_v34 }
  0x69   : > { %1937 = vmatpush3.bf16.msra.mxu1 %v2109_v32  ;;  %1911 = vmatprep.subr.bf16.mxu0 %v2110_v35 }
  0x6a   : > { %1930 = vmatprep.subr.bf16.mxu1 %v2110_v35 }
  0x6c   : > { %1912 = vmatpush3.bf16.msra.mxu0 %v2110_v35 }
  0x6d   : > { %1938 = vmatpush3.bf16.msra.mxu1 %v2110_v35  ;;  %1913 = vmatprep.subr.bf16.mxu0 %v2117_v37 }
  0x6e   : > { %1259 = vmatmul.mubr.bf16.gmra.mxu0 %v2115_v36  ;;  %1931 = vmatprep.subr.bf16.mxu1 %v2117_v37 }
  0x6f   : > { %1324 = vmatmul.mubr.bf16.gmra.mxu1 %v2116_v38  ;;  %1917 = vmatprep.mubr.bf16.mxu0 %v2119_v39 }
  0x70   : > { %1914 = vmatpush3.bf16.msra.mxu0 %v2117_v37  ;;  %1921 = vmatprep.mubr.bf16.mxu1 %v2120_v40 }
  0x71   : > { %1939 = vmatpush3.bf16.msra.mxu1 %v2117_v37  ;;  %1915 = vmatprep.subr.bf16.mxu0 %v2118_v41 }
  0x72   : > { %1932 = vmatprep.subr.bf16.mxu1 %v2118_v41 }
  0x74   : > { %1916 = vmatpush3.bf16.msra.mxu0 %v2118_v41 }
  0x75   : > { %1940 = vmatpush3.bf16.msra.mxu1 %v2118_v41 }
  0x77   : > { %1918 = vmatmul.mubr.bf16.vlgmr.msra.gmra.mxu0 %v2121_v42 }
  0x78   : > { %1922 = vmatmul.mubr.bf16.vlgmr.msra.gmra.mxu1 %v2122_v43 }
  0xf6   : > { %v1745_v44 = vpop.f32.mrf.mxu0 }
  0xf7   : > { %v1785_v45 = vpop.f32.mrf.mxu1 }
  0xf8   : > { %v1746_v46 = vpop.f32.mrf.mxu0 }
  0xf9   : > { %v1786_v47 = vpop.f32.mrf.mxu1  ;;  %v1747_v33 = vadd.f32 %v1746_v46, %v1745_v44 }
  0xfa   : > { %v2553_v48 = vpop.f32.mrf.mxu0  ;;  %v1787_v34 = vadd.f32 %v1786_v47, %v1785_v45 }
  0xfb   : > { %v2555_v49 = vpop.f32.mrf.mxu1 }
  0xfc   : > { %v2557_v50 = vpop.f32.mrf.mxu0 }
  0xfd   : > { %v2559_v51 = vpop.f32.mrf.mxu1 }
  0xfe   : > { %v1751_v52 = vpop.f32.mrf.mxu0 }
  0xff   : > { %v1791_v53 = vpop.f32.mrf.mxu1 }
 0x100   : > { %v1752_v54 = vpop.f32.mrf.mxu0 }
 0x101   : > { %v1792_v55 = vpop.f32.mrf.mxu1  ;;  %v1753_v37 = vadd.f32 %v1752_v54, %v1751_v52  ;;  %v1790_v54 = vadd.f32 %v2559_v51, %v2555_v49 }
 0x102   : > { %v1754_v56 = vpop.f32.mrf.mxu0  ;;  %v1793_v38 = vadd.f32 %v1792_v55, %v1791_v53  ;;  %v1750_v53 = vadd.f32 %v2557_v50, %v2553_v48 }
 0x103   : > { %v1794_v57 = vpop.f32.mrf.mxu1 }
 0x104   : > { %v1755_v58 = vpop.f32.mrf.mxu0  ;;  %v1180_v46 = vadd.f32 %v1793_v38, %v1753_v37 }
 0x105   : > { %v1795_v59 = vpop.f32.mrf.mxu1  ;;  %v1756_v41 = vadd.f32 %v1755_v58, %v1754_v56 }
 0x106   : > { %v1757_v60 = vpop.f32.mrf.mxu0  ;;  %v1796_v42 = vadd.f32 %v1795_v59, %v1794_v57 }
 0x107   : > { %v1797_v61 = vpop.f32.mrf.mxu1 }
 0x108   : > { %v1758_v62 = vpop.f32.mrf.mxu0  ;;  %v1183_v55 = vadd.f32 %v1796_v42, %v1756_v41 }
 0x109   : > { %v1798_v63 = vpop.f32.mrf.mxu1 }
 0x10a   : > { %v2561_v0 = vpop.f32.mrf.mxu0 }
 0x10b   : > { %v2563_v1 = vpop.f32.mrf.mxu1 }
 0x10c   : > { %v2565_v2 = vpop.f32.mrf.mxu0 }
 0x10d   : > { %v2567_v3 = vpop.f32.mrf.mxu1 }
 0x10e   : > { %2703 = vst [vmem:[#allocation5_spill] sm:$0xff] %v2567_v3  ;;  %v1763_v4 = vpop.f32.mrf.mxu0 }
 0x10f   : > { %v1803_v5 = vpop.f32.mrf.mxu1 }
 0x110   : > { %v1764_v6 = vpop.f32.mrf.mxu0 }
 0x111   : > { %v1804_v7 = vpop.f32.mrf.mxu1  ;;  %v1765_v39 = vadd.f32 %v1764_v6, %v1763_v4 }
 0x112   : > { %v1766_v8 = vpop.f32.mrf.mxu0  ;;  %v1805_v40 = vadd.f32 %v1804_v7, %v1803_v5 }
 0x113   : > { %v1806_v9 = vpop.f32.mrf.mxu1 }
 0x114   : > { %v1767_v10 = vpop.f32.mrf.mxu0  ;;  %v1196_v47 = vadd.f32 %v1805_v40, %v1765_v39 }
 0x115   : > { %v1807_v11 = vpop.f32.mrf.mxu1  ;;  %v2711_v4 = vld [vmem:[#allocation5_spill] sm:$0xff] }
 0x116   : > { %v1825_v12 = vpop.f32.mrf.mxu0  ;;  %v1808_v3 = vadd.f32 %v1807_v11, %v1806_v9  ;;  %v1802_v5 = vadd.f32 %v2711_v4, %v2563_v1 }
 0x117   : > { %v2569_v13 = vpop.f32.mrf.mxu1 }
 0x118   : > { %2704 = vst [vmem:[#allocation6_spill] sm:$0xff] %v2569_v13  ;;  %v1826_v14 = vpop.f32.mrf.mxu0  ;;  %v1768_v13 = vadd.f32 %v1767_v10, %v1766_v8  ;;  %v1175_v10 = vadd.f32 %v1790_v54, %v1750_v53 }
 0x119   : > { %v2571_v15 = vpop.f32.mrf.mxu1 }
 0x11a   : > { %2705 = vst [vmem:[#allocation7_spill] sm:$0xff] %v2571_v15  ;;  %v1828_v16 = vpop.f32.mrf.mxu0  ;;  %v1172_v15 = vadd.f32 %v1787_v34, %v1747_v33  ;;  %v1199_v6 = vadd.f32 %v1808_v3, %v1768_v13 }
 0x11b   : > { %v2573_v17 = vpop.f32.mrf.mxu1 }
 0x11c   : > { %2706 = vst [vmem:[#allocation8_spill] sm:$0xff] %v2573_v17  ;;  %v1829_v18 = vpop.f32.mrf.mxu0  ;;  %v1759_v17 = vadd.f32 %v1758_v62, %v1757_v60 }
 0x11d   : > { %v2575_v19 = vpop.f32.mrf.mxu1  ;;  %v1830_v51 = vadd.f32 %v1829_v18, %v1828_v16 }
 0x11e   : > { %2707 = vst [vmem:[#allocation9_spill] sm:$0xff] %v2575_v19  ;;  %v1831_v20 = vpop.f32.mrf.mxu0 }
 0x11f   : > { %v1871_v21 = vpop.f32.mrf.mxu1  ;;  %v1240_v16 = vadd.f32 %v1830_v51, %v1175_v10 }
 0x120   : > { %v1832_v22 = vpop.f32.mrf.mxu0 }
 0x121   : > { %v1872_v23 = vpop.f32.mrf.mxu1 }
 0x122   : > { %v1834_v24 = vpop.f32.mrf.mxu0  ;;  %v1873_v8 = vadd.f32 %v1872_v23, %v1871_v21 }
 0x123   : > { %v2577_v25 = vpop.f32.mrf.mxu1  ;;  %v2716_v33 = vld [vmem:[#allocation8_spill] sm:$0xff] }
 0x124   : > { %2708 = vst [vmem:[#allocation10_spill] sm:$0xff] %v2577_v25  ;;  %v1835_v26 = vpop.f32.mrf.mxu0  ;;  %v1833_v25 = vadd.f32 %v1832_v22, %v1831_v20  ;;  %v2713_v20 = vld [vmem:[#allocation7_spill] sm:$0xff] }
 0x125   : > { %v2579_v27 = vpop.f32.mrf.mxu1  ;;  %v2717_v34 = vld [vmem:[#allocation9_spill] sm:$0xff] }
 0x126   : > { %2709 = vst [vmem:[#allocation11_spill] sm:$0xff] %v2579_v27  ;;  %v1837_v28 = vpop.f32.mrf.mxu0  ;;  %v1799_v27 = vadd.f32 %v1798_v63, %v1797_v61  ;;  %v1245_v60 = vadd.f32 %v1833_v25, %v1180_v46  ;;  %v1836_v61 = vadd.f32 %v1835_v26, %v1834_v24  ;;  %v1762_v63 = vadd.f32 %v2565_v2, %v2561_v0 }
 0x127   : > { %v1877_v29 = vpop.f32.mrf.mxu1 }
 0x128   : > { %v1838_v30 = vpop.f32.mrf.mxu0  ;;  %v1188_v59 = vadd.f32 %v1799_v27, %v1759_v17  ;;  %v1248_v2 = vadd.f32 %v1836_v61, %v1183_v55  ;;  %v1310_v1 = vadd.f32 %v1873_v8, %v1245_v60  ;;  %v1191_v3 = vadd.f32 %v1802_v5, %v1762_v63 }
 0x129   : > { %v1878_v31 = vpop.f32.mrf.mxu1  ;;  %v1839_v56 = vadd.f32 %v1838_v30, %v1837_v28 }
 0x12a   : > { %v1840_v32 = vpop.f32.mrf.mxu0  ;;  %v1879_v13 = vadd.f32 %v1878_v31, %v1877_v29 }
 0x12b   : > { %v2581_v35 = vpop.f32.mrf.mxu1  ;;  %v1253_v11 = vadd.f32 %v1839_v56, %v1188_v59  ;;  %v2714_v18 = vld [vmem:[#allocation10_spill] sm:$0xff] }
 0x12c   : > { %2710 = vst [vmem:[#allocation12_spill] sm:$0xff] %v2581_v35  ;;  %v1841_v36 = vpop.f32.mrf.mxu0  ;;  %v1827_v35 = vadd.f32 %v1826_v14, %v1825_v12 }
 0x12d   : > { %v2583_v43 = vpop.f32.mrf.mxu1  ;;  %v1842_v12 = vadd.f32 %v1841_v36, %v1840_v32  ;;  %v2715_v21 = vld [vmem:[#allocation11_spill] sm:$0xff]  ;;  %v1318_v31 = vadd.f32 %v1879_v13, %v1253_v11 }
 0x12e   : > { %v1843_v19 = vpop.f32.mrf.mxu0  ;;  %v1237_v49 = vadd.f32 %v1827_v35, %v1172_v15  ;;  %v1876_v23 = vadd.f32 %v2715_v21, %v2714_v18  ;;  %v1870_v35 = vadd.f32 %v2717_v34, %v2716_v33 }
 0x12f   : > { %v1883_v44 = vpop.f32.mrf.mxu1  ;;  %v1256_v28 = vadd.f32 %v1842_v12, %v1191_v3 }
 0x130   : > { %v1844_v45 = vpop.f32.mrf.mxu0  ;;  %v1313_v38 = vadd.f32 %v1876_v23, %v1248_v2  ;;  %v1305_v46 = vadd.f32 %v1870_v35, %v1240_v16 }
 0x131   : > { %v1845_v52 = vadd.f32 %v1844_v45, %v1843_v19  ;;  %v1884_v57 = vpop.f32.mrf.mxu1  ;;  %v2712_v19 = vld [vmem:[#allocation6_spill] sm:$0xff] }
 0x132   : > { %v1846_v58 = vpop.f32.mrf.mxu0  ;;  %v1885_v48 = vadd.f32 %v1884_v57, %v1883_v44  ;;  %v1867_v0 = vadd.f32 %v2713_v20, %v2712_v19 }
 0x133   : > { %v1261_v62 = vadd.f32 %v1845_v52, %v1196_v47  ;;  %v1886_v50 = vpop.f32.mrf.mxu1  ;;  %v2718_v39 = vld [vmem:[#allocation12_spill] sm:$0xff] }
 0x134   : > { %v1847_v7 = vpop.f32.mrf.mxu0  ;;  %v1302_v27 = vadd.f32 %v1867_v0, %v1237_v49  ;;  %v1882_v40 = vadd.f32 %v2583_v43, %v2718_v39  ;;  %v2201_v43 = vmov (%p1405_p12), 0.0  }
 0x135   : > { %v1848_v9 = vadd.f32 %v1847_v7, %v1846_v58  ;;  %v1887_v14 = vpop.f32.mrf.mxu1  ;;  %v1326_v17 = vadd.f32 %v1885_v48, %v1261_v62  ;;  %1411 = vst [vmem:[%s2698_s3] sm:$0x1] (%p1405_p12), %v2201_v43  ;;  %1412 = vst [vmem:[%s2699_s4] sm:$0x1] (%p1405_p12), %v2201_v43 }
 0x136   : > { %v1888_v24 = vadd.f32 %v1887_v14, %v1886_v50  ;;  %v1321_v53 = vadd.f32 %v1882_v40, %v1256_v28 }
 0x137   : > { %v1264_v22 = vadd.f32 %v1848_v9, %v1199_v6  ;;  %v1919_v15 = vpop.f32.mrf.mxu0 }
 0x138   : > { %v1375_v25 = vadd.f32 %v1919_v15, %v1310_v1  ;;  %v1923_v26 = vpop.f32.mrf.mxu1 }
 0x139   : > { %v1391_v30 = vadd.f32 %v1923_v26, %v1326_v17  ;;  %v1366_v29 = vpop.f32.mrf.mxu0  ;;  %v1329_v32 = vadd.f32 %v1888_v24, %v1264_v22 }
 0x13a   : > { %1399 = vst [vmem:[%s2599_s29 + $0x10] sm:$0xff] %v1375_v25  ;;  %v1367_v36 = vadd.f32 %v1366_v29, %v1302_v27  ;;  %v1382_v37 = vpop.f32.mrf.mxu1 }
 0x13b   : > { %1403 = vst [vmem:[%s2599_s29 + $0x30] sm:$0xff] %v1391_v30  ;;  %v1383_v41 = vadd.f32 %v1382_v37, %v1318_v31  ;;  %v1920_v42 = vpop.f32.mrf.mxu0 }
 0x13c   : > { %1397 = vst [vmem:[%s2599_s29] sm:$0xff] %v1367_v36  ;;  %v1378_v44 = vadd.f32 %v1920_v42, %v1313_v38  ;;  %v1924_v45 = vpop.f32.mrf.mxu1 }
 0x13d   : > { %1401 = vst [vmem:[%s2599_s29 + $0x20] sm:$0xff] %v1383_v41  ;;  %v1394_v47 = vadd.f32 %v1924_v45, %v1329_v32  ;;  %v1369_v52 = vpop.f32.mrf.mxu0  ;;  %1410 = sbr.rel (!%p1405_p12) target bundleno = 322 (0x142), region = 32 }
 0x13e   : > { %1400 = vst [vmem:[%s2599_s29 + $0x18] sm:$0xff] %v1378_v44  ;;  %v1370_v54 = vadd.f32 %v1369_v52, %v1305_v46  ;;  %v1385_v55 = vpop.f32.mrf.mxu1 }
 0x13f   : > { %1404 = vst [vmem:[%s2599_s29 + $0x38] sm:$0xff] %v1394_v47  ;;  %v1386_v56 = vadd.f32 %v1385_v55, %v1321_v53 }
 0x140   : > { %1398 = vst [vmem:[%s2599_s29 + $0x8] sm:$0xff] %v1370_v54 }
 0x141   : > { %1402 = vst [vmem:[%s2599_s29 + $0x28] sm:$0xff] %v1386_v56 }
 0x142 PF: > { %v1417_v57 = vadd.f32 %v1370_v54, %v1367_v36  ;;  %v1434_v58 = vmul.f32 %v1367_v36, %v1367_v36  ;;  %v1435_v59 = vmul.f32 %v1370_v54, %v1370_v54  ;;  %v2202_v60 = vmov 0.0   ;;  %v1430_v18 = vld [vmem:[%s2698_s3] sm:$0x1]  ;;  %s1724_s14 = sshll.u32 %s2191_s21, 4  ;;  %s1492_s15 = sshll.u32 %s2617_s10, 4  ;;  %s2642_s15 = int_to_ptr.vmem [resolvable:$true] %s1492_s15 }
 0x143   : > { %1416 = vst [vmem:[%s2617_s10] sm:$0x1] %v2202_v60  ;;  %v1436_v61 = vmul.f32 %v1375_v25, %v1375_v25  ;;  %v1437_v63 = vmul.f32 %v1378_v44, %v1378_v44  ;;  %v1438_v6 = vmul.f32 %v1383_v41, %v1383_v41  ;;  %v1439_v7 = vmul.f32 %v1386_v56, %v1386_v56  ;;  %s2640_s29 = scalar_lea.hbm %s2700_s5, %s1724_s14  ;;  %s1470_s25 = scalar_lea.sflag [#allocation3], %s248_s7 }
 0x144   : > { %v1418_v62 = vadd.f32 %v1417_v57, %v1375_v25  ;;  %v1442_v4 = vadd.f32 %v1435_v59, %v1434_v58  ;;  %v1440_v8 = vmul.f32 %v1391_v30, %v1391_v30  ;;  %v1441_v11 = vmul.f32 %v1394_v47, %v1394_v47  ;;  %v1433_v25 = vld [vmem:[%s2699_s4] sm:$0x1]  ;;  %s2123_s9 = scalar_lea.vmem %s2642_s15, 16  ;;  %s2203_s11 = smov [#allocation2]  }
 0x145   : > { %p2124_p13 = scmp.ne.s32.totalorder %s2642_s15, %s2123_s9  ;;  %s2127_s12 = sshll.u32 %s2203_s11, 4  ;;  %s2128_s12 = int_to_ptr.vmem [resolvable:$false] %s2127_s12 }
 0x146   : > { %v1419_v5 = vadd.f32 %v1418_v62, %v1378_v44  ;;  %v1443_v48 = vadd.f32 %v1442_v4, %v1436_v61  ;;  %s2129_s13 = scalar_lea.vmem %s2128_s12, 32  ;;  %p2130_p2 = scmp.lt.s32.totalorder %s2642_s15, %s2128_s12 }
 0x147   : > { %p2125_p0 = pnand %p2124_p13, %p2274_p4  ;;  %p2131_p3 = scmp.lt.s32.totalorder %s2129_s13, %s2123_s9 }
 0x148   : > { %v1420_v50 = vadd.f32 %v1419_v5, %v1383_v41  ;;  %v1444_v49 = vadd.f32 %v1443_v48, %v1437_v63 }
 0x149   : > { %p2126_p1 = pneg %p2125_p0  ;;  %p2132_p5 = por %p2131_p3, %p2130_p2 }
 0x14a   : > { %v1421_v51 = vadd.f32 %v1420_v50, %v1386_v56  ;;  %v1445_v9 = vadd.f32 %v1444_v49, %v1438_v6  ;;  %v1457_v16 = vld [vmem:[%s2617_s10] sm:$0x1] }
 0x14b   : > { %p2133_p6 = pnand %p2132_p5, %p2126_p1 }
 0x14c   : > { %v1422_v10 = vadd.f32 %v1421_v51, %v1391_v30  ;;  %v1446_v12 = vadd.f32 %v1445_v9, %v1439_v7 }
 0x14e   : > { %v1423_v14 = vadd.f32 %v1422_v10, %v1394_v47  ;;  %v1447_v17 = vadd.f32 %v1446_v12, %v1440_v8 }
 0x150   : > { %v1424_v19 = vrot.slane %v1423_v14, 4  ;;  %v1448_v20 = vadd.f32 %v1447_v17, %v1441_v11 }
 0x152   : > { %v1425_v0 = vadd.f32 %v1424_v19, %v1423_v14  ;;  %v1449_v2 = vrot.slane %v1448_v20, 4 }
 0x154   : > { %v1426_v22 = vrot.slane %v1425_v0, 2  ;;  %v1450_v1 = vadd.f32 %v1449_v2, %v1448_v20 }
 0x156   : > { %v1427_v3 = vadd.f32 %v1426_v22, %v1425_v0  ;;  %v1451_v13 = vrot.slane %v1450_v1, 2 }
 0x158   : > { %v1428_v24 = vrot.slane %v1427_v3, 1  ;;  %v1452_v15 = vadd.f32 %v1451_v13, %v1450_v1 }
 0x15a   : > { %v1429_v21 = vadd.f32 %v1428_v24, %v1427_v3  ;;  %v1453_v23 = vrot.slane %v1452_v15, 1 }
 0x15c   : > { %v1458_v26 = vadd.f32 %v1457_v16, %v1429_v21  ;;  %v1431_v27 = vadd.f32 %v1430_v18, %v1429_v21  ;;  %v1454_v28 = vadd.f32 %v1453_v23, %v1452_v15 }
 0x15e   : > { %1459 = vst [vmem:[%s2617_s10] sm:$0x1] %v1458_v26  ;;  %1432 = vst [vmem:[%s2698_s3] sm:$0x1] %v1431_v27  ;;  %v1455_v30 = vadd.f32 %v1454_v28, %v1433_v25 }
 0x15f   : > { %2136 = shalt.err (!%p2133_p6)
}
 0x160   : > { %s2137_s10 = scalar_lea.hbm %s2640_s29, 16  ;;  %s2141_s16 = scalar_lea.hbm %s2700_s5, 32 }
 0x161   : > { %p2138_p7 = scmp.ne.s32.totalorder %s2640_s29, %s2137_s10  ;;  %p2142_p11 = scmp.lt.s32.totalorder %s2640_s29, %s2700_s5 }
 0x162   : > { %p2143_p12 = scmp.lt.s32.totalorder %s2141_s16, %s2137_s10 }
 0x163   : > { %p2139_p9 = pnand %p2138_p7, %p2274_p4 }
 0x164   : > { %p2144_p13 = por %p2143_p12, %p2142_p11 }
 0x165   : > { %p2140_p10 = pneg %p2139_p9 }
 0x167   : > { %p2145_p0 = pnand %p2144_p13, %p2140_p10 }
 0x169   : > { %2148 = shalt.err (!%p2145_p0)
}
 0x16a   : > { %1942 = dma.vmem_to_hbm [thread:$0]  (%p2274_p4), %s2642_s15, 16, %s2640_s29, %s1470_s25   ;;  %1456 = vst [vmem:[%s2699_s4] sm:$0x1] %v1455_v30 }
 0x16b PF: > { %p1948_p1 = scmp.ge.s32.totalorder %s2199_s23, 2  ;;  %s1522_s8 = sand.u32 1, %s2179_s18  }
 0x16c   : > { %s1523_s9 = scalar_lea.sflag [#allocation3], %s1522_s8 }
 0x16d   : > { %p1945_p2 = pnand %p1948_p1, %p2281_p8 }
 0x16f   : > { %p1946_p3 = pneg %p1945_p2 }
 0x171   : > { %2174 = dma.done.wait (%p1946_p3), %s1523_s9, 16  }
 0x172   : > { %2176 = vsyncadd (%p1946_p3), %s1523_s9, 4294967280  ;;  %s19_s23 = sadd.s32 1, %s2199_s23   ;;  %s2719_s18 = smov %s2183_s19 }
 0x173   : > { %p16_p5 = scmp.ge.s32.totalorder %s19_s23, 4   ;;  %s2720_s19 = smov %s2187_s20 }
 0x174   : > { %s2721_s20 = smov %s2287_s6  ;;  %s2722_s21 = smov %s2195_s22 }
 0x175   : > { %s2723_s22 = smov %s2725_s26  ;;  %18 = sbr.rel (!%p16_p5) target bundleno = 4 (0x4), region = 99 }
 0x17a   :  { %1527 = vsyncpa [#allocation3], 1 }
 0x17b   :  { %1529 = vsyncpa [#allocation3 + $0x1], 1 }

// kernel: _lambda_.21
= control target key start
LH: loop header
LB: loop body
LE: loop exit
PB: predicated region body
PF: predicated region fallthrough
CT: control target
= control target key end

     0   :  { %s712_s24 = smov 0   ;;  %s714_s25 = smov 0   ;;  %s782_s0 = inlined_call_operand.vmem [shape: f32[2,64,128], index: 0, kind: input, shape index: {}]   ;;  %s783_s1 = inlined_call_operand.vmem [shape: f32[1,128], index: 1, kind: input, shape index: {}]   ;;  %s784_s2 = inlined_call_operand.vmem [shape: f32[1,128], index: 2, kind: input, shape index: {}]   ;;  %s785_s3 = inlined_call_operand.vmem [shape: f32[1,128], index: 3, kind: input, shape index: {}]   ;;  %s786_s4 = inlined_call_operand.vmem [shape: f32[1,128], index: 4, kind: input, shape index: {}]   ;;  %s787_s5 = inlined_call_operand.vmem [shape: f32[2,1,128], index: 5, kind: input, shape index: {}]   ;;  %s788_s6 = inlined_call_operand.vmem [shape: f32[2,64,128], index: 6, kind: input, shape index: {}]   ;;  %s789_s7 = inlined_call_operand.vmem [shape: f32[2,64,128], index: 7, kind: output, shape index: {}]  }
   0x1   :  { %s716_s26 = smov 0  }
   0x2 LB: > { %s29_s27 = sadd.s32 1, %s666_s25  ;;  %p607_p0 = scmp.ge.s32.totalorder %s670_s26, 1  ;;  %s670_s26 = sphi %s716_s26, %s17_s26   ;;  %s666_s25 = sphi %s714_s25, %s791_s25   ;;  %s662_s24 = sphi %s712_s24, %s790_s24  }
   0x3   : > { %p31_p1 = scmp.ge.s32.totalorder %s29_s27, 2  ;;  %p283_p2 = scmp.lt.s32.totalorder %s670_s26, 3 }
   0x5   : > { %s793_s27 = smov (%p31_p1, %s29_s27), 0  ;;  %p284_p3 = pnand %p607_p0, %p283_p2 }
   0x6   : > { %p336_p4 = scmp.lt.s32.totalorder (!%p284_p3), %s662_s24, 1 }
   0x7   : > { %287 = sbr.rel (%p284_p3) target bundleno = 53 (0x35), region = 48 }
   0xc   : > { %v368_v0 = vld [vmem:[%s783_s1] sm:$0x1]  ;;  %v385_v6 = vlaneseq  ;;  %s795_s24 = smov (!%p336_p4, %s662_s24), 1 }
   0xd   : > { %v369_v1 = vld [vmem:[%s784_s2] sm:$0x1]  ;;  %v370_v2 = vmul.f32 0.0078125, %v368_v0  ;;  %s739_s9 = sshll.u32 %s795_s24, 6  ;;  %s347_s17 = scalar_lea.vmem %s787_s5, %s795_s24 }
   0xe   : > { %v371_v3 = vmul.f32 0.0078125, %v369_v1  ;;  %v386_v8 = vshrl.u32 %v385_v6, 7  ;;  %s343_s12 = scalar_lea.vmem %s782_s0, %s739_s9  ;;  %v614_v29 = vld [vmem:[%s785_s3] ss:$0 sm:$0xff]  ;;  %s756_s20 = scalar_lea.vmem %s788_s6, %s739_s9 }
   0xf   : > { %v372_v4 = vmul.f32 %v370_v2, %v370_v2  ;;  %v376_v10 = vld [vmem:[%s343_s12] sm:$0xff]  ;;  %v377_v12 = vld [vmem:[%s343_s12 + $0x8] sm:$0xff]  ;;  %v378_v13 = vld [vmem:[%s343_s12 + $0x10] sm:$0xff]  ;;  %s366_s28 = scalar_lea.vmem %s789_s7, %s739_s9 }
  0x10   : > { %v387_v9 = vsub.s32 0, %v386_v8  ;;  %v379_v14 = vld [vmem:[%s343_s12 + $0x18] sm:$0xff]  ;;  %v380_v15 = vld [vmem:[%s343_s12 + $0x20] sm:$0xff]  ;;  %v381_v16 = vld [vmem:[%s343_s12 + $0x28] sm:$0xff] }
  0x11   : > { %v373_v5 = vsub.f32 %v371_v3, %v372_v4  ;;  %v382_v17 = vld [vmem:[%s343_s12 + $0x30] sm:$0xff]  ;;  %v383_v18 = vld [vmem:[%s343_s12 + $0x38] sm:$0xff]  ;;  %v615_v34 = vld [vmem:[%s786_s4] ss:$0 sm:$0xff] }
  0x12   : > { %v388_v11 = vrot.slane %v370_v2, %v387_v9  ;;  %v616_v43 = vld [vmem:[%s347_s17] ss:$0 sm:$0xff]  ;;  %v458_v51 = vld [vmem:[%s756_s20 + $0x8] sm:$0xff]  ;;  %v459_v54 = vld [vmem:[%s756_s20 + $0x10] sm:$0xff] }
  0x13   : > { %v374_v7 = vadd.f32 1e-05, %v373_v5  ;;  %v457_v49 = vld [vmem:[%s756_s20] sm:$0xff]  ;;  %v460_v55 = vld [vmem:[%s756_s20 + $0x18] sm:$0xff]  ;;  %v462_v1 = vld [vmem:[%s756_s20 + $0x28] sm:$0xff] }
  0x14   : > { %v390_v19 = vsub.f32 %v376_v10, %v388_v11  ;;  %v391_v20 = vsub.f32 %v377_v12, %v388_v11  ;;  %v392_v21 = vsub.f32 %v378_v13, %v388_v11  ;;  %v393_v22 = vsub.f32 %v379_v14, %v388_v11  ;;  %v461_v57 = vld [vmem:[%s756_s20 + $0x20] sm:$0xff]  ;;  %v463_v2 = vld [vmem:[%s756_s20 + $0x30] sm:$0xff]  ;;  %v464_v3 = vld [vmem:[%s756_s20 + $0x38] sm:$0xff] }
  0x15   : > { %646 = vrsqrt.f32 %v374_v7  ;;  %v394_v24 = vsub.f32 %v380_v15, %v388_v11  ;;  %v395_v25 = vsub.f32 %v381_v16, %v388_v11  ;;  %v396_v26 = vsub.f32 %v382_v17, %v388_v11 }
  0x16   : > { %v397_v27 = vsub.f32 %v383_v18, %v388_v11 }
  0x22   : > { %v647_v23 = vpop.eup %646 }
  0x23   : > { %v402_v28 = vrot.slane %v647_v23, %v387_v9 }
  0x25   : > { %v404_v30 = vmul.f32 %v402_v28, %v390_v19  ;;  %v405_v31 = vmul.f32 %v402_v28, %v391_v20  ;;  %v406_v32 = vmul.f32 %v402_v28, %v392_v21  ;;  %v407_v33 = vmul.f32 %v402_v28, %v393_v22 }
  0x26   : > { %v408_v35 = vmul.f32 %v402_v28, %v394_v24  ;;  %v409_v36 = vmul.f32 %v402_v28, %v395_v25  ;;  %v410_v37 = vmul.f32 %v402_v28, %v396_v26  ;;  %v411_v38 = vmul.f32 %v402_v28, %v397_v27 }
  0x27   : > { %v419_v39 = vmul.f32 %v614_v29, %v404_v30  ;;  %v420_v40 = vmul.f32 %v614_v29, %v405_v31  ;;  %v421_v41 = vmul.f32 %v614_v29, %v406_v32  ;;  %v422_v42 = vmul.f32 %v614_v29, %v407_v33 }
  0x28   : > { %v423_v44 = vmul.f32 %v614_v29, %v408_v35  ;;  %v424_v45 = vmul.f32 %v614_v29, %v409_v36  ;;  %v425_v46 = vmul.f32 %v614_v29, %v410_v37  ;;  %v426_v47 = vmul.f32 %v614_v29, %v411_v38 }
  0x29   : > { %v434_v48 = vadd.f32 %v615_v34, %v419_v39  ;;  %v435_v50 = vadd.f32 %v615_v34, %v420_v40  ;;  %v436_v52 = vadd.f32 %v615_v34, %v421_v41  ;;  %v437_v53 = vadd.f32 %v615_v34, %v422_v42 }
  0x2a   : > { %v438_v56 = vadd.f32 %v615_v34, %v423_v44  ;;  %v439_v58 = vadd.f32 %v615_v34, %v424_v45  ;;  %v440_v59 = vadd.f32 %v615_v34, %v425_v46  ;;  %v441_v60 = vadd.f32 %v615_v34, %v426_v47 }
  0x2b   : > { %v449_v61 = vmul.f32 %v616_v43, %v434_v48  ;;  %v450_v62 = vmul.f32 %v616_v43, %v435_v50  ;;  %v451_v63 = vmul.f32 %v616_v43, %v436_v52  ;;  %v452_v0 = vmul.f32 %v616_v43, %v437_v53 }
  0x2c   : > { %v453_v4 = vmul.f32 %v616_v43, %v438_v56  ;;  %v454_v5 = vmul.f32 %v616_v43, %v439_v58  ;;  %v455_v6 = vmul.f32 %v616_v43, %v440_v59  ;;  %v456_v7 = vmul.f32 %v616_v43, %v441_v60 }
  0x2d   : > { %v465_v8 = vadd.f32 %v457_v49, %v449_v61  ;;  %v466_v9 = vadd.f32 %v458_v51, %v450_v62  ;;  %v467_v10 = vadd.f32 %v459_v54, %v451_v63  ;;  %v468_v11 = vadd.f32 %v460_v55, %v452_v0 }
  0x2e   : > { %v469_v12 = vadd.f32 %v461_v57, %v453_v4  ;;  %v470_v13 = vadd.f32 %v462_v1, %v454_v5  ;;  %v471_v14 = vadd.f32 %v463_v2, %v455_v6  ;;  %v472_v15 = vadd.f32 %v464_v3, %v456_v7 }
  0x2f   : > { %v473_v16 = vmax.f32 %v465_v8, 0.0  ;;  %v474_v17 = vmax.f32 %v466_v9, 0.0  ;;  %v475_v18 = vmax.f32 %v467_v10, 0.0  ;;  %v476_v19 = vmax.f32 %v468_v11, 0.0 }
  0x30   : > { %v477_v20 = vmax.f32 %v469_v12, 0.0  ;;  %v478_v21 = vmax.f32 %v470_v13, 0.0  ;;  %v479_v22 = vmax.f32 %v471_v14, 0.0  ;;  %v480_v23 = vmax.f32 %v472_v15, 0.0 }
  0x31   : > { %481 = vst [vmem:[%s366_s28] sm:$0xff] %v473_v16  ;;  %482 = vst [vmem:[%s366_s28 + $0x8] sm:$0xff] %v474_v17 }
  0x32   : > { %483 = vst [vmem:[%s366_s28 + $0x10] sm:$0xff] %v475_v18  ;;  %484 = vst [vmem:[%s366_s28 + $0x18] sm:$0xff] %v476_v19 }
  0x33   : > { %485 = vst [vmem:[%s366_s28 + $0x20] sm:$0xff] %v477_v20  ;;  %486 = vst [vmem:[%s366_s28 + $0x28] sm:$0xff] %v478_v21 }
  0x34   : > { %487 = vst [vmem:[%s366_s28 + $0x30] sm:$0xff] %v479_v22  ;;  %488 = vst [vmem:[%s366_s28 + $0x38] sm:$0xff] %v480_v23 }
  0x35 PF: > { %s17_s26 = sadd.s32 1, %s670_s26   ;;  %s790_s24 = smov %s666_s25 }
  0x36   : > { %p14_p5 = scmp.ge.s32.totalorder %s17_s26, 4   ;;  %s791_s25 = smov %s793_s27 }
  0x38   :  { %16 = sbr.rel (!%p14_p5) target bundleno = 2 (0x2), region = 84 }

// kernel: _lambda_.20
= control target key start
LH: loop header
LB: loop body
LE: loop exit
PB: predicated region body
PF: predicated region fallthrough
CT: control target
= control target key end

     0   :  { %s753_s30 = smov 0   ;;  %s937_s0 = inlined_call_operand.vmem [shape: f32[2,1,128], index: 0, kind: input, shape index: {}]   ;;  %s938_s1 = inlined_call_operand.vmem [shape: f32[1,128], index: 1, kind: input, shape index: {}]   ;;  %s939_s2 = inlined_call_operand.vmem [shape: f32[1,128], index: 2, kind: input, shape index: {}]   ;;  %s940_s3 = inlined_call_operand.vmem [shape: f32[1,128], index: 3, kind: input, shape index: {}]   ;;  %s941_s4 = inlined_call_operand.vmem [shape: f32[1,128], index: 4, kind: input, shape index: {}]   ;;  %s942_s5 = inlined_call_operand.vmem [shape: f32[128,128], index: 5, kind: input, shape index: {}]   ;;  %s943_s6 = inlined_call_operand.vmem [shape: f32[1,128], index: 6, kind: input, shape index: {}]   ;;  %s944_s7 = inlined_call_operand.vmem [shape: f32[128,128], index: 7, kind: input, shape index: {}]   ;;  %s945_s8 = inlined_call_operand.vmem [shape: f32[1,128], index: 8, kind: input, shape index: {}]   ;;  %s946_s9 = inlined_call_operand.vmem [shape: f32[2,1,128], index: 9, kind: output, shape index: {}]  }
   0x1 LB: > { %s565_s10 = sadd.s32 4294967295, %s699_s30   ;;  %p569_p0 = scmp.ge.s32.totalorder %s699_s30, 1  ;;  %s699_s30 = sphi %s753_s30, %s19_s30  }
   0x2   : > { %p285_p1 = scmp.lt.s32.totalorder %s699_s30, 3 }
   0x4   : > { %p286_p2 = pnand %p569_p0, %p285_p1 }
   0x5   : > { %p787_p3 = scmp.lt.s32.totalorder (!%p286_p2), %s565_s10, 1 }
   0x6   : > { %289 = sbr.rel (%p286_p2) target bundleno = 469 (0x1d5), region = 56 }
   0xb   : > { %v354_v0 = vld [vmem:[%s942_s5 + $0x78] sm:$0xff]  ;;  %v701_v1 = vmov 0.0   ;;  %v353_v2 = vld [vmem:[%s942_s5 + $0x70] sm:$0xff]  ;;  %vm702_vm0 = vmmov 0   ;;  %v352_v3 = vld [vmem:[%s942_s5 + $0x68] sm:$0xff]  ;;  %s949_s10 = smov (!%p787_p3, %s565_s10), 1 }
   0xc   : > { %607 = vmatprep.subr.mxu0 %v701_v1  ;;  %639 = vmatprep.mubr.msk.f32.mxu0 %vm702_vm0, %v701_v1  ;;  %v351_v4 = vld [vmem:[%s942_s5 + $0x60] sm:$0xff]  ;;  %v350_v9 = vld [vmem:[%s942_s5 + $0x58] sm:$0xff]  ;;  %v441_v11 = vld [vmem:[%s944_s7 + $0x70] sm:$0xff]  ;;  %s319_s25 = scalar_lea.vmem %s937_s0, %s949_s10  ;;  %s322_s17 = scalar_lea.vmem %s946_s9, %s949_s10 }
   0xd   : > { %608 = vmatpush3.msra.mxu0 %v354_v0  ;;  %642 = vmatprep.subr.mxu1 %v701_v1  ;;  %v323_v5 = vld [vmem:[%s938_s1] sm:$0x1]  ;;  %v442_v10 = vld [vmem:[%s944_s7 + $0x78] sm:$0xff]  ;;  %v349_v13 = vld [vmem:[%s942_s5 + $0x50] sm:$0xff] }
   0xe   : > { %609 = vmatprep.subr.mxu0 %v701_v1  ;;  %674 = vmatprep.mubr.msk.f32.mxu1 %vm702_vm0, %v701_v1  ;;  %v324_v6 = vld [vmem:[%s939_s2] sm:$0x1]  ;;  %v791_v7 = vmul.f32 0.0078125, %v323_v5  ;;  %v440_v14 = vld [vmem:[%s944_s7 + $0x68] sm:$0xff]  ;;  %v438_v20 = vld [vmem:[%s944_s7 + $0x58] sm:$0xff] }
   0xf   : > { %610 = vmatpush3.msra.mxu0 %v353_v2  ;;  %v326_v8 = vmul.f32 0.0078125, %v324_v6  ;;  %643 = vmatpush3.msra.mxu1 %v442_v10  ;;  %v348_v16 = vld [vmem:[%s942_s5 + $0x48] sm:$0xff]  ;;  %v439_v17 = vld [vmem:[%s944_s7 + $0x60] sm:$0xff]  ;;  %v346_v21 = vld [vmem:[%s942_s5 + $0x38] sm:$0xff] }
  0x10   : > { %611 = vmatprep.subr.mxu0 %v701_v1  ;;  %v327_v12 = vmul.f32 %v791_v7, %v791_v7  ;;  %644 = vmatprep.subr.mxu1 %v701_v1  ;;  %v347_v19 = vld [vmem:[%s942_s5 + $0x40] sm:$0xff]  ;;  %v437_v22 = vld [vmem:[%s944_s7 + $0x50] sm:$0xff]  ;;  %v436_v25 = vld [vmem:[%s944_s7 + $0x48] sm:$0xff] }
  0x11   : > { %612 = vmatpush3.msra.mxu0 %v352_v3  ;;  %645 = vmatpush3.msra.mxu1 %v441_v11  ;;  %v345_v23 = vld [vmem:[%s942_s5 + $0x30] sm:$0xff]  ;;  %v331_v24 = vld [vmem:[%s319_s25] sm:$0x1]  ;;  %v344_v26 = vld [vmem:[%s942_s5 + $0x28] sm:$0xff] }
  0x12   : > { %613 = vmatprep.subr.mxu0 %v701_v1  ;;  %v328_v15 = vsub.f32 %v326_v8, %v327_v12  ;;  %646 = vmatprep.subr.mxu1 %v701_v1  ;;  %v435_v27 = vld [vmem:[%s944_s7 + $0x40] sm:$0xff]  ;;  %v332_v28 = vmul.f32 0.015625, %v331_v24  ;;  %v434_v30 = vld [vmem:[%s944_s7 + $0x38] sm:$0xff]  ;;  %v433_v32 = vld [vmem:[%s944_s7 + $0x30] sm:$0xff] }
  0x13   : > { %614 = vmatpush3.msra.mxu0 %v351_v4  ;;  %647 = vmatpush3.msra.mxu1 %v440_v14  ;;  %v343_v29 = vld [vmem:[%s942_s5 + $0x20] sm:$0xff]  ;;  %v342_v31 = vld [vmem:[%s942_s5 + $0x18] sm:$0xff]  ;;  %v341_v34 = vld [vmem:[%s942_s5 + $0x10] sm:$0xff] }
  0x14   : > { %615 = vmatprep.subr.mxu0 %v701_v1  ;;  %v329_v18 = vadd.f32 1e-05, %v328_v15  ;;  %648 = vmatprep.subr.mxu1 %v701_v1  ;;  %v333_v33 = vsub.f32 %v332_v28, %v791_v7  ;;  %v432_v35 = vld [vmem:[%s944_s7 + $0x28] sm:$0xff]  ;;  %v335_v38 = vld [vmem:[%s940_s3] sm:$0x1]  ;;  %v430_v43 = vld [vmem:[%s944_s7 + $0x18] sm:$0xff] }
  0x15   : > { %616 = vmatpush3.msra.mxu0 %v350_v9  ;;  %649 = vmatpush3.msra.mxu1 %v439_v17  ;;  %v340_v37 = vld [vmem:[%s942_s5 + $0x8] sm:$0xff]  ;;  %v431_v39 = vld [vmem:[%s944_s7 + $0x20] sm:$0xff]  ;;  %v429_v46 = vld [vmem:[%s944_s7 + $0x10] sm:$0xff] }
  0x16   : > { %617 = vmatprep.subr.mxu0 %v701_v1  ;;  %687 = vrsqrt.f32 %v329_v18  ;;  %650 = vmatprep.subr.mxu1 %v701_v1  ;;  %v339_v41 = vld [vmem:[%s942_s5] sm:$0xff]  ;;  %v428_v47 = vld [vmem:[%s944_s7 + $0x8] sm:$0xff] }
  0x17   : > { %618 = vmatpush3.msra.mxu0 %v349_v13  ;;  %651 = vmatpush3.msra.mxu1 %v438_v20  ;;  %v337_v42 = vld [vmem:[%s941_s4] sm:$0x1] }
  0x18   : > { %619 = vmatprep.subr.mxu0 %v701_v1  ;;  %652 = vmatprep.subr.mxu1 %v701_v1  ;;  %v427_v48 = vld [vmem:[%s944_s7] sm:$0xff] }
  0x19   : > { %620 = vmatpush3.msra.mxu0 %v348_v16  ;;  %653 = vmatpush3.msra.mxu1 %v437_v22  ;;  %v355_v49 = vld [vmem:[%s943_s6] sm:$0x1] }
  0x1a   : > { %621 = vmatprep.subr.mxu0 %v701_v1  ;;  %654 = vmatprep.subr.mxu1 %v701_v1  ;;  %v443_v54 = vld [vmem:[%s945_s8] sm:$0x1] }
  0x1b   : > { %622 = vmatpush3.msra.mxu0 %v347_v19  ;;  %655 = vmatpush3.msra.mxu1 %v436_v25 }
  0x1c   : > { %623 = vmatprep.subr.mxu0 %v701_v1  ;;  %656 = vmatprep.subr.mxu1 %v701_v1 }
  0x1d   : > { %624 = vmatpush3.msra.mxu0 %v346_v21  ;;  %657 = vmatpush3.msra.mxu1 %v435_v27 }
  0x1e   : > { %625 = vmatprep.subr.mxu0 %v701_v1  ;;  %658 = vmatprep.subr.mxu1 %v701_v1 }
  0x1f   : > { %626 = vmatpush3.msra.mxu0 %v345_v23  ;;  %659 = vmatpush3.msra.mxu1 %v434_v30 }
  0x20   : > { %627 = vmatprep.subr.mxu0 %v701_v1  ;;  %660 = vmatprep.subr.mxu1 %v701_v1 }
  0x21   : > { %628 = vmatpush3.msra.mxu0 %v344_v26  ;;  %661 = vmatpush3.msra.mxu1 %v433_v32 }
  0x22   : > { %629 = vmatprep.subr.mxu0 %v701_v1  ;;  %662 = vmatprep.subr.mxu1 %v701_v1 }
  0x23   : > { %630 = vmatpush3.msra.mxu0 %v343_v29  ;;  %v688_v36 = vpop.eup %687  ;;  %663 = vmatpush3.msra.mxu1 %v432_v35 }
  0x24   : > { %631 = vmatprep.subr.mxu0 %v701_v1  ;;  %v334_v40 = vmul.f32 %v688_v36, %v333_v33  ;;  %664 = vmatprep.subr.mxu1 %v701_v1 }
  0x25   : > { %632 = vmatpush3.msra.mxu0 %v342_v31  ;;  %665 = vmatpush3.msra.mxu1 %v431_v39 }
  0x26   : > { %633 = vmatprep.subr.mxu0 %v701_v1  ;;  %v336_v44 = vmul.f32 %v335_v38, %v334_v40  ;;  %666 = vmatprep.subr.mxu1 %v701_v1 }
  0x27   : > { %634 = vmatpush3.msra.mxu0 %v341_v34  ;;  %667 = vmatpush3.msra.mxu1 %v430_v43 }
  0x28   : > { %635 = vmatprep.subr.mxu0 %v701_v1  ;;  %v338_v45 = vadd.f32 %v337_v42, %v336_v44  ;;  %668 = vmatprep.subr.mxu1 %v701_v1 }
  0x29   : > { %636 = vmatpush3.msra.mxu0 %v340_v37  ;;  %669 = vmatpush3.msra.mxu1 %v429_v46 }
  0x2a   : > { %637 = vmatprep.subr.mxu0 %v701_v1  ;;  %670 = vmatprep.subr.mxu1 %v701_v1 }
  0x2b   : > { %638 = vmatpush3.msra.mxu0 %v339_v41  ;;  %671 = vmatpush3.msra.mxu1 %v428_v47 }
  0x2c   : > { %640 = vmatmul.mubr.f32.vlgmr.msra.gmra.mxu0 %v338_v45  ;;  %672 = vmatprep.subr.mxu1 %v701_v1 }
  0x2d   : > { %673 = vmatpush3.msra.mxu1 %v427_v48 }
  0xec   : > { %v422_v50 = vpop.f32.mrf.mxu0 }
  0xed   : > { %v423_v51 = vadd.f32 %v422_v50, %v355_v49 }
  0xee   : > { %v641_v52 = vpop.f32.mrf.mxu0 }
  0xef   : > { %v426_v53 = vmax.f32 %v423_v51, 0.0 }
  0xf1   : > { %675 = vmatmul.mubr.f32.vlgmr.msra.gmra.mxu1 %v426_v53 }
 0x1b1   : > { %v510_v55 = vpop.f32.mrf.mxu1 }
 0x1b2   : > { %v511_v56 = vadd.f32 %v510_v55, %v443_v54 }
 0x1b3   : > { %v676_v57 = vpop.f32.mrf.mxu1 }
 0x1b4   : > { %v570_v58 = vmul.f32 -1.442695, %v511_v56 }
 0x1b6   : > { %689 = vpow2.f32 %v570_v58 }
 0x1c3   : > { %v690_v59 = vpop.eup %689 }
 0x1c4   : > { %v517_v60 = vadd.f32 1.0, %v690_v59 }
 0x1c6   : > { %691 = vrcp.f32 %v517_v60 }
 0x1d3   : > { %v692_v61 = vpop.eup %691 }
 0x1d4   : > { %520 = vst [vmem:[%s322_s17] sm:$0x1] %v692_v61 }
 0x1d5 PF: > { %s19_s30 = sadd.s32 1, %s699_s30  }
 0x1d6   : > { %p16_p4 = scmp.ge.s32.totalorder %s19_s30, 4  }
 0x1d8   :  { %18 = sbr.rel (!%p16_p4) target bundleno = 1 (0x1), region = 86 }

// kernel: _lambda_.19
= control target key start
LH: loop header
LB: loop body
LE: loop exit
PB: predicated region body
PF: predicated region fallthrough
CT: control target
= control target key end

     0   :  { %s2126_s18 = smov 0   ;;  %s2128_s19 = smov 0   ;;  %s2509_s0 = inlined_call_operand.vmem [shape: bf16[2,64,1152], index: 0, kind: input, shape index: {}]   ;;  %s2510_s1 = inlined_call_operand.vmem [shape: bf16[1152,128], index: 1, kind: input, shape index: {}]   ;;  %s2511_s2 = inlined_call_operand.vmem [shape: f32[2,64,128], index: 2, kind: output, shape index: {0}]   ;;  %s2512_s3 = inlined_call_operand.vmem [shape: f32[1,128], index: 3, kind: output, shape index: {1}]   ;;  %s2513_s4 = inlined_call_operand.vmem [shape: f32[1,128], index: 4, kind: output, shape index: {2}]   ;;  %s2514_s5 = inlined_call_operand.vmem [shape: f32[2,1,128], index: 5, kind: output, shape index: {3}]  }
   0x1   :  { %s2130_s20 = smov 0  }
   0x2 LB: > { %s28_s21 = sadd.s32 1, %s2088_s19  ;;  %p1590_p0 = scmp.ge.s32.totalorder %s2092_s20, 1  ;;  %s2092_s20 = sphi %s2130_s20, %s16_s20   ;;  %s2088_s19 = sphi %s2128_s19, %s2532_s19   ;;  %s2084_s18 = sphi %s2126_s18, %s2531_s18  }
   0x3   : > { %p30_p1 = scmp.ge.s32.totalorder %s28_s21, 2  ;;  %p206_p2 = scmp.lt.s32.totalorder %s2092_s20, 3 }
   0x5   : > { %s2534_s21 = smov (%p30_p1, %s28_s21), 0  ;;  %p207_p3 = pnand %p1590_p0, %p206_p2 }
   0x7   : > { %210 = sbr.rel (%p207_p3) target bundleno = 345 (0x159), region = 28 }
   0xc   : > { %v1946_v0 = vld [vmem:[%s2510_s1 + $0x78] sm:$0xff]   ;;  %p247_p4 = scmp.lt.s32.totalorder %s2084_s18, 1  ;;  %v1950_v4 = vld [vmem:[%s2510_s1 + $0x70] sm:$0xff]   ;;  %v1954_v8 = vld [vmem:[%s2510_s1 + $0x68] sm:$0xff]   ;;  %p1404_p5 = scmp.eq.s32.totalorder %s2084_s18, 0 }
   0xd   : > { %v1947_v1 = vld [vmem:[%s2510_s1 + $0xf8] sm:$0xff]   ;;  %1707 = vmatprep.subr.bf16.mxu0 %v1946_v0  ;;  %v1951_v5 = vld [vmem:[%s2510_s1 + $0xf0] sm:$0xff]   ;;  %v1955_v9 = vld [vmem:[%s2510_s1 + $0xe8] sm:$0xff]  }
   0xe   : > { %v1948_v2 = vld [vmem:[%s2510_s1 + $0x38] sm:$0xff]   ;;  %s2157_s28 = scalar_select %p247_p4, %s2084_s18, 1  ;;  %1747 = vmatprep.subr.bf16.mxu1 %v1947_v1  ;;  %v1952_v6 = vld [vmem:[%s2510_s1 + $0x30] sm:$0xff]   ;;  %v1956_v10 = vld [vmem:[%s2510_s1 + $0x28] sm:$0xff]  }
   0xf   : > { %v1949_v3 = vld [vmem:[%s2510_s1 + $0xb8] sm:$0xff]   ;;  %1708 = vmatpush3.bf16.msra.mxu0 %v1948_v2  ;;  %v1953_v7 = vld [vmem:[%s2510_s1 + $0xb0] sm:$0xff]   ;;  %v1957_v11 = vld [vmem:[%s2510_s1 + $0xa8] sm:$0xff]  }
  0x10   : > { %s2169_s10 = scalar_lea.vmem %s2514_s5, %s2157_s28  ;;  %1748 = vmatpush3.bf16.msra.mxu1 %v1949_v3  ;;  %1709 = vmatprep.subr.bf16.mxu0 %v1950_v4  ;;  %v1958_v12 = vld [vmem:[%s2510_s1 + $0x60] sm:$0xff]   ;;  %v1962_v16 = vld [vmem:[%s2510_s1 + $0x58] sm:$0xff]   ;;  %v1966_v20 = vld [vmem:[%s2510_s1 + $0x50] sm:$0xff]   ;;  %s1919_s15 = smul.u32 288, %s2157_s28 }
  0x11   : > { %1749 = vmatprep.subr.bf16.mxu1 %v1951_v5  ;;  %v1959_v13 = vld [vmem:[%s2510_s1 + $0xe0] sm:$0xff]   ;;  %v1963_v17 = vld [vmem:[%s2510_s1 + $0xd8] sm:$0xff]   ;;  %v1967_v21 = vld [vmem:[%s2510_s1 + $0xd0] sm:$0xff]  }
  0x12   : > { %v1960_v14 = vld [vmem:[%s2510_s1 + $0x20] sm:$0xff]   ;;  %v1964_v18 = vld [vmem:[%s2510_s1 + $0x18] sm:$0xff]   ;;  %v1968_v22 = vld [vmem:[%s2510_s1 + $0x10] sm:$0xff]   ;;  %s2250_s6 = scalar_lea.vmem %s2509_s0, %s1919_s15 }
  0x13   : > { %1710 = vmatpush3.bf16.msra.mxu0 %v1952_v6  ;;  %v1961_v15 = vld [vmem:[%s2510_s1 + $0xa0] sm:$0xff]   ;;  %v1965_v19 = vld [vmem:[%s2510_s1 + $0x98] sm:$0xff]   ;;  %v1969_v23 = vld [vmem:[%s2510_s1 + $0x90] sm:$0xff]  }
  0x14   : > { %1750 = vmatpush3.bf16.msra.mxu1 %v1953_v7  ;;  %1711 = vmatprep.subr.bf16.mxu0 %v1954_v8  ;;  %v1970_v24 = vld [vmem:[%s2510_s1 + $0x48] sm:$0xff]   ;;  %v1974_v28 = vld [vmem:[%s2510_s1 + $0x40] sm:$0xff]   ;;  %v1984_v36 = vld [vmem:[%s2510_s1 + $0x178] sm:$0xff]  }
  0x15   : > { %1751 = vmatprep.subr.bf16.mxu1 %v1955_v9  ;;  %v1971_v25 = vld [vmem:[%s2510_s1 + $0xc8] sm:$0xff]   ;;  %v1975_v29 = vld [vmem:[%s2510_s1 + $0xc0] sm:$0xff]   ;;  %v1985_v37 = vld [vmem:[%s2510_s1 + $0x1f8] sm:$0xff]  }
  0x16   : > { %v1972_v26 = vld [vmem:[%s2510_s1 + $0x8] sm:$0xff]   ;;  %v1976_v30 = vld [vmem:[%s2510_s1] sm:$0xff]   ;;  %v1986_v38 = vld [vmem:[%s2510_s1 + $0x138] sm:$0xff]  }
  0x17   : > { %1712 = vmatpush3.bf16.msra.mxu0 %v1956_v10  ;;  %v1973_v27 = vld [vmem:[%s2510_s1 + $0x88] sm:$0xff]   ;;  %v1977_v31 = vld [vmem:[%s2510_s1 + $0x80] sm:$0xff]   ;;  %v1987_v39 = vld [vmem:[%s2510_s1 + $0x1b8] sm:$0xff]  }
  0x18   : > { %1752 = vmatpush3.bf16.msra.mxu1 %v1957_v11  ;;  %1713 = vmatprep.subr.bf16.mxu0 %v1958_v12  ;;  %v1978_v32 = vld [vmem:[%s2250_s6] ss:$36 sps:$4 sm:$0xff]   ;;  %v1981_v34 = vld [vmem:[%s2250_s6 + $0x8] ss:$36 sps:$4 sm:$0xff]   ;;  %v1988_v40 = vld [vmem:[%s2510_s1 + $0x170] sm:$0xff]  }
  0x19   : > { %1753 = vmatprep.subr.bf16.mxu1 %v1959_v13  ;;  %v1980_v33 = vld [vmem:[%s2250_s6 + $0x4] ss:$36 sps:$4 sm:$0xff]   ;;  %v1983_v35 = vld [vmem:[%s2250_s6 + $0xc] ss:$36 sps:$4 sm:$0xff]   ;;  %v1994_v45 = vld [vmem:[%s2250_s6 + $0x54] ss:$36 sps:$4 sm:$0xff]  }
  0x1a   : > { %1103 = vmatprep.mubr.bf16.mxu0 %v1980_v33  ;;  %1168 = vmatprep.mubr.bf16.mxu1 %v1983_v35  ;;  %v1989_v41 = vld [vmem:[%s2510_s1 + $0x1f0] sm:$0xff]   ;;  %v1996_v46 = vld [vmem:[%s2250_s6 + $0x48] ss:$36 sps:$4 sm:$0xff]   ;;  %v2002_v52 = vld [vmem:[%s2510_s1 + $0x160] sm:$0xff]  }
  0x1b   : > { %1714 = vmatpush3.bf16.msra.mxu0 %v1960_v14  ;;  %v1990_v42 = vld [vmem:[%s2510_s1 + $0x130] sm:$0xff]   ;;  %v1998_v48 = vld [vmem:[%s2510_s1 + $0x168] sm:$0xff]   ;;  %v2003_v53 = vld [vmem:[%s2510_s1 + $0x1e0] sm:$0xff]  }
  0x1c   : > { %1754 = vmatpush3.bf16.msra.mxu1 %v1961_v15  ;;  %1715 = vmatprep.subr.bf16.mxu0 %v1962_v16  ;;  %v1991_v43 = vld [vmem:[%s2510_s1 + $0x1b0] sm:$0xff]   ;;  %v1999_v49 = vld [vmem:[%s2510_s1 + $0x1e8] sm:$0xff]   ;;  %v2004_v54 = vld [vmem:[%s2510_s1 + $0x120] sm:$0xff]  }
  0x1d   : > { %1755 = vmatprep.subr.bf16.mxu1 %v1963_v17  ;;  %v1992_v44 = vld [vmem:[%s2250_s6 + $0x4c] ss:$36 sps:$4 sm:$0xff]   ;;  %v2005_v55 = vld [vmem:[%s2510_s1 + $0x1a0] sm:$0xff]   ;;  %v2006_v56 = vld [vmem:[%s2250_s6 + $0x94] ss:$36 sps:$4 sm:$0xff]  }
  0x1e   : > { %v1997_v47 = vld [vmem:[%s2250_s6 + $0x50] ss:$36 sps:$4 sm:$0xff]   ;;  %v2000_v50 = vld [vmem:[%s2510_s1 + $0x128] sm:$0xff]   ;;  %v2008_v57 = vld [vmem:[%s2250_s6 + $0x9c] ss:$36 sps:$4 sm:$0xff]  }
  0x1f   : > { %1716 = vmatpush3.bf16.msra.mxu0 %v1964_v18  ;;  %v2001_v51 = vld [vmem:[%s2510_s1 + $0x1a8] sm:$0xff]   ;;  %v2010_v58 = vld [vmem:[%s2250_s6 + $0x90] ss:$36 sps:$4 sm:$0xff]   ;;  %v2011_v59 = vld [vmem:[%s2250_s6 + $0x98] ss:$36 sps:$4 sm:$0xff]  }
  0x20   : > { %1756 = vmatpush3.bf16.msra.mxu1 %v1965_v19  ;;  %1717 = vmatprep.subr.bf16.mxu0 %v1966_v20  ;;  %v2012_v60 = vld [vmem:[%s2510_s1 + $0x158] sm:$0xff]   ;;  %v2016_v0 = vld [vmem:[%s2510_s1 + $0x150] sm:$0xff]   ;;  %v2022_v5 = vld [vmem:[%s2250_s6 + $0xe4] ss:$36 sps:$4 sm:$0xff]  }
  0x21   : > { %1757 = vmatprep.subr.bf16.mxu1 %v1967_v21  ;;  %v2013_v61 = vld [vmem:[%s2510_s1 + $0x1d8] sm:$0xff]   ;;  %v2017_v1 = vld [vmem:[%s2510_s1 + $0x1d0] sm:$0xff]   ;;  %v2025_v7 = vld [vmem:[%s2250_s6 + $0xe0] ss:$36 sps:$4 sm:$0xff]  }
  0x22   : > { %v2014_v62 = vld [vmem:[%s2510_s1 + $0x118] sm:$0xff]   ;;  %v2018_v2 = vld [vmem:[%s2510_s1 + $0x110] sm:$0xff]   ;;  %v2026_v8 = vld [vmem:[%s2510_s1 + $0x148] sm:$0xff]  }
  0x23   : > { %1718 = vmatpush3.bf16.msra.mxu0 %v1968_v22  ;;  %v2015_v63 = vld [vmem:[%s2510_s1 + $0x198] sm:$0xff]   ;;  %v2019_v3 = vld [vmem:[%s2510_s1 + $0x190] sm:$0xff]   ;;  %v2027_v9 = vld [vmem:[%s2510_s1 + $0x1c8] sm:$0xff]  }
  0x24   : > { %1758 = vmatpush3.bf16.msra.mxu1 %v1969_v23  ;;  %1719 = vmatprep.subr.bf16.mxu0 %v1970_v24  ;;  %v2020_v4 = vld [vmem:[%s2250_s6 + $0xdc] ss:$36 sps:$4 sm:$0xff]   ;;  %v2028_v10 = vld [vmem:[%s2510_s1 + $0x108] sm:$0xff]   ;;  %v2034_v16 = vld [vmem:[%s2250_s6 + $0x10] ss:$36 sps:$4 sm:$0xff]  }
  0x25   : > { %1759 = vmatprep.subr.bf16.mxu1 %v1971_v25  ;;  %v2024_v6 = vld [vmem:[%s2250_s6 + $0xd8] ss:$36 sps:$4 sm:$0xff]   ;;  %v2029_v11 = vld [vmem:[%s2510_s1 + $0x188] sm:$0xff]   ;;  %v2030_v12 = vld [vmem:[%s2510_s1 + $0x140] sm:$0xff]  }
  0x26   : > { %v2031_v13 = vld [vmem:[%s2510_s1 + $0x1c0] sm:$0xff]   ;;  %v2036_v17 = vld [vmem:[%s2250_s6 + $0x14] ss:$36 sps:$4 sm:$0xff]   ;;  %v2058_v33 = vld [vmem:[%s2250_s6 + $0xec] ss:$36 sps:$4 sm:$0xff]  }
  0x27   : > { %1720 = vmatpush3.bf16.msra.mxu0 %v1972_v26  ;;  %v2032_v14 = vld [vmem:[%s2510_s1 + $0x100] sm:$0xff]   ;;  %v2037_v18 = vld [vmem:[%s2250_s6 + $0x18] ss:$36 sps:$4 sm:$0xff]   ;;  %v2041_v21 = vld [vmem:[%s2510_s1 + $0x230] sm:$0xff]  }
  0x28   : > { %1760 = vmatpush3.bf16.msra.mxu1 %v1973_v27  ;;  %1721 = vmatprep.subr.bf16.mxu0 %v1974_v28  ;;  %v2033_v15 = vld [vmem:[%s2510_s1 + $0x180] sm:$0xff]   ;;  %v2040_v20 = vld [vmem:[%s2510_s1 + $0x238] sm:$0xff]   ;;  %v2048_v26 = vld [vmem:[%s2510_s1 + $0x228] sm:$0xff]  }
  0x29   : > { %1761 = vmatprep.subr.bf16.mxu1 %v1975_v29  ;;  %v2039_v19 = vld [vmem:[%s2250_s6 + $0x1c] ss:$36 sps:$4 sm:$0xff]   ;;  %v2044_v23 = vld [vmem:[%s2250_s6 + $0x64] ss:$36 sps:$4 sm:$0xff]   ;;  %v2052_v28 = vld [vmem:[%s2250_s6 + $0xac] ss:$36 sps:$4 sm:$0xff]  }
  0x2a   : > { %v2042_v22 = vld [vmem:[%s2250_s6 + $0x5c] ss:$36 sps:$4 sm:$0xff]   ;;  %v2050_v27 = vld [vmem:[%s2250_s6 + $0xa4] ss:$36 sps:$4 sm:$0xff]   ;;  %v2057_v35 = vld [vmem:[%s2510_s1 + $0x210] sm:$0xff]  }
  0x2b   : > { %1722 = vmatpush3.bf16.msra.mxu0 %v1976_v30  ;;  %v2046_v24 = vld [vmem:[%s2250_s6 + $0x58] ss:$36 sps:$4 sm:$0xff]   ;;  %v2047_v25 = vld [vmem:[%s2250_s6 + $0x60] ss:$36 sps:$4 sm:$0xff]  }
  0x2c   : > { %1762 = vmatpush3.bf16.msra.mxu1 %v1977_v31  ;;  %1787 = vmatprep.subr.bf16.mxu0 %v1984_v36  ;;  %v2049_v29 = vld [vmem:[%s2510_s1 + $0x220] sm:$0xff]   ;;  %v2055_v31 = vld [vmem:[%s2250_s6 + $0xa8] ss:$36 sps:$4 sm:$0xff]  }
  0x2d   : > { %1827 = vmatprep.subr.bf16.mxu1 %v1985_v37  ;;  %v2054_v30 = vld [vmem:[%s2250_s6 + $0xa0] ss:$36 sps:$4 sm:$0xff]   ;;  %v2062_v36 = vld [vmem:[%s2250_s6 + $0xe8] ss:$36 sps:$4 sm:$0xff]  }
  0x2e   : > { %1104 = vmatmul.mubr.bf16.vlgmr.msra.gmra.mxu0 %v1978_v32  ;;  %v2056_v32 = vld [vmem:[%s2510_s1 + $0x218] sm:$0xff]   ;;  %v2064_v37 = vld [vmem:[%s2510_s1 + $0x208] sm:$0xff]  }
  0x2f   : > { %1169 = vmatmul.mubr.bf16.vlgmr.msra.gmra.mxu1 %v1981_v34  ;;  %1788 = vmatpush3.bf16.msra.mxu0 %v1986_v38  ;;  %v2060_v34 = vld [vmem:[%s2250_s6 + $0xf4] ss:$36 sps:$4 sm:$0xff]  }
  0x30   : > { %1828 = vmatpush3.bf16.msra.mxu1 %v1987_v39  ;;  %1789 = vmatprep.subr.bf16.mxu0 %v1988_v40  ;;  %v2063_v38 = vld [vmem:[%s2250_s6 + $0xf0] ss:$36 sps:$4 sm:$0xff]   ;;  %v2066_v39 = vld [vmem:[%s2250_s6 + $0x20] ss:$36 sps:$4 sm:$0xff]  }
  0x31   : > { %1829 = vmatprep.subr.bf16.mxu1 %v1989_v41  ;;  %1111 = vmatprep.mubr.bf16.mxu0 %v1992_v44  ;;  %v2067_v40 = vld [vmem:[%s2250_s6 + $0xb0] ss:$36 sps:$4 sm:$0xff]   ;;  %v2065_v41 = vld [vmem:[%s2510_s1 + $0x200] sm:$0xff]  }
  0x32   : > { %1176 = vmatprep.mubr.bf16.mxu1 %v1994_v45 }
  0x33   : > { %1790 = vmatpush3.bf16.msra.mxu0 %v1990_v42  ;;  %v2068_v42 = vld [vmem:[%s2250_s6 + $0x68] ss:$36 sps:$4 sm:$0xff]  }
  0x34   : > { %1830 = vmatpush3.bf16.msra.mxu1 %v1991_v43  ;;  %1791 = vmatprep.subr.bf16.mxu0 %v1998_v48  ;;  %v2069_v43 = vld [vmem:[%s2250_s6 + $0xf8] ss:$36 sps:$4 sm:$0xff]   ;;  %s1705_s6 = sshll.u32 %s2157_s28, 6 }
  0x35   : > { %1831 = vmatprep.subr.bf16.mxu1 %v1999_v49  ;;  %s2461_s26 = scalar_lea.vmem %s2511_s2, %s1705_s6 }
  0x36   : > { %1112 = vmatmul.mubr.bf16.gmra.mxu0 %v1996_v46 }
  0x37   : > { %1177 = vmatmul.mubr.bf16.gmra.mxu1 %v1997_v47  ;;  %1792 = vmatpush3.bf16.msra.mxu0 %v2000_v50 }
  0x38   : > { %1832 = vmatpush3.bf16.msra.mxu1 %v2001_v51  ;;  %1793 = vmatprep.subr.bf16.mxu0 %v2002_v52 }
  0x39   : > { %1833 = vmatprep.subr.bf16.mxu1 %v2003_v53  ;;  %1119 = vmatprep.mubr.bf16.mxu0 %v2006_v56 }
  0x3a   : > { %1184 = vmatprep.mubr.bf16.mxu1 %v2008_v57 }
  0x3b   : > { %1794 = vmatpush3.bf16.msra.mxu0 %v2004_v54 }
  0x3c   : > { %1834 = vmatpush3.bf16.msra.mxu1 %v2005_v55  ;;  %1795 = vmatprep.subr.bf16.mxu0 %v2012_v60 }
  0x3d   : > { %1835 = vmatprep.subr.bf16.mxu1 %v2013_v61 }
  0x3e   : > { %1120 = vmatmul.mubr.bf16.gmra.mxu0 %v2010_v58 }
  0x3f   : > { %1185 = vmatmul.mubr.bf16.gmra.mxu1 %v2011_v59  ;;  %1796 = vmatpush3.bf16.msra.mxu0 %v2014_v62 }
  0x40   : > { %1836 = vmatpush3.bf16.msra.mxu1 %v2015_v63  ;;  %1797 = vmatprep.subr.bf16.mxu0 %v2016_v0 }
  0x41   : > { %1837 = vmatprep.subr.bf16.mxu1 %v2017_v1  ;;  %1127 = vmatprep.mubr.bf16.mxu0 %v2020_v4 }
  0x42   : > { %1192 = vmatprep.mubr.bf16.mxu1 %v2022_v5 }
  0x43   : > { %1798 = vmatpush3.bf16.msra.mxu0 %v2018_v2 }
  0x44   : > { %1838 = vmatpush3.bf16.msra.mxu1 %v2019_v3  ;;  %1799 = vmatprep.subr.bf16.mxu0 %v2026_v8 }
  0x45   : > { %1839 = vmatprep.subr.bf16.mxu1 %v2027_v9 }
  0x46   : > { %1128 = vmatmul.mubr.bf16.gmra.mxu0 %v2024_v6 }
  0x47   : > { %1193 = vmatmul.mubr.bf16.gmra.mxu1 %v2025_v7  ;;  %1800 = vmatpush3.bf16.msra.mxu0 %v2028_v10 }
  0x48   : > { %1840 = vmatpush3.bf16.msra.mxu1 %v2029_v11  ;;  %1801 = vmatprep.subr.bf16.mxu0 %v2030_v12 }
  0x49   : > { %1841 = vmatprep.subr.bf16.mxu1 %v2031_v13  ;;  %1233 = vmatprep.mubr.bf16.mxu0 %v2036_v17 }
  0x4a   : > { %1298 = vmatprep.mubr.bf16.mxu1 %v2039_v19 }
  0x4b   : > { %1802 = vmatpush3.bf16.msra.mxu0 %v2032_v14 }
  0x4c   : > { %1842 = vmatpush3.bf16.msra.mxu1 %v2033_v15  ;;  %1879 = vmatprep.subr.bf16.mxu0 %v2040_v20 }
  0x4d   : > { %1903 = vmatprep.subr.bf16.mxu1 %v2040_v20 }
  0x4e   : > { %1234 = vmatmul.mubr.bf16.vlgmr.msra.gmra.mxu0 %v2034_v16 }
  0x4f   : > { %1299 = vmatmul.mubr.bf16.vlgmr.msra.gmra.mxu1 %v2037_v18  ;;  %1880 = vmatpush3.bf16.msra.mxu0 %v2040_v20 }
  0x50   : > { %1911 = vmatpush3.bf16.msra.mxu1 %v2040_v20  ;;  %1881 = vmatprep.subr.bf16.mxu0 %v2041_v21 }
  0x51   : > { %1904 = vmatprep.subr.bf16.mxu1 %v2041_v21  ;;  %1241 = vmatprep.mubr.bf16.mxu0 %v2042_v22 }
  0x52   : > { %1306 = vmatprep.mubr.bf16.mxu1 %v2044_v23 }
  0x53   : > { %1882 = vmatpush3.bf16.msra.mxu0 %v2041_v21 }
  0x54   : > { %1912 = vmatpush3.bf16.msra.mxu1 %v2041_v21  ;;  %1883 = vmatprep.subr.bf16.mxu0 %v2048_v26 }
  0x55   : > { %1905 = vmatprep.subr.bf16.mxu1 %v2048_v26 }
  0x56   : > { %1242 = vmatmul.mubr.bf16.gmra.mxu0 %v2046_v24 }
  0x57   : > { %1307 = vmatmul.mubr.bf16.gmra.mxu1 %v2047_v25  ;;  %1249 = vmatprep.mubr.bf16.mxu0 %v2050_v27 }
  0x58   : > { %1884 = vmatpush3.bf16.msra.mxu0 %v2048_v26  ;;  %1314 = vmatprep.mubr.bf16.mxu1 %v2052_v28 }
  0x59   : > { %1913 = vmatpush3.bf16.msra.mxu1 %v2048_v26  ;;  %1885 = vmatprep.subr.bf16.mxu0 %v2049_v29 }
  0x5a   : > { %1906 = vmatprep.subr.bf16.mxu1 %v2049_v29 }
  0x5c   : > { %1886 = vmatpush3.bf16.msra.mxu0 %v2049_v29 }
  0x5d   : > { %1914 = vmatpush3.bf16.msra.mxu1 %v2049_v29  ;;  %1887 = vmatprep.subr.bf16.mxu0 %v2056_v32 }
  0x5e   : > { %1250 = vmatmul.mubr.bf16.gmra.mxu0 %v2054_v30  ;;  %1907 = vmatprep.subr.bf16.mxu1 %v2056_v32 }
  0x5f   : > { %1315 = vmatmul.mubr.bf16.gmra.mxu1 %v2055_v31  ;;  %1257 = vmatprep.mubr.bf16.mxu0 %v2058_v33 }
  0x60   : > { %1888 = vmatpush3.bf16.msra.mxu0 %v2056_v32  ;;  %1322 = vmatprep.mubr.bf16.mxu1 %v2060_v34 }
  0x61   : > { %1915 = vmatpush3.bf16.msra.mxu1 %v2056_v32  ;;  %1889 = vmatprep.subr.bf16.mxu0 %v2057_v35 }
  0x62   : > { %1908 = vmatprep.subr.bf16.mxu1 %v2057_v35 }
  0x64   : > { %1890 = vmatpush3.bf16.msra.mxu0 %v2057_v35 }
  0x65   : > { %1916 = vmatpush3.bf16.msra.mxu1 %v2057_v35  ;;  %1891 = vmatprep.subr.bf16.mxu0 %v2064_v37 }
  0x66   : > { %1258 = vmatmul.mubr.bf16.gmra.mxu0 %v2062_v36  ;;  %1909 = vmatprep.subr.bf16.mxu1 %v2064_v37 }
  0x67   : > { %1323 = vmatmul.mubr.bf16.gmra.mxu1 %v2063_v38  ;;  %1895 = vmatprep.mubr.bf16.mxu0 %v2066_v39 }
  0x68   : > { %1892 = vmatpush3.bf16.msra.mxu0 %v2064_v37  ;;  %1899 = vmatprep.mubr.bf16.mxu1 %v2067_v40 }
  0x69   : > { %1917 = vmatpush3.bf16.msra.mxu1 %v2064_v37  ;;  %1893 = vmatprep.subr.bf16.mxu0 %v2065_v41 }
  0x6a   : > { %1910 = vmatprep.subr.bf16.mxu1 %v2065_v41 }
  0x6c   : > { %1894 = vmatpush3.bf16.msra.mxu0 %v2065_v41 }
  0x6d   : > { %1918 = vmatpush3.bf16.msra.mxu1 %v2065_v41 }
  0x6f   : > { %1896 = vmatmul.mubr.bf16.vlgmr.msra.gmra.mxu0 %v2068_v42 }
  0x70   : > { %1900 = vmatmul.mubr.bf16.vlgmr.msra.gmra.mxu1 %v2069_v43 }
  0xee   : > { %v1723_v44 = vpop.f32.mrf.mxu0 }
  0xef   : > { %v1763_v45 = vpop.f32.mrf.mxu1 }
  0xf0   : > { %v1724_v46 = vpop.f32.mrf.mxu0 }
  0xf1   : > { %v1764_v47 = vpop.f32.mrf.mxu1  ;;  %v1725_v33 = vadd.f32 %v1724_v46, %v1723_v44 }
  0xf2   : > { %v2415_v48 = vpop.f32.mrf.mxu0  ;;  %v1765_v34 = vadd.f32 %v1764_v47, %v1763_v45 }
  0xf3   : > { %v2417_v49 = vpop.f32.mrf.mxu1 }
  0xf4   : > { %v2419_v50 = vpop.f32.mrf.mxu0 }
  0xf5   : > { %v2421_v51 = vpop.f32.mrf.mxu1 }
  0xf6   : > { %v1729_v52 = vpop.f32.mrf.mxu0 }
  0xf7   : > { %v1769_v53 = vpop.f32.mrf.mxu1 }
  0xf8   : > { %v1730_v54 = vpop.f32.mrf.mxu0 }
  0xf9   : > { %v1770_v55 = vpop.f32.mrf.mxu1  ;;  %v1731_v37 = vadd.f32 %v1730_v54, %v1729_v52  ;;  %v1768_v54 = vadd.f32 %v2421_v51, %v2417_v49 }
  0xfa   : > { %v1732_v56 = vpop.f32.mrf.mxu0  ;;  %v1771_v38 = vadd.f32 %v1770_v55, %v1769_v53  ;;  %v1728_v53 = vadd.f32 %v2419_v50, %v2415_v48 }
  0xfb   : > { %v1772_v57 = vpop.f32.mrf.mxu1 }
  0xfc   : > { %v1733_v58 = vpop.f32.mrf.mxu0  ;;  %v1179_v46 = vadd.f32 %v1771_v38, %v1731_v37 }
  0xfd   : > { %v1773_v59 = vpop.f32.mrf.mxu1  ;;  %v1734_v41 = vadd.f32 %v1733_v58, %v1732_v56 }
  0xfe   : > { %v1735_v60 = vpop.f32.mrf.mxu0  ;;  %v1774_v42 = vadd.f32 %v1773_v59, %v1772_v57 }
  0xff   : > { %v1775_v61 = vpop.f32.mrf.mxu1 }
 0x100   : > { %v1736_v62 = vpop.f32.mrf.mxu0  ;;  %v1182_v55 = vadd.f32 %v1774_v42, %v1734_v41 }
 0x101   : > { %v1776_v63 = vpop.f32.mrf.mxu1 }
 0x102   : > { %v2423_v0 = vpop.f32.mrf.mxu0 }
 0x103   : > { %v2425_v1 = vpop.f32.mrf.mxu1 }
 0x104   : > { %v2427_v2 = vpop.f32.mrf.mxu0 }
 0x105   : > { %v2429_v3 = vpop.f32.mrf.mxu1 }
 0x106   : > { %2515 = vst [vmem:[#allocation2_spill] sm:$0xff] %v2429_v3  ;;  %v1741_v4 = vpop.f32.mrf.mxu0 }
 0x107   : > { %v1781_v5 = vpop.f32.mrf.mxu1 }
 0x108   : > { %v1742_v6 = vpop.f32.mrf.mxu0 }
 0x109   : > { %v1782_v7 = vpop.f32.mrf.mxu1  ;;  %v1743_v39 = vadd.f32 %v1742_v6, %v1741_v4 }
 0x10a   : > { %v1744_v8 = vpop.f32.mrf.mxu0  ;;  %v1783_v40 = vadd.f32 %v1782_v7, %v1781_v5 }
 0x10b   : > { %v1784_v9 = vpop.f32.mrf.mxu1 }
 0x10c   : > { %v1745_v10 = vpop.f32.mrf.mxu0  ;;  %v1195_v47 = vadd.f32 %v1783_v40, %v1743_v39 }
 0x10d   : > { %v1785_v11 = vpop.f32.mrf.mxu1  ;;  %v2523_v4 = vld [vmem:[#allocation2_spill] sm:$0xff] }
 0x10e   : > { %v1803_v12 = vpop.f32.mrf.mxu0  ;;  %v1786_v3 = vadd.f32 %v1785_v11, %v1784_v9  ;;  %v1780_v5 = vadd.f32 %v2523_v4, %v2425_v1 }
 0x10f   : > { %v2431_v13 = vpop.f32.mrf.mxu1 }
 0x110   : > { %2516 = vst [vmem:[#allocation3_spill] sm:$0xff] %v2431_v13  ;;  %v1804_v14 = vpop.f32.mrf.mxu0  ;;  %v1746_v13 = vadd.f32 %v1745_v10, %v1744_v8  ;;  %v1174_v10 = vadd.f32 %v1768_v54, %v1728_v53 }
 0x111   : > { %v2433_v15 = vpop.f32.mrf.mxu1 }
 0x112   : > { %2517 = vst [vmem:[#allocation4_spill] sm:$0xff] %v2433_v15  ;;  %v1806_v16 = vpop.f32.mrf.mxu0  ;;  %v1171_v15 = vadd.f32 %v1765_v34, %v1725_v33  ;;  %v1198_v6 = vadd.f32 %v1786_v3, %v1746_v13 }
 0x113   : > { %v2435_v17 = vpop.f32.mrf.mxu1 }
 0x114   : > { %2518 = vst [vmem:[#allocation5_spill] sm:$0xff] %v2435_v17  ;;  %v1807_v18 = vpop.f32.mrf.mxu0  ;;  %v1737_v17 = vadd.f32 %v1736_v62, %v1735_v60 }
 0x115   : > { %v2437_v19 = vpop.f32.mrf.mxu1  ;;  %v1808_v51 = vadd.f32 %v1807_v18, %v1806_v16 }
 0x116   : > { %2519 = vst [vmem:[#allocation6_spill] sm:$0xff] %v2437_v19  ;;  %v1809_v20 = vpop.f32.mrf.mxu0 }
 0x117   : > { %v1849_v21 = vpop.f32.mrf.mxu1  ;;  %v1239_v16 = vadd.f32 %v1808_v51, %v1174_v10 }
 0x118   : > { %v1810_v22 = vpop.f32.mrf.mxu0 }
 0x119   : > { %v1850_v23 = vpop.f32.mrf.mxu1 }
 0x11a   : > { %v1812_v24 = vpop.f32.mrf.mxu0  ;;  %v1851_v8 = vadd.f32 %v1850_v23, %v1849_v21 }
 0x11b   : > { %v2439_v25 = vpop.f32.mrf.mxu1  ;;  %v2528_v33 = vld [vmem:[#allocation5_spill] sm:$0xff] }
 0x11c   : > { %2520 = vst [vmem:[#allocation7_spill] sm:$0xff] %v2439_v25  ;;  %v1813_v26 = vpop.f32.mrf.mxu0  ;;  %v1811_v25 = vadd.f32 %v1810_v22, %v1809_v20  ;;  %v2525_v20 = vld [vmem:[#allocation4_spill] sm:$0xff] }
 0x11d   : > { %v2441_v27 = vpop.f32.mrf.mxu1  ;;  %v2529_v34 = vld [vmem:[#allocation6_spill] sm:$0xff] }
 0x11e   : > { %2521 = vst [vmem:[#allocation8_spill] sm:$0xff] %v2441_v27  ;;  %v1815_v28 = vpop.f32.mrf.mxu0  ;;  %v1777_v27 = vadd.f32 %v1776_v63, %v1775_v61  ;;  %v1244_v60 = vadd.f32 %v1811_v25, %v1179_v46  ;;  %v1814_v61 = vadd.f32 %v1813_v26, %v1812_v24  ;;  %v1740_v63 = vadd.f32 %v2427_v2, %v2423_v0 }
 0x11f   : > { %v1855_v29 = vpop.f32.mrf.mxu1 }
 0x120   : > { %v1816_v30 = vpop.f32.mrf.mxu0  ;;  %v1187_v59 = vadd.f32 %v1777_v27, %v1737_v17  ;;  %v1247_v2 = vadd.f32 %v1814_v61, %v1182_v55  ;;  %v1309_v1 = vadd.f32 %v1851_v8, %v1244_v60  ;;  %v1190_v3 = vadd.f32 %v1780_v5, %v1740_v63 }
 0x121   : > { %v1856_v31 = vpop.f32.mrf.mxu1  ;;  %v1817_v56 = vadd.f32 %v1816_v30, %v1815_v28 }
 0x122   : > { %v1818_v32 = vpop.f32.mrf.mxu0  ;;  %v1857_v13 = vadd.f32 %v1856_v31, %v1855_v29 }
 0x123   : > { %v2443_v35 = vpop.f32.mrf.mxu1  ;;  %v1252_v11 = vadd.f32 %v1817_v56, %v1187_v59  ;;  %v2526_v18 = vld [vmem:[#allocation7_spill] sm:$0xff] }
 0x124   : > { %2522 = vst [vmem:[#allocation9_spill] sm:$0xff] %v2443_v35  ;;  %v1819_v36 = vpop.f32.mrf.mxu0  ;;  %v1805_v35 = vadd.f32 %v1804_v14, %v1803_v12 }
 0x125   : > { %v2445_v43 = vpop.f32.mrf.mxu1  ;;  %v1820_v12 = vadd.f32 %v1819_v36, %v1818_v32  ;;  %v2527_v21 = vld [vmem:[#allocation8_spill] sm:$0xff]  ;;  %v1317_v31 = vadd.f32 %v1857_v13, %v1252_v11 }
 0x126   : > { %v1821_v19 = vpop.f32.mrf.mxu0  ;;  %v1236_v49 = vadd.f32 %v1805_v35, %v1171_v15  ;;  %v1854_v23 = vadd.f32 %v2527_v21, %v2526_v18  ;;  %v1848_v35 = vadd.f32 %v2529_v34, %v2528_v33 }
 0x127   : > { %v1861_v44 = vpop.f32.mrf.mxu1  ;;  %v1255_v28 = vadd.f32 %v1820_v12, %v1190_v3 }
 0x128   : > { %v1822_v45 = vpop.f32.mrf.mxu0  ;;  %v1312_v38 = vadd.f32 %v1854_v23, %v1247_v2  ;;  %v1304_v46 = vadd.f32 %v1848_v35, %v1239_v16 }
 0x129   : > { %v1823_v52 = vadd.f32 %v1822_v45, %v1821_v19  ;;  %v1862_v57 = vpop.f32.mrf.mxu1  ;;  %v2524_v19 = vld [vmem:[#allocation3_spill] sm:$0xff] }
 0x12a   : > { %v1824_v58 = vpop.f32.mrf.mxu0  ;;  %v1863_v48 = vadd.f32 %v1862_v57, %v1861_v44  ;;  %v1845_v0 = vadd.f32 %v2525_v20, %v2524_v19 }
 0x12b   : > { %v1260_v62 = vadd.f32 %v1823_v52, %v1195_v47  ;;  %v1864_v50 = vpop.f32.mrf.mxu1  ;;  %v2530_v39 = vld [vmem:[#allocation9_spill] sm:$0xff] }
 0x12c   : > { %v1825_v7 = vpop.f32.mrf.mxu0  ;;  %v1301_v27 = vadd.f32 %v1845_v0, %v1236_v49  ;;  %v1860_v40 = vadd.f32 %v2445_v43, %v2530_v39  ;;  %v2094_v43 = vmov (%p1404_p5), 0.0  }
 0x12d   : > { %v1826_v9 = vadd.f32 %v1825_v7, %v1824_v58  ;;  %v1865_v14 = vpop.f32.mrf.mxu1  ;;  %v1325_v17 = vadd.f32 %v1863_v48, %v1260_v62  ;;  %1410 = vst [vmem:[%s2512_s3] sm:$0x1] (%p1404_p5), %v2094_v43  ;;  %1411 = vst [vmem:[%s2513_s4] sm:$0x1] (%p1404_p5), %v2094_v43 }
 0x12e   : > { %v1866_v24 = vadd.f32 %v1865_v14, %v1864_v50  ;;  %v1320_v53 = vadd.f32 %v1860_v40, %v1255_v28 }
 0x12f   : > { %v1263_v22 = vadd.f32 %v1826_v9, %v1198_v6  ;;  %v1897_v15 = vpop.f32.mrf.mxu0 }
 0x130   : > { %v1374_v25 = vadd.f32 %v1897_v15, %v1309_v1  ;;  %v1901_v26 = vpop.f32.mrf.mxu1 }
 0x131   : > { %v1390_v30 = vadd.f32 %v1901_v26, %v1325_v17  ;;  %v1365_v29 = vpop.f32.mrf.mxu0  ;;  %v1328_v32 = vadd.f32 %v1866_v24, %v1263_v22 }
 0x132   : > { %1398 = vst [vmem:[%s2461_s26 + $0x10] sm:$0xff] %v1374_v25  ;;  %v1366_v36 = vadd.f32 %v1365_v29, %v1301_v27  ;;  %v1381_v37 = vpop.f32.mrf.mxu1 }
 0x133   : > { %1402 = vst [vmem:[%s2461_s26 + $0x30] sm:$0xff] %v1390_v30  ;;  %v1382_v41 = vadd.f32 %v1381_v37, %v1317_v31  ;;  %v1898_v42 = vpop.f32.mrf.mxu0 }
 0x134   : > { %1396 = vst [vmem:[%s2461_s26] sm:$0xff] %v1366_v36  ;;  %v1377_v44 = vadd.f32 %v1898_v42, %v1312_v38  ;;  %v1902_v45 = vpop.f32.mrf.mxu1 }
 0x135   : > { %1400 = vst [vmem:[%s2461_s26 + $0x20] sm:$0xff] %v1382_v41  ;;  %v1393_v47 = vadd.f32 %v1902_v45, %v1328_v32  ;;  %v1368_v52 = vpop.f32.mrf.mxu0  ;;  %1409 = sbr.rel (!%p1404_p5) target bundleno = 314 (0x13a), region = 32 }
 0x136   : > { %1399 = vst [vmem:[%s2461_s26 + $0x18] sm:$0xff] %v1377_v44  ;;  %v1369_v54 = vadd.f32 %v1368_v52, %v1304_v46  ;;  %v1384_v55 = vpop.f32.mrf.mxu1 }
 0x137   : > { %1403 = vst [vmem:[%s2461_s26 + $0x38] sm:$0xff] %v1393_v47  ;;  %v1385_v56 = vadd.f32 %v1384_v55, %v1320_v53 }
 0x138   : > { %1397 = vst [vmem:[%s2461_s26 + $0x8] sm:$0xff] %v1369_v54 }
 0x139   : > { %1401 = vst [vmem:[%s2461_s26 + $0x28] sm:$0xff] %v1385_v56 }
 0x13a PF: > { %v1416_v57 = vadd.f32 %v1369_v54, %v1366_v36  ;;  %v1433_v58 = vmul.f32 %v1366_v36, %v1366_v36  ;;  %v1434_v59 = vmul.f32 %v1369_v54, %v1369_v54  ;;  %v2095_v60 = vmov 0.0   ;;  %v1429_v16 = vld [vmem:[%s2512_s3] sm:$0x1] }
 0x13b   : > { %1415 = vst [vmem:[%s2169_s10] sm:$0x1] %v2095_v60  ;;  %v1435_v61 = vmul.f32 %v1374_v25, %v1374_v25  ;;  %v1436_v63 = vmul.f32 %v1377_v44, %v1377_v44  ;;  %v1437_v6 = vmul.f32 %v1382_v41, %v1382_v41  ;;  %v1438_v7 = vmul.f32 %v1385_v56, %v1385_v56 }
 0x13c   : > { %v1417_v62 = vadd.f32 %v1416_v57, %v1374_v25  ;;  %v1441_v4 = vadd.f32 %v1434_v59, %v1433_v58  ;;  %v1439_v8 = vmul.f32 %v1390_v30, %v1390_v30  ;;  %v1440_v11 = vmul.f32 %v1393_v47, %v1393_v47  ;;  %v1432_v25 = vld [vmem:[%s2513_s4] sm:$0x1] }
 0x13e   : > { %v1418_v5 = vadd.f32 %v1417_v62, %v1377_v44  ;;  %v1442_v48 = vadd.f32 %v1441_v4, %v1435_v61 }
 0x140   : > { %v1419_v50 = vadd.f32 %v1418_v5, %v1382_v41  ;;  %v1443_v49 = vadd.f32 %v1442_v48, %v1436_v63 }
 0x142   : > { %v1420_v51 = vadd.f32 %v1419_v50, %v1385_v56  ;;  %v1444_v9 = vadd.f32 %v1443_v49, %v1437_v6  ;;  %v1456_v18 = vld [vmem:[%s2169_s10] sm:$0x1] }
 0x144   : > { %v1421_v10 = vadd.f32 %v1420_v51, %v1390_v30  ;;  %v1445_v12 = vadd.f32 %v1444_v9, %v1438_v7 }
 0x146   : > { %v1422_v14 = vadd.f32 %v1421_v10, %v1393_v47  ;;  %v1446_v17 = vadd.f32 %v1445_v12, %v1439_v8 }
 0x148   : > { %v1423_v19 = vrot.slane %v1422_v14, 4  ;;  %v1447_v20 = vadd.f32 %v1446_v17, %v1440_v11 }
 0x14a   : > { %v1424_v0 = vadd.f32 %v1423_v19, %v1422_v14  ;;  %v1448_v2 = vrot.slane %v1447_v20, 4 }
 0x14c   : > { %v1425_v22 = vrot.slane %v1424_v0, 2  ;;  %v1449_v1 = vadd.f32 %v1448_v2, %v1447_v20 }
 0x14e   : > { %v1426_v3 = vadd.f32 %v1425_v22, %v1424_v0  ;;  %v1450_v13 = vrot.slane %v1449_v1, 2 }
 0x150   : > { %v1427_v24 = vrot.slane %v1426_v3, 1  ;;  %v1451_v15 = vadd.f32 %v1450_v13, %v1449_v1 }
 0x152   : > { %v1428_v21 = vadd.f32 %v1427_v24, %v1426_v3  ;;  %v1452_v23 = vrot.slane %v1451_v15, 1 }
 0x154   : > { %v1430_v26 = vadd.f32 %v1429_v16, %v1428_v21  ;;  %v1453_v27 = vadd.f32 %v1452_v23, %v1451_v15  ;;  %v1457_v28 = vadd.f32 %v1456_v18, %v1428_v21 }
 0x156   : > { %1431 = vst [vmem:[%s2512_s3] sm:$0x1] %v1430_v26  ;;  %v1454_v30 = vadd.f32 %v1453_v27, %v1432_v25  ;;  %1458 = vst [vmem:[%s2169_s10] sm:$0x1] %v1457_v28 }
 0x158   : > { %1455 = vst [vmem:[%s2513_s4] sm:$0x1] %v1454_v30 }
 0x159 PF: > { %s16_s20 = sadd.s32 1, %s2092_s20   ;;  %s2531_s18 = smov %s2088_s19 }
 0x15a   : > { %p13_p6 = scmp.ge.s32.totalorder %s16_s20, 4   ;;  %s2532_s19 = smov %s2534_s21 }
 0x15c   :  { %15 = sbr.rel (!%p13_p6) target bundleno = 2 (0x2), region = 94 }

// kernel: _lambda_.22
= control target key start
LH: loop header
LB: loop body
LE: loop exit
PB: predicated region body
PF: predicated region fallthrough
CT: control target
= control target key end

     0   :  { %s2068_s30 = smov 0   ;;  %s2070_s10 = smov 0   ;;  %s2406_s0 = inlined_call_operand.vmem [shape: bf16[2,16,1152], index: 0, kind: input, shape index: {}]   ;;  %s2407_s1 = inlined_call_operand.vmem [shape: bf16[2,16,128], index: 1, kind: input, shape index: {}]   ;;  %s2408_s2 = inlined_call_operand.vmem [shape: bf16[1152,128], index: 2, kind: input, shape index: {}]   ;;  %s2409_s3 = inlined_call_operand.vmem [shape: bf16[128,128], index: 3, kind: input, shape index: {}]   ;;  %s2410_s4 = inlined_call_operand.vmem [shape: f32[2,16,128], index: 4, kind: output, shape index: {0}]   ;;  %s2411_s5 = inlined_call_operand.vmem [shape: f32[1,128], index: 5, kind: output, shape index: {1}]   ;;  %s2412_s6 = inlined_call_operand.vmem [shape: f32[1,128], index: 6, kind: output, shape index: {2}]   ;;  %s2413_s7 = inlined_call_operand.vmem [shape: f32[2,16,128], index: 7, kind: output, shape index: {3}]   ;;  %s2414_s8 = inlined_call_operand.vmem [shape: f32[1,128], index: 8, kind: output, shape index: {4}]   ;;  %s2415_s9 = inlined_call_operand.vmem [shape: f32[1,128], index: 9, kind: output, shape index: {5}]  }
   0x1   :  { %s2072_s11 = smov 0  }
   0x2 LB: > { %s32_s12 = sadd.s32 1, %s2009_s10  ;;  %p1618_p0 = scmp.ge.s32.totalorder %s2013_s11, 1  ;;  %s2013_s11 = sphi %s2072_s11, %s20_s11   ;;  %s2009_s10 = sphi %s2070_s10, %s2417_s10   ;;  %s2005_s30 = sphi %s2068_s30, %s2416_s30  }
   0x3   : > { %p34_p1 = scmp.ge.s32.totalorder %s32_s12, 2  ;;  %p319_p2 = scmp.lt.s32.totalorder %s2013_s11, 3 }
   0x5   : > { %s2419_s12 = smov (%p34_p1, %s32_s12), 0  ;;  %p320_p3 = pnand %p1618_p0, %p319_p2 }
   0x6   : > { %p383_p4 = scmp.lt.s32.totalorder (!%p320_p3), %s2005_s30, 1  ;;  %p1378_p5 = scmp.eq.s32.totalorder (!%p320_p3), %s2005_s30, 0 }
   0x7   : > { %323 = sbr.rel (%p320_p3) target bundleno = 331 (0x14b), region = 36 }
   0xc   : > { %v1897_v0 = vld [vmem:[%s2408_s2 + $0x78] sm:$0xff]   ;;  %v1901_v4 = vld [vmem:[%s2408_s2 + $0x70] sm:$0xff]   ;;  %v1905_v8 = vld [vmem:[%s2408_s2 + $0x68] sm:$0xff]   ;;  %s2156_s23 = scalar_select %p383_p4, %s2005_s30, 1  ;;  %vm2016_vm0 = vmmov 0  }
   0xd   : > { %v1898_v1 = vld [vmem:[%s2408_s2 + $0xf8] sm:$0xff]   ;;  %1723 = vmatprep.subr.bf16.mxu0 %v1897_v0  ;;  %v1902_v5 = vld [vmem:[%s2408_s2 + $0xf0] sm:$0xff]   ;;  %v1906_v9 = vld [vmem:[%s2408_s2 + $0xe8] sm:$0xff]  }
   0xe   : > { %v1899_v2 = vld [vmem:[%s2408_s2 + $0x38] sm:$0xff]   ;;  %1745 = vmatprep.subr.bf16.mxu1 %v1898_v1  ;;  %v1903_v6 = vld [vmem:[%s2408_s2 + $0x30] sm:$0xff]   ;;  %v1907_v10 = vld [vmem:[%s2408_s2 + $0x28] sm:$0xff]   ;;  %s1869_s15 = smul.u32 72, %s2156_s23  ;;  %s1719_s20 = sshll.u32 %s2156_s23, 3 }
   0xf   : > { %v1900_v3 = vld [vmem:[%s2408_s2 + $0xb8] sm:$0xff]   ;;  %1724 = vmatpush3.bf16.msra.mxu0 %v1899_v2  ;;  %v1904_v7 = vld [vmem:[%s2408_s2 + $0xb0] sm:$0xff]   ;;  %v1908_v11 = vld [vmem:[%s2408_s2 + $0xa8] sm:$0xff]   ;;  %s401_s29 = scalar_lea.vmem %s2407_s1, %s1719_s20 }
  0x10   : > { %1746 = vmatpush3.bf16.msra.mxu1 %v1900_v3  ;;  %1725 = vmatprep.subr.bf16.mxu0 %v1901_v4  ;;  %v1909_v12 = vld [vmem:[%s2408_s2 + $0x60] sm:$0xff]   ;;  %v1913_v16 = vld [vmem:[%s2408_s2 + $0x58] sm:$0xff]   ;;  %v1917_v20 = vld [vmem:[%s2408_s2 + $0x50] sm:$0xff]   ;;  %s2186_s27 = scalar_lea.vmem %s2406_s0, %s1869_s15 }
  0x11   : > { %1747 = vmatprep.subr.bf16.mxu1 %v1902_v5  ;;  %v1910_v13 = vld [vmem:[%s2408_s2 + $0xe0] sm:$0xff]   ;;  %v1914_v17 = vld [vmem:[%s2408_s2 + $0xd8] sm:$0xff]   ;;  %v1918_v21 = vld [vmem:[%s2408_s2 + $0xd0] sm:$0xff]  }
  0x12   : > { %v1911_v14 = vld [vmem:[%s2408_s2 + $0x20] sm:$0xff]   ;;  %v1915_v18 = vld [vmem:[%s2408_s2 + $0x18] sm:$0xff]   ;;  %v1919_v22 = vld [vmem:[%s2408_s2 + $0x10] sm:$0xff]  }
  0x13   : > { %1726 = vmatpush3.bf16.msra.mxu0 %v1903_v6  ;;  %v1912_v15 = vld [vmem:[%s2408_s2 + $0xa0] sm:$0xff]   ;;  %v1916_v19 = vld [vmem:[%s2408_s2 + $0x98] sm:$0xff]   ;;  %v1920_v23 = vld [vmem:[%s2408_s2 + $0x90] sm:$0xff]  }
  0x14   : > { %1748 = vmatpush3.bf16.msra.mxu1 %v1904_v7  ;;  %1727 = vmatprep.subr.bf16.mxu0 %v1905_v8  ;;  %v1921_v24 = vld [vmem:[%s2408_s2 + $0x48] sm:$0xff]   ;;  %v1925_v28 = vld [vmem:[%s2408_s2 + $0x40] sm:$0xff]   ;;  %v1935_v36 = vld [vmem:[%s2408_s2 + $0x178] sm:$0xff]   ;;  %v2015_v7 = vmov 0.0  }
  0x15   : > { %1749 = vmatprep.subr.bf16.mxu1 %v1906_v9  ;;  %v1922_v25 = vld [vmem:[%s2408_s2 + $0xc8] sm:$0xff]   ;;  %v1926_v29 = vld [vmem:[%s2408_s2 + $0xc0] sm:$0xff]   ;;  %v1936_v37 = vld [vmem:[%s2408_s2 + $0x1f8] sm:$0xff]  }
  0x16   : > { %v1923_v26 = vld [vmem:[%s2408_s2 + $0x8] sm:$0xff]   ;;  %v1927_v30 = vld [vmem:[%s2408_s2] sm:$0xff]   ;;  %v1937_v38 = vld [vmem:[%s2408_s2 + $0x138] sm:$0xff]  }
  0x17   : > { %1728 = vmatpush3.bf16.msra.mxu0 %v1907_v10  ;;  %v1924_v27 = vld [vmem:[%s2408_s2 + $0x88] sm:$0xff]   ;;  %v1928_v31 = vld [vmem:[%s2408_s2 + $0x80] sm:$0xff]   ;;  %v1938_v39 = vld [vmem:[%s2408_s2 + $0x1b8] sm:$0xff]  }
  0x18   : > { %1750 = vmatpush3.bf16.msra.mxu1 %v1908_v11  ;;  %1729 = vmatprep.subr.bf16.mxu0 %v1909_v12  ;;  %v1929_v32 = vld [vmem:[%s2186_s27] ss:$36 sps:$4 sm:$0xff]   ;;  %v1932_v34 = vld [vmem:[%s2186_s27 + $0x8] ss:$36 sps:$4 sm:$0xff]   ;;  %v1939_v40 = vld [vmem:[%s2408_s2 + $0x170] sm:$0xff]  }
  0x19   : > { %1751 = vmatprep.subr.bf16.mxu1 %v1910_v13  ;;  %v1931_v33 = vld [vmem:[%s2186_s27 + $0x4] ss:$36 sps:$4 sm:$0xff]   ;;  %v1934_v35 = vld [vmem:[%s2186_s27 + $0xc] ss:$36 sps:$4 sm:$0xff]   ;;  %v1951_v52 = vld [vmem:[%s2408_s2 + $0x158] sm:$0xff]  }
  0x1a   : > { %1088 = vmatprep.mubr.bf16.mxu0 %v1931_v33  ;;  %1129 = vmatprep.mubr.bf16.mxu1 %v1934_v35  ;;  %v1940_v41 = vld [vmem:[%s2408_s2 + $0x1f0] sm:$0xff]   ;;  %v1943_v44 = vld [vmem:[%s2408_s2 + $0x168] sm:$0xff]   ;;  %v1947_v48 = vld [vmem:[%s2408_s2 + $0x160] sm:$0xff]  }
  0x1b   : > { %1730 = vmatpush3.bf16.msra.mxu0 %v1911_v14  ;;  %v1941_v42 = vld [vmem:[%s2408_s2 + $0x130] sm:$0xff]   ;;  %v1944_v45 = vld [vmem:[%s2408_s2 + $0x1e8] sm:$0xff]   ;;  %v1948_v49 = vld [vmem:[%s2408_s2 + $0x1e0] sm:$0xff]  }
  0x1c   : > { %1752 = vmatpush3.bf16.msra.mxu1 %v1912_v15  ;;  %1731 = vmatprep.subr.bf16.mxu0 %v1913_v16  ;;  %v1942_v43 = vld [vmem:[%s2408_s2 + $0x1b0] sm:$0xff]   ;;  %v1945_v46 = vld [vmem:[%s2408_s2 + $0x128] sm:$0xff]   ;;  %v1949_v50 = vld [vmem:[%s2408_s2 + $0x120] sm:$0xff]  }
  0x1d   : > { %1753 = vmatprep.subr.bf16.mxu1 %v1914_v17  ;;  %v1946_v47 = vld [vmem:[%s2408_s2 + $0x1a8] sm:$0xff]   ;;  %v1950_v51 = vld [vmem:[%s2408_s2 + $0x1a0] sm:$0xff]   ;;  %v1952_v53 = vld [vmem:[%s2408_s2 + $0x1d8] sm:$0xff]  }
  0x1e   : > { %v1953_v54 = vld [vmem:[%s2408_s2 + $0x118] sm:$0xff]   ;;  %v1955_v56 = vld [vmem:[%s2408_s2 + $0x150] sm:$0xff]   ;;  %v1959_v60 = vld [vmem:[%s2408_s2 + $0x148] sm:$0xff]  }
  0x1f   : > { %1732 = vmatpush3.bf16.msra.mxu0 %v1915_v18  ;;  %v1954_v55 = vld [vmem:[%s2408_s2 + $0x198] sm:$0xff]   ;;  %v1956_v57 = vld [vmem:[%s2408_s2 + $0x1d0] sm:$0xff]   ;;  %v1960_v61 = vld [vmem:[%s2408_s2 + $0x1c8] sm:$0xff]  }
  0x20   : > { %1754 = vmatpush3.bf16.msra.mxu1 %v1916_v19  ;;  %1733 = vmatprep.subr.bf16.mxu0 %v1917_v20  ;;  %v1957_v58 = vld [vmem:[%s2408_s2 + $0x110] sm:$0xff]   ;;  %v1961_v62 = vld [vmem:[%s2408_s2 + $0x108] sm:$0xff]   ;;  %v1963_v0 = vld [vmem:[%s2408_s2 + $0x140] sm:$0xff]  }
  0x21   : > { %1755 = vmatprep.subr.bf16.mxu1 %v1918_v21  ;;  %v1958_v59 = vld [vmem:[%s2408_s2 + $0x190] sm:$0xff]   ;;  %v1962_v63 = vld [vmem:[%s2408_s2 + $0x188] sm:$0xff]   ;;  %v1964_v1 = vld [vmem:[%s2408_s2 + $0x1c0] sm:$0xff]  }
  0x22   : > { %v1965_v2 = vld [vmem:[%s2408_s2 + $0x100] sm:$0xff]   ;;  %v1967_v4 = vld [vmem:[%s2186_s27 + $0x10] ss:$36 sps:$4 sm:$0xff]   ;;  %v1970_v6 = vld [vmem:[%s2186_s27 + $0x18] ss:$36 sps:$4 sm:$0xff]  }
  0x23   : > { %1734 = vmatpush3.bf16.msra.mxu0 %v1919_v22  ;;  %v1966_v3 = vld [vmem:[%s2408_s2 + $0x180] sm:$0xff]   ;;  %v1969_v5 = vld [vmem:[%s2186_s27 + $0x14] ss:$36 sps:$4 sm:$0xff]   ;;  %v1977_v13 = vld [vmem:[%s2408_s2 + $0x228] sm:$0xff]  }
  0x24   : > { %1756 = vmatpush3.bf16.msra.mxu1 %v1920_v23  ;;  %1735 = vmatprep.subr.bf16.mxu0 %v1921_v24  ;;  %v1972_v8 = vld [vmem:[%s2186_s27 + $0x1c] ss:$36 sps:$4 sm:$0xff]   ;;  %v1975_v11 = vld [vmem:[%s2408_s2 + $0x230] sm:$0xff]   ;;  %v1978_v14 = vld [vmem:[%s2409_s3 + $0x28] sm:$0xff]  }
  0x25   : > { %1757 = vmatprep.subr.bf16.mxu1 %v1922_v25  ;;  %v1973_v9 = vld [vmem:[%s2408_s2 + $0x238] sm:$0xff]   ;;  %v1976_v12 = vld [vmem:[%s2409_s3 + $0x30] sm:$0xff]   ;;  %v1979_v15 = vld [vmem:[%s2408_s2 + $0x220] sm:$0xff]  }
  0x26   : > { %v1974_v10 = vld [vmem:[%s2409_s3 + $0x38] sm:$0xff]   ;;  %v1980_v16 = vld [vmem:[%s2409_s3 + $0x20] sm:$0xff]   ;;  %v1983_v19 = vld [vmem:[%s2408_s2 + $0x210] sm:$0xff]  }
  0x27   : > { %1736 = vmatpush3.bf16.msra.mxu0 %v1923_v26  ;;  %v1981_v17 = vld [vmem:[%s2408_s2 + $0x218] sm:$0xff]   ;;  %v1984_v20 = vld [vmem:[%s2409_s3 + $0x10] sm:$0xff]   ;;  %v1985_v21 = vld [vmem:[%s2408_s2 + $0x208] sm:$0xff]  }
  0x28   : > { %1758 = vmatpush3.bf16.msra.mxu1 %v1924_v27  ;;  %1737 = vmatprep.subr.bf16.mxu0 %v1925_v28  ;;  %v1982_v18 = vld [vmem:[%s2409_s3 + $0x18] sm:$0xff]   ;;  %v1986_v22 = vld [vmem:[%s2409_s3 + $0x8] sm:$0xff]   ;;  %v1987_v23 = vld [vmem:[%s2408_s2 + $0x200] sm:$0xff]  }
  0x29   : > { %1759 = vmatprep.subr.bf16.mxu1 %v1926_v29  ;;  %v1988_v24 = vld [vmem:[%s2409_s3] sm:$0xff]  }
  0x2a   : > { %v1989_v25 = vld [vmem:[%s2186_s27 + $0x20] ss:$36 sps:$4 sm:$0xff]   ;;  %s1720_s27 = sshll.u32 %s2156_s23, 4 }
  0x2b   : > { %1738 = vmatpush3.bf16.msra.mxu0 %v1927_v30  ;;  %v1990_v26 = vld [vmem:[%s401_s29] sm:$0xff]   ;;  %s421_s29 = scalar_lea.vmem %s2413_s7, %s1720_s27  ;;  %s411_s15 = scalar_lea.vmem %s2410_s4, %s1720_s27 }
  0x2c   : > { %1760 = vmatpush3.bf16.msra.mxu1 %v1928_v31  ;;  %1767 = vmatprep.subr.bf16.mxu0 %v1935_v36 }
  0x2d   : > { %1789 = vmatprep.subr.bf16.mxu1 %v1936_v37 }
  0x2e   : > { %1089 = vmatmul.mubr.bf16.vlgmr.msra.gmra.mxu0 %v1929_v32 }
  0x2f   : > { %1130 = vmatmul.mubr.bf16.vlgmr.msra.gmra.mxu1 %v1932_v34  ;;  %1768 = vmatpush3.bf16.msra.mxu0 %v1937_v38 }
  0x30   : > { %1790 = vmatpush3.bf16.msra.mxu1 %v1938_v39  ;;  %1769 = vmatprep.subr.bf16.mxu0 %v1939_v40 }
  0x31   : > { %1791 = vmatprep.subr.bf16.mxu1 %v1940_v41  ;;  %1170 = vmatprep.mubr.bf16.mxu0 %v1969_v5 }
  0x32   : > { %1211 = vmatprep.mubr.bf16.mxu1 %v1972_v8 }
  0x33   : > { %1770 = vmatpush3.bf16.msra.mxu0 %v1941_v42 }
  0x34   : > { %1792 = vmatpush3.bf16.msra.mxu1 %v1942_v43  ;;  %1771 = vmatprep.subr.bf16.mxu0 %v1943_v44 }
  0x35   : > { %1793 = vmatprep.subr.bf16.mxu1 %v1944_v45 }
  0x37   : > { %1772 = vmatpush3.bf16.msra.mxu0 %v1945_v46 }
  0x38   : > { %1794 = vmatpush3.bf16.msra.mxu1 %v1946_v47  ;;  %1773 = vmatprep.subr.bf16.mxu0 %v1947_v48 }
  0x39   : > { %1795 = vmatprep.subr.bf16.mxu1 %v1948_v49 }
  0x3b   : > { %1774 = vmatpush3.bf16.msra.mxu0 %v1949_v50 }
  0x3c   : > { %1796 = vmatpush3.bf16.msra.mxu1 %v1950_v51  ;;  %1775 = vmatprep.subr.bf16.mxu0 %v1951_v52 }
  0x3d   : > { %1797 = vmatprep.subr.bf16.mxu1 %v1952_v53 }
  0x3f   : > { %1776 = vmatpush3.bf16.msra.mxu0 %v1953_v54 }
  0x40   : > { %1798 = vmatpush3.bf16.msra.mxu1 %v1954_v55  ;;  %1777 = vmatprep.subr.bf16.mxu0 %v1955_v56 }
  0x41   : > { %1799 = vmatprep.subr.bf16.mxu1 %v1956_v57 }
  0x43   : > { %1778 = vmatpush3.bf16.msra.mxu0 %v1957_v58 }
  0x44   : > { %1800 = vmatpush3.bf16.msra.mxu1 %v1958_v59  ;;  %1779 = vmatprep.subr.bf16.mxu0 %v1959_v60 }
  0x45   : > { %1801 = vmatprep.subr.bf16.mxu1 %v1960_v61 }
  0x47   : > { %1780 = vmatpush3.bf16.msra.mxu0 %v1961_v62 }
  0x48   : > { %1802 = vmatpush3.bf16.msra.mxu1 %v1962_v63  ;;  %1781 = vmatprep.subr.bf16.mxu0 %v1963_v0 }
  0x49   : > { %1803 = vmatprep.subr.bf16.mxu1 %v1964_v1 }
  0x4b   : > { %1782 = vmatpush3.bf16.msra.mxu0 %v1965_v2 }
  0x4c   : > { %1804 = vmatpush3.bf16.msra.mxu1 %v1966_v3  ;;  %1829 = vmatprep.subr.bf16.mxu0 %v2015_v7  ;;  %v2017_v3 = vmov (%p1378_p5), 0.0  }
  0x4d   : > { %1849 = vmatprep.subr.bf16.mxu1 %v2015_v7  ;;  %1384 = vst [vmem:[%s2411_s5] sm:$0x1] (%p1378_p5), %v2017_v3  ;;  %1385 = vst [vmem:[%s2412_s6] sm:$0x1] (%p1378_p5), %v2017_v3 }
  0x4e   : > { %1171 = vmatmul.mubr.bf16.vlgmr.msra.gmra.mxu0 %v1967_v4  ;;  %1386 = vst [vmem:[%s2414_s8] sm:$0x1] (%p1378_p5), %v2017_v3  ;;  %1387 = vst [vmem:[%s2415_s9] sm:$0x1] (%p1378_p5), %v2017_v3 }
  0x4f   : > { %1845 = vmatprep.mubr.msk.bf16.mxu0 %vm2016_vm0, %v2015_v7  ;;  %1212 = vmatmul.mubr.bf16.vlgmr.msra.gmra.mxu1 %v1970_v6 }
  0x50   : > { %1830 = vmatpush3.bf16.msra.mxu0 %v1973_v9  ;;  %1850 = vmatpush3.bf16.msra.mxu1 %v1974_v10 }
  0x51   : > { %1831 = vmatprep.subr.bf16.mxu0 %v2015_v7  ;;  %1851 = vmatprep.subr.bf16.mxu1 %v2015_v7 }
  0x52   : > { %1865 = vmatprep.mubr.msk.bf16.mxu1 %vm2016_vm0, %v2015_v7 }
  0x54   : > { %1832 = vmatpush3.bf16.msra.mxu0 %v1975_v11  ;;  %1852 = vmatpush3.bf16.msra.mxu1 %v1976_v12 }
  0x55   : > { %1833 = vmatprep.subr.bf16.mxu0 %v2015_v7  ;;  %1853 = vmatprep.subr.bf16.mxu1 %v2015_v7 }
  0x58   : > { %1834 = vmatpush3.bf16.msra.mxu0 %v1977_v13  ;;  %1854 = vmatpush3.bf16.msra.mxu1 %v1978_v14 }
  0x59   : > { %1835 = vmatprep.subr.bf16.mxu0 %v2015_v7  ;;  %1855 = vmatprep.subr.bf16.mxu1 %v2015_v7 }
  0x5c   : > { %1836 = vmatpush3.bf16.msra.mxu0 %v1979_v15  ;;  %1856 = vmatpush3.bf16.msra.mxu1 %v1980_v16 }
  0x5d   : > { %1837 = vmatprep.subr.bf16.mxu0 %v2015_v7  ;;  %1857 = vmatprep.subr.bf16.mxu1 %v2015_v7 }
  0x60   : > { %1838 = vmatpush3.bf16.msra.mxu0 %v1981_v17  ;;  %1858 = vmatpush3.bf16.msra.mxu1 %v1982_v18 }
  0x61   : > { %1839 = vmatprep.subr.bf16.mxu0 %v2015_v7  ;;  %1859 = vmatprep.subr.bf16.mxu1 %v2015_v7 }
  0x64   : > { %1840 = vmatpush3.bf16.msra.mxu0 %v1983_v19  ;;  %1860 = vmatpush3.bf16.msra.mxu1 %v1984_v20 }
  0x65   : > { %1841 = vmatprep.subr.bf16.mxu0 %v2015_v7  ;;  %1861 = vmatprep.subr.bf16.mxu1 %v2015_v7 }
  0x68   : > { %1842 = vmatpush3.bf16.msra.mxu0 %v1985_v21  ;;  %1862 = vmatpush3.bf16.msra.mxu1 %v1986_v22 }
  0x69   : > { %1843 = vmatprep.subr.bf16.mxu0 %v2015_v7  ;;  %1863 = vmatprep.subr.bf16.mxu1 %v2015_v7 }
  0x6c   : > { %1844 = vmatpush3.bf16.msra.mxu0 %v1987_v23  ;;  %1864 = vmatpush3.bf16.msra.mxu1 %v1988_v24 }
  0x6f   : > { %1846 = vmatmul.mubr.bf16.vlgmr.msra.gmra.mxu0 %v1989_v25  ;;  %1866 = vmatmul.mubr.bf16.vlgmr.msra.gmra.mxu1 %v1990_v26 }
  0xee   : > { %v1739_v27 = vpop.f32.mrf.mxu0 }
  0xef   : > { %v1761_v29 = vpop.f32.mrf.mxu1 }
  0xf0   : > { %v1740_v28 = vpop.f32.mrf.mxu0 }
  0xf1   : > { %v1762_v31 = vpop.f32.mrf.mxu1  ;;  %v1741_v39 = vadd.f32 %v1740_v28, %v1739_v27 }
  0xf2   : > { %v1742_v30 = vpop.f32.mrf.mxu0  ;;  %v1763_v40 = vadd.f32 %v1762_v31, %v1761_v29 }
  0xf3   : > { %v1764_v33 = vpop.f32.mrf.mxu1 }
  0xf4   : > { %v1743_v32 = vpop.f32.mrf.mxu0  ;;  %v1132_v44 = vadd.f32 %v1763_v40, %v1741_v39 }
  0xf5   : > { %v1765_v35 = vpop.f32.mrf.mxu1  ;;  %v1744_v45 = vadd.f32 %v1743_v32, %v1742_v30 }
  0xf6   : > { %v1766_v46 = vadd.f32 %v1765_v35, %v1764_v33 }
  0xf8   : > { %v1135_v50 = vadd.f32 %v1766_v46, %v1744_v45 }
 0x10e   : > { %v1783_v34 = vpop.f32.mrf.mxu0 }
 0x10f   : > { %v1805_v37 = vpop.f32.mrf.mxu1 }
 0x110   : > { %v1784_v36 = vpop.f32.mrf.mxu0 }
 0x111   : > { %v1806_v41 = vpop.f32.mrf.mxu1  ;;  %v1785_v42 = vadd.f32 %v1784_v36, %v1783_v34 }
 0x112   : > { %v1786_v38 = vpop.f32.mrf.mxu0  ;;  %v1807_v51 = vadd.f32 %v1806_v41, %v1805_v37 }
 0x113   : > { %v1808_v47 = vpop.f32.mrf.mxu1  ;;  %v1173_v48 = vadd.f32 %v1785_v42, %v1132_v44 }
 0x114   : > { %v1787_v43 = vpop.f32.mrf.mxu0 }
 0x115   : > { %v1788_v49 = vadd.f32 %v1787_v43, %v1786_v38  ;;  %v1809_v52 = vpop.f32.mrf.mxu1  ;;  %v1214_v54 = vadd.f32 %v1807_v51, %v1173_v48 }
 0x116   : > { %v1810_v56 = vadd.f32 %v1809_v52, %v1808_v47 }
 0x117   : > { %v1176_v53 = vadd.f32 %v1788_v49, %v1135_v50 }
 0x119   : > { %v1217_v61 = vadd.f32 %v1810_v56, %v1176_v53 }
 0x12f   : > { %v1254_v55 = vpop.f32.mrf.mxu0  ;;  %v1367_v58 = vpop.f32.mrf.mxu1 }
 0x130   : > { %v1255_v57 = vadd.f32 %v1254_v55, %v1214_v54  ;;  %1376 = vst [vmem:[%s421_s29] sm:$0xff] %v1367_v58 }
 0x131   : > { %v1847_v59 = vpop.f32.mrf.mxu0  ;;  %v1867_v60 = vpop.f32.mrf.mxu1 }
 0x132   : > { %1374 = vst [vmem:[%s411_s15] sm:$0xff] %v1255_v57  ;;  %1383 = sbr.rel (!%p1378_p5) target bundleno = 311 (0x137), region = 40 }
 0x133   : > { %v1257_v62 = vpop.f32.mrf.mxu0  ;;  %v1370_v0 = vpop.f32.mrf.mxu1 }
 0x134   : > { %v1258_v63 = vadd.f32 %v1257_v62, %v1217_v61  ;;  %1377 = vst [vmem:[%s421_s29 + $0x8] sm:$0xff] %v1370_v0 }
 0x135   : > { %v1848_v1 = vpop.f32.mrf.mxu0  ;;  %v1868_v2 = vpop.f32.mrf.mxu1 }
 0x136   : > { %1375 = vst [vmem:[%s411_s15 + $0x8] sm:$0xff] %v1258_v63 }
 0x137 PF: > { %v1389_v4 = vadd.f32 %v1258_v63, %v1255_v57  ;;  %v1399_v5 = vmul.f32 %v1255_v57, %v1255_v57  ;;  %v1400_v6 = vmul.f32 %v1258_v63, %v1258_v63  ;;  %v1411_v7 = vadd.f32 %v1370_v0, %v1367_v58  ;;  %v1388_v29 = vld [vmem:[%s2411_s5] sm:$0x1] }
 0x138   : > { %v1421_v8 = vmul.f32 %v1367_v58, %v1367_v58  ;;  %v1422_v9 = vmul.f32 %v1370_v0, %v1370_v0  ;;  %v1410_v30 = vld [vmem:[%s2414_s8] sm:$0x1] }
 0x139   : > { %v1390_v10 = vrot.slane %v1389_v4, 4  ;;  %v1401_v11 = vadd.f32 %v1400_v6, %v1399_v5  ;;  %v1412_v12 = vrot.slane %v1411_v7, 4  ;;  %v1398_v35 = vld [vmem:[%s2412_s6] sm:$0x1] }
 0x13a   : > { %v1423_v13 = vadd.f32 %v1422_v9, %v1421_v8  ;;  %v1420_v40 = vld [vmem:[%s2415_s9] sm:$0x1] }
 0x13b   : > { %v1391_v14 = vadd.f32 %v1390_v10, %v1389_v4  ;;  %v1402_v15 = vrot.slane %v1401_v11, 4  ;;  %v1413_v16 = vadd.f32 %v1412_v12, %v1411_v7 }
 0x13c   : > { %v1424_v17 = vrot.slane %v1423_v13, 4 }
 0x13d   : > { %v1392_v18 = vrot.slane %v1391_v14, 2  ;;  %v1403_v19 = vadd.f32 %v1402_v15, %v1401_v11  ;;  %v1414_v20 = vrot.slane %v1413_v16, 2 }
 0x13e   : > { %v1425_v21 = vadd.f32 %v1424_v17, %v1423_v13 }
 0x13f   : > { %v1393_v22 = vadd.f32 %v1392_v18, %v1391_v14  ;;  %v1404_v23 = vrot.slane %v1403_v19, 2  ;;  %v1415_v24 = vadd.f32 %v1414_v20, %v1413_v16 }
 0x140   : > { %v1426_v25 = vrot.slane %v1425_v21, 2 }
 0x141   : > { %v1394_v26 = vrot.slane %v1393_v22, 1  ;;  %v1405_v27 = vadd.f32 %v1404_v23, %v1403_v19  ;;  %v1416_v28 = vrot.slane %v1415_v24, 1 }
 0x142   : > { %v1427_v31 = vadd.f32 %v1426_v25, %v1425_v21 }
 0x143   : > { %v1395_v32 = vadd.f32 %v1394_v26, %v1393_v22  ;;  %v1406_v33 = vrot.slane %v1405_v27, 1  ;;  %v1417_v34 = vadd.f32 %v1416_v28, %v1415_v24 }
 0x144   : > { %v1428_v36 = vrot.slane %v1427_v31, 1 }
 0x145   : > { %v1396_v37 = vadd.f32 %v1395_v32, %v1388_v29  ;;  %v1407_v38 = vadd.f32 %v1406_v33, %v1405_v27  ;;  %v1418_v39 = vadd.f32 %v1417_v34, %v1410_v30 }
 0x146   : > { %v1429_v41 = vadd.f32 %v1428_v36, %v1427_v31 }
 0x147   : > { %1397 = vst [vmem:[%s2411_s5] sm:$0x1] %v1396_v37  ;;  %v1408_v42 = vadd.f32 %v1407_v38, %v1398_v35  ;;  %1419 = vst [vmem:[%s2414_s8] sm:$0x1] %v1418_v39 }
 0x148   : > { %v1430_v43 = vadd.f32 %v1429_v41, %v1420_v40 }
 0x149   : > { %1409 = vst [vmem:[%s2412_s6] sm:$0x1] %v1408_v42 }
 0x14a   : > { %1431 = vst [vmem:[%s2415_s9] sm:$0x1] %v1430_v43 }
 0x14b PF: > { %s20_s11 = sadd.s32 1, %s2013_s11   ;;  %s2416_s30 = smov %s2009_s10 }
 0x14c   : > { %p17_p6 = scmp.ge.s32.totalorder %s20_s11, 4   ;;  %s2417_s10 = smov %s2419_s12 }
 0x14e   :  { %19 = sbr.rel (!%p17_p6) target bundleno = 2 (0x2), region = 117 }

// kernel: _lambda_.23
= control target key start
LH: loop header
LB: loop body
LE: loop exit
PB: predicated region body
PF: predicated region fallthrough
CT: control target
= control target key end

     0   :  { %s511_s18 = smov 0   ;;  %s513_s19 = smov 0   ;;  %s556_s0 = inlined_call_operand.vmem [shape: f32[2,16,128], index: 0, kind: input, shape index: {}]   ;;  %s557_s1 = inlined_call_operand.vmem [shape: f32[1,128], index: 1, kind: input, shape index: {}]   ;;  %s558_s2 = inlined_call_operand.vmem [shape: f32[1,128], index: 2, kind: input, shape index: {}]   ;;  %s559_s3 = inlined_call_operand.vmem [shape: f32[1,128], index: 3, kind: input, shape index: {}]   ;;  %s560_s4 = inlined_call_operand.vmem [shape: f32[1,128], index: 4, kind: input, shape index: {}]   ;;  %s561_s5 = inlined_call_operand.vmem [shape: bf16[2,16,128], index: 5, kind: output, shape index: {}]  }
   0x1   :  { %s515_s20 = smov 0  }
   0x2 LB: > { %s27_s21 = sadd.s32 1, %s475_s19  ;;  %p411_p0 = scmp.ge.s32.totalorder %s479_s20, 1  ;;  %s479_s20 = sphi %s515_s20, %s15_s20   ;;  %s475_s19 = sphi %s513_s19, %s563_s19   ;;  %s471_s18 = sphi %s511_s18, %s562_s18  }
   0x3   : > { %p29_p1 = scmp.ge.s32.totalorder %s27_s21, 2  ;;  %p208_p2 = scmp.lt.s32.totalorder %s479_s20, 3 }
   0x5   : > { %s565_s21 = smov (%p29_p1, %s27_s21), 0  ;;  %p209_p3 = pnand %p411_p0, %p208_p2 }
   0x6   : > { %p245_p4 = scmp.lt.s32.totalorder (!%p209_p3), %s471_s18, 1 }
   0x7   : > { %212 = sbr.rel (%p209_p3) target bundleno = 48 (0x30), region = 40 }
   0xc   : > { %v264_v0 = vld [vmem:[%s557_s1] sm:$0x1]  ;;  %v275_v6 = vlaneseq  ;;  %s567_s18 = smov (!%p245_p4, %s471_s18), 1 }
   0xd   : > { %v265_v1 = vld [vmem:[%s558_s2] sm:$0x1]  ;;  %v266_v2 = vmul.f32 0.03125, %v264_v0  ;;  %s422_s26 = sshll.u32 %s567_s18, 4  ;;  %s423_s9 = sshll.u32 %s567_s18, 3 }
   0xe   : > { %v267_v3 = vmul.f32 0.03125, %v265_v1  ;;  %v276_v8 = vshrl.u32 %v275_v6, 7  ;;  %s252_s29 = scalar_lea.vmem %s556_s0, %s422_s26  ;;  %v416_v17 = vld [vmem:[%s559_s3] ss:$0 sm:$0xff]  ;;  %s262_s12 = scalar_lea.vmem %s561_s5, %s423_s9 }
   0xf   : > { %v268_v4 = vmul.f32 %v266_v2, %v266_v2  ;;  %v272_v11 = vld [vmem:[%s252_s29] sm:$0xff]  ;;  %v273_v12 = vld [vmem:[%s252_s29 + $0x8] sm:$0xff] }
  0x10   : > { %v277_v9 = vsub.s32 0, %v276_v8  ;;  %v417_v20 = vld [vmem:[%s560_s4] ss:$0 sm:$0xff] }
  0x11   : > { %v269_v5 = vsub.f32 %v267_v3, %v268_v4 }
  0x12   : > { %v278_v10 = vrot.slane %v266_v2, %v277_v9 }
  0x13   : > { %v270_v7 = vadd.f32 1e-05, %v269_v5 }
  0x14   : > { %v280_v13 = vsub.f32 %v272_v11, %v278_v10  ;;  %v281_v14 = vsub.f32 %v273_v12, %v278_v10 }
  0x15   : > { %455 = vrsqrt.f32 %v270_v7 }
  0x22   : > { %v456_v15 = vpop.eup %455 }
  0x23   : > { %v286_v16 = vrot.slane %v456_v15, %v277_v9 }
  0x25   : > { %v288_v18 = vmul.f32 %v286_v16, %v280_v13  ;;  %v289_v19 = vmul.f32 %v286_v16, %v281_v14 }
  0x27   : > { %v297_v21 = vmul.f32 %v416_v17, %v288_v18  ;;  %v298_v22 = vmul.f32 %v416_v17, %v289_v19 }
  0x29   : > { %v306_v23 = vadd.f32 %v417_v20, %v297_v21  ;;  %v307_v24 = vadd.f32 %v417_v20, %v298_v22 }
  0x2b   : > { %v308_v25 = vmax.f32 %v306_v23, 0.0  ;;  %v309_v26 = vmax.f32 %v307_v24, 0.0 }
  0x2d   : > { %v429_v27 = vpack.c.bf16 %v309_v26, %v308_v25 }
  0x2f   : > { %430 = vst [vmem:[%s262_s12] sm:$0xff] %v429_v27  }
  0x30 PF: > { %s15_s20 = sadd.s32 1, %s479_s20   ;;  %s562_s18 = smov %s475_s19 }
  0x31   : > { %p12_p5 = scmp.ge.s32.totalorder %s15_s20, 4   ;;  %s563_s19 = smov %s565_s21 }
  0x33   :  { %14 = sbr.rel (!%p12_p5) target bundleno = 2 (0x2), region = 70 }

// kernel: _lambda_.25
= control target key start
LH: loop header
LB: loop body
LE: loop exit
PB: predicated region body
PF: predicated region fallthrough
CT: control target
= control target key end

     0   :  { %s753_s30 = smov 0   ;;  %s937_s0 = inlined_call_operand.vmem [shape: f32[2,1,128], index: 0, kind: input, shape index: {}]   ;;  %s938_s1 = inlined_call_operand.vmem [shape: f32[1,128], index: 1, kind: input, shape index: {}]   ;;  %s939_s2 = inlined_call_operand.vmem [shape: f32[1,128], index: 2, kind: input, shape index: {}]   ;;  %s940_s3 = inlined_call_operand.vmem [shape: f32[1,128], index: 3, kind: input, shape index: {}]   ;;  %s941_s4 = inlined_call_operand.vmem [shape: f32[1,128], index: 4, kind: input, shape index: {}]   ;;  %s942_s5 = inlined_call_operand.vmem [shape: f32[128,128], index: 5, kind: input, shape index: {}]   ;;  %s943_s6 = inlined_call_operand.vmem [shape: f32[1,128], index: 6, kind: input, shape index: {}]   ;;  %s944_s7 = inlined_call_operand.vmem [shape: f32[128,128], index: 7, kind: input, shape index: {}]   ;;  %s945_s8 = inlined_call_operand.vmem [shape: f32[1,128], index: 8, kind: input, shape index: {}]   ;;  %s946_s9 = inlined_call_operand.vmem [shape: f32[2,1,128], index: 9, kind: output, shape index: {}]  }
   0x1 LB: > { %s565_s10 = sadd.s32 4294967295, %s699_s30   ;;  %p569_p0 = scmp.ge.s32.totalorder %s699_s30, 1  ;;  %s699_s30 = sphi %s753_s30, %s19_s30  }
   0x2   : > { %p285_p1 = scmp.lt.s32.totalorder %s699_s30, 3 }
   0x4   : > { %p286_p2 = pnand %p569_p0, %p285_p1 }
   0x5   : > { %p787_p3 = scmp.lt.s32.totalorder (!%p286_p2), %s565_s10, 1 }
   0x6   : > { %289 = sbr.rel (%p286_p2) target bundleno = 469 (0x1d5), region = 56 }
   0xb   : > { %v354_v0 = vld [vmem:[%s942_s5 + $0x78] sm:$0xff]  ;;  %v701_v1 = vmov 0.0   ;;  %v353_v2 = vld [vmem:[%s942_s5 + $0x70] sm:$0xff]  ;;  %vm702_vm0 = vmmov 0   ;;  %v352_v3 = vld [vmem:[%s942_s5 + $0x68] sm:$0xff]  ;;  %s949_s10 = smov (!%p787_p3, %s565_s10), 1 }
   0xc   : > { %607 = vmatprep.subr.mxu0 %v701_v1  ;;  %639 = vmatprep.mubr.msk.f32.mxu0 %vm702_vm0, %v701_v1  ;;  %v351_v4 = vld [vmem:[%s942_s5 + $0x60] sm:$0xff]  ;;  %v350_v9 = vld [vmem:[%s942_s5 + $0x58] sm:$0xff]  ;;  %v441_v11 = vld [vmem:[%s944_s7 + $0x70] sm:$0xff]  ;;  %s319_s25 = scalar_lea.vmem %s937_s0, %s949_s10  ;;  %s322_s17 = scalar_lea.vmem %s946_s9, %s949_s10 }
   0xd   : > { %608 = vmatpush3.msra.mxu0 %v354_v0  ;;  %642 = vmatprep.subr.mxu1 %v701_v1  ;;  %v323_v5 = vld [vmem:[%s938_s1] sm:$0x1]  ;;  %v442_v10 = vld [vmem:[%s944_s7 + $0x78] sm:$0xff]  ;;  %v349_v13 = vld [vmem:[%s942_s5 + $0x50] sm:$0xff] }
   0xe   : > { %609 = vmatprep.subr.mxu0 %v701_v1  ;;  %674 = vmatprep.mubr.msk.f32.mxu1 %vm702_vm0, %v701_v1  ;;  %v324_v6 = vld [vmem:[%s939_s2] sm:$0x1]  ;;  %v791_v7 = vmul.f32 0.03125, %v323_v5  ;;  %v440_v14 = vld [vmem:[%s944_s7 + $0x68] sm:$0xff]  ;;  %v438_v20 = vld [vmem:[%s944_s7 + $0x58] sm:$0xff] }
   0xf   : > { %610 = vmatpush3.msra.mxu0 %v353_v2  ;;  %v326_v8 = vmul.f32 0.03125, %v324_v6  ;;  %643 = vmatpush3.msra.mxu1 %v442_v10  ;;  %v348_v16 = vld [vmem:[%s942_s5 + $0x48] sm:$0xff]  ;;  %v439_v17 = vld [vmem:[%s944_s7 + $0x60] sm:$0xff]  ;;  %v346_v21 = vld [vmem:[%s942_s5 + $0x38] sm:$0xff] }
  0x10   : > { %611 = vmatprep.subr.mxu0 %v701_v1  ;;  %v327_v12 = vmul.f32 %v791_v7, %v791_v7  ;;  %644 = vmatprep.subr.mxu1 %v701_v1  ;;  %v347_v19 = vld [vmem:[%s942_s5 + $0x40] sm:$0xff]  ;;  %v437_v22 = vld [vmem:[%s944_s7 + $0x50] sm:$0xff]  ;;  %v436_v25 = vld [vmem:[%s944_s7 + $0x48] sm:$0xff] }
  0x11   : > { %612 = vmatpush3.msra.mxu0 %v352_v3  ;;  %645 = vmatpush3.msra.mxu1 %v441_v11  ;;  %v345_v23 = vld [vmem:[%s942_s5 + $0x30] sm:$0xff]  ;;  %v331_v24 = vld [vmem:[%s319_s25] sm:$0x1]  ;;  %v344_v26 = vld [vmem:[%s942_s5 + $0x28] sm:$0xff] }
  0x12   : > { %613 = vmatprep.subr.mxu0 %v701_v1  ;;  %v328_v15 = vsub.f32 %v326_v8, %v327_v12  ;;  %646 = vmatprep.subr.mxu1 %v701_v1  ;;  %v435_v27 = vld [vmem:[%s944_s7 + $0x40] sm:$0xff]  ;;  %v332_v28 = vmul.f32 0.0625, %v331_v24  ;;  %v434_v30 = vld [vmem:[%s944_s7 + $0x38] sm:$0xff]  ;;  %v433_v32 = vld [vmem:[%s944_s7 + $0x30] sm:$0xff] }
  0x13   : > { %614 = vmatpush3.msra.mxu0 %v351_v4  ;;  %647 = vmatpush3.msra.mxu1 %v440_v14  ;;  %v343_v29 = vld [vmem:[%s942_s5 + $0x20] sm:$0xff]  ;;  %v342_v31 = vld [vmem:[%s942_s5 + $0x18] sm:$0xff]  ;;  %v341_v34 = vld [vmem:[%s942_s5 + $0x10] sm:$0xff] }
  0x14   : > { %615 = vmatprep.subr.mxu0 %v701_v1  ;;  %v329_v18 = vadd.f32 1e-05, %v328_v15  ;;  %648 = vmatprep.subr.mxu1 %v701_v1  ;;  %v333_v33 = vsub.f32 %v332_v28, %v791_v7  ;;  %v432_v35 = vld [vmem:[%s944_s7 + $0x28] sm:$0xff]  ;;  %v335_v38 = vld [vmem:[%s940_s3] sm:$0x1]  ;;  %v430_v43 = vld [vmem:[%s944_s7 + $0x18] sm:$0xff] }
  0x15   : > { %616 = vmatpush3.msra.mxu0 %v350_v9  ;;  %649 = vmatpush3.msra.mxu1 %v439_v17  ;;  %v340_v37 = vld [vmem:[%s942_s5 + $0x8] sm:$0xff]  ;;  %v431_v39 = vld [vmem:[%s944_s7 + $0x20] sm:$0xff]  ;;  %v429_v46 = vld [vmem:[%s944_s7 + $0x10] sm:$0xff] }
  0x16   : > { %617 = vmatprep.subr.mxu0 %v701_v1  ;;  %687 = vrsqrt.f32 %v329_v18  ;;  %650 = vmatprep.subr.mxu1 %v701_v1  ;;  %v339_v41 = vld [vmem:[%s942_s5] sm:$0xff]  ;;  %v428_v47 = vld [vmem:[%s944_s7 + $0x8] sm:$0xff] }
  0x17   : > { %618 = vmatpush3.msra.mxu0 %v349_v13  ;;  %651 = vmatpush3.msra.mxu1 %v438_v20  ;;  %v337_v42 = vld [vmem:[%s941_s4] sm:$0x1] }
  0x18   : > { %619 = vmatprep.subr.mxu0 %v701_v1  ;;  %652 = vmatprep.subr.mxu1 %v701_v1  ;;  %v427_v48 = vld [vmem:[%s944_s7] sm:$0xff] }
  0x19   : > { %620 = vmatpush3.msra.mxu0 %v348_v16  ;;  %653 = vmatpush3.msra.mxu1 %v437_v22  ;;  %v355_v49 = vld [vmem:[%s943_s6] sm:$0x1] }
  0x1a   : > { %621 = vmatprep.subr.mxu0 %v701_v1  ;;  %654 = vmatprep.subr.mxu1 %v701_v1  ;;  %v443_v54 = vld [vmem:[%s945_s8] sm:$0x1] }
  0x1b   : > { %622 = vmatpush3.msra.mxu0 %v347_v19  ;;  %655 = vmatpush3.msra.mxu1 %v436_v25 }
  0x1c   : > { %623 = vmatprep.subr.mxu0 %v701_v1  ;;  %656 = vmatprep.subr.mxu1 %v701_v1 }
  0x1d   : > { %624 = vmatpush3.msra.mxu0 %v346_v21  ;;  %657 = vmatpush3.msra.mxu1 %v435_v27 }
  0x1e   : > { %625 = vmatprep.subr.mxu0 %v701_v1  ;;  %658 = vmatprep.subr.mxu1 %v701_v1 }
  0x1f   : > { %626 = vmatpush3.msra.mxu0 %v345_v23  ;;  %659 = vmatpush3.msra.mxu1 %v434_v30 }
  0x20   : > { %627 = vmatprep.subr.mxu0 %v701_v1  ;;  %660 = vmatprep.subr.mxu1 %v701_v1 }
  0x21   : > { %628 = vmatpush3.msra.mxu0 %v344_v26  ;;  %661 = vmatpush3.msra.mxu1 %v433_v32 }
  0x22   : > { %629 = vmatprep.subr.mxu0 %v701_v1  ;;  %662 = vmatprep.subr.mxu1 %v701_v1 }
  0x23   : > { %630 = vmatpush3.msra.mxu0 %v343_v29  ;;  %v688_v36 = vpop.eup %687  ;;  %663 = vmatpush3.msra.mxu1 %v432_v35 }
  0x24   : > { %631 = vmatprep.subr.mxu0 %v701_v1  ;;  %v334_v40 = vmul.f32 %v688_v36, %v333_v33  ;;  %664 = vmatprep.subr.mxu1 %v701_v1 }
  0x25   : > { %632 = vmatpush3.msra.mxu0 %v342_v31  ;;  %665 = vmatpush3.msra.mxu1 %v431_v39 }
  0x26   : > { %633 = vmatprep.subr.mxu0 %v701_v1  ;;  %v336_v44 = vmul.f32 %v335_v38, %v334_v40  ;;  %666 = vmatprep.subr.mxu1 %v701_v1 }
  0x27   : > { %634 = vmatpush3.msra.mxu0 %v341_v34  ;;  %667 = vmatpush3.msra.mxu1 %v430_v43 }
  0x28   : > { %635 = vmatprep.subr.mxu0 %v701_v1  ;;  %v338_v45 = vadd.f32 %v337_v42, %v336_v44  ;;  %668 = vmatprep.subr.mxu1 %v701_v1 }
  0x29   : > { %636 = vmatpush3.msra.mxu0 %v340_v37  ;;  %669 = vmatpush3.msra.mxu1 %v429_v46 }
  0x2a   : > { %637 = vmatprep.subr.mxu0 %v701_v1  ;;  %670 = vmatprep.subr.mxu1 %v701_v1 }
  0x2b   : > { %638 = vmatpush3.msra.mxu0 %v339_v41  ;;  %671 = vmatpush3.msra.mxu1 %v428_v47 }
  0x2c   : > { %640 = vmatmul.mubr.f32.vlgmr.msra.gmra.mxu0 %v338_v45  ;;  %672 = vmatprep.subr.mxu1 %v701_v1 }
  0x2d   : > { %673 = vmatpush3.msra.mxu1 %v427_v48 }
  0xec   : > { %v422_v50 = vpop.f32.mrf.mxu0 }
  0xed   : > { %v423_v51 = vadd.f32 %v422_v50, %v355_v49 }
  0xee   : > { %v641_v52 = vpop.f32.mrf.mxu0 }
  0xef   : > { %v426_v53 = vmax.f32 %v423_v51, 0.0 }
  0xf1   : > { %675 = vmatmul.mubr.f32.vlgmr.msra.gmra.mxu1 %v426_v53 }
 0x1b1   : > { %v510_v55 = vpop.f32.mrf.mxu1 }
 0x1b2   : > { %v511_v56 = vadd.f32 %v510_v55, %v443_v54 }
 0x1b3   : > { %v676_v57 = vpop.f32.mrf.mxu1 }
 0x1b4   : > { %v570_v58 = vmul.f32 -1.442695, %v511_v56 }
 0x1b6   : > { %689 = vpow2.f32 %v570_v58 }
 0x1c3   : > { %v690_v59 = vpop.eup %689 }
 0x1c4   : > { %v517_v60 = vadd.f32 1.0, %v690_v59 }
 0x1c6   : > { %691 = vrcp.f32 %v517_v60 }
 0x1d3   : > { %v692_v61 = vpop.eup %691 }
 0x1d4   : > { %520 = vst [vmem:[%s322_s17] sm:$0x1] %v692_v61 }
 0x1d5 PF: > { %s19_s30 = sadd.s32 1, %s699_s30  }
 0x1d6   : > { %p16_p4 = scmp.ge.s32.totalorder %s19_s30, 4  }
 0x1d8   :  { %18 = sbr.rel (!%p16_p4) target bundleno = 1 (0x1), region = 86 }

// kernel: _lambda_.26
= control target key start
LH: loop header
LB: loop body
LE: loop exit
PB: predicated region body
PF: predicated region fallthrough
CT: control target
= control target key end

     0   :  { %s826_s17 = smov 0   ;;  %s828_s18 = smov 0   ;;  %s898_s0 = inlined_call_operand.vmem [shape: f32[2,16,128], index: 0, kind: input, shape index: {}]   ;;  %s899_s1 = inlined_call_operand.vmem [shape: f32[1,128], index: 1, kind: input, shape index: {}]   ;;  %s900_s2 = inlined_call_operand.vmem [shape: f32[1,128], index: 2, kind: input, shape index: {}]   ;;  %s901_s3 = inlined_call_operand.vmem [shape: f32[1,128], index: 3, kind: input, shape index: {}]   ;;  %s902_s4 = inlined_call_operand.vmem [shape: f32[1,128], index: 4, kind: input, shape index: {}]   ;;  %s903_s5 = inlined_call_operand.vmem [shape: f32[2,1,128], index: 5, kind: input, shape index: {}]   ;;  %s904_s6 = inlined_call_operand.vmem [shape: f32[2,16,128], index: 6, kind: input, shape index: {}]   ;;  %s905_s7 = inlined_call_operand.vmem [shape: f32[1,128], index: 7, kind: input, shape index: {}]   ;;  %s906_s8 = inlined_call_operand.vmem [shape: f32[1,128], index: 8, kind: input, shape index: {}]   ;;  %s907_s9 = inlined_call_operand.vmem [shape: f32[1,128], index: 9, kind: input, shape index: {}]   ;;  %s908_s10 = inlined_call_operand.vmem [shape: f32[1,128], index: 10, kind: input, shape index: {}]   ;;  %s909_s11 = inlined_call_operand.vmem [shape: f32[2,16,128], index: 11, kind: output, shape index: {}]  }
   0x1   :  { %s830_s19 = smov 0  }
   0x2 LB: > { %s33_s20 = sadd.s32 1, %s760_s18  ;;  %p697_p0 = scmp.ge.s32.totalorder %s764_s19, 1  ;;  %s764_s19 = sphi %s830_s19, %s21_s19   ;;  %s760_s18 = sphi %s828_s18, %s911_s18   ;;  %s756_s17 = sphi %s826_s17, %s910_s17  }
   0x3   : > { %p35_p1 = scmp.ge.s32.totalorder %s33_s20, 2  ;;  %p383_p2 = scmp.lt.s32.totalorder %s764_s19, 3 }
   0x5   : > { %s913_s20 = smov (%p35_p1, %s33_s20), 0  ;;  %p384_p3 = pnand %p697_p0, %p383_p2 }
   0x6   : > { %p444_p4 = scmp.lt.s32.totalorder (!%p384_p3), %s756_s17, 1 }
   0x7   : > { %387 = sbr.rel (%p384_p3) target bundleno = 50 (0x32), region = 64 }
   0xc   : > { %v476_v0 = vld [vmem:[%s899_s1] sm:$0x1]  ;;  %v487_v10 = vlaneseq  ;;  %s915_s17 = smov (!%p444_p4, %s756_s17), 1 }
   0xd   : > { %v477_v1 = vld [vmem:[%s900_s2] sm:$0x1]  ;;  %v478_v2 = vmul.f32 0.03125, %v476_v0  ;;  %s859_s29 = sshll.u32 %s915_s17, 4  ;;  %s455_s25 = scalar_lea.vmem %s903_s5, %s915_s17 }
   0xe   : > { %v479_v3 = vmul.f32 0.03125, %v477_v1  ;;  %v520_v4 = vld [vmem:[%s905_s7] sm:$0x1]  ;;  %v488_v14 = vshrl.u32 %v487_v10, 7  ;;  %s451_s13 = scalar_lea.vmem %s898_s0, %s859_s29  ;;  %s464_s16 = scalar_lea.vmem %s904_s6, %s859_s29 }
   0xf   : > { %v521_v5 = vld [vmem:[%s906_s8] sm:$0x1]  ;;  %v480_v6 = vmul.f32 %v478_v2, %v478_v2  ;;  %v522_v7 = vmul.f32 0.03125, %v520_v4  ;;  %v485_v19 = vld [vmem:[%s451_s13 + $0x8] sm:$0xff]  ;;  %s474_s15 = scalar_lea.vmem %s909_s11, %s859_s29 }
  0x10   : > { %v523_v8 = vmul.f32 0.03125, %v521_v5  ;;  %v489_v16 = vsub.s32 0, %v488_v14  ;;  %v484_v18 = vld [vmem:[%s451_s13] sm:$0xff]  ;;  %v529_v22 = vld [vmem:[%s464_s16 + $0x8] sm:$0xff] }
  0x11   : > { %v481_v9 = vsub.f32 %v479_v3, %v480_v6  ;;  %v524_v11 = vmul.f32 %v522_v7, %v522_v7  ;;  %v528_v21 = vld [vmem:[%s464_s16] sm:$0xff] }
  0x12   : > { %v490_v17 = vrot.slane %v478_v2, %v489_v16  ;;  %v534_v20 = vrot.slane %v522_v7, %v489_v16  ;;  %v704_v30 = vld [vmem:[%s901_s3] ss:$0 sm:$0xff] }
  0x13   : > { %v482_v12 = vadd.f32 1e-05, %v481_v9  ;;  %v525_v13 = vsub.f32 %v523_v8, %v524_v11  ;;  %v705_v34 = vld [vmem:[%s902_s4] ss:$0 sm:$0xff] }
  0x14   : > { %v492_v23 = vsub.f32 %v484_v18, %v490_v17  ;;  %v493_v24 = vsub.f32 %v485_v19, %v490_v17  ;;  %v536_v27 = vsub.f32 %v528_v21, %v534_v20  ;;  %v537_v28 = vsub.f32 %v529_v22, %v534_v20  ;;  %v706_v35 = vld [vmem:[%s907_s9] ss:$0 sm:$0xff] }
  0x15   : > { %738 = vrsqrt.f32 %v482_v12  ;;  %v526_v15 = vadd.f32 1e-05, %v525_v13  ;;  %v707_v40 = vld [vmem:[%s908_s10] ss:$0 sm:$0xff] }
  0x16   : > { %v708_v41 = vld [vmem:[%s455_s25] ss:$0 sm:$0xff] }
  0x17   : > { %740 = vrsqrt.f32 %v526_v15 }
  0x22   : > { %v739_v25 = vpop.eup %738 }
  0x23   : > { %v498_v26 = vrot.slane %v739_v25, %v489_v16 }
  0x24   : > { %v741_v29 = vpop.eup %740 }
  0x25   : > { %v500_v31 = vmul.f32 %v498_v26, %v492_v23  ;;  %v501_v32 = vmul.f32 %v498_v26, %v493_v24  ;;  %v542_v33 = vrot.slane %v741_v29, %v489_v16 }
  0x27   : > { %v509_v36 = vmul.f32 %v704_v30, %v500_v31  ;;  %v544_v37 = vmul.f32 %v542_v33, %v536_v27  ;;  %v510_v38 = vmul.f32 %v704_v30, %v501_v32  ;;  %v545_v39 = vmul.f32 %v542_v33, %v537_v28 }
  0x29   : > { %v518_v42 = vadd.f32 %v705_v34, %v509_v36  ;;  %v553_v43 = vmul.f32 %v706_v35, %v544_v37  ;;  %v519_v44 = vadd.f32 %v705_v34, %v510_v38  ;;  %v554_v45 = vmul.f32 %v706_v35, %v545_v39 }
  0x2b   : > { %v562_v46 = vadd.f32 %v707_v40, %v553_v43  ;;  %v571_v47 = vmul.f32 %v708_v41, %v518_v42  ;;  %v563_v48 = vadd.f32 %v707_v40, %v554_v45  ;;  %v572_v49 = vmul.f32 %v708_v41, %v519_v44 }
  0x2d   : > { %v573_v50 = vadd.f32 %v571_v47, %v562_v46  ;;  %v574_v51 = vadd.f32 %v572_v49, %v563_v48 }
  0x2f   : > { %v575_v52 = vmax.f32 %v573_v50, 0.0  ;;  %v576_v53 = vmax.f32 %v574_v51, 0.0 }
  0x31   : > { %577 = vst [vmem:[%s474_s15] sm:$0xff] %v575_v52  ;;  %578 = vst [vmem:[%s474_s15 + $0x8] sm:$0xff] %v576_v53 }
  0x32 PF: > { %s21_s19 = sadd.s32 1, %s764_s19   ;;  %s910_s17 = smov %s760_s18 }
  0x33   : > { %p18_p5 = scmp.ge.s32.totalorder %s21_s19, 4   ;;  %s911_s18 = smov %s913_s20 }
  0x35   :  { %20 = sbr.rel (!%p18_p5) target bundleno = 2 (0x2), region = 100 }

// kernel: _lambda_.24
= control target key start
LH: loop header
LB: loop body
LE: loop exit
PB: predicated region body
PF: predicated region fallthrough
CT: control target
= control target key end

     0   :  { %s1655_s18 = smov 0   ;;  %s1657_s19 = smov 0   ;;  %s1963_s0 = inlined_call_operand.vmem [shape: bf16[2,16,1152], index: 0, kind: input, shape index: {}]   ;;  %s1964_s1 = inlined_call_operand.vmem [shape: bf16[1152,128], index: 1, kind: input, shape index: {}]   ;;  %s1965_s2 = inlined_call_operand.vmem [shape: f32[2,16,128], index: 2, kind: output, shape index: {0}]   ;;  %s1966_s3 = inlined_call_operand.vmem [shape: f32[1,128], index: 3, kind: output, shape index: {1}]   ;;  %s1967_s4 = inlined_call_operand.vmem [shape: f32[1,128], index: 4, kind: output, shape index: {2}]   ;;  %s1968_s5 = inlined_call_operand.vmem [shape: f32[2,1,128], index: 5, kind: output, shape index: {3}]  }
   0x1   :  { %s1659_s20 = smov 0  }
   0x2 LB: > { %s28_s21 = sadd.s32 1, %s1616_s19  ;;  %p1278_p0 = scmp.ge.s32.totalorder %s1620_s20, 1  ;;  %s1620_s20 = sphi %s1659_s20, %s16_s20   ;;  %s1616_s19 = sphi %s1657_s19, %s1970_s19   ;;  %s1612_s18 = sphi %s1655_s18, %s1969_s18  }
   0x3   : > { %p30_p1 = scmp.ge.s32.totalorder %s28_s21, 2  ;;  %p206_p2 = scmp.lt.s32.totalorder %s1620_s20, 3 }
   0x5   : > { %s1972_s21 = smov (%p30_p1, %s28_s21), 0  ;;  %p207_p3 = pnand %p1278_p0, %p206_p2 }
   0x6   : > { %p247_p4 = scmp.lt.s32.totalorder (!%p207_p3), %s1612_s18, 1  ;;  %p1110_p5 = scmp.eq.s32.totalorder (!%p207_p3), %s1612_s18, 0 }
   0x7   : > { %210 = sbr.rel (%p207_p3) target bundleno = 329 (0x149), region = 28 }
   0xc   : > { %v1513_v0 = vld [vmem:[%s1964_s1 + $0x78] sm:$0xff]   ;;  %s1686_s28 = scalar_select %p247_p4, %s1612_s18, 1  ;;  %v1517_v4 = vld [vmem:[%s1964_s1 + $0x70] sm:$0xff]   ;;  %v1521_v8 = vld [vmem:[%s1964_s1 + $0x68] sm:$0xff]   ;;  %vm1623_vm0 = vmmov 0  }
   0xd   : > { %v1514_v1 = vld [vmem:[%s1964_s1 + $0xf8] sm:$0xff]   ;;  %1368 = vmatprep.subr.bf16.mxu0 %v1513_v0  ;;  %v1518_v5 = vld [vmem:[%s1964_s1 + $0xf0] sm:$0xff]   ;;  %v1522_v9 = vld [vmem:[%s1964_s1 + $0xe8] sm:$0xff]  }
   0xe   : > { %v1515_v2 = vld [vmem:[%s1964_s1 + $0x38] sm:$0xff]   ;;  %1390 = vmatprep.subr.bf16.mxu1 %v1514_v1  ;;  %s1698_s10 = scalar_lea.vmem %s1968_s5, %s1686_s28  ;;  %v1519_v6 = vld [vmem:[%s1964_s1 + $0x30] sm:$0xff]   ;;  %v1523_v10 = vld [vmem:[%s1964_s1 + $0x28] sm:$0xff]   ;;  %s1485_s15 = smul.u32 72, %s1686_s28 }
   0xf   : > { %v1516_v3 = vld [vmem:[%s1964_s1 + $0xb8] sm:$0xff]   ;;  %1369 = vmatpush3.bf16.msra.mxu0 %v1515_v2  ;;  %v1520_v7 = vld [vmem:[%s1964_s1 + $0xb0] sm:$0xff]   ;;  %v1524_v11 = vld [vmem:[%s1964_s1 + $0xa8] sm:$0xff]  }
  0x10   : > { %1391 = vmatpush3.bf16.msra.mxu1 %v1516_v3  ;;  %1370 = vmatprep.subr.bf16.mxu0 %v1517_v4  ;;  %v1525_v12 = vld [vmem:[%s1964_s1 + $0x60] sm:$0xff]   ;;  %v1529_v16 = vld [vmem:[%s1964_s1 + $0x58] sm:$0xff]   ;;  %v1533_v20 = vld [vmem:[%s1964_s1 + $0x50] sm:$0xff]   ;;  %s1779_s6 = scalar_lea.vmem %s1963_s0, %s1485_s15 }
  0x11   : > { %1392 = vmatprep.subr.bf16.mxu1 %v1518_v5  ;;  %v1526_v13 = vld [vmem:[%s1964_s1 + $0xe0] sm:$0xff]   ;;  %v1530_v17 = vld [vmem:[%s1964_s1 + $0xd8] sm:$0xff]   ;;  %v1534_v21 = vld [vmem:[%s1964_s1 + $0xd0] sm:$0xff]  }
  0x12   : > { %v1527_v14 = vld [vmem:[%s1964_s1 + $0x20] sm:$0xff]   ;;  %v1531_v18 = vld [vmem:[%s1964_s1 + $0x18] sm:$0xff]   ;;  %v1535_v22 = vld [vmem:[%s1964_s1 + $0x10] sm:$0xff]  }
  0x13   : > { %1371 = vmatpush3.bf16.msra.mxu0 %v1519_v6  ;;  %v1528_v15 = vld [vmem:[%s1964_s1 + $0xa0] sm:$0xff]   ;;  %v1532_v19 = vld [vmem:[%s1964_s1 + $0x98] sm:$0xff]   ;;  %v1536_v23 = vld [vmem:[%s1964_s1 + $0x90] sm:$0xff]   ;;  %v1622_v6 = vmov 0.0  }
  0x14   : > { %1393 = vmatpush3.bf16.msra.mxu1 %v1520_v7  ;;  %1372 = vmatprep.subr.bf16.mxu0 %v1521_v8  ;;  %v1537_v24 = vld [vmem:[%s1964_s1 + $0x48] sm:$0xff]   ;;  %v1541_v28 = vld [vmem:[%s1964_s1 + $0x40] sm:$0xff]   ;;  %v1551_v36 = vld [vmem:[%s1964_s1 + $0x178] sm:$0xff]  }
  0x15   : > { %1394 = vmatprep.subr.bf16.mxu1 %v1522_v9  ;;  %v1538_v25 = vld [vmem:[%s1964_s1 + $0xc8] sm:$0xff]   ;;  %v1542_v29 = vld [vmem:[%s1964_s1 + $0xc0] sm:$0xff]   ;;  %v1552_v37 = vld [vmem:[%s1964_s1 + $0x138] sm:$0xff]  }
  0x16   : > { %v1539_v26 = vld [vmem:[%s1964_s1 + $0x8] sm:$0xff]   ;;  %v1543_v30 = vld [vmem:[%s1964_s1] sm:$0xff]   ;;  %v1553_v38 = vld [vmem:[%s1964_s1 + $0x1f8] sm:$0xff]  }
  0x17   : > { %1373 = vmatpush3.bf16.msra.mxu0 %v1523_v10  ;;  %v1540_v27 = vld [vmem:[%s1964_s1 + $0x88] sm:$0xff]   ;;  %v1544_v31 = vld [vmem:[%s1964_s1 + $0x80] sm:$0xff]   ;;  %v1554_v39 = vld [vmem:[%s1964_s1 + $0x1b8] sm:$0xff]  }
  0x18   : > { %1395 = vmatpush3.bf16.msra.mxu1 %v1524_v11  ;;  %1374 = vmatprep.subr.bf16.mxu0 %v1525_v12  ;;  %v1545_v32 = vld [vmem:[%s1779_s6] ss:$36 sps:$4 sm:$0xff]   ;;  %v1548_v34 = vld [vmem:[%s1779_s6 + $0x8] ss:$36 sps:$4 sm:$0xff]   ;;  %v1555_v40 = vld [vmem:[%s1964_s1 + $0x170] sm:$0xff]  }
  0x19   : > { %1396 = vmatprep.subr.bf16.mxu1 %v1526_v13  ;;  %v1547_v33 = vld [vmem:[%s1779_s6 + $0x4] ss:$36 sps:$4 sm:$0xff]   ;;  %v1550_v35 = vld [vmem:[%s1779_s6 + $0xc] ss:$36 sps:$4 sm:$0xff]   ;;  %v1567_v52 = vld [vmem:[%s1964_s1 + $0x158] sm:$0xff]  }
  0x1a   : > { %935 = vmatprep.mubr.bf16.mxu0 %v1547_v33  ;;  %976 = vmatprep.mubr.bf16.mxu1 %v1550_v35  ;;  %v1556_v41 = vld [vmem:[%s1964_s1 + $0x130] sm:$0xff]   ;;  %v1559_v44 = vld [vmem:[%s1964_s1 + $0x168] sm:$0xff]   ;;  %v1563_v48 = vld [vmem:[%s1964_s1 + $0x160] sm:$0xff]  }
  0x1b   : > { %1375 = vmatpush3.bf16.msra.mxu0 %v1527_v14  ;;  %v1557_v42 = vld [vmem:[%s1964_s1 + $0x1f0] sm:$0xff]   ;;  %v1560_v45 = vld [vmem:[%s1964_s1 + $0x128] sm:$0xff]   ;;  %v1564_v49 = vld [vmem:[%s1964_s1 + $0x120] sm:$0xff]  }
  0x1c   : > { %1397 = vmatpush3.bf16.msra.mxu1 %v1528_v15  ;;  %1376 = vmatprep.subr.bf16.mxu0 %v1529_v16  ;;  %v1558_v43 = vld [vmem:[%s1964_s1 + $0x1b0] sm:$0xff]   ;;  %v1561_v46 = vld [vmem:[%s1964_s1 + $0x1e8] sm:$0xff]   ;;  %v1565_v50 = vld [vmem:[%s1964_s1 + $0x1e0] sm:$0xff]  }
  0x1d   : > { %1398 = vmatprep.subr.bf16.mxu1 %v1530_v17  ;;  %v1562_v47 = vld [vmem:[%s1964_s1 + $0x1a8] sm:$0xff]   ;;  %v1566_v51 = vld [vmem:[%s1964_s1 + $0x1a0] sm:$0xff]   ;;  %v1568_v53 = vld [vmem:[%s1964_s1 + $0x118] sm:$0xff]  }
  0x1e   : > { %v1569_v54 = vld [vmem:[%s1964_s1 + $0x1d8] sm:$0xff]   ;;  %v1571_v56 = vld [vmem:[%s1964_s1 + $0x150] sm:$0xff]   ;;  %v1575_v60 = vld [vmem:[%s1964_s1 + $0x148] sm:$0xff]  }
  0x1f   : > { %1377 = vmatpush3.bf16.msra.mxu0 %v1531_v18  ;;  %v1570_v55 = vld [vmem:[%s1964_s1 + $0x198] sm:$0xff]   ;;  %v1572_v57 = vld [vmem:[%s1964_s1 + $0x110] sm:$0xff]   ;;  %v1576_v61 = vld [vmem:[%s1964_s1 + $0x108] sm:$0xff]  }
  0x20   : > { %1399 = vmatpush3.bf16.msra.mxu1 %v1532_v19  ;;  %1378 = vmatprep.subr.bf16.mxu0 %v1533_v20  ;;  %v1573_v58 = vld [vmem:[%s1964_s1 + $0x1d0] sm:$0xff]   ;;  %v1577_v62 = vld [vmem:[%s1964_s1 + $0x1c8] sm:$0xff]   ;;  %v1579_v0 = vld [vmem:[%s1964_s1 + $0x140] sm:$0xff]  }
  0x21   : > { %1400 = vmatprep.subr.bf16.mxu1 %v1534_v21  ;;  %v1574_v59 = vld [vmem:[%s1964_s1 + $0x190] sm:$0xff]   ;;  %v1578_v63 = vld [vmem:[%s1964_s1 + $0x188] sm:$0xff]   ;;  %v1580_v1 = vld [vmem:[%s1964_s1 + $0x100] sm:$0xff]  }
  0x22   : > { %v1581_v2 = vld [vmem:[%s1964_s1 + $0x1c0] sm:$0xff]   ;;  %v1582_v3 = vld [vmem:[%s1779_s6 + $0x10] ss:$36 sps:$4 sm:$0xff]   ;;  %v1586_v7 = vld [vmem:[%s1779_s6 + $0x18] ss:$36 sps:$4 sm:$0xff]  }
  0x23   : > { %1379 = vmatpush3.bf16.msra.mxu0 %v1535_v22  ;;  %v1584_v4 = vld [vmem:[%s1779_s6 + $0x14] ss:$36 sps:$4 sm:$0xff]   ;;  %v1585_v5 = vld [vmem:[%s1964_s1 + $0x180] sm:$0xff]   ;;  %v1591_v11 = vld [vmem:[%s1964_s1 + $0x228] sm:$0xff]  }
  0x24   : > { %1401 = vmatpush3.bf16.msra.mxu1 %v1536_v23  ;;  %1380 = vmatprep.subr.bf16.mxu0 %v1537_v24  ;;  %v1588_v8 = vld [vmem:[%s1779_s6 + $0x1c] ss:$36 sps:$4 sm:$0xff]   ;;  %v1590_v10 = vld [vmem:[%s1964_s1 + $0x230] sm:$0xff]   ;;  %v1595_v15 = vld [vmem:[%s1964_s1 + $0x208] sm:$0xff]  }
  0x25   : > { %1402 = vmatprep.subr.bf16.mxu1 %v1538_v25  ;;  %v1589_v9 = vld [vmem:[%s1964_s1 + $0x238] sm:$0xff]   ;;  %v1592_v12 = vld [vmem:[%s1964_s1 + $0x220] sm:$0xff]   ;;  %v1594_v14 = vld [vmem:[%s1964_s1 + $0x210] sm:$0xff]  }
  0x26   : > { %v1593_v13 = vld [vmem:[%s1964_s1 + $0x218] sm:$0xff]   ;;  %v1596_v16 = vld [vmem:[%s1964_s1 + $0x200] sm:$0xff]  }
  0x27   : > { %1381 = vmatpush3.bf16.msra.mxu0 %v1539_v26  ;;  %v1597_v17 = vld [vmem:[%s1779_s6 + $0x20] ss:$36 sps:$4 sm:$0xff]   ;;  %s1366_s6 = sshll.u32 %s1686_s28, 4 }
  0x28   : > { %1403 = vmatpush3.bf16.msra.mxu1 %v1540_v27  ;;  %1382 = vmatprep.subr.bf16.mxu0 %v1541_v28  ;;  %s265_s26 = scalar_lea.vmem %s1965_s2, %s1366_s6 }
  0x29   : > { %1404 = vmatprep.subr.bf16.mxu1 %v1542_v29 }
  0x2b   : > { %1383 = vmatpush3.bf16.msra.mxu0 %v1543_v30 }
  0x2c   : > { %1405 = vmatpush3.bf16.msra.mxu1 %v1544_v31  ;;  %1412 = vmatprep.subr.bf16.mxu0 %v1551_v36 }
  0x2d   : > { %1434 = vmatprep.subr.bf16.mxu1 %v1553_v38 }
  0x2e   : > { %936 = vmatmul.mubr.bf16.vlgmr.msra.gmra.mxu0 %v1545_v32 }
  0x2f   : > { %977 = vmatmul.mubr.bf16.vlgmr.msra.gmra.mxu1 %v1548_v34  ;;  %1413 = vmatpush3.bf16.msra.mxu0 %v1552_v37 }
  0x30   : > { %1435 = vmatpush3.bf16.msra.mxu1 %v1554_v39  ;;  %1414 = vmatprep.subr.bf16.mxu0 %v1555_v40 }
  0x31   : > { %1436 = vmatprep.subr.bf16.mxu1 %v1557_v42  ;;  %1017 = vmatprep.mubr.bf16.mxu0 %v1584_v4 }
  0x32   : > { %1058 = vmatprep.mubr.bf16.mxu1 %v1588_v8 }
  0x33   : > { %1415 = vmatpush3.bf16.msra.mxu0 %v1556_v41 }
  0x34   : > { %1437 = vmatpush3.bf16.msra.mxu1 %v1558_v43  ;;  %1416 = vmatprep.subr.bf16.mxu0 %v1559_v44 }
  0x35   : > { %1438 = vmatprep.subr.bf16.mxu1 %v1561_v46 }
  0x37   : > { %1417 = vmatpush3.bf16.msra.mxu0 %v1560_v45 }
  0x38   : > { %1439 = vmatpush3.bf16.msra.mxu1 %v1562_v47  ;;  %1418 = vmatprep.subr.bf16.mxu0 %v1563_v48 }
  0x39   : > { %1440 = vmatprep.subr.bf16.mxu1 %v1565_v50 }
  0x3b   : > { %1419 = vmatpush3.bf16.msra.mxu0 %v1564_v49 }
  0x3c   : > { %1441 = vmatpush3.bf16.msra.mxu1 %v1566_v51  ;;  %1420 = vmatprep.subr.bf16.mxu0 %v1567_v52 }
  0x3d   : > { %1442 = vmatprep.subr.bf16.mxu1 %v1569_v54  ;;  %v1624_v54 = vmov (%p1110_p5), 0.0  }
  0x3e   : > { %1116 = vst [vmem:[%s1966_s3] sm:$0x1] (%p1110_p5), %v1624_v54  ;;  %1117 = vst [vmem:[%s1967_s4] sm:$0x1] (%p1110_p5), %v1624_v54 }
  0x3f   : > { %1421 = vmatpush3.bf16.msra.mxu0 %v1568_v53 }
  0x40   : > { %1443 = vmatpush3.bf16.msra.mxu1 %v1570_v55  ;;  %1422 = vmatprep.subr.bf16.mxu0 %v1571_v56 }
  0x41   : > { %1444 = vmatprep.subr.bf16.mxu1 %v1573_v58 }
  0x43   : > { %1423 = vmatpush3.bf16.msra.mxu0 %v1572_v57 }
  0x44   : > { %1445 = vmatpush3.bf16.msra.mxu1 %v1574_v59  ;;  %1424 = vmatprep.subr.bf16.mxu0 %v1575_v60 }
  0x45   : > { %1446 = vmatprep.subr.bf16.mxu1 %v1577_v62 }
  0x47   : > { %1425 = vmatpush3.bf16.msra.mxu0 %v1576_v61 }
  0x48   : > { %1447 = vmatpush3.bf16.msra.mxu1 %v1578_v63  ;;  %1426 = vmatprep.subr.bf16.mxu0 %v1579_v0 }
  0x49   : > { %1448 = vmatprep.subr.bf16.mxu1 %v1581_v2 }
  0x4b   : > { %1427 = vmatpush3.bf16.msra.mxu0 %v1580_v1 }
  0x4c   : > { %1465 = vmatprep.subr.bf16.mxu0 %v1622_v6  ;;  %1449 = vmatpush3.bf16.msra.mxu1 %v1585_v5 }
  0x4e   : > { %1018 = vmatmul.mubr.bf16.vlgmr.msra.gmra.mxu0 %v1582_v3 }
  0x4f   : > { %1481 = vmatprep.mubr.msk.bf16.mxu0 %vm1623_vm0, %v1622_v6  ;;  %1466 = vmatpush3.bf16.msra.mxu0 %v1589_v9 }
  0x50   : > { %1059 = vmatmul.mubr.bf16.vlgmr.msra.gmra.mxu1 %v1586_v7  ;;  %1467 = vmatprep.subr.bf16.mxu0 %v1622_v6 }
  0x53   : > { %1468 = vmatpush3.bf16.msra.mxu0 %v1590_v10 }
  0x54   : > { %1469 = vmatprep.subr.bf16.mxu0 %v1622_v6 }
  0x57   : > { %1470 = vmatpush3.bf16.msra.mxu0 %v1591_v11 }
  0x58   : > { %1471 = vmatprep.subr.bf16.mxu0 %v1622_v6 }
  0x5b   : > { %1472 = vmatpush3.bf16.msra.mxu0 %v1592_v12 }
  0x5c   : > { %1473 = vmatprep.subr.bf16.mxu0 %v1622_v6 }
  0x5f   : > { %1474 = vmatpush3.bf16.msra.mxu0 %v1593_v13 }
  0x60   : > { %1475 = vmatprep.subr.bf16.mxu0 %v1622_v6 }
  0x63   : > { %1476 = vmatpush3.bf16.msra.mxu0 %v1594_v14 }
  0x64   : > { %1477 = vmatprep.subr.bf16.mxu0 %v1622_v6 }
  0x67   : > { %1478 = vmatpush3.bf16.msra.mxu0 %v1595_v15 }
  0x68   : > { %1479 = vmatprep.subr.bf16.mxu0 %v1622_v6 }
  0x6b   : > { %1480 = vmatpush3.bf16.msra.mxu0 %v1596_v16 }
  0x6e   : > { %1482 = vmatmul.mubr.bf16.vlgmr.msra.gmra.mxu0 %v1597_v17 }
  0xee   : > { %v1384_v18 = vpop.f32.mrf.mxu0 }
  0xef   : > { %v1406_v19 = vpop.f32.mrf.mxu1 }
  0xf0   : > { %v1385_v20 = vpop.f32.mrf.mxu0 }
  0xf1   : > { %v1407_v21 = vpop.f32.mrf.mxu1  ;;  %v1386_v31 = vadd.f32 %v1385_v20, %v1384_v18 }
  0xf2   : > { %v1387_v22 = vpop.f32.mrf.mxu0  ;;  %v1408_v32 = vadd.f32 %v1407_v21, %v1406_v19 }
  0xf3   : > { %v1409_v23 = vpop.f32.mrf.mxu1 }
  0xf4   : > { %v1388_v24 = vpop.f32.mrf.mxu0  ;;  %v979_v36 = vadd.f32 %v1408_v32, %v1386_v31 }
  0xf5   : > { %v1410_v26 = vpop.f32.mrf.mxu1  ;;  %v1389_v37 = vadd.f32 %v1388_v24, %v1387_v22 }
  0xf6   : > { %v1411_v38 = vadd.f32 %v1410_v26, %v1409_v23 }
  0xf8   : > { %v982_v43 = vadd.f32 %v1411_v38, %v1389_v37 }
 0x10e   : > { %v1428_v25 = vpop.f32.mrf.mxu0 }
 0x110   : > { %v1429_v27 = vpop.f32.mrf.mxu0  ;;  %v1450_v28 = vpop.f32.mrf.mxu1 }
 0x111   : > { %v1430_v33 = vadd.f32 %v1429_v27, %v1428_v25 }
 0x112   : > { %v1431_v29 = vpop.f32.mrf.mxu0  ;;  %v1451_v30 = vpop.f32.mrf.mxu1 }
 0x113   : > { %v1020_v39 = vadd.f32 %v1430_v33, %v979_v36  ;;  %v1452_v40 = vadd.f32 %v1451_v30, %v1450_v28 }
 0x114   : > { %v1432_v34 = vpop.f32.mrf.mxu0  ;;  %v1453_v35 = vpop.f32.mrf.mxu1 }
 0x115   : > { %v1433_v41 = vadd.f32 %v1432_v34, %v1431_v29  ;;  %v1061_v46 = vadd.f32 %v1452_v40, %v1020_v39 }
 0x116   : > { %v1454_v42 = vpop.f32.mrf.mxu1 }
 0x117   : > { %v1023_v44 = vadd.f32 %v1433_v41, %v982_v43  ;;  %v1455_v45 = vadd.f32 %v1454_v42, %v1453_v35 }
 0x119   : > { %v1064_v50 = vadd.f32 %v1455_v45, %v1023_v44 }
 0x12e   : > { %v1101_v47 = vpop.f32.mrf.mxu0 }
 0x12f   : > { %v1102_v48 = vadd.f32 %v1101_v47, %v1061_v46 }
 0x130   : > { %v1483_v49 = vpop.f32.mrf.mxu0 }
 0x131   : > { %1108 = vst [vmem:[%s265_s26] sm:$0xff] %v1102_v48  ;;  %1115 = sbr.rel (!%p1110_p5) target bundleno = 310 (0x136), region = 32 }
 0x132   : > { %v1104_v51 = vpop.f32.mrf.mxu0 }
 0x133   : > { %v1105_v52 = vadd.f32 %v1104_v51, %v1064_v50 }
 0x134   : > { %v1484_v53 = vpop.f32.mrf.mxu0 }
 0x135   : > { %1109 = vst [vmem:[%s265_s26 + $0x8] sm:$0xff] %v1105_v52 }
 0x136 PF: > { %1121 = vst [vmem:[%s1698_s10] sm:$0x1] %v1622_v6  ;;  %v1122_v55 = vadd.f32 %v1105_v52, %v1102_v48  ;;  %v1133_v56 = vmul.f32 %v1102_v48, %v1102_v48  ;;  %v1134_v57 = vmul.f32 %v1105_v52, %v1105_v52  ;;  %v1129_v4 = vld [vmem:[%s1966_s3] sm:$0x1] }
 0x137   : > { %v1132_v8 = vld [vmem:[%s1967_s4] sm:$0x1] }
 0x138   : > { %v1123_v58 = vrot.slane %v1122_v55, 4  ;;  %v1135_v59 = vadd.f32 %v1134_v57, %v1133_v56 }
 0x13a   : > { %v1124_v60 = vadd.f32 %v1123_v58, %v1122_v55  ;;  %v1136_v61 = vrot.slane %v1135_v59, 4 }
 0x13c   : > { %v1125_v62 = vrot.slane %v1124_v60, 2  ;;  %v1137_v63 = vadd.f32 %v1136_v61, %v1135_v59 }
 0x13d   : > { %v1144_v5 = vld [vmem:[%s1698_s10] sm:$0x1] }
 0x13e   : > { %v1126_v0 = vadd.f32 %v1125_v62, %v1124_v60  ;;  %v1138_v1 = vrot.slane %v1137_v63, 2 }
 0x140   : > { %v1127_v2 = vrot.slane %v1126_v0, 1  ;;  %v1139_v3 = vadd.f32 %v1138_v1, %v1137_v63 }
 0x142   : > { %v1128_v6 = vadd.f32 %v1127_v2, %v1126_v0  ;;  %v1140_v7 = vrot.slane %v1139_v3, 1 }
 0x144   : > { %v1130_v9 = vadd.f32 %v1129_v4, %v1128_v6  ;;  %v1141_v10 = vadd.f32 %v1140_v7, %v1139_v3  ;;  %v1145_v11 = vadd.f32 %v1144_v5, %v1128_v6 }
 0x146   : > { %1131 = vst [vmem:[%s1966_s3] sm:$0x1] %v1130_v9  ;;  %v1142_v12 = vadd.f32 %v1141_v10, %v1132_v8  ;;  %1146 = vst [vmem:[%s1698_s10] sm:$0x1] %v1145_v11 }
 0x148   : > { %1143 = vst [vmem:[%s1967_s4] sm:$0x1] %v1142_v12 }
 0x149 PF: > { %s16_s20 = sadd.s32 1, %s1620_s20   ;;  %s1969_s18 = smov %s1616_s19 }
 0x14a   : > { %p13_p6 = scmp.ge.s32.totalorder %s16_s20, 4   ;;  %s1970_s19 = smov %s1972_s21 }
 0x14c   :  { %15 = sbr.rel (!%p13_p6) target bundleno = 2 (0x2), region = 94 }

// kernel: _lambda_.27
= control target key start
LH: loop header
LB: loop body
LE: loop exit
PB: predicated region body
PF: predicated region fallthrough
CT: control target
= control target key end

     0   :  { %8 = vsyncpa [#allocation3], 0  ;;  %s666_s0 = inlined_call_operand.vmem [shape: f32[2,16,128], index: 0, kind: input, shape index: {}]   ;;  %s667_s1 = inlined_call_operand.vmem [shape: f32[128,128], index: 1, kind: input, shape index: {}]   ;;  %s668_s2 = inlined_call_operand.vmem [shape: f32[1,128], index: 2, kind: input, shape index: {}]   ;;  %s669_s3 = inlined_call_operand.hbm [shape: f32[2,1,128], index: 3, kind: output, shape index: {}]  }
   0x1   :  { %10 = vsyncpa [#allocation3 + $0x1], 0  ;;  %s522_s12 = smov 0   ;;  %s524_s13 = smov 0  }
   0x2   :  { %s526_s14 = smov 0   ;;  %s528_s15 = smov 0  }
   0x3 LB: > { %s543_s16 = sadd.s32 4294967295, %s497_s15   ;;  %s334_s17 = sadd.s32 4294967294, %s497_s15   ;;  %s497_s15 = sphi %s528_s15, %s675_s15   ;;  %s493_s14 = sphi %s526_s14, %s674_s14   ;;  %s489_s13 = sphi %s524_s13, %s673_s13   ;;  %s485_s12 = sphi %s522_s12, %s672_s12  }
   0x4   : > { %s547_s18 = sadd.s32 1, %s497_s15   ;;  %s91_s19 = sadd.s32 1, %s493_s14 }
   0x5   : > { %s88_s20 = ssub.s32 %s497_s15, %s547_s18  ;;  %p101_p0 = scmp.ne.s32.totalorder %s493_s14, %s489_s13 }
   0x6   : > { %p89_p1 = scmp.eq.s32.totalorder %s88_s20, 0  ;;  %p102_p2 = scmp.eq.s32.totalorder %s543_s16, 1 }
   0x7   : > { %p107_p3 = scmp.ne.s32.totalorder %s489_s13, %s485_s12  ;;  %p108_p4 = scmp.eq.s32.totalorder %s334_s17, 1 }
   0x8   : > { %s558_s21 = scalar_select %p89_p1, %s493_s14, %s91_s19  }
   0x9   : > { %p560_p5 = por %p102_p2, %p101_p0  ;;  %p564_p6 = por %p108_p4, %p107_p3 }
   0xa   : > { %p337_p7 = scmp.ge.s32.totalorder %s497_s15, 1  ;;  %p140_p8 = scmp.lt.s32.totalorder %s497_s15, 3 }
   0xc   : > { %p141_p9 = pnand %p337_p7, %p140_p8 }
   0xd   : > { %p163_p10 = scmp.lt.s32.totalorder (!%p141_p9), %s543_s16, 1  ;;  %s161_s25 = sand.u32 (!%p141_p9), 1, %s489_s13  }
   0xe   : > { %144 = sbr.rel (%p141_p9) target bundleno = 260 (0x104), region = 32  ;;  %s162_s29 = scalar_lea.vmem (!%p141_p9), [#allocation2], %s161_s25 }
   0xf   : > { %s279_s30 = sshll.u32 (!%p141_p9), %s162_s29, 4  ;;  %s267_s7 = scalar_lea.sflag (!%p141_p9), [#allocation3], %s161_s25  ;;  %s280_s30 = int_to_ptr.vmem [resolvable:$true] %s279_s30 }
  0x10   : > { %s437_s8 = scalar_lea.vmem (!%p141_p9), %s280_s30, 16 }
  0x11   : > { %p438_p11 = scmp.ne.s32.totalorder (!%p141_p9), %s280_s30, %s437_s8 }
  0x13   : > { %v193_v0 = vld [vmem:[%s667_s1 + $0x78] sm:$0xff]  ;;  %v499_v1 = vmov 0.0   ;;  %v192_v2 = vld [vmem:[%s667_s1 + $0x70] sm:$0xff]  ;;  %vm500_vm0 = vmmov 0   ;;  %s164_s28 = scalar_select %p163_p10, %s543_s16, 1  ;;  %v191_v3 = vld [vmem:[%s667_s1 + $0x68] sm:$0xff] }
  0x14   : > { %361 = vmatprep.subr.mxu0 %v499_v1  ;;  %393 = vmatprep.mubr.msk.f32.mxu0 %vm500_vm0, %v499_v1  ;;  %v190_v4 = vld [vmem:[%s667_s1 + $0x60] sm:$0xff]  ;;  %v189_v7 = vld [vmem:[%s667_s1 + $0x58] sm:$0xff]  ;;  %v188_v9 = vld [vmem:[%s667_s1 + $0x50] sm:$0xff]  ;;  %p439_p12 = pnand %p438_p11, %p560_p5 }
  0x15   : > { %362 = vmatpush3.msra.mxu0 %v193_v0  ;;  %s343_s4 = sshll.u32 %s164_s28, 4  ;;  %v187_v11 = vld [vmem:[%s667_s1 + $0x48] sm:$0xff]  ;;  %v186_v13 = vld [vmem:[%s667_s1 + $0x40] sm:$0xff]  ;;  %v185_v15 = vld [vmem:[%s667_s1 + $0x38] sm:$0xff]  ;;  %s340_s28 = sshll.u32 %s543_s16, 4 }
  0x16   : > { %363 = vmatprep.subr.mxu0 %v499_v1  ;;  %s167_s9 = scalar_lea.vmem %s666_s0, %s343_s4  ;;  %v184_v16 = vld [vmem:[%s667_s1 + $0x30] sm:$0xff]  ;;  %v183_v18 = vld [vmem:[%s667_s1 + $0x28] sm:$0xff]  ;;  %v182_v19 = vld [vmem:[%s667_s1 + $0x20] sm:$0xff]  ;;  %s631_s6 = scalar_lea.hbm %s669_s3, %s340_s28 }
  0x17   : > { %364 = vmatpush3.msra.mxu0 %v192_v2  ;;  %v168_v5 = vld [vmem:[%s167_s9] sm:$0xff]  ;;  %v169_v6 = vld [vmem:[%s167_s9 + $0x8] sm:$0xff]  ;;  %v181_v21 = vld [vmem:[%s667_s1 + $0x18] sm:$0xff]  ;;  %p440_p13 = pneg %p439_p12  ;;  %s501_s9 = smov [#allocation2]  }
  0x18   : > { %365 = vmatprep.subr.mxu0 %v499_v1  ;;  %v170_v8 = vadd.f32 %v169_v6, %v168_v5  ;;  %v180_v22 = vld [vmem:[%s667_s1 + $0x10] sm:$0xff]  ;;  %v179_v24 = vld [vmem:[%s667_s1 + $0x8] sm:$0xff]  ;;  %v178_v25 = vld [vmem:[%s667_s1] sm:$0xff]  ;;  %s441_s16 = sshll.u32 %s501_s9, 4  ;;  %s442_s16 = int_to_ptr.vmem [resolvable:$false] %s441_s16 }
  0x19   : > { %366 = vmatpush3.msra.mxu0 %v191_v3  ;;  %v194_v27 = vld [vmem:[%s668_s2] sm:$0x1]  ;;  %s443_s10 = scalar_lea.vmem %s442_s16, 32  ;;  %p444_p0 = scmp.lt.s32.totalorder %s280_s30, %s442_s16 }
  0x1a   : > { %367 = vmatprep.subr.mxu0 %v499_v1  ;;  %v171_v10 = vrot.slane %v170_v8, 4  ;;  %p445_p1 = scmp.lt.s32.totalorder %s443_s10, %s437_s8 }
  0x1b   : > { %368 = vmatpush3.msra.mxu0 %v190_v4 }
  0x1c   : > { %369 = vmatprep.subr.mxu0 %v499_v1  ;;  %v172_v12 = vadd.f32 %v171_v10, %v170_v8  ;;  %p446_p2 = por %p445_p1, %p444_p0 }
  0x1d   : > { %370 = vmatpush3.msra.mxu0 %v189_v7 }
  0x1e   : > { %371 = vmatprep.subr.mxu0 %v499_v1  ;;  %v173_v14 = vrot.slane %v172_v12, 2  ;;  %p447_p3 = pnand %p446_p2, %p440_p13 }
  0x1f   : > { %372 = vmatpush3.msra.mxu0 %v188_v9 }
  0x20   : > { %373 = vmatprep.subr.mxu0 %v499_v1  ;;  %v174_v17 = vadd.f32 %v173_v14, %v172_v12 }
  0x21   : > { %374 = vmatpush3.msra.mxu0 %v187_v11 }
  0x22   : > { %375 = vmatprep.subr.mxu0 %v499_v1  ;;  %v175_v20 = vrot.slane %v174_v17, 1 }
  0x23   : > { %376 = vmatpush3.msra.mxu0 %v186_v13 }
  0x24   : > { %377 = vmatprep.subr.mxu0 %v499_v1  ;;  %v176_v23 = vadd.f32 %v175_v20, %v174_v17 }
  0x25   : > { %378 = vmatpush3.msra.mxu0 %v185_v15 }
  0x26   : > { %379 = vmatprep.subr.mxu0 %v499_v1  ;;  %v177_v26 = vmul.f32 0.0625, %v176_v23 }
  0x27   : > { %380 = vmatpush3.msra.mxu0 %v184_v16 }
  0x28   : > { %381 = vmatprep.subr.mxu0 %v499_v1 }
  0x29   : > { %382 = vmatpush3.msra.mxu0 %v183_v18 }
  0x2a   : > { %383 = vmatprep.subr.mxu0 %v499_v1 }
  0x2b   : > { %384 = vmatpush3.msra.mxu0 %v182_v19 }
  0x2c   : > { %385 = vmatprep.subr.mxu0 %v499_v1 }
  0x2d   : > { %386 = vmatpush3.msra.mxu0 %v181_v21 }
  0x2e   : > { %387 = vmatprep.subr.mxu0 %v499_v1 }
  0x2f   : > { %388 = vmatpush3.msra.mxu0 %v180_v22 }
  0x30   : > { %389 = vmatprep.subr.mxu0 %v499_v1 }
  0x31   : > { %390 = vmatpush3.msra.mxu0 %v179_v24 }
  0x32   : > { %391 = vmatprep.subr.mxu0 %v499_v1 }
  0x33   : > { %392 = vmatpush3.msra.mxu0 %v178_v25 }
  0x34   : > { %394 = vmatmul.mubr.f32.vlgmr.msra.gmra.mxu0 %v177_v26 }
  0xf4   : > { %v261_v28 = vpop.f32.mrf.mxu0 }
  0xf5   : > { %v262_v29 = vadd.f32 %v261_v28, %v194_v27 }
  0xf6   : > { %v395_v30 = vpop.f32.mrf.mxu0 }
  0xf7   : > { %265 = vst [vmem:[%s162_s29] sm:$0x1] %v262_v29 }
  0xf8   : > { %450 = shalt.err (!%p447_p3)
}
  0xf9   : > { %s451_s11 = scalar_lea.hbm %s631_s6, 16  ;;  %s455_s20 = scalar_lea.hbm %s669_s3, 32 }
  0xfa   : > { %p452_p4 = scmp.ne.s32.totalorder %s631_s6, %s451_s11  ;;  %p456_p9 = scmp.lt.s32.totalorder %s631_s6, %s669_s3 }
  0xfb   : > { %p457_p10 = scmp.lt.s32.totalorder %s455_s20, %s451_s11 }
  0xfc   : > { %p453_p7 = pnand %p452_p4, %p560_p5 }
  0xfd   : > { %p458_p11 = por %p457_p10, %p456_p9 }
  0xfe   : > { %p454_p8 = pneg %p453_p7 }
 0x100   : > { %p459_p12 = pnand %p458_p11, %p454_p8 }
 0x102   : > { %462 = shalt.err (!%p459_p12)
}
 0x103   : > { %396 = dma.vmem_to_hbm [thread:$0]  (%p560_p5), %s280_s30, 16, %s631_s6, %s267_s7  }
 0x104 PF: > { %p402_p13 = scmp.ge.s32.totalorder %s497_s15, 2  ;;  %s291_s26 = sand.u32 1, %s485_s12  }
 0x105   : > { %s292_s27 = scalar_lea.sflag [#allocation3], %s291_s26 }
 0x106   : > { %p399_p0 = pnand %p402_p13, %p564_p6 }
 0x108   : > { %p400_p1 = pneg %p399_p0 }
 0x10a   : > { %480 = dma.done.wait (%p400_p1), %s292_s27, 16  }
 0x10b   : > { %482 = vsyncadd (%p400_p1), %s292_s27, 4294967280  ;;  %p13_p2 = scmp.ge.s32.totalorder %s547_s18, 4   ;;  %s672_s12 = smov %s489_s13 }
 0x10c   : > { %s673_s13 = smov %s493_s14  ;;  %s674_s14 = smov %s558_s21 }
 0x10d   : > { %s675_s15 = smov %s547_s18  ;;  %15 = sbr.rel (!%p13_p2) target bundleno = 3 (0x3), region = 67 }
 0x112   :  { %296 = vsyncpa [#allocation3], 1 }
 0x113   :  { %298 = vsyncpa [#allocation3 + $0x1], 1 }

</bundles_post_ra>
